<compile_context>
chip_gen: v5e
topology: v5e:2x2
jax: 0.10.0
libtpu: 0.0.40
codegen_flags: <defaults>
</compile_context>

<pallas_src>
import jax
import jax.numpy as jnp
from jax.experimental import pallas as pl
from jax.experimental.pallas import tpu as pltpu


def _round_up(x, m):
    return (x + m - 1) // m * m


def _skipgru_kernel(gi_ref, mix_ref, whh_ref, bhn_ref,
                    h_hist_ref, o_ref, h_scratch):
    """One (batch-block, time-block) grid step of the SkipGRU recurrence.

    gi_ref:     (TBB, TB, 3Hp) bf16/f32  precomputed x@W_ih^T + b_ih + [b_hr|b_hz|0]
    mix_ref:    (TBB, TB, 1)   f32
    whh_ref:    (Hp, 3Hp)      bf16/f32  W_hh^T, gate order r|z|n along 3Hp
    bhn_ref:    (1, Hp)        f32       b_hn only (must stay inside r*(...))
    h_hist_ref: (TBB, TB, Hp)  f32
    o_ref:      (TBB, Hp)      f32       resident across the time axis
    h_scratch:  (TBB, Hp)      f32       carried hidden state
    """
    t_blk = pl.program_id(1)
    n_t = pl.num_programs(1)
    TBB, TB, _ = gi_ref.shape
    Hp = h_scratch.shape[1]
    f32 = jnp.float32

    @pl.when(t_blk == 0)
    def _():
        h_scratch[...] = jnp.zeros_like(h_scratch)

    h = h_scratch[...]                                   # (TBB, Hp) f32

    # Loop-invariant hoists (JAX does not CSE broadcast_in_dim).
    whh = whh_ref[...]                                   # (Hp, 3Hp)
    bhn = jnp.broadcast_to(bhn_ref[...], (TBB, Hp))      # broadcast once

    # Statically unrolled time loop in sublane-dense groups of 8 steps: the gi
    # load and the history store each touch full (8,128) tiles (dense vld/vst).
    for g in range(TB // 8):
        i0 = g * 8
        gi_blk = gi_ref[:, i0:i0 + 8, :].astype(f32)     # (TBB, 8, 3Hp) dense load
        mix_blk = mix_ref[:, i0:i0 + 8, :]               # (TBB, 8, 1)
        hs = []
        for j in range(8):
            gi = gi_blk[:, j, :]                         # (TBB, 3Hp)
            m = mix_blk[:, j, :]                         # (TBB, 1)

            # Recurrent projection on the MXU (bf16 operands, f32 accumulation).
            gh = jnp.dot(h.astype(whh.dtype), whh,
                         preferred_element_type=f32)     # (TBB, 3Hp)

            r = jax.nn.sigmoid(gi[:, 0:Hp] + gh[:, 0:Hp])
            z = jax.nn.sigmoid(gi[:, Hp:2 * Hp] + gh[:, Hp:2 * Hp])
            n = jnp.tanh(gi[:, 2 * Hp:3 * Hp] + r * (gh[:, 2 * Hp:3 * Hp] + bhn))

            # Fused blends: (1-z)*n + z*h == n + z*(h-n);  g*m + h*(1-m) == h + m*(g-h).
            gru_out = n + z * (h - n)
            h = h + m * (gru_out - h)
            hs.append(h)

        h_hist_ref[:, i0:i0 + 8, :] = jnp.stack(hs, axis=1)   # one dense 8-sublane store

    h_scratch[...] = h

    @pl.when(t_blk == n_t - 1)
    def _():
        o_ref[...] = h                                   # single final-state store


def skip_gru_forward(x, mix, w_ih, w_hh, b_ih, b_hh, l=None, *,
                     time_block=32, batch_block=None,
                     matmul_dtype=jnp.bfloat16, gi_dtype=jnp.bfloat16):
    """SkipGRU.forward.  x: [B,T,N], mix: [B,T,1].  Returns (h [B,T,H], o [B,H])."""
    B, T, N = x.shape
    H = w_ih.shape[0] // 3
    f32 = jnp.float32

    # ---- TPU-friendly padded tile sizes ---------------------------------------
    Hp = _round_up(H, 128)                              # lane-aligned gates / history

    Tp8 = _round_up(T, 8)
    TB = min(_round_up(max(1, time_block), 8), Tp8)     # sublane-aligned time block

    Bp8 = _round_up(B, 8)
    if batch_block is None:
        TBB = min(128, Bp8)                             # fat M-dim for the recurrent matmul
        if Bp8 >= 32 and Bp8 // TBB < 2:
            TBB = _round_up((Bp8 + 1) // 2, 8)          # keep >=2 batch blocks (v7x: 2 TCs)
    else:
        TBB = min(_round_up(max(1, batch_block), 8), Bp8)

    # Auto-shrink tiles if the double-buffered VMEM working set would not fit.
    gi_isz = jnp.dtype(gi_dtype).itemsize
    w_isz = jnp.dtype(matmul_dtype).itemsize

    def _vmem_est(tbb, tb):
        return (2 * tbb * tb * 3 * Hp * gi_isz          # gi blocks (double-buffered)
                + 2 * tbb * tb * 128 * 4                # mix blocks (lane-padded)
                + 2 * tbb * tb * Hp * 4                 # history blocks
                + 2 * tbb * Hp * 4                      # final-state block
                + 2 * Hp * 3 * Hp * w_isz               # resident weights
                + tbb * Hp * 4)                         # hidden-state scratch

    VMEM_BLOCK_BUDGET = 40 * 1024 * 1024                # leaves headroom even on v7x (64 MiB)
    while _vmem_est(TBB, TB) > VMEM_BLOCK_BUDGET and TB > 8:
        TB = _round_up(TB // 2, 8)
    while _vmem_est(TBB, TB) > VMEM_BLOCK_BUDGET and TBB > 8:
        TBB = _round_up(TBB // 2, 8)

    Tp = _round_up(T, TB)
    Bp = _round_up(B, TBB)
    n_b, n_t = Bp // TBB, Tp // TB

    x = x.astype(f32)
    mix = mix.astype(f32)

    # ---- per-gate zero padding of the parameters (gate order r|z|n) -----------
    w_ih_p = jnp.zeros((3, Hp, N), f32).at[:, :H, :].set(w_ih.reshape(3, H, N).astype(f32))
    w_hh_p = jnp.zeros((3, Hp, Hp), f32).at[:, :H, :H].set(w_hh.reshape(3, H, H).astype(f32))
    b_ih_p = jnp.zeros((3, Hp), f32).at[:, :H].set(b_ih.reshape(3, H).astype(f32))
    b_hh_p = jnp.zeros((3, Hp), f32).at[:, :H].set(b_hh.reshape(3, H).astype(f32))

    # Fold b_ih fully and the r/z parts of b_hh into gi; only b_hn stays in-kernel.
    b_fold = b_ih_p.at[0].add(b_hh_p[0]).at[1].add(b_hh_p[1])     # (3, Hp)
    bhn = b_hh_p[2].reshape(1, Hp)

    # ---- hoisted input projection: one large bf16 [Bp*Tp, N] x [N, 3Hp] GEMM ---
    x_p = jnp.zeros((Bp, Tp, N), f32).at[:B, :T, :].set(x)
    wih_t = w_ih_p.reshape(3 * Hp, N).T                            # (N, 3Hp)
    gi = jnp.dot(x_p.reshape(Bp * Tp, N).astype(matmul_dtype),
                 wih_t.astype(matmul_dtype),
                 preferred_element_type=f32) + b_fold.reshape(1, 3 * Hp)
    gi = gi.reshape(Bp, Tp, 3 * Hp).astype(gi_dtype)               # narrow gi stream to HBM

    # Padded timesteps / batch rows get mix = 0  ->  h_{t+1} = h_t (pure skip).
    mix_p = jnp.zeros((Bp, Tp, 1), f32).at[:B, :T, :].set(mix)

    whh_t = w_hh_p.reshape(3 * Hp, Hp).T.astype(matmul_dtype)      # (Hp, 3Hp)

    vmem_limit = int(min(48 * 1024 * 1024,
                         max(16 * 1024 * 1024, _vmem_est(TBB, TB) * 5 // 4 + (2 << 20))))

    h_hist_p, o_p = pl.pallas_call(
        _skipgru_kernel,
        out_shape=(jax.ShapeDtypeStruct((Bp, Tp, Hp), f32),
                   jax.ShapeDtypeStruct((Bp, Hp), f32)),
        grid_spec=pltpu.PrefetchScalarGridSpec(
            num_scalar_prefetch=0,
            grid=(n_b, n_t),
            in_specs=[
                pl.BlockSpec((TBB, TB, 3 * Hp), lambda b, t: (b, t, 0)),
                pl.BlockSpec((TBB, TB, 1), lambda b, t: (b, t, 0)),
                pl.BlockSpec((Hp, 3 * Hp), lambda b, t: (0, 0)),   # weights stay resident
                pl.BlockSpec((1, Hp), lambda b, t: (0, 0)),        # b_hn stays resident
            ],
            out_specs=(
                pl.BlockSpec((TBB, TB, Hp), lambda b, t: (b, t, 0)),
                pl.BlockSpec((TBB, Hp), lambda b, t: (b, 0)),      # resident across t
            ),
            scratch_shapes=[pltpu.VMEM((TBB, Hp), f32)],
        ),
        compiler_params=pltpu.CompilerParams(
            # batch blocks are independent (megacore / v7x); the time axis carries state.
            dimension_semantics=("parallel", "arbitrary"),
            vmem_limit_bytes=vmem_limit,
        ),
    )(gi, mix_p, whh_t, bhn)

    h_hist = h_hist_p[:B, :T, :H]
    o = o_p[:B, :H]
    if l is not None:
        # Glue of SkipGRU.forward: gather the last valid step per sequence.
        o = h_hist[jnp.arange(B), l - 1]
    return h_hist, o


def _skip_gru_reference(x, mix, w_ih, w_hh, b_ih, b_hh):
    """Pure-JAX f32 reference mirroring the PyTorch loop."""
    B, T, N = x.shape
    H = w_hh.shape[1]
    h = jnp.zeros((B, H), jnp.float32)
    outs = []
    for t in range(T):
        xt = x[:, t, :]
        gi = xt @ w_ih.T + b_ih
        gh = h @ w_hh.T + b_hh
        i_r, i_z, i_n = gi[:, :H], gi[:, H:2 * H], gi[:, 2 * H:]
        h_r, h_z, h_n = gh[:, :H], gh[:, H:2 * H], gh[:, 2 * H:]
        r = jax.nn.sigmoid(i_r + h_r)
        z = jax.nn.sigmoid(i_z + h_z)
        n = jnp.tanh(i_n + r * h_n)
        gru_out = (1.0 - z) * n + z * h
        m = mix[:, t, :]
        h = gru_out * m + h * (1.0 - m)
        outs.append(h)
    return jnp.stack(outs, axis=1), h


if __name__ == "__main__":
    B, T, N, H = 2, 8, 4, 32

    key = jax.random.PRNGKey(0)
    kx, km, k1, k2, k3, k4 = jax.random.split(key, 6)

    x = jax.random.normal(kx, (B, T, N), jnp.float32)
    mix = jax.random.uniform(km, (B, T, 1), jnp.float32)

    bound = 1.0 / (H ** 0.5)
    w_ih = jax.random.uniform(k1, (3 * H, N), jnp.float32, -bound, bound)
    w_hh = jax.random.uniform(k2, (3 * H, H), jnp.float32, -bound, bound)
    b_ih = jax.random.uniform(k3, (3 * H,), jnp.float32, -bound, bound)
    b_hh = jax.random.uniform(k4, (3 * H,), jnp.float32, -bound, bound)

    h_hist, o = skip_gru_forward(x, mix, w_ih, w_hh, b_ih, b_hh)
    jax.block_until_ready((h_hist, o))

    h_ref, o_ref = _skip_gru_reference(x, mix, w_ih, w_hh, b_ih, b_hh)
    assert h_hist.shape == (B, T, H) and o.shape == (B, H)
    # Input GEMM, gi stream and recurrent matmul all run in bf16 (f32 accum /
    # gate math) -> compare with a bf16-appropriate tolerance.
    assert jnp.allclose(h_hist, h_ref, atol=3e-2, rtol=3e-2)
    assert jnp.allclose(o, o_ref, atol=3e-2, rtol=3e-2)

    # Exercise the sequence-length (l) glue path of SkipGRU.forward.
    l = jnp.array([T, T - 3], dtype=jnp.int32)
    _, o_l = skip_gru_forward(x, mix, w_ih, w_hh, b_ih, b_hh, l=l)
    jax.block_until_ready(o_l)
    assert jnp.allclose(o_l, h_ref[jnp.arange(B), l - 1], atol=3e-2, rtol=3e-2)

    print("KERNEL_OK")
</pallas_src>

<mosaic_0001>
module attributes {stable_mosaic.version = 11 : i64} {
  func.func @_skipgru_kernel(%arg0: i32, %arg1: i32, %arg2: memref<8x8x384xbf16, #tpu.memory_space<vmem>>, %arg3: memref<8x8x1xf32, #tpu.memory_space<vmem>>, %arg4: memref<128x384xbf16, #tpu.memory_space<vmem>>, %arg5: memref<1x128xf32, #tpu.memory_space<vmem>>, %arg6: memref<8x8x128xf32, #tpu.memory_space<vmem>>, %arg7: memref<8x128xf32, #tpu.memory_space<vmem>>, %arg8: memref<8x128xf32, #tpu.memory_space<vmem>>) attributes {dimension_semantics = [#tpu.dimension_semantics<parallel>, #tpu.dimension_semantics<arbitrary>], iteration_bounds = array<i64: 1, 1>, scalar_prefetch = 0 : i64, scratch_operands = 1 : i64, tpu.core_type = #tpu.core_type<tc>, window_params = [{transform_indices = @transform_0, window_bounds = array<i64: 8, 8, 384>}, {transform_indices = @transform_1, window_bounds = array<i64: 8, 8, 1>}, {pipeline_mode = #tpu.pipeline_mode<synchronous>, transform_indices = @transform_2, window_bounds = array<i64: 128, 384>}, {pipeline_mode = #tpu.pipeline_mode<synchronous>, transform_indices = @transform_3, window_bounds = array<i64: 1, 128>}, {transform_indices = @transform_4, window_bounds = array<i64: 8, 8, 128>}, {transform_indices = @transform_5, window_bounds = array<i64: 8, 128>}]} {
    %c0_i32 = arith.constant 0 : i32
    %0 = arith.cmpi eq, %arg1, %c0_i32 : i32
    %1 = arith.extui %0 : i1 to i32
    %c0_i32_0 = arith.constant 0 : i32
    %2 = arith.cmpi ne, %1, %c0_i32_0 : i32
    scf.if %2 {
      %cst_42 = arith.constant 0.000000e+00 : f32
      %305 = vector.broadcast %cst_42 : f32 to vector<8x128xf32>
      %c0_43 = arith.constant 0 : index
      %c0_44 = arith.constant 0 : index
      %306 = vector.load %arg8[%c0_43, %c0_44] : memref<8x128xf32, #tpu.memory_space<vmem>>, vector<8x128xf32>
      tpu.vector_store %arg8[%c0_43, %c0_44], %305 {strides = array<i32>} : memref<8x128xf32, #tpu.memory_space<vmem>>, vector<8x128xf32>,
    } else {
    }
    %c0 = arith.constant 0 : index
    %c0_1 = arith.constant 0 : index
    %3 = vector.load %arg8[%c0, %c0_1] : memref<8x128xf32, #tpu.memory_space<vmem>>, vector<8x128xf32>
    %c0_2 = arith.constant 0 : index
    %c0_3 = arith.constant 0 : index
    %4 = vector.load %arg4[%c0_2, %c0_3] : memref<128x384xbf16, #tpu.memory_space<vmem>>, vector<128x384xbf16>
    %c0_4 = arith.constant 0 : index
    %c0_5 = arith.constant 0 : index
    %5 = vector.load %arg5[%c0_4, %c0_5] : memref<1x128xf32, #tpu.memory_space<vmem>>, vector<1x128xf32>
    %6 = vector.shape_cast %5 : vector<1x128xf32> to vector<1x128xf32>
    %7 = vector.broadcast %6 : vector<1x128xf32> to vector<8x128xf32>
    %c0_6 = arith.constant 0 : index
    %c0_7 = arith.constant 0 : index
    %c0_8 = arith.constant 0 : index
    %8 = vector.load %arg2[%c0_6, %c0_7, %c0_8] : memref<8x8x384xbf16, #tpu.memory_space<vmem>>, vector<8x8x384xbf16>
    %9 = arith.extf %8 : vector<8x8x384xbf16> to vector<8x8x384xf32>
    %c0_9 = arith.constant 0 : index
    %c0_10 = arith.constant 0 : index
    %c0_11 = arith.constant 0 : index
    %10 = vector.load %arg3[%c0_9, %c0_10, %c0_11] : memref<8x8x1xf32, #tpu.memory_space<vmem>>, vector<8x8x1xf32>
    %11 = vector.extract_strided_slice %9 {offsets = [0, 0, 0], sizes = [8, 1, 384], strides = [1, 1, 1]} : vector<8x8x384xf32> to vector<8x1x384xf32>
    %12 = vector.shape_cast %11 : vector<8x1x384xf32> to vector<8x384xf32>
    %13 = vector.extract_strided_slice %10 {offsets = [0, 0, 0], sizes = [8, 1, 1], strides = [1, 1, 1]} : vector<8x8x1xf32> to vector<8x1x1xf32>
    %14 = vector.shape_cast %13 : vector<8x1x1xf32> to vector<8x1xf32>
    %15 = arith.truncf %3 : vector<8x128xf32> to vector<8x128xbf16>
    %cst = arith.constant dense<0.000000e+00> : vector<8x384xf32>
    %16 = tpu.matmul %15, %4, %cst {dimension_numbers = #tpu.dot_dimension_numbers<[1], [0], [0], [1], [0, 0, 1, 1], [], []>} : vector<8x128xbf16>, vector<128x384xbf16>, vector<8x384xf32> -> vector<8x384xf32>
    %17 = vector.extract_strided_slice %12 {offsets = [0, 0], sizes = [8, 128], strides = [1, 1]} : vector<8x384xf32> to vector<8x128xf32>
    %18 = vector.extract_strided_slice %16 {offsets = [0, 0], sizes = [8, 128], strides = [1, 1]} : vector<8x384xf32> to vector<8x128xf32>
    %19 = arith.addf %17, %18 : vector<8x128xf32>
    %20 = arith.negf %19 : vector<8x128xf32>
    %21 = math.exp %20 : vector<8x128xf32>
    %cst_12 = arith.constant 1.000000e+00 : f32
    %22 = vector.broadcast %cst_12 : f32 to vector<8x128xf32>
    %23 = arith.addf %22, %21 : vector<8x128xf32>
    %24 = arith.divf %22, %23 : vector<8x128xf32>
    %25 = vector.extract_strided_slice %12 {offsets = [0, 128], sizes = [8, 128], strides = [1, 1]} : vector<8x384xf32> to vector<8x128xf32>
    %26 = vector.extract_strided_slice %16 {offsets = [0, 128], sizes = [8, 128], strides = [1, 1]} : vector<8x384xf32> to vector<8x128xf32>
    %27 = arith.addf %25, %26 : vector<8x128xf32>
    %28 = arith.negf %27 : vector<8x128xf32>
    %29 = math.exp %28 : vector<8x128xf32>
    %cst_13 = arith.constant 1.000000e+00 : f32
    %30 = vector.broadcast %cst_13 : f32 to vector<8x128xf32>
    %31 = arith.addf %30, %29 : vector<8x128xf32>
    %32 = arith.divf %30, %31 : vector<8x128xf32>
    %33 = vector.extract_strided_slice %12 {offsets = [0, 256], sizes = [8, 128], strides = [1, 1]} : vector<8x384xf32> to vector<8x128xf32>
    %34 = vector.extract_strided_slice %16 {offsets = [0, 256], sizes = [8, 128], strides = [1, 1]} : vector<8x384xf32> to vector<8x128xf32>
    %35 = arith.addf %34, %7 : vector<8x128xf32>
    %36 = arith.mulf %24, %35 : vector<8x128xf32>
    %37 = arith.addf %33, %36 : vector<8x128xf32>
    %38 = math.tanh %37 : vector<8x128xf32>
    %39 = arith.subf %3, %38 : vector<8x128xf32>
    %40 = arith.mulf %32, %39 : vector<8x128xf32>
    %41 = arith.addf %38, %40 : vector<8x128xf32>
    %42 = arith.subf %41, %3 : vector<8x128xf32>
    %43 = vector.broadcast %14 : vector<8x1xf32> to vector<8x128xf32>
    %44 = arith.mulf %43, %42 : vector<8x128xf32>
    %45 = arith.addf %3, %44 : vector<8x128xf32>
    %46 = vector.extract_strided_slice %9 {offsets = [0, 1, 0], sizes = [8, 1, 384], strides = [1, 1, 1]} : vector<8x8x384xf32> to vector<8x1x384xf32>
    %47 = vector.shape_cast %46 : vector<8x1x384xf32> to vector<8x384xf32>
    %48 = vector.extract_strided_slice %10 {offsets = [0, 1, 0], sizes = [8, 1, 1], strides = [1, 1, 1]} : vector<8x8x1xf32> to vector<8x1x1xf32>
    %49 = vector.shape_cast %48 : vector<8x1x1xf32> to vector<8x1xf32>
    %50 = arith.truncf %45 : vector<8x128xf32> to vector<8x128xbf16>
    %cst_14 = arith.constant dense<0.000000e+00> : vector<8x384xf32>
    %51 = tpu.matmul %50, %4, %cst_14 {dimension_numbers = #tpu.dot_dimension_numbers<[1], [0], [0], [1], [0, 0, 1, 1], [], []>} : vector<8x128xbf16>, vector<128x384xbf16>, vector<8x384xf32> -> vector<8x384xf32>
    %52 = vector.extract_strided_slice %47 {offsets = [0, 0], sizes = [8, 128], strides = [1, 1]} : vector<8x384xf32> to vector<8x128xf32>
    %53 = vector.extract_strided_slice %51 {offsets = [0, 0], sizes = [8, 128], strides = [1, 1]} : vector<8x384xf32> to vector<8x128xf32>
    %54 = arith.addf %52, %53 : vector<8x128xf32>
    %55 = arith.negf %54 : vector<8x128xf32>
    %56 = math.exp %55 : vector<8x128xf32>
    %cst_15 = arith.constant 1.000000e+00 : f32
    %57 = vector.broadcast %cst_15 : f32 to vector<8x128xf32>
    %58 = arith.addf %57, %56 : vector<8x128xf32>
    %59 = arith.divf %57, %58 : vector<8x128xf32>
    %60 = vector.extract_strided_slice %47 {offsets = [0, 128], sizes = [8, 128], strides = [1, 1]} : vector<8x384xf32> to vector<8x128xf32>
    %61 = vector.extract_strided_slice %51 {offsets = [0, 128], sizes = [8, 128], strides = [1, 1]} : vector<8x384xf32> to vector<8x128xf32>
    %62 = arith.addf %60, %61 : vector<8x128xf32>
    %63 = arith.negf %62 : vector<8x128xf32>
    %64 = math.exp %63 : vector<8x128xf32>
    %cst_16 = arith.constant 1.000000e+00 : f32
    %65 = vector.broadcast %cst_16 : f32 to vector<8x128xf32>
    %66 = arith.addf %65, %64 : vector<8x128xf32>
    %67 = arith.divf %65, %66 : vector<8x128xf32>
    %68 = vector.extract_strided_slice %47 {offsets = [0, 256], sizes = [8, 128], strides = [1, 1]} : vector<8x384xf32> to vector<8x128xf32>
    %69 = vector.extract_strided_slice %51 {offsets = [0, 256], sizes = [8, 128], strides = [1, 1]} : vector<8x384xf32> to vector<8x128xf32>
    %70 = arith.addf %69, %7 : vector<8x128xf32>
    %71 = arith.mulf %59, %70 : vector<8x128xf32>
    %72 = arith.addf %68, %71 : vector<8x128xf32>
    %73 = math.tanh %72 : vector<8x128xf32>
    %74 = arith.subf %45, %73 : vector<8x128xf32>
    %75 = arith.mulf %67, %74 : vector<8x128xf32>
    %76 = arith.addf %73, %75 : vector<8x128xf32>
    %77 = arith.subf %76, %45 : vector<8x128xf32>
    %78 = vector.broadcast %49 : vector<8x1xf32> to vector<8x128xf32>
    %79 = arith.mulf %78, %77 : vector<8x128xf32>
    %80 = arith.addf %45, %79 : vector<8x128xf32>
    %81 = vector.extract_strided_slice %9 {offsets = [0, 2, 0], sizes = [8, 1, 384], strides = [1, 1, 1]} : vector<8x8x384xf32> to vector<8x1x384xf32>
    %82 = vector.shape_cast %81 : vector<8x1x384xf32> to vector<8x384xf32>
    %83 = vector.extract_strided_slice %10 {offsets = [0, 2, 0], sizes = [8, 1, 1], strides = [1, 1, 1]} : vector<8x8x1xf32> to vector<8x1x1xf32>
    %84 = vector.shape_cast %83 : vector<8x1x1xf32> to vector<8x1xf32>
    %85 = arith.truncf %80 : vector<8x128xf32> to vector<8x128xbf16>
    %cst_17 = arith.constant dense<0.000000e+00> : vector<8x384xf32>
    %86 = tpu.matmul %85, %4, %cst_17 {dimension_numbers = #tpu.dot_dimension_numbers<[1], [0], [0], [1], [0, 0, 1, 1], [], []>} : vector<8x128xbf16>, vector<128x384xbf16>, vector<8x384xf32> -> vector<8x384xf32>
    %87 = vector.extract_strided_slice %82 {offsets = [0, 0], sizes = [8, 128], strides = [1, 1]} : vector<8x384xf32> to vector<8x128xf32>
    %88 = vector.extract_strided_slice %86 {offsets = [0, 0], sizes = [8, 128], strides = [1, 1]} : vector<8x384xf32> to vector<8x128xf32>
    %89 = arith.addf %87, %88 : vector<8x128xf32>
    %90 = arith.negf %89 : vector<8x128xf32>
    %91 = math.exp %90 : vector<8x128xf32>
    %cst_18 = arith.constant 1.000000e+00 : f32
    %92 = vector.broadcast %cst_18 : f32 to vector<8x128xf32>
    %93 = arith.addf %92, %91 : vector<8x128xf32>
    %94 = arith.divf %92, %93 : vector<8x128xf32>
    %95 = vector.extract_strided_slice %82 {offsets = [0, 128], sizes = [8, 128], strides = [1, 1]} : vector<8x384xf32> to vector<8x128xf32>
    %96 = vector.extract_strided_slice %86 {offsets = [0, 128], sizes = [8, 128], strides = [1, 1]} : vector<8x384xf32> to vector<8x128xf32>
    %97 = arith.addf %95, %96 : vector<8x128xf32>
    %98 = arith.negf %97 : vector<8x128xf32>
    %99 = math.exp %98 : vector<8x128xf32>
    %cst_19 = arith.constant 1.000000e+00 : f32
    %100 = vector.broadcast %cst_19 : f32 to vector<8x128xf32>
    %101 = arith.addf %100, %99 : vector<8x128xf32>
    %102 = arith.divf %100, %101 : vector<8x128xf32>
    %103 = vector.extract_strided_slice %82 {offsets = [0, 256], sizes = [8, 128], strides = [1, 1]} : vector<8x384xf32> to vector<8x128xf32>
    %104 = vector.extract_strided_slice %86 {offsets = [0, 256], sizes = [8, 128], strides = [1, 1]} : vector<8x384xf32> to vector<8x128xf32>
    %105 = arith.addf %104, %7 : vector<8x128xf32>
    %106 = arith.mulf %94, %105 : vector<8x128xf32>
    %107 = arith.addf %103, %106 : vector<8x128xf32>
    %108 = math.tanh %107 : vector<8x128xf32>
    %109 = arith.subf %80, %108 : vector<8x128xf32>
    %110 = arith.mulf %102, %109 : vector<8x128xf32>
    %111 = arith.addf %108, %110 : vector<8x128xf32>
    %112 = arith.subf %111, %80 : vector<8x128xf32>
    %113 = vector.broadcast %84 : vector<8x1xf32> to vector<8x128xf32>
    %114 = arith.mulf %113, %112 : vector<8x128xf32>
    %115 = arith.addf %80, %114 : vector<8x128xf32>
    %116 = vector.extract_strided_slice %9 {offsets = [0, 3, 0], sizes = [8, 1, 384], strides = [1, 1, 1]} : vector<8x8x384xf32> to vector<8x1x384xf32>
    %117 = vector.shape_cast %116 : vector<8x1x384xf32> to vector<8x384xf32>
    %118 = vector.extract_strided_slice %10 {offsets = [0, 3, 0], sizes = [8, 1, 1], strides = [1, 1, 1]} : vector<8x8x1xf32> to vector<8x1x1xf32>
    %119 = vector.shape_cast %118 : vector<8x1x1xf32> to vector<8x1xf32>
    %120 = arith.truncf %115 : vector<8x128xf32> to vector<8x128xbf16>
    %cst_20 = arith.constant dense<0.000000e+00> : vector<8x384xf32>
    %121 = tpu.matmul %120, %4, %cst_20 {dimension_numbers = #tpu.dot_dimension_numbers<[1], [0], [0], [1], [0, 0, 1, 1], [], []>} : vector<8x128xbf16>, vector<128x384xbf16>, vector<8x384xf32> -> vector<8x384xf32>
    %122 = vector.extract_strided_slice %117 {offsets = [0, 0], sizes = [8, 128], strides = [1, 1]} : vector<8x384xf32> to vector<8x128xf32>
    %123 = vector.extract_strided_slice %121 {offsets = [0, 0], sizes = [8, 128], strides = [1, 1]} : vector<8x384xf32> to vector<8x128xf32>
    %124 = arith.addf %122, %123 : vector<8x128xf32>
    %125 = arith.negf %124 : vector<8x128xf32>
    %126 = math.exp %125 : vector<8x128xf32>
    %cst_21 = arith.constant 1.000000e+00 : f32
    %127 = vector.broadcast %cst_21 : f32 to vector<8x128xf32>
    %128 = arith.addf %127, %126 : vector<8x128xf32>
    %129 = arith.divf %127, %128 : vector<8x128xf32>
    %130 = vector.extract_strided_slice %117 {offsets = [0, 128], sizes = [8, 128], strides = [1, 1]} : vector<8x384xf32> to vector<8x128xf32>
    %131 = vector.extract_strided_slice %121 {offsets = [0, 128], sizes = [8, 128], strides = [1, 1]} : vector<8x384xf32> to vector<8x128xf32>
    %132 = arith.addf %130, %131 : vector<8x128xf32>
    %133 = arith.negf %132 : vector<8x128xf32>
    %134 = math.exp %133 : vector<8x128xf32>
    %cst_22 = arith.constant 1.000000e+00 : f32
    %135 = vector.broadcast %cst_22 : f32 to vector<8x128xf32>
    %136 = arith.addf %135, %134 : vector<8x128xf32>
    %137 = arith.divf %135, %136 : vector<8x128xf32>
    %138 = vector.extract_strided_slice %117 {offsets = [0, 256], sizes = [8, 128], strides = [1, 1]} : vector<8x384xf32> to vector<8x128xf32>
    %139 = vector.extract_strided_slice %121 {offsets = [0, 256], sizes = [8, 128], strides = [1, 1]} : vector<8x384xf32> to vector<8x128xf32>
    %140 = arith.addf %139, %7 : vector<8x128xf32>
    %141 = arith.mulf %129, %140 : vector<8x128xf32>
    %142 = arith.addf %138, %141 : vector<8x128xf32>
    %143 = math.tanh %142 : vector<8x128xf32>
    %144 = arith.subf %115, %143 : vector<8x128xf32>
    %145 = arith.mulf %137, %144 : vector<8x128xf32>
    %146 = arith.addf %143, %145 : vector<8x128xf32>
    %147 = arith.subf %146, %115 : vector<8x128xf32>
    %148 = vector.broadcast %119 : vector<8x1xf32> to vector<8x128xf32>
    %149 = arith.mulf %148, %147 : vector<8x128xf32>
    %150 = arith.addf %115, %149 : vector<8x128xf32>
    %151 = vector.extract_strided_slice %9 {offsets = [0, 4, 0], sizes = [8, 1, 384], strides = [1, 1, 1]} : vector<8x8x384xf32> to vector<8x1x384xf32>
    %152 = vector.shape_cast %151 : vector<8x1x384xf32> to vector<8x384xf32>
    %153 = vector.extract_strided_slice %10 {offsets = [0, 4, 0], sizes = [8, 1, 1], strides = [1, 1, 1]} : vector<8x8x1xf32> to vector<8x1x1xf32>
    %154 = vector.shape_cast %153 : vector<8x1x1xf32> to vector<8x1xf32>
    %155 = arith.truncf %150 : vector<8x128xf32> to vector<8x128xbf16>
    %cst_23 = arith.constant dense<0.000000e+00> : vector<8x384xf32>
    %156 = tpu.matmul %155, %4, %cst_23 {dimension_numbers = #tpu.dot_dimension_numbers<[1], [0], [0], [1], [0, 0, 1, 1], [], []>} : vector<8x128xbf16>, vector<128x384xbf16>, vector<8x384xf32> -> vector<8x384xf32>
    %157 = vector.extract_strided_slice %152 {offsets = [0, 0], sizes = [8, 128], strides = [1, 1]} : vector<8x384xf32> to vector<8x128xf32>
    %158 = vector.extract_strided_slice %156 {offsets = [0, 0], sizes = [8, 128], strides = [1, 1]} : vector<8x384xf32> to vector<8x128xf32>
    %159 = arith.addf %157, %158 : vector<8x128xf32>
    %160 = arith.negf %159 : vector<8x128xf32>
    %161 = math.exp %160 : vector<8x128xf32>
    %cst_24 = arith.constant 1.000000e+00 : f32
    %162 = vector.broadcast %cst_24 : f32 to vector<8x128xf32>
    %163 = arith.addf %162, %161 : vector<8x128xf32>
    %164 = arith.divf %162, %163 : vector<8x128xf32>
    %165 = vector.extract_strided_slice %152 {offsets = [0, 128], sizes = [8, 128], strides = [1, 1]} : vector<8x384xf32> to vector<8x128xf32>
    %166 = vector.extract_strided_slice %156 {offsets = [0, 128], sizes = [8, 128], strides = [1, 1]} : vector<8x384xf32> to vector<8x128xf32>
    %167 = arith.addf %165, %166 : vector<8x128xf32>
    %168 = arith.negf %167 : vector<8x128xf32>
    %169 = math.exp %168 : vector<8x128xf32>
    %cst_25 = arith.constant 1.000000e+00 : f32
    %170 = vector.broadcast %cst_25 : f32 to vector<8x128xf32>
    %171 = arith.addf %170, %169 : vector<8x128xf32>
    %172 = arith.divf %170, %171 : vector<8x128xf32>
    %173 = vector.extract_strided_slice %152 {offsets = [0, 256], sizes = [8, 128], strides = [1, 1]} : vector<8x384xf32> to vector<8x128xf32>
    %174 = vector.extract_strided_slice %156 {offsets = [0, 256], sizes = [8, 128], strides = [1, 1]} : vector<8x384xf32> to vector<8x128xf32>
    %175 = arith.addf %174, %7 : vector<8x128xf32>
    %176 = arith.mulf %164, %175 : vector<8x128xf32>
    %177 = arith.addf %173, %176 : vector<8x128xf32>
    %178 = math.tanh %177 : vector<8x128xf32>
    %179 = arith.subf %150, %178 : vector<8x128xf32>
    %180 = arith.mulf %172, %179 : vector<8x128xf32>
    %181 = arith.addf %178, %180 : vector<8x128xf32>
    %182 = arith.subf %181, %150 : vector<8x128xf32>
    %183 = vector.broadcast %154 : vector<8x1xf32> to vector<8x128xf32>
    %184 = arith.mulf %183, %182 : vector<8x128xf32>
    %185 = arith.addf %150, %184 : vector<8x128xf32>
    %186 = vector.extract_strided_slice %9 {offsets = [0, 5, 0], sizes = [8, 1, 384], strides = [1, 1, 1]} : vector<8x8x384xf32> to vector<8x1x384xf32>
    %187 = vector.shape_cast %186 : vector<8x1x384xf32> to vector<8x384xf32>
    %188 = vector.extract_strided_slice %10 {offsets = [0, 5, 0], sizes = [8, 1, 1], strides = [1, 1, 1]} : vector<8x8x1xf32> to vector<8x1x1xf32>
    %189 = vector.shape_cast %188 : vector<8x1x1xf32> to vector<8x1xf32>
    %190 = arith.truncf %185 : vector<8x128xf32> to vector<8x128xbf16>
    %cst_26 = arith.constant dense<0.000000e+00> : vector<8x384xf32>
    %191 = tpu.matmul %190, %4, %cst_26 {dimension_numbers = #tpu.dot_dimension_numbers<[1], [0], [0], [1], [0, 0, 1, 1], [], []>} : vector<8x128xbf16>, vector<128x384xbf16>, vector<8x384xf32> -> vector<8x384xf32>
    %192 = vector.extract_strided_slice %187 {offsets = [0, 0], sizes = [8, 128], strides = [1, 1]} : vector<8x384xf32> to vector<8x128xf32>
    %193 = vector.extract_strided_slice %191 {offsets = [0, 0], sizes = [8, 128], strides = [1, 1]} : vector<8x384xf32> to vector<8x128xf32>
    %194 = arith.addf %192, %193 : vector<8x128xf32>
    %195 = arith.negf %194 : vector<8x128xf32>
    %196 = math.exp %195 : vector<8x128xf32>
    %cst_27 = arith.constant 1.000000e+00 : f32
    %197 = vector.broadcast %cst_27 : f32 to vector<8x128xf32>
    %198 = arith.addf %197, %196 : vector<8x128xf32>
    %199 = arith.divf %197, %198 : vector<8x128xf32>
    %200 = vector.extract_strided_slice %187 {offsets = [0, 128], sizes = [8, 128], strides = [1, 1]} : vector<8x384xf32> to vector<8x128xf32>
    %201 = vector.extract_strided_slice %191 {offsets = [0, 128], sizes = [8, 128], strides = [1, 1]} : vector<8x384xf32> to vector<8x128xf32>
    %202 = arith.addf %200, %201 : vector<8x128xf32>
    %203 = arith.negf %202 : vector<8x128xf32>
    %204 = math.exp %203 : vector<8x128xf32>
    %cst_28 = arith.constant 1.000000e+00 : f32
    %205 = vector.broadcast %cst_28 : f32 to vector<8x128xf32>
    %206 = arith.addf %205, %204 : vector<8x128xf32>
    %207 = arith.divf %205, %206 : vector<8x128xf32>
    %208 = vector.extract_strided_slice %187 {offsets = [0, 256], sizes = [8, 128], strides = [1, 1]} : vector<8x384xf32> to vector<8x128xf32>
    %209 = vector.extract_strided_slice %191 {offsets = [0, 256], sizes = [8, 128], strides = [1, 1]} : vector<8x384xf32> to vector<8x128xf32>
    %210 = arith.addf %209, %7 : vector<8x128xf32>
    %211 = arith.mulf %199, %210 : vector<8x128xf32>
    %212 = arith.addf %208, %211 : vector<8x128xf32>
    %213 = math.tanh %212 : vector<8x128xf32>
    %214 = arith.subf %185, %213 : vector<8x128xf32>
    %215 = arith.mulf %207, %214 : vector<8x128xf32>
    %216 = arith.addf %213, %215 : vector<8x128xf32>
    %217 = arith.subf %216, %185 : vector<8x128xf32>
    %218 = vector.broadcast %189 : vector<8x1xf32> to vector<8x128xf32>
    %219 = arith.mulf %218, %217 : vector<8x128xf32>
    %220 = arith.addf %185, %219 : vector<8x128xf32>
    %221 = vector.extract_strided_slice %9 {offsets = [0, 6, 0], sizes = [8, 1, 384], strides = [1, 1, 1]} : vector<8x8x384xf32> to vector<8x1x384xf32>
    %222 = vector.shape_cast %221 : vector<8x1x384xf32> to vector<8x384xf32>
    %223 = vector.extract_strided_slice %10 {offsets = [0, 6, 0], sizes = [8, 1, 1], strides = [1, 1, 1]} : vector<8x8x1xf32> to vector<8x1x1xf32>
    %224 = vector.shape_cast %223 : vector<8x1x1xf32> to vector<8x1xf32>
    %225 = arith.truncf %220 : vector<8x128xf32> to vector<8x128xbf16>
    %cst_29 = arith.constant dense<0.000000e+00> : vector<8x384xf32>
    %226 = tpu.matmul %225, %4, %cst_29 {dimension_numbers = #tpu.dot_dimension_numbers<[1], [0], [0], [1], [0, 0, 1, 1], [], []>} : vector<8x128xbf16>, vector<128x384xbf16>, vector<8x384xf32> -> vector<8x384xf32>
    %227 = vector.extract_strided_slice %222 {offsets = [0, 0], sizes = [8, 128], strides = [1, 1]} : vector<8x384xf32> to vector<8x128xf32>
    %228 = vector.extract_strided_slice %226 {offsets = [0, 0], sizes = [8, 128], strides = [1, 1]} : vector<8x384xf32> to vector<8x128xf32>
    %229 = arith.addf %227, %228 : vector<8x128xf32>
    %230 = arith.negf %229 : vector<8x128xf32>
    %231 = math.exp %230 : vector<8x128xf32>
    %cst_30 = arith.constant 1.000000e+00 : f32
    %232 = vector.broadcast %cst_30 : f32 to vector<8x128xf32>
    %233 = arith.addf %232, %231 : vector<8x128xf32>
    %234 = arith.divf %232, %233 : vector<8x128xf32>
    %235 = vector.extract_strided_slice %222 {offsets = [0, 128], sizes = [8, 128], strides = [1, 1]} : vector<8x384xf32> to vector<8x128xf32>
    %236 = vector.extract_strided_slice %226 {offsets = [0, 128], sizes = [8, 128], strides = [1, 1]} : vector<8x384xf32> to vector<8x128xf32>
    %237 = arith.addf %235, %236 : vector<8x128xf32>
    %238 = arith.negf %237 : vector<8x128xf32>
    %239 = math.exp %238 : vector<8x128xf32>
    %cst_31 = arith.constant 1.000000e+00 : f32
    %240 = vector.broadcast %cst_31 : f32 to vector<8x128xf32>
    %241 = arith.addf %240, %239 : vector<8x128xf32>
    %242 = arith.divf %240, %241 : vector<8x128xf32>
    %243 = vector.extract_strided_slice %222 {offsets = [0, 256], sizes = [8, 128], strides = [1, 1]} : vector<8x384xf32> to vector<8x128xf32>
    %244 = vector.extract_strided_slice %226 {offsets = [0, 256], sizes = [8, 128], strides = [1, 1]} : vector<8x384xf32> to vector<8x128xf32>
    %245 = arith.addf %244, %7 : vector<8x128xf32>
    %246 = arith.mulf %234, %245 : vector<8x128xf32>
    %247 = arith.addf %243, %246 : vector<8x128xf32>
    %248 = math.tanh %247 : vector<8x128xf32>
    %249 = arith.subf %220, %248 : vector<8x128xf32>
    %250 = arith.mulf %242, %249 : vector<8x128xf32>
    %251 = arith.addf %248, %250 : vector<8x128xf32>
    %252 = arith.subf %251, %220 : vector<8x128xf32>
    %253 = vector.broadcast %224 : vector<8x1xf32> to vector<8x128xf32>
    %254 = arith.mulf %253, %252 : vector<8x128xf32>
    %255 = arith.addf %220, %254 : vector<8x128xf32>
    %256 = vector.extract_strided_slice %9 {offsets = [0, 7, 0], sizes = [8, 1, 384], strides = [1, 1, 1]} : vector<8x8x384xf32> to vector<8x1x384xf32>
    %257 = vector.shape_cast %256 : vector<8x1x384xf32> to vector<8x384xf32>
    %258 = vector.extract_strided_slice %10 {offsets = [0, 7, 0], sizes = [8, 1, 1], strides = [1, 1, 1]} : vector<8x8x1xf32> to vector<8x1x1xf32>
    %259 = vector.shape_cast %258 : vector<8x1x1xf32> to vector<8x1xf32>
    %260 = arith.truncf %255 : vector<8x128xf32> to vector<8x128xbf16>
    %cst_32 = arith.constant dense<0.000000e+00> : vector<8x384xf32>
    %261 = tpu.matmul %260, %4, %cst_32 {dimension_numbers = #tpu.dot_dimension_numbers<[1], [0], [0], [1], [0, 0, 1, 1], [], []>} : vector<8x128xbf16>, vector<128x384xbf16>, vector<8x384xf32> -> vector<8x384xf32>
    %262 = vector.extract_strided_slice %257 {offsets = [0, 0], sizes = [8, 128], strides = [1, 1]} : vector<8x384xf32> to vector<8x128xf32>
    %263 = vector.extract_strided_slice %261 {offsets = [0, 0], sizes = [8, 128], strides = [1, 1]} : vector<8x384xf32> to vector<8x128xf32>
    %264 = arith.addf %262, %263 : vector<8x128xf32>
    %265 = arith.negf %264 : vector<8x128xf32>
    %266 = math.exp %265 : vector<8x128xf32>
    %cst_33 = arith.constant 1.000000e+00 : f32
    %267 = vector.broadcast %cst_33 : f32 to vector<8x128xf32>
    %268 = arith.addf %267, %266 : vector<8x128xf32>
    %269 = arith.divf %267, %268 : vector<8x128xf32>
    %270 = vector.extract_strided_slice %257 {offsets = [0, 128], sizes = [8, 128], strides = [1, 1]} : vector<8x384xf32> to vector<8x128xf32>
    %271 = vector.extract_strided_slice %261 {offsets = [0, 128], sizes = [8, 128], strides = [1, 1]} : vector<8x384xf32> to vector<8x128xf32>
    %272 = arith.addf %270, %271 : vector<8x128xf32>
    %273 = arith.negf %272 : vector<8x128xf32>
    %274 = math.exp %273 : vector<8x128xf32>
    %cst_34 = arith.constant 1.000000e+00 : f32
    %275 = vector.broadcast %cst_34 : f32 to vector<8x128xf32>
    %276 = arith.addf %275, %274 : vector<8x128xf32>
    %277 = arith.divf %275, %276 : vector<8x128xf32>
    %278 = vector.extract_strided_slice %257 {offsets = [0, 256], sizes = [8, 128], strides = [1, 1]} : vector<8x384xf32> to vector<8x128xf32>
    %279 = vector.extract_strided_slice %261 {offsets = [0, 256], sizes = [8, 128], strides = [1, 1]} : vector<8x384xf32> to vector<8x128xf32>
    %280 = arith.addf %279, %7 : vector<8x128xf32>
    %281 = arith.mulf %269, %280 : vector<8x128xf32>
    %282 = arith.addf %278, %281 : vector<8x128xf32>
    %283 = math.tanh %282 : vector<8x128xf32>
    %284 = arith.subf %255, %283 : vector<8x128xf32>
    %285 = arith.mulf %277, %284 : vector<8x128xf32>
    %286 = arith.addf %283, %285 : vector<8x128xf32>
    %287 = arith.subf %286, %255 : vector<8x128xf32>
    %288 = vector.broadcast %259 : vector<8x1xf32> to vector<8x128xf32>
    %289 = arith.mulf %288, %287 : vector<8x128xf32>
    %290 = arith.addf %255, %289 : vector<8x128xf32>
    %291 = vector.shape_cast %45 : vector<8x128xf32> to vector<8x1x128xf32>
    %292 = vector.shape_cast %80 : vector<8x128xf32> to vector<8x1x128xf32>
    %293 = vector.shape_cast %115 : vector<8x128xf32> to vector<8x1x128xf32>
    %294 = vector.shape_cast %150 : vector<8x128xf32> to vector<8x1x128xf32>
    %295 = vector.shape_cast %185 : vector<8x128xf32> to vector<8x1x128xf32>
    %296 = vector.shape_cast %220 : vector<8x128xf32> to vector<8x1x128xf32>
    %297 = vector.shape_cast %255 : vector<8x128xf32> to vector<8x1x128xf32>
    %298 = vector.shape_cast %290 : vector<8x128xf32> to vector<8x1x128xf32>
    %299 = tpu.concatenate %291, %292, %293, %294, %295, %296, %297, %298 in 1 : vector<8x1x128xf32>, vector<8x1x128xf32>, vector<8x1x128xf32>, vector<8x1x128xf32>, vector<8x1x128xf32>, vector<8x1x128xf32>, vector<8x1x128xf32>, vector<8x1x128xf32> -> vector<8x8x128xf32>
    %c0_35 = arith.constant 0 : index
    %c0_36 = arith.constant 0 : index
    %c0_37 = arith.constant 0 : index
    %300 = vector.load %arg6[%c0_35, %c0_36, %c0_37] : memref<8x8x128xf32, #tpu.memory_space<vmem>>, vector<8x8x128xf32>
    tpu.vector_store %arg6[%c0_35, %c0_36, %c0_37], %299 {strides = array<i32>} : memref<8x8x128xf32, #tpu.memory_space<vmem>>, vector<8x8x128xf32>,
    %c0_38 = arith.constant 0 : index
    %c0_39 = arith.constant 0 : index
    %301 = vector.load %arg8[%c0_38, %c0_39] : memref<8x128xf32, #tpu.memory_space<vmem>>, vector<8x128xf32>
    tpu.vector_store %arg8[%c0_38, %c0_39], %290 {strides = array<i32>} : memref<8x128xf32, #tpu.memory_space<vmem>>, vector<8x128xf32>,
    %c0_i32_40 = arith.constant 0 : i32
    %302 = arith.cmpi eq, %arg1, %c0_i32_40 : i32
    %303 = arith.extui %302 : i1 to i32
    %c0_i32_41 = arith.constant 0 : i32
    %304 = arith.cmpi ne, %303, %c0_i32_41 : i32
    scf.if %304 {
      %c0_42 = arith.constant 0 : index
      %c0_43 = arith.constant 0 : index
      %305 = vector.load %arg7[%c0_42, %c0_43] : memref<8x128xf32, #tpu.memory_space<vmem>>, vector<8x128xf32>
      tpu.vector_store %arg7[%c0_42, %c0_43], %290 {strides = array<i32>} : memref<8x128xf32, #tpu.memory_space<vmem>>, vector<8x128xf32>,
    } else {
    }
    return
  }
  func.func @transform_0(%arg0: i32, %arg1: i32) -> (i32, i32, i32) {
    %c0_i32 = arith.constant 0 : i32
    %c0_i32_0 = arith.constant 0 : i32
    return %arg0, %arg1, %c0_i32 : i32, i32, i32
  }
  func.func @transform_1(%arg0: i32, %arg1: i32) -> (i32, i32, i32) {
    %c0_i32 = arith.constant 0 : i32
    %c0_i32_0 = arith.constant 0 : i32
    return %arg0, %arg1, %c0_i32 : i32, i32, i32
  }
  func.func @transform_2(%arg0: i32, %arg1: i32) -> (i32, i32) {
    %c0_i32 = arith.constant 0 : i32
    %c0_i32_0 = arith.constant 0 : i32
    %c0_i32_1 = arith.constant 0 : i32
    return %c0_i32, %c0_i32_0 : i32, i32
  }
  func.func @transform_3(%arg0: i32, %arg1: i32) -> (i32, i32) {
    %c0_i32 = arith.constant 0 : i32
    %c0_i32_0 = arith.constant 0 : i32
    %c0_i32_1 = arith.constant 0 : i32
    return %c0_i32, %c0_i32_0 : i32, i32
  }
  func.func @transform_4(%arg0: i32, %arg1: i32) -> (i32, i32, i32) {
    %c0_i32 = arith.constant 0 : i32
    %c0_i32_0 = arith.constant 0 : i32
    return %arg0, %arg1, %c0_i32 : i32, i32, i32
  }
  func.func @transform_5(%arg0: i32, %arg1: i32) -> (i32, i32) {
    %c0_i32 = arith.constant 0 : i32
    %c0_i32_0 = arith.constant 0 : i32
    return %arg0, %c0_i32 : i32, i32
  }
}

</mosaic_0001>

<bundles_post_ra>
// kernel: tpu_custom_call.1
= control target key start
LH: loop header
LB: loop body
LE: loop exit
PB: predicated region body
PF: predicated region fallthrough
CT: control target
= control target key end

     0   :  { %11 = vsyncpa [#allocation4], 0  ;;  %s11428_s0 = inlined_call_operand.hbm [shape: bf16[8,8,384], index: 0, kind: input, shape index: {}]   ;;  %s11429_s1 = inlined_call_operand.vmem [shape: f32[8,8,1], index: 1, kind: input, shape index: {}]   ;;  %s11430_s2 = inlined_call_operand.hbm [shape: bf16[128,384], index: 2, kind: input, shape index: {}]   ;;  %s11431_s3 = inlined_call_operand.vmem [shape: f32[1,128], index: 3, kind: input, shape index: {}]   ;;  %s11432_s4 = inlined_call_operand.hbm [shape: f32[8,8,128], index: 4, kind: output, shape index: {0}]   ;;  %s11433_s5 = inlined_call_operand.hbm [shape: f32[8,128], index: 5, kind: output, shape index: {1}]  }
   0x1   :  { %12 = vsyncpa [#allocation7], 0 }
   0x2   :  { %13 = vsyncpa [#allocation5], 0 }
   0x3   :  { %14 = vsyncpa [#allocation10], 0  ;;  %s19_s20 = sshll.u32 %s11428_s0, 4  ;;  %s5921_s21 = smov [#allocation3]   ;;  %s20_s20 = int_to_ptr.hbm [resolvable:$true] %s19_s20 }
   0x4   :  { %s21_s22 = sshll.u32 %s5921_s21, 4  ;;  %s34_s25 = sshll.u32 %s11430_s2, 4  ;;  %s22_s22 = int_to_ptr.vmem [resolvable:$true] %s21_s22  ;;  %s35_s25 = int_to_ptr.hbm [resolvable:$true] %s34_s25 }
   0x5   :  { %s5922_s26 = smov 192   ;;  %s5923_s27 = smov 12  }
   0x6   :  { %27 = dma.hbm_to_vmem [thread:$0]  %s20_s20, 1536, %s22_s22, [#allocation4], %s5922_s26, %s5922_s26, %s5923_s27  }
   0x7   :  { %s5924_s28 = smov [#allocation6]  }
   0x8   :  { %s36_s29 = sshll.u32 %s5924_s28, 4  ;;  %s37_s29 = int_to_ptr.vmem [resolvable:$true] %s36_s29 }
   0x9   :  { %42 = dma.hbm_to_vmem [thread:$0]  %s35_s25, 3072, %s37_s29, [#allocation7], %s5922_s26, %s5922_s26, %s5923_s27  }
   0xa   :  { %5913 = dma.done.wait [#allocation4], 1536  }
   0xb   :  { %5914 = vsyncadd [#allocation4], 4294965760 }
   0xc   :  { %5915 = dma.done.wait [#allocation7], 3072  }
   0xd   :  { %5916 = vsyncadd [#allocation7], 4294964224  ;;  %v4996_v0 = vld [vmem:[#allocation6 + $0xa8] sm:$0xf]  ;;  %v5156_v1 = vld [vmem:[#allocation6 + $0xb0] sm:$0xf0] }
   0xe   :  { %v4984_v2 = vld [vmem:[#allocation6 + $0x90] sm:$0xf]  ;;  %v5968_v3 = vor.u32 %v5156_v1, %v4996_v0  ;;  %v5153_v4 = vld [vmem:[#allocation6 + $0x98] sm:$0xf0]  ;;  %v5155_v5 = vld [vmem:[#allocation6 + $0xac] sm:$0xf] }
   0xf   :  { %v4998_v6 = vld [vmem:[#allocation6 + $0xb4] sm:$0xf0]  ;;  %v5971_v7 = vor.u32 %v5153_v4, %v4984_v2  ;;  %v5004_v10 = vld [vmem:[#allocation6 + $0xb0] sm:$0xf]  ;;  %v5157_v11 = vld [vmem:[#allocation6 + $0xb8] sm:$0xf0] }
  0x10   :  { %11622 = vst [vmem:[#allocation15_spill] sm:$0xff] %v5968_v3  ;;  %272 = vmatpush.bf16.msra.mxu0 %v5968_v3  ;;  %v4972_v8 = vld [vmem:[#allocation6 + $0x78] sm:$0xf]  ;;  %v5973_v9 = vor.u32 %v5155_v5, %v4998_v6  ;;  %864 = vmatpush.bf16.msra.mxu3 %v5968_v3  ;;  %v5150_v12 = vld [vmem:[#allocation6 + $0x80] sm:$0xf0]  ;;  %v5976_v13 = vor.u32 %v5157_v11, %v5004_v10  ;;  %v136_v45 = vld [vmem:[%s11429_s1 + $0x8] sm:$0xff] }
  0x11   :  { %11623 = vst [vmem:[#allocation16_spill] sm:$0xff] %v5971_v7  ;;  %v5152_v14 = vld [vmem:[#allocation6 + $0x94] sm:$0xf]  ;;  %v4986_v15 = vld [vmem:[#allocation6 + $0x9c] sm:$0xf0]  ;;  %v5985_v22 = vor.u32 %v5150_v12, %v4972_v8  ;;  %v5925_v47 = vmov 0  }
  0x12   :  { %11624 = vst [vmem:[#allocation17_spill] sm:$0xff] %v5973_v9  ;;  %285 = vmatpush.bf16.msra.mxu1 %v5973_v9  ;;  %v5979_v16 = vor.u32 %v5152_v14, %v4986_v15  ;;  %v4992_v17 = vld [vmem:[#allocation6 + $0x98] sm:$0xf]  ;;  %v5154_v18 = vld [vmem:[#allocation6 + $0xa0] sm:$0xf0]  ;;  %298 = vmatpush.bf16.msra.mxu2 %v5976_v13  ;;  %v137_v4 = vld [vmem:[%s11429_s1 + $0x10] sm:$0xff] }
  0x13   :  { %11625 = vst [vmem:[#allocation18_spill] sm:$0xff] %v5976_v13  ;;  %v5982_v19 = vor.u32 %v5154_v18, %v4992_v17  ;;  %v5149_v20 = vld [vmem:[#allocation6 + $0x7c] sm:$0xf]  ;;  %v4974_v21 = vld [vmem:[#allocation6 + $0x84] sm:$0xf0]  ;;  %5169 = vset.pattern.permute.xlu0 %v5925_v47  ;;  %v135_v48 = vld [vmem:[%s11429_s1] sm:$0xff]  ;;  %5170 = vset.pattern.permute.xlu1 %v5925_v47 }
  0x14   :  { %11626 = vst [vmem:[#allocation19_spill] sm:$0xff] %v5979_v16  ;;  %273 = vmatpush.bf16.msra.mxu0 %v5971_v7  ;;  %v4980_v23 = vld [vmem:[#allocation6 + $0x80] sm:$0xf]  ;;  %v5151_v24 = vld [vmem:[#allocation6 + $0x88] sm:$0xf0]  ;;  %865 = vmatpush.bf16.msra.mxu3 %v5971_v7  ;;  %v5989_v27 = vor.u32 %v5149_v20, %v4974_v21  ;;  %v138_v6 = vld [vmem:[%s11429_s1 + $0x18] sm:$0xff] }
  0x15   :  { %11627 = vst [vmem:[#allocation20_spill] sm:$0xff] %v5982_v19  ;;  %v4960_v25 = vld [vmem:[#allocation6 + $0x60] sm:$0xf]  ;;  %v5147_v26 = vld [vmem:[#allocation6 + $0x68] sm:$0xf0]  ;;  %v5992_v28 = vor.u32 %v5151_v24, %v4980_v23  ;;  %798 = vperm.xlu0 %5169, %v136_v45   ;;  %793 = vperm.xlu1 %5170, %v135_v48   ;;  %v141_v21 = vld [vmem:[%s11429_s1 + $0x30] sm:$0xff] }
  0x16   :  { %11628 = vst [vmem:[#allocation21_spill] sm:$0xff] %v5985_v22  ;;  %286 = vmatpush.bf16.msra.mxu1 %v5979_v16  ;;  %299 = vmatpush.bf16.msra.mxu2 %v5982_v19  ;;  %v5146_v29 = vld [vmem:[#allocation6 + $0x64] sm:$0xf]  ;;  %v4962_v30 = vld [vmem:[#allocation6 + $0x6c] sm:$0xf0]  ;;  %v5995_v31 = vor.u32 %v5147_v26, %v4960_v25  ;;  %v140_v12 = vld [vmem:[%s11429_s1 + $0x28] sm:$0xff] }
  0x17   :  { %11629 = vst [vmem:[#allocation22_spill] sm:$0xff] %v5989_v27  ;;  %v4968_v32 = vld [vmem:[#allocation6 + $0x68] sm:$0xf]  ;;  %v5148_v33 = vld [vmem:[#allocation6 + $0x70] sm:$0xf0]  ;;  %v5999_v36 = vor.u32 %v5146_v29, %v4962_v30  ;;  %v139_v52 = vld [vmem:[%s11429_s1 + $0x20] sm:$0xff]  ;;  %5171 = vset.pattern.permute.xlu2 %v5925_v47 }
  0x18   :  { %11630 = vst [vmem:[#allocation23_spill] sm:$0xff] %v5992_v28  ;;  %274 = vmatpush.bf16.msra.mxu0 %v5985_v22  ;;  %866 = vmatpush.bf16.msra.mxu3 %v5985_v22  ;;  %v4948_v34 = vld [vmem:[#allocation6 + $0x48] sm:$0xf]  ;;  %v5144_v35 = vld [vmem:[#allocation6 + $0x50] sm:$0xf0]  ;;  %v6002_v37 = vor.u32 %v5148_v33, %v4968_v32  ;;  %v142_v23 = vld [vmem:[%s11429_s1 + $0x38] sm:$0xff] }
  0x19   :  { %11631 = vst [vmem:[#allocation24_spill] sm:$0xff] %v5995_v31  ;;  %v5143_v38 = vld [vmem:[#allocation6 + $0x4c] sm:$0xf]  ;;  %v4950_v39 = vld [vmem:[#allocation6 + $0x54] sm:$0xf0]  ;;  %v6005_v40 = vor.u32 %v5144_v35, %v4948_v34  ;;  %813 = vperm.xlu2 %5171, %v139_v52   ;;  %v5926_v24 = vmov 0.0|0.0  }
  0x1a   :  { %287 = vmatpush.bf16.msra.mxu1 %v5989_v27  ;;  %11632 = vst [vmem:[#allocation25_spill] sm:$0xff] %v5999_v36  ;;  %300 = vmatpush.bf16.msra.mxu2 %v5992_v28  ;;  %v4956_v41 = vld [vmem:[#allocation6 + $0x50] sm:$0xf]  ;;  %v5145_v42 = vld [vmem:[#allocation6 + $0x58] sm:$0xf0]  ;;  %v6012_v46 = vor.u32 %v5143_v38, %v4950_v39  ;;  %v95_v25 = vld [vmem:[#allocation3] sm:$0xff] }
  0x1b   :  { %11633 = vst [vmem:[#allocation26_spill] sm:$0xff] %v6002_v37  ;;  %v4936_v43 = vld [vmem:[#allocation6 + $0x30] sm:$0xf]  ;;  %v5141_v44 = vld [vmem:[#allocation6 + $0x38] sm:$0xf0]  ;;  %v6018_v49 = vor.u32 %v5145_v42, %v4956_v41  ;;  %v101_v30 = vld [vmem:[#allocation3 + $0x24] sm:$0xff]  ;;  %v6128_v34 = vunpack.c.l.bf16 %v95_v25 }
  0x1c   :  { %275 = vmatpush.bf16.msra.mxu0 %v5995_v31  ;;  %11634 = vst [vmem:[#allocation27_spill] sm:$0xff] %v6005_v40  ;;  %867 = vmatpush.bf16.msra.mxu3 %v5995_v31  ;;  %v5140_v50 = vld [vmem:[#allocation6 + $0x34] sm:$0xf]  ;;  %v4938_v51 = vld [vmem:[#allocation6 + $0x3c] sm:$0xf0]  ;;  %v6024_v53 = vor.u32 %v5141_v44, %v4936_v43  ;;  %v97_v26 = vld [vmem:[#allocation3 + $0xc] sm:$0xff]  ;;  %v6136_v41 = vunpack.c.l.bf16 %v101_v30 }
  0x1d   :  { %11635 = vst [vmem:[#allocation28_spill] sm:$0xff] %v6012_v46  ;;  %v4944_v54 = vld [vmem:[#allocation6 + $0x38] sm:$0xf]  ;;  %v5142_v55 = vld [vmem:[#allocation6 + $0x40] sm:$0xf0]  ;;  %v6027_v58 = vor.u32 %v5140_v50, %v4938_v51  ;;  %803 = vperm.xlu0 %5169, %v137_v4   ;;  %808 = vperm.xlu1 %5170, %v138_v6   ;;  %v103_v32 = vld [vmem:[#allocation3 + $0x30] sm:$0xff]  ;;  %v6132_v38 = vunpack.c.l.bf16 %v97_v26 }
  0x1e   :  { %288 = vmatpush.bf16.msra.mxu1 %v5999_v36  ;;  %301 = vmatpush.bf16.msra.mxu2 %v6002_v37  ;;  %11636 = vst [vmem:[#allocation29_spill] sm:$0xff] %v6018_v49  ;;  %v4924_v56 = vld [vmem:[#allocation6 + $0x18] sm:$0xf]  ;;  %v5138_v57 = vld [vmem:[#allocation6 + $0x20] sm:$0xf0]  ;;  %v6030_v59 = vor.u32 %v5142_v55, %v4944_v54  ;;  %v105_v33 = vld [vmem:[#allocation3 + $0x3c] sm:$0xff]  ;;  %v6138_v42 = vunpack.c.l.bf16 %v103_v32 }
  0x1f   :  { %11637 = vst [vmem:[#allocation30_spill] sm:$0xff] %v6024_v53  ;;  %v5137_v60 = vld [vmem:[#allocation6 + $0x1c] sm:$0xf]  ;;  %v4926_v61 = vld [vmem:[#allocation6 + $0x24] sm:$0xf0]  ;;  %v6034_v62 = vor.u32 %v5138_v57, %v4924_v56  ;;  %v6140_v43 = vunpack.c.l.bf16 %v105_v33  ;;  %v109_v51 = vld [vmem:[#allocation3 + $0x54] sm:$0xff] }
  0x20   :  { %276 = vmatpush.bf16.msra.mxu0 %v6005_v40  ;;  %11638 = vst [vmem:[#allocation31_spill] sm:$0xff] %v6027_v58  ;;  %868 = vmatpush.bf16.msra.mxu3 %v6005_v40  ;;  %v4932_v63 = vld [vmem:[#allocation6 + $0x20] sm:$0xf]  ;;  %v5139_v0 = vld [vmem:[#allocation6 + $0x28] sm:$0xf0]  ;;  %v6040_v5 = vor.u32 %v5137_v60, %v4926_v61  ;;  %v99_v29 = vld [vmem:[#allocation3 + $0x18] sm:$0xff]  ;;  %v6153_v4 = vunpack.c.l.bf16 %v109_v51 }
  0x21   :  { %11639 = vst [vmem:[#allocation32_spill] sm:$0xff] %v6030_v59  ;;  %v4912_v1 = vld [vmem:[#allocation6] sm:$0xf]  ;;  %v5135_v2 = vld [vmem:[#allocation6 + $0x8] sm:$0xf0]  ;;  %v6046_v8 = vor.u32 %v5139_v0, %v4932_v63  ;;  %818 = vperm.xlu2 %5171, %v140_v12   ;;  %v6134_v39 = vunpack.c.l.bf16 %v99_v29  ;;  %s4894_s2 = sshll.u32 %s11433_s5, 4  ;;  %s4895_s2 = int_to_ptr.hbm [resolvable:$true] %s4894_s2 }
  0x22   :  { %289 = vmatpush.bf16.msra.mxu1 %v6012_v46  ;;  %302 = vmatpush.bf16.msra.mxu2 %v6018_v49  ;;  %11640 = vst [vmem:[#allocation33_spill] sm:$0xff] %v6034_v62  ;;  %v5134_v10 = vld [vmem:[#allocation6 + $0x4] sm:$0xf]  ;;  %v4914_v11 = vld [vmem:[#allocation6 + $0xc] sm:$0xf0]  ;;  %v6053_v14 = vor.u32 %v5135_v2, %v4912_v1  ;;  %v6130_v35 = vld [vmem:[#allocation3 + $0x48] sm:$0xff] }
  0x23   :  { %11641 = vst [vmem:[#allocation34_spill] sm:$0xff] %v6040_v5  ;;  %v4920_v15 = vld [vmem:[#allocation6 + $0x8] sm:$0xf]  ;;  %v5136_v17 = vld [vmem:[#allocation6 + $0x10] sm:$0xf0]  ;;  %v6056_v18 = vor.u32 %v5134_v10, %v4914_v11  ;;  %v6143_v52 = vunpack.c.l.bf16 %v6130_v35  ;;  %s5929_s5 = smov [#allocation8]  }
  0x24   :  { %277 = vmatpush.bf16.msra.mxu0 %v6024_v53  ;;  %11642 = vst [vmem:[#allocation35_spill] sm:$0xff] %v6046_v8  ;;  %869 = vmatpush.bf16.msra.mxu3 %v6024_v53  ;;  %v6059_v20 = vor.u32 %v5136_v17, %v4920_v15  ;;  %s4878_s30 = sshll.u32 %s5929_s5, 4  ;;  %s4880_s8 = sshll.u32 %s11432_s4, 4  ;;  %s4879_s30 = int_to_ptr.vmem [resolvable:$true] %s4878_s30  ;;  %s4881_s8 = int_to_ptr.hbm [resolvable:$true] %s4880_s8 }
  0x25   :  { %11643 = vst [vmem:[#allocation36_spill] sm:$0xff] %v6053_v14  ;;  %823 = vperm.xlu0 %5169, %v141_v21   ;;  %828 = vperm.xlu1 %5170, %v142_v23   ;;  %s5930_s9 = smov 128   ;;  %s5931_s10 = smov 8  }
  0x26   :  { %290 = vmatpush.bf16.msra.mxu1 %v6027_v58  ;;  %303 = vmatpush.bf16.msra.mxu2 %v6030_v59  ;;  %11644 = vst [vmem:[#allocation37_spill] sm:$0xff] %v6056_v18 }
  0x27   :  { %11645 = vst [vmem:[#allocation38_spill] sm:$0xff] %v6059_v20 }
  0x28   :  { %278 = vmatpush.bf16.msra.mxu0 %v6034_v62  ;;  %870 = vmatpush.bf16.msra.mxu3 %v6034_v62  ;;  %11646 = vst [vmem:[#allocation39_spill] sm:$0xff] %v6128_v34 }
  0x29   :  { %11647 = vst [vmem:[#allocation40_spill] sm:$0xff] %v6132_v38 }
  0x2a   :  { %291 = vmatpush.bf16.msra.mxu1 %v6040_v5  ;;  %304 = vmatpush.bf16.msra.mxu2 %v6046_v8  ;;  %11648 = vst [vmem:[#allocation41_spill] sm:$0xff] %v6134_v39 }
  0x2b   :  { %11649 = vst [vmem:[#allocation42_spill] sm:$0xff] %v6136_v41 }
  0x2c   :  { %279 = vmatpush.bf16.msra.mxu0 %v6053_v14  ;;  %871 = vmatpush.bf16.msra.mxu3 %v6053_v14  ;;  %11650 = vst [vmem:[#allocation43_spill] sm:$0xff] %v6138_v42 }
  0x2d   :  { %11651 = vst [vmem:[#allocation44_spill] sm:$0xff] %v6140_v43 }
  0x2e   :  { %292 = vmatpush.bf16.msra.mxu1 %v6056_v18  ;;  %305 = vmatpush.bf16.msra.mxu2 %v6059_v20  ;;  %11652 = vst [vmem:[#allocation45_spill] sm:$0xff] %v6143_v52 }
  0x2f   :  { %280 = vmatmul.bf16.vlgmr.msra.gmra.mxu0 %v5926_v24  ;;  %11653 = vst [vmem:[#allocation46_spill] sm:$0xff] %v6153_v4 }
  0x30   :  { %877 = vmatpush.bf16.msrb.mxu0 %v5973_v9  ;;  %1422 = vmatpush.bf16.msrb.mxu3 %v5973_v9 }
  0x31   :  { %293 = vmatmul.bf16.vlgmr.msra.gmra.mxu1 %v5926_v24  ;;  %306 = vmatmul.bf16.vlgmr.msra.gmra.mxu2 %v5926_v24 }
  0x32   :  { %890 = vmatpush.bf16.msrb.mxu1 %v5976_v13  ;;  %1409 = vmatpush.bf16.msrb.mxu2 %v5968_v3 }
  0x34   :  { %878 = vmatpush.bf16.msrb.mxu0 %v5979_v16  ;;  %1423 = vmatpush.bf16.msrb.mxu3 %v5979_v16 }
  0x36   :  { %891 = vmatpush.bf16.msrb.mxu1 %v5982_v19  ;;  %1410 = vmatpush.bf16.msrb.mxu2 %v5971_v7 }
  0x38   :  { %879 = vmatpush.bf16.msrb.mxu0 %v5989_v27  ;;  %1424 = vmatpush.bf16.msrb.mxu3 %v5989_v27 }
  0x3a   :  { %892 = vmatpush.bf16.msrb.mxu1 %v5992_v28  ;;  %1411 = vmatpush.bf16.msrb.mxu2 %v5985_v22 }
  0x3c   :  { %880 = vmatpush.bf16.msrb.mxu0 %v5999_v36  ;;  %1425 = vmatpush.bf16.msrb.mxu3 %v5999_v36 }
  0x3e   :  { %893 = vmatpush.bf16.msrb.mxu1 %v6002_v37  ;;  %1412 = vmatpush.bf16.msrb.mxu2 %v5995_v31 }
  0x40   :  { %881 = vmatpush.bf16.msrb.mxu0 %v6012_v46  ;;  %1426 = vmatpush.bf16.msrb.mxu3 %v6012_v46 }
  0x42   :  { %894 = vmatpush.bf16.msrb.mxu1 %v6018_v49  ;;  %1413 = vmatpush.bf16.msrb.mxu2 %v6005_v40 }
  0x44   :  { %882 = vmatpush.bf16.msrb.mxu0 %v6027_v58  ;;  %1427 = vmatpush.bf16.msrb.mxu3 %v6027_v58 }
  0x46   :  { %895 = vmatpush.bf16.msrb.mxu1 %v6030_v59  ;;  %1414 = vmatpush.bf16.msrb.mxu2 %v6024_v53 }
  0x48   :  { %883 = vmatpush.bf16.msrb.mxu0 %v6040_v5  ;;  %1428 = vmatpush.bf16.msrb.mxu3 %v6040_v5 }
  0x4a   :  { %896 = vmatpush.bf16.msrb.mxu1 %v6046_v8  ;;  %1415 = vmatpush.bf16.msrb.mxu2 %v6034_v62 }
  0x4c   :  { %884 = vmatpush.bf16.msrb.mxu0 %v6056_v18  ;;  %1429 = vmatpush.bf16.msrb.mxu3 %v6056_v18 }
  0x4e   :  { %897 = vmatpush.bf16.msrb.mxu1 %v6059_v20  ;;  %1416 = vmatpush.bf16.msrb.mxu2 %v6053_v14 }
  0x50   :  { %1435 = vmatpush.bf16.msra.mxu0 %v5976_v13 }
  0x52   :  { %1954 = vmatpush.bf16.msra.mxu1 %v5968_v3  ;;  %1967 = vmatpush.bf16.msra.mxu2 %v5973_v9 }
  0x54   :  { %1436 = vmatpush.bf16.msra.mxu0 %v5982_v19 }
  0x56   :  { %1955 = vmatpush.bf16.msra.mxu1 %v5971_v7  ;;  %1968 = vmatpush.bf16.msra.mxu2 %v5979_v16 }
  0x58   :  { %1437 = vmatpush.bf16.msra.mxu0 %v5992_v28 }
  0x5a   :  { %1956 = vmatpush.bf16.msra.mxu1 %v5985_v22  ;;  %1969 = vmatpush.bf16.msra.mxu2 %v5989_v27 }
  0x5c   :  { %1438 = vmatpush.bf16.msra.mxu0 %v6002_v37 }
  0x5e   :  { %1957 = vmatpush.bf16.msra.mxu1 %v5995_v31  ;;  %1970 = vmatpush.bf16.msra.mxu2 %v5999_v36 }
  0x60   :  { %1439 = vmatpush.bf16.msra.mxu0 %v6018_v49  ;;  %v108_v49 = vld [vmem:[#allocation3 + $0x50] sm:$0xf] }
  0x62   :  { %1958 = vmatpush.bf16.msra.mxu1 %v6005_v40  ;;  %1971 = vmatpush.bf16.msra.mxu2 %v6012_v46  ;;  %v102_v40 = vld [vmem:[#allocation3 + $0x2c] sm:$0xf] }
  0x64   :  { %1440 = vmatpush.bf16.msra.mxu0 %v6030_v59  ;;  %v100_v59 = vld [vmem:[#allocation3 + $0x20] sm:$0xf] }
  0x65   :  { %v6360_v36 = vunpack.c.l.bf16 %v100_v59  ;;  %v6377_v59 = vunpack.c.l.bf16 %v102_v40 }
  0x66   :  { %1959 = vmatpush.bf16.msra.mxu1 %v6024_v53  ;;  %1972 = vmatpush.bf16.msra.mxu2 %v6027_v58 }
  0x67   :  { %11672 = vst [vmem:[#allocation55_spill] sm:$0xff] %v6360_v36 }
  0x68   :  { %1441 = vmatpush.bf16.msra.mxu0 %v6046_v8  ;;  %11677 = vst [vmem:[#allocation56_spill] sm:$0xff] %v6377_v59 }
  0x6a   :  { %1960 = vmatpush.bf16.msra.mxu1 %v6034_v62  ;;  %1973 = vmatpush.bf16.msra.mxu2 %v6040_v5 }
  0x6c   :  { %1442 = vmatpush.bf16.msra.mxu0 %v6059_v20 }
  0x6e   :  { %1961 = vmatpush.bf16.msra.mxu1 %v6053_v14  ;;  %1974 = vmatpush.bf16.msra.mxu2 %v6056_v18 }
  0xac   :  { %v281_v44 = vpop.f32.mrf.mxu0 }
  0xad   :  { %v312_v45 = vrot.slane %v281_v44, 1  ;;  %v313_v47 = vrot.slane %v281_v44, 2  ;;  %v314_v48 = vrot.slane %v281_v44, 3  ;;  %v315_v50 = vrot.slane %v281_v44, 4 }
  0xae   :  { %v316_v54 = vrot.slane %v281_v44, 5  ;;  %v317_v55 = vrot.slane %v281_v44, 6  ;;  %v327_v56 = vadd.f32 %v281_v44, %v6128_v34  ;;  %v6146_v57 = vpop.f32.mrf.mxu1  ;;  %v318_v12 = vrot.slane %v281_v44, 7 }
  0xaf   :  { %v328_v60 = vadd.f32 %v312_v45, %v6132_v38  ;;  %v329_v61 = vadd.f32 %v313_v47, %v6134_v39  ;;  %v330_v63 = vadd.f32 %v314_v48, %v6136_v41  ;;  %v331_v0 = vadd.f32 %v315_v50, %v6138_v42 }
  0xb0   :  { %v332_v1 = vadd.f32 %v316_v54, %v6140_v43  ;;  %v5006_v2 = vmul.f32 -1.442695, %v327_v56  ;;  %v333_v15 = vadd.f32 %v317_v55, %v6143_v52  ;;  %v334_v24 = vadd.f32 %v318_v12, %v6153_v4 }
  0xb1   :  { %v5007_v6 = vmul.f32 -1.442695, %v328_v60  ;;  %v5008_v10 = vmul.f32 -1.442695, %v329_v61  ;;  %v5009_v11 = vmul.f32 -1.442695, %v330_v63  ;;  %v6157_v48 = vunpack.c.h.bf16 %v95_v25 }
  0xb2   :  { %5173 = vpow2.f32 %v5006_v2  ;;  %v5010_v17 = vmul.f32 -1.442695, %v331_v0  ;;  %v5011_v21 = vmul.f32 -1.442695, %v332_v1  ;;  %v5012_v45 = vmul.f32 -1.442695, %v333_v15 }
  0xb3   :  { %5175 = vpow2.f32 %v5007_v6  ;;  %11654 = vst [vmem:[#allocation47_spill] sm:$0xff] %v6157_v48  ;;  %v6163_v56 = vunpack.c.h.bf16 %v97_v26  ;;  %v6165_v60 = vunpack.c.h.bf16 %v99_v29  ;;  %v5013_v63 = vmul.f32 -1.442695, %v334_v24 }
  0xb4   :  { %5177 = vpow2.f32 %v5008_v10  ;;  %v283_v23 = vpop.f32.mrf.mxu0  ;;  %v6159_v54 = vpop.f32.mrf.mxu2  ;;  %v6167_v0 = vunpack.c.h.bf16 %v101_v30  ;;  %v6169_v1 = vunpack.c.h.bf16 %v103_v32  ;;  %v6174_v6 = vunpack.c.h.bf16 %v105_v33 }
  0xb5   :  { %5179 = vpow2.f32 %v5009_v11  ;;  %11655 = vst [vmem:[#allocation48_spill] sm:$0xff] %v6163_v56  ;;  %v503_v26 = vadd.f32 %v6146_v57, %v6157_v48  ;;  %v488_v30 = vrot.slane %v6146_v57, 1  ;;  %v489_v32 = vrot.slane %v6146_v57, 2 }
  0xb6   :  { %5181 = vpow2.f32 %v5010_v17  ;;  %v296_v47 = vpop.f32.mrf.mxu1  ;;  %11656 = vst [vmem:[#allocation49_spill] sm:$0xff] %v6165_v60  ;;  %v490_v15 = vrot.slane %v6146_v57, 3  ;;  %v491_v33 = vrot.slane %v6146_v57, 4  ;;  %v492_v23 = vrot.slane %v6146_v57, 5 }
  0xb7   :  { %5183 = vpow2.f32 %v5011_v21  ;;  %11657 = vst [vmem:[#allocation50_spill] sm:$0xff] %v6167_v0  ;;  %v6190_v21 = vunpack.c.h.bf16 %v6130_v35  ;;  %v493_v24 = vrot.slane %v6146_v57, 6  ;;  %v494_v47 = vrot.slane %v6146_v57, 7 }
  0xb8   :  { %v5174_v50 = vpop.eup %5173  ;;  %5185 = vpow2.f32 %v5012_v45  ;;  %11658 = vst [vmem:[#allocation51_spill] sm:$0xff] %v6169_v1  ;;  %v6195_v45 = vunpack.c.h.bf16 %v109_v51  ;;  %v506_v51 = vadd.f32 %v490_v15, %v6167_v0  ;;  %v507_v4 = vadd.f32 %v491_v33, %v6169_v1 }
  0xb9   :  { %v5176_v44 = vpop.eup %5175  ;;  %v6161_v55 = vadd.f32 1.0, %v5174_v50  ;;  %11659 = vst [vmem:[#allocation52_spill] sm:$0xff] %v6174_v6  ;;  %v508_v57 = vadd.f32 %v492_v23, %v6174_v6  ;;  %v509_v52 = vadd.f32 %v493_v24, %v6190_v21 }
  0xba   :  { %v5178_v61 = vpop.eup %5177  ;;  %v6178_v29 = vadd.f32 1.0, %v5176_v44  ;;  %11660 = vst [vmem:[#allocation53_spill] sm:$0xff] %v6190_v21  ;;  %v504_v44 = vadd.f32 %v488_v30, %v6163_v56  ;;  %v6229_v42 = vmul.f32 -1.442695, %v507_v4 }
  0xbb   :  { %v5180_v25 = vpop.eup %5179  ;;  %v6171_v2 = vadd.f32 1.0, %v5178_v61  ;;  %5187 = vrcp.f32 %v6161_v55  ;;  %11661 = vst [vmem:[#allocation54_spill] sm:$0xff] %v6195_v45  ;;  %v505_v61 = vadd.f32 %v489_v32, %v6165_v60  ;;  %v6217_v32 = vadd.f32 %v494_v47, %v6195_v45 }
  0xbc   :  { %v5182_v10 = vpop.eup %5181  ;;  %v6180_v11 = vadd.f32 1.0, %v5180_v25  ;;  %v309_v35 = vpop.f32.mrf.mxu2  ;;  %v5015_v33 = vmul.f32 -1.442695, %v504_v44  ;;  %v378_v24 = vand.u32 2147483648, %v6161_v55  ;;  %v6236_v44 = vmul.f32 -1.442695, %v508_v57 }
  0xbd   :  { %v6184_v12 = vadd.f32 1.0, %v5182_v10  ;;  %5189 = vrcp.f32 %v6171_v2  ;;  %v5184_v17 = vpop.eup %5183  ;;  %v6221_v35 = vmul.f32 -1.442695, %v505_v61  ;;  %v408_v41 = vand.u32 2147483648, %v6171_v2 }
  0xbe   :  { %5191 = vpow2.f32 %v5013_v63  ;;  %v5186_v50 = vpop.eup %5185  ;;  %v5014_v63 = vmul.f32 -1.442695, %v503_v26  ;;  %v6203_v10 = vadd.f32 1.0, %v5184_v17  ;;  %v6238_v61 = vmul.f32 -1.442695, %v509_v52 }
  0xbf   :  { %5193 = vrcp.f32 %v6180_v11  ;;  %v6212_v30 = vadd.f32 1.0, %v5186_v50  ;;  %v6227_v50 = vmul.f32 -1.442695, %v506_v51  ;;  %v423_v21 = vand.u32 2147483648, %v6180_v11 }
  0xc0   :  { %5195 = vrcp.f32 %v6178_v29  ;;  %v6250_v6 = vor.u32 1.1754944e-38, %v378_v24  ;;  %v421_v1 = vand.u32 2147483647, %v6180_v11  ;;  %v436_v48 = vand.u32 2147483647, %v6184_v12 }
  0xc1   :  { %v6201_v25 = vpop.eup %5187  ;;  %5197 = vrcp.f32 %v6184_v12  ;;  %vm372_vm1 = vweird.f32 %v6161_v55  ;;  %v6271_v18 = vor.u32 1.1754944e-38, %v423_v21  ;;  %vm402_vm2 = vweird.f32 %v6171_v2 }
  0xc2   :  { %v368_v26 = vmul.f32 %v6201_v25, %v6161_v55  ;;  %5199 = vpow2.f32 %v5014_v63  ;;  %vm373_vm0 = vweird.f32 %v6201_v25  ;;  %vm417_vm5 = vweird.f32 %v6180_v11 }
  0xc3   :  { %v6210_v43 = vpop.eup %5189  ;;  %5201 = vrcp.f32 %v6203_v10  ;;  %v451_v20 = vand.u32 2147483647, %v6203_v10  ;;  %vm432_vm6 = vweird.f32 %v6184_v12  ;;  %vm6320_vm11 = vcmp.eq.f32.partialorder %v421_v1, 8.507059e+37  ;;  %vm6350_vm8 = vmor %vm372_vm1, %vm373_vm0 }
  0xc4   :  { %v5192_v17 = vpop.eup %5191  ;;  %v398_v15 = vmul.f32 %v6210_v43, %v6171_v2  ;;  %v369_v34 = vsub.f32 1.0, %v368_v26  ;;  %5203 = vrcp.f32 %v6212_v30  ;;  %v406_v26 = vand.u32 2147483647, %v6171_v2 }
  0xc5   :  { %v6223_v23 = vpop.eup %5193  ;;  %v6242_v38 = vadd.f32 1.0, %v5192_v17  ;;  %v438_v17 = vand.u32 2147483648, %v6184_v12  ;;  %vm403_vm3 = vweird.f32 %v6210_v43  ;;  %vm6325_vm12 = vcmp.eq.f32.partialorder %v436_v48, 8.507059e+37  ;;  %v6344_v48 = vld [vmem:[%s11431_s3] ss:$0 sm:$0xff] }
  0xc6   :  { %v6231_v47 = vpop.eup %5195  ;;  %v413_v63 = vmul.f32 %v6223_v23, %v6180_v11  ;;  %v399_v45 = vsub.f32 1.0, %v398_v15  ;;  %v6261_v15 = vor.u32 1.1754944e-38, %v408_v41  ;;  %v370_v24 = vmul.f32 %v6201_v25, %v369_v34  ;;  %vm6366_vm10 = vmor %vm402_vm2, %vm403_vm3 }
  0xc7   :  { %v6240_v39 = vpop.eup %5197  ;;  %v6254_v52 = vmul.f32 %v6231_v47, %v6178_v29  ;;  %5205 = vrcp.f32 %v6242_v38  ;;  %vm418_vm4 = vweird.f32 %v6223_v23  ;;  %v483_v53 = vand.u32 2147483648, %v6242_v38 }
  0xc8   :  { %v428_v57 = vmul.f32 %v6240_v39, %v6184_v12  ;;  %v6258_v51 = vpop.eup %5199  ;;  %v414_v4 = vsub.f32 1.0, %v413_v63  ;;  %v400_v56 = vmul.f32 %v6210_v43, %v399_v45  ;;  %v453_v63 = vand.u32 2147483648, %v6203_v10  ;;  %vm6383_vm1 = vmor %vm417_vm5, %vm418_vm4 }
  0xc9   :  { %v6264_v0 = vpop.eup %5201  ;;  %v6290_v34 = vadd.f32 %v6201_v25, %v370_v24  ;;  %5207 = vpow2.f32 %v5015_v33  ;;  %vm433_vm7 = vweird.f32 %v6240_v39  ;;  %v466_v24 = vand.u32 2147483647, %v6212_v30 }
  0xca   :  { %v429_v60 = vsub.f32 1.0, %v428_v57  ;;  %v443_v41 = vmul.f32 %v6264_v0, %v6203_v10  ;;  %v6276_v14 = vpop.eup %5203  ;;  %v6282_v57 = vor.u32 1.1754944e-38, %v438_v17  ;;  %v415_v21 = vmul.f32 %v6223_v23, %v414_v4  ;;  %vm6402_vm4 = vmor %vm432_vm6, %vm433_vm7 }
  0xcb   :  { %v458_v5 = vmul.f32 %v6276_v14, %v6212_v30  ;;  %v468_v17 = vand.u32 2147483648, %v6212_v30  ;;  %v6296_v4 = vadd.f32 %v6210_v43, %v400_v56  ;;  %5209 = vpow2.f32 %v6221_v35 }
  0xcc   :  { %v444_v45 = vsub.f32 1.0, %v443_v41  ;;  %v430_v62 = vmul.f32 %v6240_v39, %v429_v60  ;;  %v6300_v41 = vor.u32 1.1754944e-38, %v453_v63  ;;  %v481_v60 = vand.u32 2147483647, %v6242_v38 }
  0xcd   :  { %v459_v8 = vsub.f32 1.0, %v458_v5  ;;  %v6302_v58 = vpop.eup %5205  ;;  %vm6308_vm9 = vcmp.eq.f32.partialorder %v406_v26, 8.507059e+37  ;;  %v6313_v33 = vadd.f32 %v6223_v23, %v415_v21  ;;  %5211 = vpow2.f32 %v6227_v50 }
  0xce   :  { %v445_v63 = vmul.f32 %v6264_v0, %v444_v45  ;;  %v473_v5 = vmul.f32 %v6302_v58, %v6242_v38  ;;  %v431_v35 = vadd.f32 %v6240_v39, %v430_v62  ;;  %vm448_vm13 = vweird.f32 %v6264_v0 }
  0xcf   :  { %v6330_v21 = vor.u32 1.1754944e-38, %v468_v17  ;;  %v5021_v45 = vmul.f32 -1.442695, %v6217_v32  ;;  %vm6333_vm14 = vcmp.eq.f32.partialorder %v451_v20, 8.507059e+37  ;;  %v460_v1 = vmul.f32 %v6276_v14, %v459_v8  ;;  %v104_v32 = vld [vmem:[#allocation3 + $0x38] sm:$0xf]  ;;  %v5208_v17 = vpop.eup %5207 }
  0xd0   :  { %vm463_vm15 = vweird.f32 %v6276_v14  ;;  %v474_v62 = vsub.f32 1.0, %v473_v5  ;;  %5213 = vpow2.f32 %v6229_v42  ;;  %v6354_v20 = vor.u32 1.1754944e-38, %v483_v53  ;;  %v106_v5 = vld [vmem:[#allocation3 + $0x44] sm:$0xf] }
  0xd1   :  { %5215 = vpow2.f32 %v6236_v44  ;;  %v6358_v42 = vadd.f32 1.0, %v6258_v51  ;;  %v446_v53 = vadd.f32 %v6264_v0, %v445_v63  ;;  %vm6371_vm0 = vcmp.eq.f32.partialorder %v466_v24, 8.507059e+37  ;;  %v5210_v51 = vpop.eup %5209 }
  0xd2   :  { %v475_v44 = vmul.f32 %v6302_v58, %v474_v62  ;;  %5217 = vpow2.f32 %v6238_v61  ;;  %vm478_vm2 = vweird.f32 %v6302_v58  ;;  %v6388_v24 = vadd.f32 1.0, %v5208_v17 }
  0xd3   :  { %5219 = vpow2.f32 %v5021_v45  ;;  %v6390_v63 = vunpack.c.l.bf16 %v104_v32  ;;  %v5212_v62 = vpop.eup %5211  ;;  %v11681_v40 = vand.u32 2147483647, %v6161_v55  ;;  %v461_v45 = vadd.f32 %v6276_v14, %v460_v1 }
  0xd4   :  { %vm6407_vm5 = vcmp.eq.f32.partialorder %v481_v60, 8.507059e+37  ;;  %v6411_v17 = vunpack.c.l.bf16 %v106_v5  ;;  %v6413_v55 = vunpack.c.l.bf16 %v108_v49  ;;  %vm11690_vm6 = vweird.f32 %v6203_v10 }
  0xd5   :  { %11680 = vst [vmem:[#allocation57_spill] sm:$0xff] %v6390_v63  ;;  %vm6394_vm3 = vcmp.eq.f32.partialorder %v11681_v40, 8.507059e+37  ;;  %v405_v40 = vsel %vm6366_vm10, %v6210_v43, %v6296_v4  ;;  %vm6423_vm7 = vmor %vm11690_vm6, %vm448_vm13  ;;  %v375_v60 = vsel %vm6350_vm8, %v6201_v25, %v6290_v34  ;;  %v420_v49 = vsel %vm6383_vm1, %v6223_v23, %v6313_v33 }
  0xd6   :  { %11688 = vst [vmem:[#allocation58_spill] sm:$0xff] %v6411_v17  ;;  %v435_v31 = vsel %vm6402_vm4, %v6240_v39, %v431_v35  ;;  %v6440_v43 = vadd.f32 %v6344_v48, %v6159_v54  ;;  %v5214_v10 = vpop.eup %5213  ;;  %v476_v4 = vadd.f32 %v6302_v58, %v475_v44  ;;  %v6443_v1 = vadd.f32 1.0, %v5210_v51 }
  0xd7   :  { %11689 = vst [vmem:[#allocation59_spill] sm:$0xff] %v6413_v55  ;;  %5221 = vrcp.f32 %v6358_v42  ;;  %v450_v25 = vsel %vm6423_vm7, %v6264_v0, %v446_v53  ;;  %v5216_v23 = vpop.eup %5215  ;;  %vm11693_vm8 = vweird.f32 %v6212_v30  ;;  %v6457_v54 = vadd.f32 1.0, %v5212_v62  ;;  %v96_v62 = vld [vmem:[#allocation3 + $0x8] sm:$0xf] }
  0xd8   :  { %vm6453_vm10 = vmor %vm11693_vm8, %vm463_vm15  ;;  %5223 = vrcp.f32 %v6388_v24  ;;  %v410_v34 = vsel %vm6308_vm9, %v6261_v15, %v405_v40  ;;  %v666_v33 = vrot.slane %v6440_v43, 2  ;;  %v5218_v0 = vpop.eup %5217  ;;  %v425_v35 = vsel %vm6320_vm11, %v6271_v18, %v420_v49  ;;  %v110_v49 = vld [vmem:[#allocation3 + $0x5c] sm:$0xf] }
  0xd9   :  { %v440_v30 = vsel %vm6325_vm12, %v6282_v57, %v435_v31  ;;  %v465_v8 = vsel %vm6453_vm10, %v6276_v14, %v461_v45  ;;  %v667_v5 = vrot.slane %v6440_v43, 3  ;;  %v5220_v53 = vpop.eup %5219  ;;  %vm11696_vm9 = vweird.f32 %v6242_v38 }
  0xda   :  { %vm6478_vm13 = vmor %vm11696_vm9, %vm478_vm2  ;;  %v6482_v46 = vadd.f32 1.0, %v5214_v10  ;;  %v455_v18 = vsel %vm6333_vm14, %v6300_v41, %v450_v25  ;;  %v668_v57 = vrot.slane %v6440_v43, 4  ;;  %v669_v14 = vrot.slane %v6440_v43, 5 }
  0xdb   :  { %v6489_v56 = vadd.f32 1.0, %v5216_v23  ;;  %5225 = vrcp.f32 %v6443_v1  ;;  %v480_v38 = vsel %vm6478_vm13, %v6302_v58, %v476_v4  ;;  %v670_v26 = vrot.slane %v6440_v43, 6 }
  0xdc   :  { %v6496_v44 = vadd.f32 1.0, %v5218_v0  ;;  %5227 = vrcp.f32 %v6457_v54  ;;  %v470_v41 = vsel %vm6371_vm0, %v6330_v21, %v465_v8  ;;  %v682_v50 = vmul.f32 %v666_v33, %v410_v34 }
  0xdd   :  { %v6502_v51 = vpop.eup %5221  ;;  %v6504_v2 = vadd.f32 1.0, %v5220_v53  ;;  %v683_v11 = vmul.f32 %v667_v5, %v425_v35  ;;  %v684_v45 = vmul.f32 %v668_v57, %v440_v30  ;;  %v685_v40 = vmul.f32 %v669_v14, %v455_v18  ;;  %v98_v30 = vld [vmem:[#allocation3 + $0x14] sm:$0xf] }
  0xde   :  { %v6506_v58 = vpop.eup %5223  ;;  %5229 = vrcp.f32 %v6482_v46  ;;  %v380_v12 = vsel %vm6394_vm3, %v6250_v6, %v375_v60  ;;  %v485_v37 = vsel %vm6407_vm5, %v6354_v20, %v480_v38  ;;  %v671_v21 = vrot.slane %v6440_v43, 7 }
  0xdf   :  { %5231 = vrcp.f32 %v6489_v56  ;;  %v686_v31 = vmul.f32 %v670_v26, %v470_v41  ;;  %v690_v10 = vadd.f32 %v682_v50, %v6360_v36  ;;  %v691_v4 = vadd.f32 %v683_v11, %v6377_v59 }
  0xe0   :  { %v11699_v25 = vsub.f32 1.0, %v6254_v52  ;;  %5233 = vrcp.f32 %v6496_v44  ;;  %v6523_v6 = vunpack.c.l.bf16 %v96_v62  ;;  %v692_v20 = vadd.f32 %v684_v45, %v6390_v63 }
  0xe1   :  { %v6526_v61 = vpop.eup %5225  ;;  %v559_v32 = vmul.f32 %v6506_v58, %v6388_v24  ;;  %5235 = vrcp.f32 %v6504_v2  ;;  %v680_v60 = vmul.f32 %v6440_v43, %v380_v12  ;;  %v693_v39 = vadd.f32 %v685_v40, %v6411_v17 }
  0xe2   :  { %v385_v23 = vmul.f32 %v6231_v47, %v11699_v25  ;;  %v6533_v52 = vpop.eup %5227  ;;  %vm388_vm11 = vweird.f32 %v6231_v47  ;;  %v6536_v34 = vunpack.c.l.bf16 %v110_v49  ;;  %v687_v33 = vmul.f32 %v671_v21, %v485_v37 }
  0xe3   :  { %5237 = vtanh.f32 %v690_v10  ;;  %vm387_vm12 = vweird.f32 %v6178_v29  ;;  %v544_v0 = vmul.f32 %v6502_v51, %v6358_v42  ;;  %v694_v35 = vadd.f32 %v686_v31, %v6413_v55 }
  0xe4   :  { %11700 = vst [vmem:[#allocation60_spill] sm:$0xff] %v6536_v34  ;;  %5239 = vtanh.f32 %v691_v4  ;;  %v6542_v8 = vpop.eup %5229  ;;  %v665_v5 = vrot.slane %v6440_v43, 1  ;;  %v386_v53 = vadd.f32 %v6231_v47, %v385_v23  ;;  %v391_v15 = vand.u32 2147483647, %v6178_v29  ;;  %vm389_vm14 = vmor %vm387_vm12, %vm388_vm11 }
  0xe5   :  { %5241 = vtanh.f32 %v692_v20  ;;  %v6547_v18 = vpop.eup %5231  ;;  %v11701_v57 = vand.u32 2147483648, %v6178_v29  ;;  %v688_v38 = vadd.f32 %v680_v60, %v6523_v6  ;;  %v560_v26 = vsub.f32 1.0, %v559_v32 }
  0xe6   :  { %5243 = vtanh.f32 %v693_v39  ;;  %v6554_v41 = vpop.eup %5233  ;;  %v695_v43 = vadd.f32 %v687_v33, %v6536_v34  ;;  %v6557_v50 = vunpack.c.l.bf16 %v98_v30  ;;  %v390_v62 = vsel %vm389_vm14, %v6231_v47, %v386_v53 }
  0xe7   :  { %v394_v14 = vor.u32 1.1754944e-38, %v11701_v57  ;;  %vm392_vm15 = vcmp.eq.f32.partialorder %v391_v15, 8.507059e+37  ;;  %v6560_v11 = vpop.eup %5235  ;;  %5245 = vtanh.f32 %v694_v35  ;;  %v561_v29 = vmul.f32 %v6506_v58, %v560_v26 }
  0xe8   :  { %11702 = vst [vmem:[#allocation61_spill] sm:$0xff] %v6557_v50  ;;  %v545_v40 = vsub.f32 1.0, %v544_v0  ;;  %v574_v37 = vmul.f32 %v6526_v61, %v6443_v1  ;;  %v589_v21 = vmul.f32 %v6533_v52, %v6457_v54  ;;  %v567_v49 = vand.u32 2147483647, %v6388_v24 }
  0xe9   :  { %v395_v45 = vsel %vm392_vm15, %v394_v14, %v390_v62  ;;  %v6563_v12 = vpop.eup %5237  ;;  %vm563_vm0 = vweird.f32 %v6388_v24  ;;  %vm564_vm1 = vweird.f32 %v6506_v58  ;;  %v569_v10 = vand.u32 2147483648, %v6388_v24 }
  0xea   :  { %v681_v31 = vmul.f32 %v665_v5, %v395_v45  ;;  %v6570_v47 = vpop.eup %5239  ;;  %v604_v25 = vmul.f32 %v6542_v8, %v6482_v46  ;;  %5247 = vtanh.f32 %v688_v38  ;;  %vm11545_vm2 = vcmask 1041409   ;;  %vm6592_vm5 = vmor %vm563_vm0, %vm564_vm1 }
  0xeb   :  { %v6575_v4 = vpop.eup %5241  ;;  %5249 = vtanh.f32 %v695_v43  ;;  %vm11543_vm3 = vcmask 1042434   ;;  %v562_v32 = vadd.f32 %v6506_v58, %v561_v29  ;;  %v546_v60 = vmul.f32 %v6502_v51, %v545_v40 }
  0xec   :  { %v689_v23 = vadd.f32 %v681_v31, %v6557_v50  ;;  %v6580_v20 = vpop.eup %5243  ;;  %v715_v39 = vrot.slane %v6563_v12, 6  ;;  %vm11542_vm4 = vcmask 1043459   ;;  %v11496_v33 = vmov 0.0  }
  0xed   :  { %v6586_v0 = vrot.slane %v11496_v33, 1  ;;  %vm6596_vm6 = vcmp.eq.f32.partialorder %v567_v49, 8.507059e+37  ;;  %v6600_v5 = vpop.eup %5245  ;;  %v718_v53 = vrot.slane %v6570_v47, 5  ;;  %v721_v15 = vrot.slane %v6575_v4, 4 }
  0xee   :  { %5251 = vtanh.f32 %v689_v23  ;;  %vm11541_vm7 = vcmask 1044484   ;;  %v570_v57 = vor.u32 1.1754944e-38, %v569_v10  ;;  %vm548_vm8 = vweird.f32 %v6358_v42 }
  0xef   :  { %v724_v24 = vrot.slane %v6580_v20, 3  ;;  %vm11540_vm10 = vcmask 1045509   ;;  %vm549_vm9 = vweird.f32 %v6502_v51  ;;  %v552_v14 = vand.u32 2147483647, %v6358_v42 }
  0xf0   :  { %v575_v38 = vsub.f32 1.0, %v574_v37  ;;  %vm11539_vm13 = vcmask 1046534   ;;  %v566_v26 = vsel %vm6592_vm5, %v6506_v58, %v562_v32  ;;  %v547_v43 = vadd.f32 %v6502_v51, %v546_v60  ;;  %v6613_v29 = vpop.eup %5247  ;;  %vm6625_vm15 = vmor %vm548_vm8, %vm549_vm9 }
  0xf1   :  { %v554_v62 = vand.u32 2147483648, %v6358_v42  ;;  %v590_v45 = vsub.f32 1.0, %v589_v21  ;;  %v727_v40 = vrot.slane %v6600_v5, 2  ;;  %vm11538_vm11 = vcmask 1047559   ;;  %v6619_v37 = vpop.eup %5249 }
  0xf2   :  { %v576_v49 = vmul.f32 %v6526_v61, %v575_v38  ;;  %vm578_vm12 = vweird.f32 %v6443_v1  ;;  %vm579_vm14 = vweird.f32 %v6526_v61  ;;  %v582_v21 = vand.u32 2147483647, %v6443_v1 }
  0xf3   :  { %v584_v31 = vand.u32 2147483648, %v6443_v1  ;;  %v591_v10 = vmul.f32 %v6533_v52, %v590_v45  ;;  %vm593_vm0 = vweird.f32 %v6457_v54  ;;  %vm594_vm1 = vweird.f32 %v6533_v52  ;;  %vm6653_vm8 = vmor %vm578_vm12, %vm579_vm14 }
  0xf4   :  { %v6633_v23 = vpop.eup %5251  ;;  %v597_v32 = vand.u32 2147483647, %v6457_v54  ;;  %v599_v42 = vand.u32 2147483648, %v6457_v54  ;;  %v605_v60 = vsub.f32 1.0, %v604_v25  ;;  %v571_v35 = vsel %vm6596_vm6, %v570_v57, %v566_v26  ;;  %vm6669_vm9 = vmor %vm593_vm0, %vm594_vm1  ;;  %v6724_v26 = vpop.permute.xlu0 %798 }
  0xf5   :  { %v712_v38 = vrot.slane %v6633_v23, 7  ;;  %vm6641_vm5 = vcmp.eq.f32.partialorder %v552_v14, 8.507059e+37  ;;  %v577_v45 = vadd.f32 %v6526_v61, %v576_v49  ;;  %v551_v34 = vsel %vm6625_vm15, %v6502_v51, %v547_v43  ;;  %11724 = vst [vmem:[#allocation62_spill] sm:$0xff] %v6724_v26 }
  0xf6   :  { %v555_v55 = vor.u32 1.1754944e-38, %v554_v62  ;;  %v592_v30 = vadd.f32 %v6533_v52, %v591_v10  ;;  %v606_v57 = vmul.f32 %v6542_v8, %v605_v60  ;;  %vm6661_vm6 = vcmp.eq.f32.partialorder %v582_v21, 8.507059e+37 }
  0xf7   :  { %v714_v14 = vsel %vm11545_vm2, %v712_v38, %v6613_v29  ;;  %v585_v51 = vor.u32 1.1754944e-38, %v584_v31  ;;  %vm608_vm12 = vweird.f32 %v6482_v46  ;;  %vm6675_vm14 = vcmp.eq.f32.partialorder %v597_v32, 8.507059e+37 }
  0xf8   :  { %v717_v43 = vsel %vm11543_vm3, %v715_v39, %v714_v14  ;;  %v600_v49 = vor.u32 1.1754944e-38, %v599_v42  ;;  %vm609_vm15 = vweird.f32 %v6542_v8  ;;  %v581_v54 = vsel %vm6653_vm8, %v6526_v61, %v577_v45 }
  0xf9   :  { %v720_v58 = vsel %vm11542_vm4, %v718_v53, %v717_v43  ;;  %v612_v21 = vand.u32 2147483647, %v6482_v46  ;;  %v634_v31 = vmul.f32 %v6554_v41, %v6496_v44  ;;  %v596_v10 = vsel %vm6669_vm9, %v6533_v52, %v592_v30  ;;  %vm6700_vm0 = vmor %vm608_vm12, %vm609_vm15 }
  0xfa   :  { %v723_v39 = vsel %vm11541_vm7, %v721_v15, %v720_v58  ;;  %v607_v32 = vadd.f32 %v6542_v8, %v606_v57  ;;  %v614_v42 = vand.u32 2147483648, %v6482_v46  ;;  %v730_v53 = vrot.slane %v6619_v37, 1 }
  0xfb   :  { %v726_v60 = vsel %vm11540_vm10, %v724_v24, %v723_v39  ;;  %v11719_v61 = vmov 0.0   ;;  %v635_v15 = vsub.f32 1.0, %v634_v31  ;;  %v556_v25 = vsel %vm6641_vm5, %v555_v55, %v551_v34  ;;  %v6738_v39 = vpop.permute.xlu1 %793 }
  0xfc   :  { %v6696_v38 = vrot.slane %v11719_v61, 2  ;;  %v729_v52 = vsel %vm11539_vm13, %v727_v40, %v726_v60  ;;  %v586_v30 = vsel %vm6661_vm6, %v585_v51, %v581_v54  ;;  %v649_v24 = vmul.f32 %v6560_v11, %v6504_v2  ;;  %11725 = vst [vmem:[#allocation63_spill] sm:$0xff] %v6738_v39 }
  0xfd   :  { %v732_v57 = vsel %vm11538_vm11, %v730_v53, %v729_v52  ;;  %v601_v46 = vsel %vm6675_vm14, %v600_v49, %v596_v10  ;;  %vm6714_vm1 = vcmp.eq.f32.partialorder %v612_v21, 8.507059e+37  ;;  %v636_v40 = vmul.f32 %v6554_v41, %v635_v15 }
  0xfe   :  { %v6719_v1 = vsub.f32 0.0, %v732_v57  ;;  %v611_v55 = vsel %vm6700_vm0, %v6542_v8, %v607_v32  ;;  %v615_v34 = vor.u32 1.1754944e-38, %v614_v42  ;;  %v650_v33 = vsub.f32 1.0, %v649_v24 }
  0xff   :  { %vm638_vm5 = vweird.f32 %v6496_v44  ;;  %vm639_vm8 = vweird.f32 %v6554_v41  ;;  %v642_v51 = vand.u32 2147483647, %v6496_v44  ;;  %v644_v43 = vand.u32 2147483648, %v6496_v44 }
 0x100   :  { %v736_v62 = vrot.slane %v6719_v1, 1  ;;  %v737_v49 = vrot.slane %v6719_v1, 2  ;;  %v738_v58 = vrot.slane %v6719_v1, 3  ;;  %vm653_vm6 = vweird.f32 %v6504_v2  ;;  %vm6744_vm12 = vmor %vm638_vm5, %vm639_vm8 }
 0x101   :  { %v739_v8 = vrot.slane %v6719_v1, 4  ;;  %v637_v54 = vadd.f32 %v6554_v41, %v636_v40  ;;  %v651_v21 = vmul.f32 %v6560_v11, %v650_v33  ;;  %vm654_vm9 = vweird.f32 %v6560_v11 }
 0x102   :  { %v752_v31 = vmul.f32 %v736_v62, %v571_v35  ;;  %v753_v10 = vmul.f32 %v737_v49, %v586_v30  ;;  %v754_v32 = vmul.f32 %v738_v58, %v601_v46  ;;  %v659_v53 = vand.u32 2147483648, %v6504_v2  ;;  %vm6765_vm15 = vmor %vm653_vm6, %vm654_vm9 }
 0x103   :  { %v770_v60 = vrot.slane %v11719_v61, 3  ;;  %v616_v45 = vsel %vm6714_vm1, %v615_v34, %v611_v55  ;;  %v652_v35 = vadd.f32 %v6560_v11, %v651_v21  ;;  %v657_v15 = vand.u32 2147483647, %v6504_v2 }
 0x104   :  { %v760_v52 = vadd.f32 %v6633_v23, %v752_v31  ;;  %v751_v30 = vmul.f32 %v6719_v1, %v556_v25  ;;  %v761_v44 = vadd.f32 %v6563_v12, %v753_v10  ;;  %vm6757_vm14 = vcmp.eq.f32.partialorder %v642_v51, 8.507059e+37  ;;  %v6794_v10 = vpop.permute.xlu1 %808 }
 0x105   :  { %v755_v46 = vmul.f32 %v739_v8, %v616_v45  ;;  %v641_v23 = vsel %vm6744_vm12, %v6554_v41, %v637_v54  ;;  %v645_v25 = vor.u32 1.1754944e-38, %v644_v43  ;;  %v741_v12 = vrot.slane %v6719_v1, 6  ;;  %11733 = vst [vmem:[#allocation65_spill] sm:$0xff] %v6794_v10 }
 0x106   :  { %v784_v14 = vsub.f32 %v760_v52, %v6586_v0  ;;  %v785_v40 = vsub.f32 %v761_v44, %v6696_v38  ;;  %v762_v55 = vadd.f32 %v6570_v47, %v754_v32  ;;  %v660_v34 = vor.u32 1.1754944e-38, %v659_v53  ;;  %v6785_v38 = vpop.permute.xlu0 %803  ;;  %v11744_v53 = vld [vmem:[#allocation29_spill] sm:$0xff] }
 0x107   :  { %v656_v2 = vsel %vm6765_vm15, %v6560_v11, %v652_v35  ;;  %vm658_vm0 = vcmp.eq.f32.partialorder %v657_v15, 8.507059e+37  ;;  %v742_v33 = vrot.slane %v6719_v1, 7  ;;  %v619_v41 = vmul.f32 %v6547_v18, %v6489_v56  ;;  %11732 = vst [vmem:[#allocation64_spill] sm:$0xff] %v6785_v38 }
 0x108   :  { %v832_v51 = vmul.f32 %v6724_v26, %v784_v14  ;;  %v759_v43 = vadd.f32 %v6613_v29, %v751_v30  ;;  %v771_v0 = vrot.slane %v11719_v61, 4  ;;  %v763_v47 = vadd.f32 %v6575_v4, %v755_v46  ;;  %v6796_v4 = vpop.permute.xlu2 %813 }
 0x109   :  { %v646_v62 = vsel %vm6757_vm14, %v645_v25, %v641_v23  ;;  %v620_v11 = vsub.f32 1.0, %v619_v41  ;;  %vm623_vm1 = vweird.f32 %v6489_v56  ;;  %v833_v49 = vmul.f32 %v6785_v38, %v785_v40  ;;  %11734 = vst [vmem:[#allocation66_spill] sm:$0xff] %v6796_v4 }
 0x10a   :  { %v786_v58 = vsub.f32 %v762_v55, %v770_v60  ;;  %v757_v8 = vmul.f32 %v741_v12, %v646_v62  ;;  %v661_v54 = vsel %vm658_vm0, %v660_v34, %v656_v2  ;;  %v847_v21 = vrot.slane %v832_v51, 7 }
 0x10b   :  { %v758_v31 = vmul.f32 %v742_v33, %v661_v54  ;;  %v621_v29 = vmul.f32 %v6547_v18, %v620_v11  ;;  %vm624_vm5 = vweird.f32 %v6547_v18  ;;  %v773_v32 = vrot.slane %v11719_v61, 6 }
 0x10c   :  { %v774_v42 = vrot.slane %v11719_v61, 7  ;;  %vm6800_vm8 = vmor %vm623_vm1, %vm624_vm5  ;;  %v627_v60 = vand.u32 2147483647, %v6489_v56  ;;  %v629_v45 = vand.u32 2147483648, %v6489_v56  ;;  %v831_v35 = vmul.f32 %v6738_v39, %v759_v43 }
 0x10d   :  { %v787_v15 = vsub.f32 %v763_v47, %v771_v0  ;;  %v622_v52 = vadd.f32 %v6547_v18, %v621_v29  ;;  %v740_v30 = vrot.slane %v6719_v1, 5  ;;  %v849_v44 = vrot.slane %v833_v49, 6  ;;  %v6824_v0 = vpop.permute.xlu1 %828  ;;  %v11741_v29 = vld [vmem:[#allocation26_spill] sm:$0xff] }
 0x10e   :  { %v765_v24 = vadd.f32 %v6600_v5, %v757_v8  ;;  %vm628_vm6 = vcmp.eq.f32.partialorder %v627_v60, 8.507059e+37  ;;  %v630_v57 = vor.u32 1.1754944e-38, %v629_v45  ;;  %v848_v46 = vsel %vm11545_vm2, %v847_v21, %v831_v35  ;;  %11738 = vst [vmem:[#allocation68_spill] sm:$0xff] %v6824_v0  ;;  %v11745_v60 = vld [vmem:[#allocation27_spill] sm:$0xff]  ;;  %v11746_v45 = vld [vmem:[#allocation28_spill] sm:$0xff] }
 0x10f   :  { %v834_v23 = vmul.f32 %v6794_v10, %v786_v58  ;;  %v766_v25 = vadd.f32 %v6619_v37, %v758_v31  ;;  %v626_v56 = vsel %vm6800_vm8, %v6547_v18, %v622_v52  ;;  %v772_v14 = vrot.slane %v11719_v61, 5  ;;  %v6821_v37 = vpop.permute.xlu0 %823  ;;  %v11747_v35 = vld [vmem:[#allocation32_spill] sm:$0xff]  ;;  %v11749_v52 = vld [vmem:[#allocation31_spill] sm:$0xff] }
 0x110   :  { %v631_v12 = vsel %vm628_vm6, %v630_v57, %v626_v56  ;;  %v850_v1 = vsel %vm11543_vm3, %v849_v44, %v848_v46  ;;  %v835_v5 = vmul.f32 %v6796_v4, %v787_v15  ;;  %v789_v55 = vsub.f32 %v765_v24, %v773_v32  ;;  %11737 = vst [vmem:[#allocation67_spill] sm:$0xff] %v6821_v37  ;;  %v6826_v61 = vpop.permute.xlu2 %818  ;;  %v11742_v32 = vld [vmem:[#allocation24_spill] sm:$0xff]  ;;  %v11748_v15 = vld [vmem:[#allocation30_spill] sm:$0xff]  ;;  %v11751_v44 = vld [vmem:[#allocation33_spill] sm:$0xff] }
 0x111   :  { %v756_v40 = vmul.f32 %v740_v30, %v631_v12  ;;  %v851_v34 = vrot.slane %v834_v23, 5  ;;  %v790_v2 = vsub.f32 %v766_v25, %v774_v42  ;;  %11739 = vst [vmem:[#allocation69_spill] sm:$0xff] %v6826_v61  ;;  %v11743_v42 = vld [vmem:[#allocation25_spill] sm:$0xff]  ;;  %v11750_v30 = vld [vmem:[#allocation35_spill] sm:$0xff]  ;;  %v11752_v24 = vld [vmem:[#allocation34_spill] sm:$0xff] }
 0x112   :  { %v853_v43 = vrot.slane %v835_v5, 4  ;;  %v837_v18 = vmul.f32 %v6821_v37, %v789_v55  ;;  %v11753_v57 = vld [vmem:[#allocation38_spill] sm:$0xff]  ;;  %v11754_v46 = vld [vmem:[#allocation36_spill] sm:$0xff]  ;;  %v11755_v23 = vld [vmem:[#allocation37_spill] sm:$0xff] }
 0x113   :  { %v764_v33 = vadd.f32 %v6580_v20, %v756_v40  ;;  %v852_v41 = vsel %vm11542_vm4, %v851_v34, %v850_v1  ;;  %v838_v47 = vmul.f32 %v6824_v0, %v790_v2  ;;  %v11756_v5 = vld [vmem:[#allocation48_spill] sm:$0xff] }
 0x114   :  { %v854_v11 = vsel %vm11541_vm7, %v853_v43, %v852_v41  ;;  %v857_v20 = vrot.slane %v837_v18, 2  ;;  %v11758_v18 = vld [vmem:[#allocation49_spill] sm:$0xff] }
 0x115   :  { %v788_v51 = vsub.f32 %v764_v33, %v772_v14  ;;  %v859_v58 = vrot.slane %v838_v47, 1  ;;  %v11757_v33 = vld [vmem:[#allocation47_spill] sm:$0xff] }
 0x117   :  { %v836_v62 = vmul.f32 %v6826_v61, %v788_v51 }
 0x119   :  { %v855_v49 = vrot.slane %v836_v62, 3  ;;  %v11759_v62 = vld [vmem:[#allocation50_spill] sm:$0xff] }
 0x11b   :  { %v856_v8 = vsel %vm11540_vm10, %v855_v49, %v854_v11 }
 0x11c   :  { %v858_v54 = vsel %vm11539_vm13, %v857_v20, %v856_v8 }
 0x11d   :  { %v6834_v21 = vsel %vm11538_vm11, %v859_v58, %v858_v54 }
 0x11e   :  { %11740 = vst [vmem:[#allocation70_spill] sm:$0xff] %v6834_v21  ;;  %v863_v31 = vpack.c.bf16 %v6834_v21, %v6834_v21 }
 0x120   :  { %872 = vmatmul.bf16.vlgmr.msra.gmra.mxu3 %v863_v31  ;;  %885 = vmatmul.bf16.vlgmr.msrb.gmra.mxu0 %v863_v31 }
 0x121   :  { %898 = vmatmul.bf16.vlgmr.msrb.gmra.mxu1 %v863_v31  ;;  %1980 = vmatpush.bf16.msra.mxu3 %v5976_v13  ;;  %v11760_v31 = vld [vmem:[#allocation51_spill] sm:$0xff] }
 0x122   :  { %2499 = vmatpush.bf16.msrb.mxu0 %v5968_v3  ;;  %2512 = vmatpush.bf16.msrb.mxu1 %v5973_v9 }
 0x125   :  { %1981 = vmatpush.bf16.msra.mxu3 %v5982_v19 }
 0x126   :  { %2500 = vmatpush.bf16.msrb.mxu0 %v5971_v7  ;;  %2513 = vmatpush.bf16.msrb.mxu1 %v5979_v16 }
 0x129   :  { %1982 = vmatpush.bf16.msra.mxu3 %v5992_v28 }
 0x12a   :  { %2501 = vmatpush.bf16.msrb.mxu0 %v5985_v22  ;;  %2514 = vmatpush.bf16.msrb.mxu1 %v5989_v27 }
 0x12d   :  { %1983 = vmatpush.bf16.msra.mxu3 %v11741_v29 }
 0x12e   :  { %2502 = vmatpush.bf16.msrb.mxu0 %v11742_v32  ;;  %2515 = vmatpush.bf16.msrb.mxu1 %v11743_v42 }
 0x131   :  { %1984 = vmatpush.bf16.msra.mxu3 %v11744_v53 }
 0x132   :  { %2503 = vmatpush.bf16.msrb.mxu0 %v11745_v60  ;;  %2516 = vmatpush.bf16.msrb.mxu1 %v11746_v45 }
 0x135   :  { %1985 = vmatpush.bf16.msra.mxu3 %v11747_v35 }
 0x136   :  { %2504 = vmatpush.bf16.msrb.mxu0 %v11748_v15  ;;  %2517 = vmatpush.bf16.msrb.mxu1 %v11749_v52 }
 0x139   :  { %1986 = vmatpush.bf16.msra.mxu3 %v11750_v30 }
 0x13a   :  { %2505 = vmatpush.bf16.msrb.mxu0 %v11751_v44  ;;  %2518 = vmatpush.bf16.msrb.mxu1 %v11752_v24 }
 0x13d   :  { %1987 = vmatpush.bf16.msra.mxu3 %v11753_v57 }
 0x13e   :  { %2506 = vmatpush.bf16.msrb.mxu0 %v11754_v46  ;;  %2519 = vmatpush.bf16.msrb.mxu1 %v11755_v23 }
 0x19d   :  { %v886_v25 = vpop.f32.mrf.mxu0 }
 0x19e   :  { %v899_v56 = vpop.f32.mrf.mxu1  ;;  %v1080_v1 = vrot.slane %v886_v25, 7  ;;  %v1096_v55 = vadd.f32 %v886_v25, %v11756_v5  ;;  %v1081_v34 = vrot.slane %v886_v25, 1  ;;  %v1082_v2 = vrot.slane %v886_v25, 2  ;;  %v11761_v5 = vld [vmem:[#allocation52_spill] sm:$0xff] }
 0x19f   :  { %v1083_v20 = vrot.slane %v886_v25, 3  ;;  %v1084_v58 = vrot.slane %v886_v25, 4  ;;  %v1086_v46 = vrot.slane %v886_v25, 6 }
 0x1a0   :  { %v1095_v41 = vadd.f32 %v1080_v1, %v11757_v33  ;;  %v5031_v43 = vmul.f32 -1.442695, %v1096_v55  ;;  %v1097_v47 = vadd.f32 %v1081_v34, %v11758_v18  ;;  %v1098_v11 = vadd.f32 %v1082_v2, %v11759_v62  ;;  %v11764_v62 = vld [vmem:[#allocation39_spill] sm:$0xff] }
 0x1a1   :  { %v1100_v23 = vadd.f32 %v1084_v58, %v11761_v5  ;;  %v11767_v5 = vld [vmem:[#allocation42_spill] sm:$0xff]  ;;  %v11768_v18 = vld [vmem:[#allocation43_spill] sm:$0xff] }
 0x1a2   :  { %v5030_v49 = vmul.f32 -1.442695, %v1095_v41  ;;  %5253 = vpow2.f32 %v5031_v43  ;;  %v5032_v8 = vmul.f32 -1.442695, %v1097_v47  ;;  %v5033_v54 = vmul.f32 -1.442695, %v1098_v11 }
 0x1a3   :  { %v6862_v12 = vpop.f32.mrf.mxu3  ;;  %v5035_v41 = vmul.f32 -1.442695, %v1100_v23  ;;  %v11763_v47 = vld [vmem:[#allocation54_spill] sm:$0xff] }
 0x1a4   :  { %5255 = vpow2.f32 %v5030_v49  ;;  %v1102_v11 = vadd.f32 %v1086_v46, %v11763_v47  ;;  %v904_v58 = vrot.slane %v6862_v12, 7  ;;  %v905_v46 = vrot.slane %v6862_v12, 1 }
 0x1a5   :  { %v888_v14 = vpop.f32.mrf.mxu0  ;;  %5257 = vpow2.f32 %v5032_v8 }
 0x1a6   :  { %v901_v40 = vpop.f32.mrf.mxu1  ;;  %v1099_v14 = vadd.f32 %v1083_v20, %v11760_v31  ;;  %5259 = vpow2.f32 %v5033_v54  ;;  %v6877_v20 = vadd.f32 %v6344_v48, %v899_v56  ;;  %v5037_v8 = vmul.f32 -1.442695, %v1102_v11  ;;  %v11766_v11 = vld [vmem:[#allocation41_spill] sm:$0xff] }
 0x1a7   :  { %v1085_v40 = vrot.slane %v886_v25, 5  ;;  %v907_v25 = vrot.slane %v6862_v12, 3  ;;  %v909_v54 = vrot.slane %v6862_v12, 5  ;;  %v919_v47 = vadd.f32 %v904_v58, %v11764_v62 }
 0x1a8   :  { %v5254_v1 = vpop.eup %5253  ;;  %v5034_v55 = vmul.f32 -1.442695, %v1099_v14  ;;  %v921_v43 = vadd.f32 %v905_v46, %v11766_v11  ;;  %v11769_v46 = vld [vmem:[#allocation44_spill] sm:$0xff] }
 0x1a9   :  { %v6874_v49 = vadd.f32 1.0, %v5254_v1  ;;  %v906_v1 = vrot.slane %v6862_v12, 2  ;;  %v923_v33 = vadd.f32 %v907_v25, %v11768_v18 }
 0x1aa   :  { %v5256_v34 = vpop.eup %5255  ;;  %5261 = vpow2.f32 %v5034_v55  ;;  %v908_v55 = vrot.slane %v6862_v12, 4 }
 0x1ab   :  { %v875_v51 = vpop.f32.mrf.mxu3  ;;  %v5258_v14 = vpop.eup %5257  ;;  %5263 = vpow2.f32 %v5035_v41  ;;  %v922_v31 = vadd.f32 %v906_v1, %v11767_v5 }
 0x1ac   :  { %v11762_v51 = vld [vmem:[#allocation53_spill] sm:$0xff]  ;;  %v5260_v48 = vpop.eup %5259  ;;  %5265 = vrcp.f32 %v6874_v49  ;;  %v924_v1 = vadd.f32 %v908_v55, %v11769_v46  ;;  %v1161_v55 = vand.u32 2147483648, %v6874_v49 }
 0x1ad   :  { %v1101_v2 = vadd.f32 %v1085_v40, %v11762_v51  ;;  %v6884_v40 = vadd.f32 1.0, %v5256_v34  ;;  %v6893_v34 = vadd.f32 1.0, %v5258_v14  ;;  %v11765_v51 = vld [vmem:[#allocation40_spill] sm:$0xff]  ;;  %v6899_v41 = vadd.f32 1.0, %v5260_v48  ;;  %v11771_v48 = vld [vmem:[#allocation46_spill] sm:$0xff] }
 0x1ae   :  { %v910_v14 = vrot.slane %v6862_v12, 6  ;;  %v5025_v18 = vmul.f32 -1.442695, %v922_v31 }
 0x1af   :  { %v5036_v56 = vmul.f32 -1.442695, %v1101_v2  ;;  %v920_v2 = vadd.f32 %v6862_v12, %v11765_v51  ;;  %5267 = vrcp.f32 %v6884_v40  ;;  %v11770_v12 = vld [vmem:[#allocation45_spill] sm:$0xff]  ;;  %v5026_v51 = vmul.f32 -1.442695, %v923_v33 }
 0x1b0   :  { %v5262_v57 = vpop.eup %5261  ;;  %v925_v25 = vadd.f32 %v909_v54, %v11770_v12  ;;  %v926_v11 = vadd.f32 %v910_v14, %v11771_v48  ;;  %v5027_v54 = vmul.f32 -1.442695, %v924_v1  ;;  %v6941_v33 = vor.u32 1.1754944e-38, %v1161_v55 }
 0x1b1   :  { %5269 = vpow2.f32 %v5036_v56  ;;  %v5264_v62 = vpop.eup %5263  ;;  %v5022_v56 = vmul.f32 -1.442695, %v919_v47  ;;  %v5023_v5 = vmul.f32 -1.442695, %v920_v2  ;;  %v6920_v44 = vadd.f32 1.0, %v5262_v57 }
 0x1b2   :  { %5271 = vpow2.f32 %v5037_v8  ;;  %v6912_v23 = vpop.eup %5265  ;;  %v5024_v8 = vmul.f32 -1.442695, %v921_v43  ;;  %v1146_v47 = vand.u32 2147483648, %v6884_v40  ;;  %v5028_v57 = vmul.f32 -1.442695, %v925_v25  ;;  %11773 = vst [vmem:[#allocation72_spill] sm:$0xff] %v6941_v33 }
 0x1b3   :  { %5273 = vrcp.f32 %v6893_v34  ;;  %v1151_v43 = vmul.f32 %v6912_v23, %v6874_v49  ;;  %v6931_v48 = vadd.f32 1.0, %v5264_v62  ;;  %v5029_v12 = vmul.f32 -1.442695, %v926_v11 }
 0x1b4   :  { %5275 = vrcp.f32 %v6899_v41  ;;  %v6939_v1 = vor.u32 1.1754944e-38, %v1146_v47  ;;  %v1176_v62 = vand.u32 2147483648, %v6893_v34  ;;  %v1191_v31 = vand.u32 2147483648, %v6899_v41 }
 0x1b5   :  { %5277 = vpow2.f32 %v5022_v56  ;;  %v6918_v24 = vpop.eup %5267  ;;  %v1152_v25 = vsub.f32 1.0, %v1151_v43  ;;  %v1206_v11 = vand.u32 2147483648, %v6920_v44 }
 0x1b6   :  { %5279 = vpow2.f32 %v5023_v5  ;;  %v1136_v5 = vmul.f32 %v6918_v24, %v6884_v40  ;;  %11772 = vst [vmem:[#allocation71_spill] sm:$0xff] %v6939_v1 }
 0x1b7   :  { %v5270_v2 = vpop.eup %5269  ;;  %5281 = vpow2.f32 %v5024_v8  ;;  %v6971_v35 = vor.u32 1.1754944e-38, %v1206_v11 }
 0x1b8   :  { %v5272_v14 = vpop.eup %5271  ;;  %5283 = vpow2.f32 %v5025_v18  ;;  %v6937_v8 = vadd.f32 1.0, %v5270_v2  ;;  %v1137_v30 = vsub.f32 1.0, %v1136_v5  ;;  %v6965_v5 = vor.u32 1.1754944e-38, %v1191_v31 }
 0x1b9   :  { %v6929_v58 = vpop.eup %5273  ;;  %5285 = vpow2.f32 %v5026_v51  ;;  %v6950_v55 = vadd.f32 1.0, %v5272_v14  ;;  %v6963_v14 = vor.u32 1.1754944e-38, %v1176_v62  ;;  %11777 = vst [vmem:[#allocation76_spill] sm:$0xff] %v6971_v35 }
 0x1ba   :  { %v6935_v46 = vpop.eup %5275  ;;  %5287 = vrcp.f32 %v6920_v44  ;;  %v6956_v15 = vmul.f32 %v6929_v58, %v6893_v34  ;;  %11776 = vst [vmem:[#allocation75_spill] sm:$0xff] %v6965_v5  ;;  %v6977_v45 = vmul.f32 %v6918_v24, %v1137_v30 }
 0x1bb   :  { %v5278_v18 = vpop.eup %5277  ;;  %5289 = vpow2.f32 %v5027_v54  ;;  %11775 = vst [vmem:[#allocation74_spill] sm:$0xff] %v6963_v14  ;;  %v6985_v11 = vmul.f32 %v6935_v46, %v6899_v41 }
 0x1bc   :  { %v5280_v56 = vpop.eup %5279  ;;  %5291 = vpow2.f32 %v5028_v57  ;;  %v6948_v2 = vadd.f32 1.0, %v5278_v18  ;;  %11774 = vst [vmem:[#allocation73_spill] sm:$0xff] %v6956_v15  ;;  %v1153_v18 = vmul.f32 %v6912_v23, %v1152_v25 }
 0x1bd   :  { %v5282_v47 = vpop.eup %5281  ;;  %5293 = vpow2.f32 %v5029_v12  ;;  %v6952_v52 = vadd.f32 1.0, %v5280_v56 }
 0x1be   :  { %v5284_v43 = vpop.eup %5283  ;;  %v6959_v51 = vadd.f32 1.0, %v5282_v47  ;;  %5295 = vrcp.f32 %v6948_v2  ;;  %v970_v31 = vand.u32 2147483648, %v6948_v2  ;;  %v6991_v30 = vadd.f32 %v6912_v23, %v1153_v18 }
 0x1bf   :  { %v5286_v57 = vpop.eup %5285  ;;  %5297 = vrcp.f32 %v6952_v52  ;;  %v6974_v47 = vadd.f32 1.0, %v5284_v43  ;;  %v985_v60 = vand.u32 2147483648, %v6952_v52  ;;  %vm964_vm9 = vweird.f32 %v6948_v2 }
 0x1c0   :  { %v6968_v12 = vpop.eup %5287  ;;  %5299 = vrcp.f32 %v6931_v48  ;;  %v6987_v56 = vadd.f32 1.0, %v5286_v57  ;;  %v968_v57 = vand.u32 2147483647, %v6948_v2  ;;  %v1000_v32 = vand.u32 2147483648, %v6959_v51 }
 0x1c1   :  { %v5290_v54 = vpop.eup %5289  ;;  %5301 = vrcp.f32 %v6937_v8  ;;  %v6995_v25 = vmul.f32 %v6968_v12, %v6920_v44  ;;  %v7013_v22 = vor.u32 1.1754944e-38, %v970_v31  ;;  %vm979_vm12 = vweird.f32 %v6952_v52 }
 0x1c2   :  { %v5292_v62 = vpop.eup %5291  ;;  %5303 = vrcp.f32 %v6959_v51  ;;  %v7001_v42 = vadd.f32 1.0, %v5290_v54  ;;  %v983_v54 = vand.u32 2147483647, %v6952_v52  ;;  %v998_v7 = vand.u32 2147483647, %v6959_v51 }
 0x1c3   :  { %v5294_v43 = vpop.eup %5293  ;;  %5305 = vrcp.f32 %v6950_v55  ;;  %v7009_v29 = vadd.f32 1.0, %v5292_v62  ;;  %v1015_v19 = vand.u32 2147483648, %v6974_v47  ;;  %v986_v3 = vor.u32 1.1754944e-38, %v985_v60 }
 0x1c4   :  { %v6999_v53 = vpop.eup %5295  ;;  %5307 = vrcp.f32 %v6974_v47  ;;  %v7026_v9 = vadd.f32 1.0, %v5294_v43  ;;  %vm994_vm14 = vweird.f32 %v6959_v51  ;;  %v1013_v13 = vand.u32 2147483647, %v6974_v47 }
 0x1c5   :  { %v7007_v18 = vpop.eup %5297  ;;  %v960_v27 = vmul.f32 %v6999_v53, %v6948_v2  ;;  %5309 = vrcp.f32 %v6987_v56  ;;  %vm965_vm15 = vweird.f32 %v6999_v53  ;;  %v7033_v61 = vor.u32 1.1754944e-38, %v1000_v32 }
 0x1c6   :  { %v7017_v28 = vpop.eup %5299  ;;  %v975_v16 = vmul.f32 %v7007_v18, %v6952_v52  ;;  %5311 = vrcp.f32 %v7001_v42  ;;  %vm7039_vm0 = vcmp.eq.f32.partialorder %v968_v57, 8.507059e+37  ;;  %vm980_vm1 = vweird.f32 %v7007_v18  ;;  %vm7074_vm7 = vmor %vm964_vm9, %vm965_vm15 }
 0x1c7   :  { %v7024_v62 = vpop.eup %5301  ;;  %v961_v31 = vsub.f32 1.0, %v960_v27  ;;  %vm7044_vm5 = vcmp.eq.f32.partialorder %v983_v54, 8.507059e+37  ;;  %vm1009_vm8 = vweird.f32 %v6974_v47  ;;  %v1028_v32 = vand.u32 2147483647, %v6987_v56  ;;  %vm7091_vm9 = vmor %vm979_vm12, %vm980_vm1 }
 0x1c8   :  { %v7030_v0 = vpop.eup %5303  ;;  %v976_v37 = vsub.f32 1.0, %v975_v16  ;;  %v1016_v57 = vor.u32 1.1754944e-38, %v1015_v19  ;;  %v1030_v10 = vand.u32 2147483648, %v6987_v56  ;;  %v1045_v38 = vand.u32 2147483648, %v7001_v42 }
 0x1c9   :  { %v7036_v26 = vpop.eup %5305  ;;  %v962_v43 = vmul.f32 %v6999_v53, %v961_v31  ;;  %v990_v16 = vmul.f32 %v7030_v0, %v6959_v51  ;;  %vm7056_vm6 = vcmp.eq.f32.partialorder %v998_v7, 8.507059e+37  ;;  %vm7061_vm11 = vcmp.eq.f32.partialorder %v1013_v13, 8.507059e+37 }
 0x1ca   :  { %v5308_v4 = vpop.eup %5307  ;;  %v977_v31 = vmul.f32 %v7007_v18, %v976_v37  ;;  %vm1024_vm13 = vweird.f32 %v6987_v56  ;;  %vm995_vm10 = vweird.f32 %v7030_v0  ;;  %5313 = vrcp.f32 %v7009_v29 }
 0x1cb   :  { %v963_v54 = vadd.f32 %v6999_v53, %v962_v43  ;;  %v991_v39 = vsub.f32 1.0, %v990_v16  ;;  %v1005_v21 = vmul.f32 %v5308_v4, %v6974_v47  ;;  %v5310_v19 = vpop.eup %5309  ;;  %v1043_v43 = vand.u32 2147483647, %v7001_v42 }
 0x1cc   :  { %v978_v37 = vadd.f32 %v7007_v18, %v977_v31  ;;  %v1020_v14 = vmul.f32 %v5310_v19, %v6987_v56  ;;  %vm7080_vm4 = vcmp.eq.f32.partialorder %v1028_v32, 8.507059e+37  ;;  %v5312_v1 = vpop.eup %5311  ;;  %vm1010_vm15 = vweird.f32 %v5308_v4 }
 0x1cd   :  { %v992_v13 = vmul.f32 %v7030_v0, %v991_v39  ;;  %v1006_v16 = vsub.f32 1.0, %v1005_v21  ;;  %v967_v33 = vsel %vm7074_vm7, %v6999_v53, %v963_v54  ;;  %v1031_v39 = vor.u32 1.1754944e-38, %v1030_v10  ;;  %vm7104_vm7 = vmor %vm994_vm14, %vm995_vm10 }
 0x1ce   :  { %vm1039_vm3 = vweird.f32 %v7001_v42  ;;  %v1046_v21 = vor.u32 1.1754944e-38, %v1045_v38  ;;  %v982_v32 = vsel %vm7091_vm9, %v7007_v18, %v978_v37  ;;  %v1021_v54 = vsub.f32 1.0, %v1020_v14  ;;  %vm1011_vm10 = vmor %vm1009_vm8, %vm1010_vm15 }
 0x1cf   :  { %v993_v7 = vadd.f32 %v7030_v0, %v992_v13  ;;  %v1007_v53 = vmul.f32 %v5308_v4, %v1006_v16  ;;  %vm1025_vm12 = vweird.f32 %v5310_v19  ;;  %v1035_v10 = vmul.f32 %v5312_v1, %v7001_v42 }
 0x1d0   :  { %vm7109_vm1 = vcmp.eq.f32.partialorder %v1043_v43, 8.507059e+37  ;;  %v1058_v18 = vand.u32 2147483647, %v7009_v29  ;;  %v1060_v37 = vand.u32 2147483648, %v7009_v29  ;;  %v1022_v13 = vmul.f32 %v5310_v19, %v1021_v54  ;;  %v5314_v16 = vpop.eup %5313 }
 0x1d1   :  { %v997_v14 = vsel %vm7104_vm7, %v7030_v0, %v993_v7  ;;  %v1008_v51 = vadd.f32 %v5308_v4, %v1007_v53  ;;  %5315 = vrcp.f32 %v7026_v9  ;;  %v972_v43 = vsel %vm7039_vm0, %v7013_v22, %v967_v33  ;;  %vm1026_vm0 = vmor %vm1024_vm13, %vm1025_vm12 }
 0x1d2   :  { %v987_v2 = vsel %vm7044_vm5, %v986_v3, %v982_v32  ;;  %v1036_v15 = vsub.f32 1.0, %v1035_v10  ;;  %vm1054_vm14 = vweird.f32 %v7009_v29  ;;  %v1023_v7 = vadd.f32 %v5310_v19, %v1022_v13 }
 0x1d3   :  { %v1012_v0 = vsel %vm1011_vm10, %v5308_v4, %v1008_v51  ;;  %vm1040_vm9 = vweird.f32 %v5312_v1  ;;  %v1050_v53 = vmul.f32 %v5314_v16, %v7009_v29  ;;  %v1002_v27 = vsel %vm7056_vm6, %v7033_v61, %v997_v14 }
 0x1d4   :  { %v1017_v22 = vsel %vm7061_vm11, %v1016_v57, %v1012_v0  ;;  %v1037_v3 = vmul.f32 %v5312_v1, %v1036_v15  ;;  %vm7137_vm5 = vcmp.eq.f32.partialorder %v1058_v18, 8.507059e+37  ;;  %v1027_v4 = vsel %vm1026_vm0, %v5310_v19, %v1023_v7  ;;  %vm1041_vm8 = vmor %vm1039_vm3, %vm1040_vm9 }
 0x1d5   :  { %v1051_v47 = vsub.f32 1.0, %v1050_v53  ;;  %v1061_v60 = vor.u32 1.1754944e-38, %v1060_v37  ;;  %v11798_v32 = vrot.slane %v6877_v20, 7  ;;  %v1032_v61 = vsel %vm7080_vm4, %v1031_v39, %v1027_v4 }
 0x1d6   :  { %v1038_v35 = vadd.f32 %v5312_v1, %v1037_v3  ;;  %vm1055_vm11 = vweird.f32 %v5314_v16  ;;  %v1273_v5 = vmul.f32 %v6877_v20, %v987_v2  ;;  %vm1156_vm13 = vweird.f32 %v6912_v23 }
 0x1d7   :  { %v1272_v54 = vmul.f32 %v11798_v32, %v972_v43  ;;  %v5316_v56 = vpop.eup %5315  ;;  %v1052_v15 = vmul.f32 %v5314_v16, %v1051_v47  ;;  %v1073_v57 = vand.u32 2147483647, %v7026_v9  ;;  %v11799_v19 = vrot.slane %v6877_v20, 1  ;;  %vm1056_vm3 = vmor %vm1054_vm14, %vm1055_vm11 }
 0x1d8   :  { %v11800_v31 = vrot.slane %v6877_v20, 2  ;;  %v1042_v10 = vsel %vm1041_vm8, %v5312_v1, %v1038_v35  ;;  %v1065_v18 = vmul.f32 %v5316_v56, %v7026_v9  ;;  %v1075_v37 = vand.u32 2147483648, %v7026_v9  ;;  %v11804_v35 = vld [vmem:[#allocation59_spill] sm:$0xff] }
 0x1d9   :  { %v1274_v52 = vmul.f32 %v11799_v19, %v1002_v27  ;;  %v11801_v14 = vrot.slane %v6877_v20, 3  ;;  %vm1155_vm4 = vweird.f32 %v6874_v49  ;;  %v1047_v42 = vsel %vm7109_vm1, %v1046_v21, %v1042_v10 }
 0x1da   :  { %v1275_v39 = vmul.f32 %v11800_v31, %v1017_v22  ;;  %v1053_v13 = vadd.f32 %v5314_v16, %v1052_v15  ;;  %v1280_v43 = vadd.f32 %v1272_v54, %v6523_v6  ;;  %v1281_v2 = vadd.f32 %v1273_v5, %v6557_v50  ;;  %vm7203_vm8 = vmor %vm1155_vm4, %vm1156_vm13 }
 0x1db   :  { %v1276_v51 = vmul.f32 %v11801_v14, %v1032_v61  ;;  %v1066_v1 = vsub.f32 1.0, %v1065_v18  ;;  %v11802_v0 = vrot.slane %v6877_v20, 4  ;;  %v1282_v53 = vadd.f32 %v1274_v52, %v6360_v36 }
 0x1dc   :  { %v1283_v27 = vadd.f32 %v1275_v39, %v6377_v59  ;;  %v1057_v22 = vsel %vm1056_vm3, %v5314_v16, %v1053_v13  ;;  %vm1070_vm6 = vweird.f32 %v5316_v56  ;;  %5317 = vtanh.f32 %v1280_v43  ;;  %v11811_v13 = vld [vmem:[#allocation73_spill] sm:$0xff] }
 0x1dd   :  { %v1277_v7 = vmul.f32 %v11802_v0, %v1047_v42  ;;  %v1284_v21 = vadd.f32 %v1276_v51, %v6390_v63  ;;  %vm1141_vm15 = vweird.f32 %v6918_v24  ;;  %v1062_v38 = vsel %vm7137_vm5, %v1061_v60, %v1057_v22 }
 0x1de   :  { %v1067_v29 = vmul.f32 %v5316_v56, %v1066_v1  ;;  %5319 = vtanh.f32 %v1281_v2  ;;  %vm1171_vm7 = vweird.f32 %v6929_v58  ;;  %v1211_v4 = vmul.f32 %v7017_v28, %v6931_v48 }
 0x1df   :  { %v1285_v3 = vadd.f32 %v1277_v7, %v6411_v17  ;;  %v1226_v16 = vmul.f32 %v7024_v62, %v6937_v8  ;;  %v11803_v47 = vrot.slane %v6877_v20, 5  ;;  %5321 = vtanh.f32 %v1282_v53  ;;  %v11816_v53 = vld [vmem:[#allocation60_spill] sm:$0xff] }
 0x1e0   :  { %vm1140_vm12 = vweird.f32 %v6884_v40  ;;  %vm1186_vm1 = vweird.f32 %v6935_v46  ;;  %v1241_v33 = vmul.f32 %v7036_v26, %v6950_v55  ;;  %v1068_v60 = vadd.f32 %v5316_v56, %v1067_v29 }
 0x1e1   :  { %v1278_v32 = vmul.f32 %v11803_v47, %v1062_v38  ;;  %vm1069_vm10 = vweird.f32 %v7026_v9  ;;  %5323 = vtanh.f32 %v1283_v27  ;;  %vm1170_vm14 = vweird.f32 %v6893_v34 }
 0x1e2   :  { %v1182_v54 = vsub.f32 1.0, %v6985_v11  ;;  %vm1071_vm9 = vmor %vm1069_vm10, %vm1070_vm6  ;;  %v1076_v61 = vor.u32 1.1754944e-38, %v1075_v37  ;;  %5325 = vtanh.f32 %v1284_v21  ;;  %vm1185_vm0 = vweird.f32 %v6899_v41  ;;  %v7194_v52 = vpop.eup %5317 }
 0x1e3   :  { %v1286_v5 = vadd.f32 %v1278_v32, %v11804_v35  ;;  %v1197_v15 = vsub.f32 1.0, %v6995_v25  ;;  %v1072_v19 = vsel %vm1071_vm9, %v5316_v56, %v1068_v60  ;;  %vm1074_vm5 = vcmp.eq.f32.partialorder %v1073_v57, 8.507059e+37 }
 0x1e4   :  { %5327 = vtanh.f32 %v1285_v3  ;;  %vm1200_vm11 = vweird.f32 %v6920_v44  ;;  %v1212_v9 = vsub.f32 1.0, %v1211_v4  ;;  %v1227_v31 = vsub.f32 1.0, %v1226_v16  ;;  %v7197_v39 = vpop.eup %5319 }
 0x1e5   :  { %v1077_v11 = vsel %vm1074_vm5, %v1076_v61, %v1072_v19  ;;  %5329 = vtanh.f32 %v1286_v5  ;;  %v11807_v25 = vand.u32 2147483647, %v6874_v49  ;;  %vm1201_vm6 = vweird.f32 %v6968_v12  ;;  %v7218_v51 = vpop.eup %5321  ;;  %vm7266_vm5 = vmor %vm1140_vm12, %vm1141_vm15 }
 0x1e6   :  { %v1242_v57 = vsub.f32 1.0, %v1241_v33  ;;  %v11810_v18 = vrot.slane %v6877_v20, 6  ;;  %v1304_v14 = vrot.slane %v7194_v52, 1  ;;  %v1139_v42 = vadd.f32 %v6918_v24, %v6977_v45  ;;  %vm7287_vm15 = vmor %vm1170_vm14, %vm1171_vm7 }
 0x1e7   :  { %vm7209_vm3 = vcmp.eq.f32.partialorder %v11807_v25, 8.507059e+37  ;;  %v1158_v49 = vsel %vm7203_vm8, %v6912_v23, %v6991_v30  ;;  %v11812_v43 = vsub.f32 1.0, %v11811_v13  ;;  %v1221_v1 = vand.u32 2147483648, %v6931_v48  ;;  %v7230_v20 = vpop.eup %5323  ;;  %vm7310_vm14 = vmor %vm1185_vm0, %vm1186_vm1 }
 0x1e8   :  { %v1279_v37 = vmul.f32 %v11810_v18, %v1077_v11  ;;  %v11813_v0 = vand.u32 2147483647, %v6884_v40  ;;  %v1183_v45 = vmul.f32 %v6935_v46, %v1182_v54  ;;  %v1305_v23 = vsel %vm11545_vm2, %v7197_v39, %v1304_v14  ;;  %v7243_v22 = vpop.eup %5325 }
 0x1e9   :  { %v1168_v2 = vmul.f32 %v6929_v58, %v11812_v43  ;;  %v1306_v30 = vrot.slane %v7218_v51, 7  ;;  %v1198_v21 = vmul.f32 %v6968_v12, %v1197_v15  ;;  %v1213_v38 = vmul.f32 %v7017_v28, %v1212_v9 }
 0x1ea   :  { %vm7234_vm13 = vcmp.eq.f32.partialorder %v11813_v0, 8.507059e+37  ;;  %v1287_v27 = vadd.f32 %v1279_v37, %v11816_v53  ;;  %v1228_v29 = vmul.f32 %v7024_v62, %v1227_v31  ;;  %v1308_v3 = vrot.slane %v7230_v20, 6  ;;  %v7249_v4 = vpop.eup %5327 }
 0x1eb   :  { %v11817_v16 = vand.u32 2147483647, %v6893_v34  ;;  %v1243_v32 = vmul.f32 %v7036_v26, %v1242_v57  ;;  %vm11820_vm9 = vcmask 1042434   ;;  %v1310_v60 = vrot.slane %v7243_v22, 5  ;;  %v7260_v54 = vpop.eup %5329 }
 0x1ec   :  { %5331 = vtanh.f32 %v1287_v27  ;;  %v1307_v33 = vsel %vm11820_vm9, %v1306_v30, %v1305_v23  ;;  %v1169_v5 = vadd.f32 %v6929_v58, %v1168_v2  ;;  %v11823_v15 = vand.u32 2147483647, %v6899_v41 }
 0x1ed   :  { %vm7253_vm4 = vcmp.eq.f32.partialorder %v11817_v16, 8.507059e+37  ;;  %vm11826_vm2 = vcmask 1043459   ;;  %v1312_v31 = vrot.slane %v7249_v4, 4  ;;  %v1143_v40 = vsel %vm7266_vm5, %v6918_v24, %v1139_v42 }
 0x1ee   :  { %vm7273_vm8 = vcmp.eq.f32.partialorder %v11823_v15, 8.507059e+37  ;;  %v1309_v9 = vsel %vm11826_vm2, %v1308_v3, %v1307_v33  ;;  %v1184_v10 = vadd.f32 %v6935_v46, %v1183_v45  ;;  %v11829_v25 = vand.u32 2147483647, %v6920_v44  ;;  %v11841_v45 = vld [vmem:[#allocation72_spill] sm:$0xff] }
 0x1ef   :  { %vm1216_vm2 = vweird.f32 %v7017_v28  ;;  %v11832_v24 = vand.u32 2147483647, %v6931_v48  ;;  %vm11835_vm7 = vcmask 1044484   ;;  %v1199_v14 = vadd.f32 %v6968_v12, %v1198_v21 }
 0x1f0   :  { %vm7294_vm12 = vcmp.eq.f32.partialorder %v11829_v25, 8.507059e+37  ;;  %v1311_v34 = vsel %vm11835_vm7, %v1310_v60, %v1309_v9  ;;  %v1214_v42 = vadd.f32 %v7017_v28, %v1213_v38  ;;  %vm1231_vm9 = vweird.f32 %v7024_v62  ;;  %vm7322_vm7 = vmor %vm1200_vm11, %vm1201_vm6  ;;  %v11852_v60 = vld [vmem:[#allocation74_spill] sm:$0xff]  ;;  %v11854_v9 = vld [vmem:[#allocation75_spill] sm:$0xff] }
 0x1f1   :  { %vm7301_vm5 = vcmp.eq.f32.partialorder %v11832_v24, 8.507059e+37  ;;  %vm11838_vm10 = vcmask 1045509   ;;  %v1229_v41 = vadd.f32 %v7024_v62, %v1228_v29  ;;  %v1244_v2 = vadd.f32 %v7036_v26, %v1243_v32  ;;  %v11849_v29 = vld [vmem:[#allocation71_spill] sm:$0xff] }
 0x1f2   :  { %v1313_v13 = vsel %vm11838_vm10, %v1312_v31, %v1311_v34  ;;  %vm1246_vm1 = vweird.f32 %v7036_v26  ;;  %v1314_v0 = vrot.slane %v7260_v54, 3  ;;  %v1163_v27 = vsel %vm7209_vm3, %v11841_v45, %v1158_v49  ;;  %v5332_v38 = vpop.eup %5331  ;;  %v11855_v31 = vld [vmem:[#allocation70_spill] sm:$0xff] }
 0x1f3   :  { %v1173_v44 = vsel %vm7287_vm15, %v6929_v58, %v1169_v5  ;;  %vm11842_vm0 = vweird.f32 %v6931_v48  ;;  %v1236_v30 = vand.u32 2147483648, %v6937_v8  ;;  %v1251_v21 = vand.u32 2147483648, %v6950_v55 }
 0x1f4   :  { %vm7340_vm11 = vmor %vm11842_vm0, %vm1216_vm2  ;;  %vm11845_vm6 = vweird.f32 %v6937_v8  ;;  %v1234_v58 = vand.u32 2147483647, %v6937_v8  ;;  %vm1245_vm10 = vweird.f32 %v6950_v55  ;;  %v1249_v48 = vand.u32 2147483647, %v6950_v55 }
 0x1f5   :  { %vm7348_vm3 = vmor %vm11845_vm6, %vm1231_vm9  ;;  %vm11848_vm15 = vcmask 1046534   ;;  %v1148_v3 = vsel %vm7234_vm13, %v11849_v29, %v1143_v40  ;;  %v1188_v16 = vsel %vm7310_vm14, %v6935_v46, %v1184_v10  ;;  %v1222_v32 = vor.u32 1.1754944e-38, %v1221_v1  ;;  %v11856_v40 = vld [vmem:[#allocation76_spill] sm:$0xff] }
 0x1f6   :  { %v1315_v49 = vsel %vm11848_vm15, %v1314_v0, %v1313_v13  ;;  %vm7364_vm9 = vmor %vm1245_vm10, %vm1246_vm1  ;;  %v1316_v8 = vrot.slane %v5332_v38, 2  ;;  %v1203_v55 = vsel %vm7322_vm7, %v6968_v12, %v1199_v14  ;;  %v1218_v7 = vsel %vm7340_vm11, %v7017_v28, %v1214_v42 }
 0x1f7   :  { %v1233_v46 = vsel %vm7348_vm3, %v7024_v62, %v1229_v41  ;;  %v1248_v1 = vsel %vm7364_vm9, %v7036_v26, %v1244_v2  ;;  %v1178_v61 = vsel %vm7253_vm4, %v11852_v60, %v1173_v44  ;;  %v1237_v5 = vor.u32 1.1754944e-38, %v1236_v30  ;;  %v11866_v60 = vld [vmem:[#allocation65_spill] sm:$0xff]  ;;  %vm11877_vm1 = vmmov %vm11848_vm15 }
 0x1f8   :  { %v1252_v15 = vor.u32 1.1754944e-38, %v1251_v21  ;;  %vm11853_vm13 = vcmask 1047559   ;;  %v1193_v28 = vsel %vm7273_vm8, %v11854_v9, %v1188_v16  ;;  %vm1235_vm2 = vcmp.eq.f32.partialorder %v1234_v58, 8.507059e+37 }
 0x1f9   :  { %v1317_v12 = vsel %vm11853_vm13, %v1316_v8, %v1315_v49  ;;  %vm1250_vm14 = vcmp.eq.f32.partialorder %v1249_v48, 8.507059e+37  ;;  %v1208_v26 = vsel %vm7294_vm12, %v11856_v40, %v1203_v55  ;;  %v1223_v47 = vsel %vm7301_vm5, %v1222_v32, %v1218_v7  ;;  %v11864_v55 = vld [vmem:[#allocation63_spill] sm:$0xff]  ;;  %vm11878_vm0 = vmmov %vm11853_vm13 }
 0x1fa   :  { %v1319_v62 = vsub.f32 %v11855_v31, %v1317_v12  ;;  %v1238_v11 = vsel %vm1235_vm2, %v1237_v5, %v1233_v46  ;;  %v1253_v10 = vsel %vm1250_vm14, %v1252_v15, %v1248_v1  ;;  %v11857_v29 = vrot.slane %v11855_v31, 7  ;;  %v11865_v46 = vld [vmem:[#allocation64_spill] sm:$0xff]  ;;  %v11867_v5 = vld [vmem:[#allocation66_spill] sm:$0xff] }
 0x1fb   :  { %v11863_v33 = vrot.slane %v11855_v31, 6  ;;  %v11868_v12 = vld [vmem:[#allocation62_spill] sm:$0xff]  ;;  %vm11872_vm4 = vcmask 1041409   ;;  %vm11873_vm8 = vcmask 1042434   ;;  %vm11874_vm12 = vcmask 1043459  }
 0x1fc   :  { %v1321_v25 = vrot.slane %v1319_v62, 7  ;;  %v1322_v24 = vrot.slane %v1319_v62, 1  ;;  %v1323_v34 = vrot.slane %v1319_v62, 2  ;;  %v1324_v37 = vrot.slane %v1319_v62, 3 }
 0x1fd   :  { %v1325_v14 = vrot.slane %v1319_v62, 4  ;;  %v1326_v19 = vrot.slane %v1319_v62, 5  ;;  %v1327_v42 = vrot.slane %v1319_v62, 6  ;;  %v1337_v13 = vmul.f32 %v1319_v62, %v1163_v27 }
 0x1fe   :  { %v1336_v43 = vmul.f32 %v1321_v25, %v1148_v3  ;;  %v1338_v41 = vmul.f32 %v1322_v24, %v1178_v61  ;;  %v1339_v2 = vmul.f32 %v1323_v34, %v1193_v28  ;;  %v1340_v0 = vmul.f32 %v1324_v37, %v1208_v26  ;;  %v11869_v28 = vld [vmem:[#allocation69_spill] sm:$0xff] }
 0x1ff   :  { %v1341_v45 = vmul.f32 %v1325_v14, %v1223_v47  ;;  %v1342_v57 = vmul.f32 %v1326_v19, %v1238_v11  ;;  %v1343_v44 = vmul.f32 %v1327_v42, %v1253_v10  ;;  %v1345_v18 = vadd.f32 %v7197_v39, %v1337_v13  ;;  %v11870_v47 = vld [vmem:[#allocation67_spill] sm:$0xff]  ;;  %v11871_v10 = vld [vmem:[#allocation68_spill] sm:$0xff] }
 0x200   :  { %v1344_v23 = vadd.f32 %v7194_v52, %v1336_v43  ;;  %v1346_v30 = vadd.f32 %v7218_v51, %v1338_v41  ;;  %v1347_v21 = vadd.f32 %v7230_v20, %v1339_v2  ;;  %v1348_v56 = vadd.f32 %v7243_v22, %v1340_v0 }
 0x201   :  { %v1349_v58 = vadd.f32 %v7249_v4, %v1341_v45  ;;  %v1350_v27 = vadd.f32 %v7260_v54, %v1342_v57  ;;  %v1351_v48 = vadd.f32 %v5332_v38, %v1343_v44  ;;  %v1369_v49 = vsub.f32 %v1345_v18, %v11855_v31  ;;  %v11880_v18 = vld [vmem:[#allocation18_spill] sm:$0xff] }
 0x202   :  { %v1368_v3 = vsub.f32 %v1344_v23, %v11857_v29  ;;  %v11858_v39 = vrot.slane %v11855_v31, 1  ;;  %v11859_v52 = vrot.slane %v11855_v31, 2  ;;  %v11860_v20 = vrot.slane %v11855_v31, 3  ;;  %v11881_v23 = vld [vmem:[#allocation15_spill] sm:$0xff]  ;;  %v11889_v29 = vld [vmem:[#allocation26_spill] sm:$0xff] }
 0x203   :  { %v11861_v22 = vrot.slane %v11855_v31, 4  ;;  %v11862_v54 = vrot.slane %v11855_v31, 5  ;;  %v1375_v8 = vsub.f32 %v1351_v48, %v11863_v33  ;;  %v1377_v9 = vmul.f32 %v1369_v49, %v11868_v12  ;;  %v11887_v48 = vld [vmem:[#allocation21_spill] sm:$0xff]  ;;  %v11888_v49 = vld [vmem:[#allocation22_spill] sm:$0xff] }
 0x204   :  { %v1370_v16 = vsub.f32 %v1346_v30, %v11858_v39  ;;  %v1371_v51 = vsub.f32 %v1347_v21, %v11859_v52  ;;  %v1372_v32 = vsub.f32 %v1348_v56, %v11860_v20  ;;  %v1376_v7 = vmul.f32 %v1368_v3, %v11864_v55  ;;  %v11882_v30 = vld [vmem:[#allocation17_spill] sm:$0xff]  ;;  %v11883_v21 = vld [vmem:[#allocation20_spill] sm:$0xff]  ;;  %v11893_v52 = vld [vmem:[#allocation27_spill] sm:$0xff] }
 0x205   :  { %v1373_v4 = vsub.f32 %v1349_v58, %v11861_v22  ;;  %v1374_v38 = vsub.f32 %v1350_v27, %v11862_v54  ;;  %v1383_v25 = vmul.f32 %v1375_v8, %v11871_v10  ;;  %vm11875_vm5 = vcmask 1044484   ;;  %v11884_v56 = vld [vmem:[#allocation16_spill] sm:$0xff]  ;;  %v11885_v58 = vld [vmem:[#allocation19_spill] sm:$0xff]  ;;  %v11891_v39 = vld [vmem:[#allocation25_spill] sm:$0xff] }
 0x206   :  { %v1378_v1 = vmul.f32 %v1370_v16, %v11865_v46  ;;  %v1379_v61 = vmul.f32 %v1371_v51, %v11866_v60  ;;  %v1380_v15 = vmul.f32 %v1372_v32, %v11867_v5  ;;  %v1392_v40 = vrot.slane %v1376_v7, 1  ;;  %v11886_v27 = vld [vmem:[#allocation23_spill] sm:$0xff]  ;;  %v11890_v3 = vld [vmem:[#allocation24_spill] sm:$0xff]  ;;  %v11892_v16 = vld [vmem:[#allocation29_spill] sm:$0xff] }
 0x207   :  { %v1381_v62 = vmul.f32 %v1373_v4, %v11869_v28  ;;  %v1382_v11 = vmul.f32 %v1374_v38, %v11870_v47  ;;  %vm11876_vm7 = vcmask 1045509   ;;  %v1404_v2 = vrot.slane %v1383_v25, 2  ;;  %v11894_v51 = vld [vmem:[#allocation28_spill] sm:$0xff]  ;;  %v11896_v32 = vld [vmem:[#allocation30_spill] sm:$0xff]  ;;  %v11897_v22 = vld [vmem:[#allocation31_spill] sm:$0xff] }
 0x208   :  { %v1394_v26 = vrot.slane %v1378_v1, 7  ;;  %v1393_v24 = vsel %vm11872_vm4, %v1377_v9, %v1392_v40  ;;  %v1396_v34 = vrot.slane %v1379_v61, 6  ;;  %v1398_v14 = vrot.slane %v1380_v15, 5  ;;  %v11895_v20 = vld [vmem:[#allocation32_spill] sm:$0xff]  ;;  %v11898_v4 = vld [vmem:[#allocation35_spill] sm:$0xff]  ;;  %v11899_v54 = vld [vmem:[#allocation33_spill] sm:$0xff] }
 0x209   :  { %v1400_v42 = vrot.slane %v1381_v62, 4  ;;  %v1402_v43 = vrot.slane %v1382_v11, 3  ;;  %v11900_v38 = vld [vmem:[#allocation34_spill] sm:$0xff]  ;;  %v11902_v8 = vld [vmem:[#allocation36_spill] sm:$0xff]  ;;  %v11903_v7 = vld [vmem:[#allocation37_spill] sm:$0xff] }
 0x20a   :  { %v1395_v37 = vsel %vm11873_vm8, %v1394_v26, %v1393_v24  ;;  %v11901_v33 = vld [vmem:[#allocation38_spill] sm:$0xff] }
 0x20b   :  { %v1397_v19 = vsel %vm11874_vm12, %v1396_v34, %v1395_v37  ;;  %v11904_v34 = vld [vmem:[#allocation41_spill] sm:$0xff] }
 0x20c   :  { %v1399_v13 = vsel %vm11875_vm5, %v1398_v14, %v1397_v19  ;;  %v11905_v14 = vld [vmem:[#allocation39_spill] sm:$0xff] }
 0x20d   :  { %v1401_v41 = vsel %vm11876_vm7, %v1400_v42, %v1399_v13  ;;  %v11906_v42 = vld [vmem:[#allocation40_spill] sm:$0xff] }
 0x20e   :  { %v1403_v0 = vsel %vm11877_vm1, %v1402_v43, %v1401_v41  ;;  %v11907_v43 = vld [vmem:[#allocation42_spill] sm:$0xff] }
 0x20f   :  { %v1405_v45 = vsel %vm11878_vm0, %v1404_v2, %v1403_v0  ;;  %v11908_v2 = vld [vmem:[#allocation43_spill] sm:$0xff] }
 0x210   :  { %v7431_v57 = vadd.f32 %v1405_v45, %v11855_v31 }
 0x212   :  { %11879 = vst [vmem:[#allocation73_spill] sm:$0xff] %v7431_v57  ;;  %v1408_v44 = vpack.c.bf16 %v7431_v57, %v7431_v57 }
 0x214   :  { %1417 = vmatmul.bf16.vlgmr.msrb.gmra.mxu2 %v1408_v44  ;;  %1430 = vmatmul.bf16.vlgmr.msrb.gmra.mxu3 %v1408_v44 }
 0x215   :  { %1443 = vmatmul.bf16.vlgmr.msra.gmra.mxu0 %v1408_v44  ;;  %2525 = vmatpush.bf16.msrb.mxu2 %v11880_v18  ;;  %v11909_v44 = vld [vmem:[#allocation44_spill] sm:$0xff] }
 0x216   :  { %3044 = vmatpush.bf16.msrb.mxu3 %v11881_v23  ;;  %3057 = vmatpush.bf16.msra.mxu0 %v11882_v30 }
 0x219   :  { %2526 = vmatpush.bf16.msrb.mxu2 %v11883_v21 }
 0x21a   :  { %3045 = vmatpush.bf16.msrb.mxu3 %v11884_v56  ;;  %3058 = vmatpush.bf16.msra.mxu0 %v11885_v58 }
 0x21d   :  { %2527 = vmatpush.bf16.msrb.mxu2 %v11886_v27 }
 0x21e   :  { %3046 = vmatpush.bf16.msrb.mxu3 %v11887_v48  ;;  %3059 = vmatpush.bf16.msra.mxu0 %v11888_v49 }
 0x221   :  { %2528 = vmatpush.bf16.msrb.mxu2 %v11889_v29 }
 0x222   :  { %3047 = vmatpush.bf16.msrb.mxu3 %v11890_v3  ;;  %3060 = vmatpush.bf16.msra.mxu0 %v11891_v39 }
 0x225   :  { %2529 = vmatpush.bf16.msrb.mxu2 %v11892_v16 }
 0x226   :  { %3048 = vmatpush.bf16.msrb.mxu3 %v11893_v52  ;;  %3061 = vmatpush.bf16.msra.mxu0 %v11894_v51 }
 0x229   :  { %2530 = vmatpush.bf16.msrb.mxu2 %v11895_v20 }
 0x22a   :  { %3049 = vmatpush.bf16.msrb.mxu3 %v11896_v32  ;;  %3062 = vmatpush.bf16.msra.mxu0 %v11897_v22  ;;  %v11911_v22 = vld [vmem:[#allocation46_spill] sm:$0xff] }
 0x22d   :  { %2531 = vmatpush.bf16.msrb.mxu2 %v11898_v4 }
 0x22e   :  { %3050 = vmatpush.bf16.msrb.mxu3 %v11899_v54  ;;  %3063 = vmatpush.bf16.msra.mxu0 %v11900_v38 }
 0x231   :  { %2532 = vmatpush.bf16.msrb.mxu2 %v11901_v33 }
 0x232   :  { %3051 = vmatpush.bf16.msrb.mxu3 %v11902_v8  ;;  %3064 = vmatpush.bf16.msra.mxu0 %v11903_v7  ;;  %v11910_v8 = vld [vmem:[#allocation45_spill] sm:$0xff] }
 0x292   :  { %v1444_v1 = vpop.f32.mrf.mxu0 }
 0x297   :  { %v1418_v61 = vpop.f32.mrf.mxu2  ;;  %v7459_v15 = vpop.f32.mrf.mxu3 }
 0x298   :  { %v1449_v9 = vrot.slane %v1418_v61, 6  ;;  %v1450_v62 = vrot.slane %v1418_v61, 7  ;;  %v1451_v40 = vrot.slane %v1418_v61, 1  ;;  %v1452_v26 = vrot.slane %v1418_v61, 2 }
 0x299   :  { %v1453_v11 = vrot.slane %v1418_v61, 3  ;;  %v1454_v25 = vrot.slane %v1418_v61, 4  ;;  %v1455_v24 = vrot.slane %v1418_v61, 5  ;;  %v1466_v37 = vadd.f32 %v1418_v61, %v11904_v34 }
 0x29a   :  { %v1464_v19 = vadd.f32 %v1449_v9, %v11905_v14  ;;  %v1465_v13 = vadd.f32 %v1450_v62, %v11906_v42  ;;  %v1467_v41 = vadd.f32 %v1451_v40, %v11907_v43  ;;  %v1468_v0 = vadd.f32 %v1452_v26, %v11908_v2  ;;  %v1446_v45 = vpop.f32.mrf.mxu0  ;;  %v5813_v9 = vld [vmem:[%s11431_s3] ss:$0 sm:$0xff] }
 0x29b   :  { %v1469_v31 = vadd.f32 %v1453_v11, %v11909_v44  ;;  %v5040_v7 = vmul.f32 -1.442695, %v1466_v37  ;;  %v1470_v33 = vadd.f32 %v1454_v25, %v11910_v8  ;;  %v1471_v32 = vadd.f32 %v1455_v24, %v11911_v22  ;;  %v11917_v8 = vld [vmem:[#allocation52_spill] sm:$0xff] }
 0x29c   :  { %v5038_v38 = vmul.f32 -1.442695, %v1464_v19  ;;  %v5039_v54 = vmul.f32 -1.442695, %v1465_v13  ;;  %v5041_v4 = vmul.f32 -1.442695, %v1467_v41  ;;  %v7472_v62 = vadd.f32 %v5813_v9, %v1444_v1 }
 0x29d   :  { %5333 = vpow2.f32 %v5040_v7  ;;  %v5042_v61 = vmul.f32 -1.442695, %v1468_v0  ;;  %v1625_v40 = vrot.slane %v7459_v15, 6  ;;  %v5043_v26 = vmul.f32 -1.442695, %v1469_v31  ;;  %v11912_v13 = vld [vmem:[#allocation47_spill] sm:$0xff] }
 0x29e   :  { %5335 = vpow2.f32 %v5038_v38  ;;  %v5044_v37 = vmul.f32 -1.442695, %v1470_v33  ;;  %v5045_v19 = vmul.f32 -1.442695, %v1471_v32  ;;  %v1626_v24 = vrot.slane %v7459_v15, 7  ;;  %v11914_v7 = vld [vmem:[#allocation49_spill] sm:$0xff] }
 0x29f   :  { %5337 = vpow2.f32 %v5039_v54  ;;  %v1420_v11 = vpop.f32.mrf.mxu2  ;;  %v1433_v25 = vpop.f32.mrf.mxu3  ;;  %v1640_v41 = vadd.f32 %v1625_v40, %v11912_v13  ;;  %v1627_v32 = vrot.slane %v7459_v15, 1  ;;  %v1628_v33 = vrot.slane %v7459_v15, 2  ;;  %v11915_v1 = vld [vmem:[#allocation50_spill] sm:$0xff] }
 0x2a0   :  { %5339 = vpow2.f32 %v5041_v4  ;;  %v1629_v9 = vrot.slane %v7459_v15, 3  ;;  %v1630_v40 = vrot.slane %v7459_v15, 4  ;;  %v7503_v13 = vadd.f32 %v7459_v15, %v11914_v7 }
 0x2a1   :  { %5341 = vpow2.f32 %v5042_v61 }
 0x2a2   :  { %5343 = vpow2.f32 %v5043_v26  ;;  %v11913_v26 = vld [vmem:[#allocation48_spill] sm:$0xff]  ;;  %v7515_v44 = vadd.f32 %v1629_v9, %v11917_v8 }
 0x2a3   :  { %v5334_v0 = vpop.eup %5333  ;;  %5345 = vpow2.f32 %v5044_v37  ;;  %v1641_v37 = vadd.f32 %v1626_v24, %v11913_v26  ;;  %v11916_v26 = vld [vmem:[#allocation51_spill] sm:$0xff] }
 0x2a4   :  { %v5336_v31 = vpop.eup %5335  ;;  %v7481_v4 = vadd.f32 1.0, %v5334_v0  ;;  %5347 = vpow2.f32 %v5045_v19  ;;  %v5046_v0 = vmul.f32 -1.442695, %v1640_v41  ;;  %v7512_v22 = vadd.f32 %v1628_v33, %v11916_v26 }
 0x2a5   :  { %v5338_v45 = vpop.eup %5337  ;;  %v7485_v61 = vadd.f32 1.0, %v5336_v31  ;;  %v7520_v7 = vmul.f32 -1.442695, %v1641_v37 }
 0x2a6   :  { %v5340_v11 = vpop.eup %5339  ;;  %v7489_v25 = vadd.f32 1.0, %v5338_v45  ;;  %5349 = vrcp.f32 %v7481_v4  ;;  %v11918_v45 = vld [vmem:[#allocation53_spill] sm:$0xff]  ;;  %v1543_v42 = vand.u32 2147483647, %v7481_v4  ;;  %vm1539_vm11 = vweird.f32 %v7481_v4 }
 0x2a7   :  { %v5342_v54 = vpop.eup %5341  ;;  %v7495_v19 = vadd.f32 1.0, %v5340_v11  ;;  %5351 = vrcp.f32 %v7485_v61  ;;  %v1515_v38 = vand.u32 2147483648, %v7485_v61  ;;  %v7509_v11 = vadd.f32 %v1627_v32, %v11915_v1 }
 0x2a8   :  { %5353 = vrcp.f32 %v7489_v25  ;;  %v5344_v24 = vpop.eup %5343  ;;  %v7505_v41 = vadd.f32 1.0, %v5342_v54  ;;  %v7518_v2 = vadd.f32 %v1630_v40, %v11918_v45  ;;  %v1530_v34 = vand.u32 2147483648, %v7489_v25 }
 0x2a9   :  { %v5346_v31 = vpop.eup %5345  ;;  %5355 = vpow2.f32 %v5046_v0  ;;  %v1545_v32 = vand.u32 2147483648, %v7481_v4  ;;  %v7528_v26 = vadd.f32 1.0, %v5344_v24  ;;  %v1513_v9 = vand.u32 2147483647, %v7485_v61 }
 0x2aa   :  { %v5348_v54 = vpop.eup %5347  ;;  %5357 = vrcp.f32 %v7495_v19  ;;  %v1528_v40 = vand.u32 2147483647, %v7489_v25  ;;  %v7535_v0 = vadd.f32 1.0, %v5346_v31  ;;  %vm1509_vm6 = vweird.f32 %v7485_v61 }
 0x2ab   :  { %v7538_v45 = vor.u32 1.1754944e-38, %v1515_v38  ;;  %5359 = vrcp.f32 %v7505_v41  ;;  %v7545_v1 = vadd.f32 1.0, %v5348_v54  ;;  %vm1524_vm3 = vweird.f32 %v7489_v25 }
 0x2ac   :  { %v7526_v33 = vpop.eup %5349  ;;  %v1558_v31 = vand.u32 2147483647, %v7495_v19  ;;  %v1560_v43 = vand.u32 2147483648, %v7495_v19  ;;  %v1531_v20 = vor.u32 1.1754944e-38, %v1530_v34  ;;  %v1546_v52 = vor.u32 1.1754944e-38, %v1545_v32 }
 0x2ad   :  { %v7533_v37 = vpop.eup %5351  ;;  %v1535_v8 = vmul.f32 %v7526_v33, %v7481_v4  ;;  %vm1540_vm10 = vweird.f32 %v7526_v33  ;;  %vm7557_vm15 = vcmp.eq.f32.partialorder %v1543_v42, 8.507059e+37  ;;  %vm1554_vm9 = vweird.f32 %v7495_v19 }
 0x2ae   :  { %v7543_v24 = vpop.eup %5353  ;;  %v1505_v14 = vmul.f32 %v7533_v37, %v7485_v61  ;;  %5361 = vrcp.f32 %v7528_v26  ;;  %vm1510_vm13 = vweird.f32 %v7533_v37  ;;  %vm7564_vm2 = vcmp.eq.f32.partialorder %v1513_v9, 8.507059e+37  ;;  %vm7593_vm5 = vmor %vm1539_vm11, %vm1540_vm10 }
 0x2af   :  { %v1520_v38 = vmul.f32 %v7543_v24, %v7489_v25  ;;  %v1536_v51 = vsub.f32 1.0, %v1535_v8  ;;  %v7554_v16 = vpop.eup %5355  ;;  %v1573_v32 = vand.u32 2147483647, %v7505_v41  ;;  %vm7571_vm14 = vcmp.eq.f32.partialorder %v1528_v40, 8.507059e+37  ;;  %vm7608_vm0 = vmor %vm1509_vm6, %vm1510_vm13 }
 0x2b0   :  { %v1506_v39 = vsub.f32 1.0, %v1505_v14  ;;  %v5358_v3 = vpop.eup %5357  ;;  %vm7576_vm4 = vcmp.eq.f32.partialorder %v1558_v31, 8.507059e+37  ;;  %v1561_v9 = vor.u32 1.1754944e-38, %v1560_v43  ;;  %vm1569_vm8 = vweird.f32 %v7505_v41 }
 0x2b1   :  { %v1521_v8 = vsub.f32 1.0, %v1520_v38  ;;  %v1537_v14 = vmul.f32 %v7526_v33, %v1536_v51  ;;  %v1550_v49 = vmul.f32 %v5358_v3, %v7495_v19  ;;  %v5360_v38 = vpop.eup %5359  ;;  %v1588_v40 = vand.u32 2147483647, %v7528_v26 }
 0x2b2   :  { %v1507_v42 = vmul.f32 %v7533_v37, %v1506_v39  ;;  %v1575_v39 = vand.u32 2147483648, %v7505_v41  ;;  %vm1525_vm12 = vweird.f32 %v7543_v24  ;;  %v1565_v56 = vmul.f32 %v5360_v38, %v7505_v41 }
 0x2b3   :  { %v1522_v51 = vmul.f32 %v7543_v24, %v1521_v8  ;;  %v1538_v27 = vadd.f32 %v7526_v33, %v1537_v14  ;;  %v1551_v31 = vsub.f32 1.0, %v1550_v49  ;;  %vm7597_vm7 = vcmp.eq.f32.partialorder %v1573_v32, 8.507059e+37  ;;  %vm7622_vm10 = vmor %vm1524_vm3, %vm1525_vm12 }
 0x2b4   :  { %v1508_v58 = vadd.f32 %v7533_v37, %v1507_v42  ;;  %vm1584_vm1 = vweird.f32 %v7528_v26  ;;  %v1590_v49 = vand.u32 2147483648, %v7528_v26  ;;  %5363 = vrcp.f32 %v7535_v0  ;;  %v5362_v42 = vpop.eup %5361 }
 0x2b5   :  { %v1523_v43 = vadd.f32 %v7543_v24, %v1522_v51  ;;  %v1542_v32 = vsel %vm7593_vm5, %v7526_v33, %v1538_v27  ;;  %v1552_v51 = vmul.f32 %v5358_v3, %v1551_v31  ;;  %vm1555_vm11 = vweird.f32 %v5358_v3 }
 0x2b6   :  { %v1566_v21 = vsub.f32 1.0, %v1565_v56  ;;  %v1512_v30 = vsel %vm7608_vm0, %v7533_v37, %v1508_v58  ;;  %v1576_v23 = vor.u32 1.1754944e-38, %v1575_v39  ;;  %v1580_v18 = vmul.f32 %v5362_v42, %v7528_v26  ;;  %vm1556_vm3 = vmor %vm1554_vm9, %vm1555_vm11 }
 0x2b7   :  { %vm7627_vm6 = vcmp.eq.f32.partialorder %v1588_v40, 8.507059e+37  ;;  %v1527_v56 = vsel %vm7622_vm10, %v7543_v24, %v1523_v43  ;;  %v1553_v58 = vadd.f32 %v5358_v3, %v1552_v51  ;;  %vm1570_vm13 = vweird.f32 %v5360_v38 }
 0x2b8   :  { %v1567_v33 = vmul.f32 %v5360_v38, %v1566_v21  ;;  %v1547_v25 = vsel %vm7557_vm15, %v1546_v52, %v1542_v32  ;;  %v1581_v37 = vsub.f32 1.0, %v1580_v18  ;;  %v1591_v39 = vor.u32 1.1754944e-38, %v1590_v49  ;;  %vm1571_vm15 = vmor %vm1569_vm8, %vm1570_vm13 }
 0x2b9   :  { %5365 = vrcp.f32 %v7545_v1  ;;  %v1517_v40 = vsel %vm7564_vm2, %v7538_v45, %v1512_v30  ;;  %v1557_v31 = vsel %vm1556_vm3, %v5358_v3, %v1553_v58  ;;  %vm1585_vm12 = vweird.f32 %v5362_v42 }
 0x2ba   :  { %v1568_v8 = vadd.f32 %v5360_v38, %v1567_v33  ;;  %v5364_v24 = vpop.eup %5363  ;;  %v1532_v21 = vsel %vm7571_vm14, %v1531_v20, %v1527_v56  ;;  %v1562_v52 = vsel %vm7576_vm4, %v1561_v9, %v1557_v31  ;;  %v1582_v18 = vmul.f32 %v5362_v42, %v1581_v37  ;;  %vm1586_vm2 = vmor %vm1584_vm1, %vm1585_vm12 }
 0x2bb   :  { %v1603_v19 = vand.u32 2147483647, %v7535_v0  ;;  %v1595_v34 = vmul.f32 %v5364_v24, %v7535_v0  ;;  %vm1599_vm9 = vweird.f32 %v7535_v0  ;;  %v1605_v30 = vand.u32 2147483648, %v7535_v0 }
 0x2bc   :  { %v1572_v54 = vsel %vm1571_vm15, %v5360_v38, %v1568_v8  ;;  %v1583_v3 = vadd.f32 %v5362_v42, %v1582_v18  ;;  %v1618_v48 = vand.u32 2147483647, %v7545_v1  ;;  %v11937_v20 = vrot.slane %v7472_v62, 6 }
 0x2bd   :  { %v1577_v29 = vsel %vm7597_vm7, %v1576_v23, %v1572_v54  ;;  %v1596_v41 = vsub.f32 1.0, %v1595_v34  ;;  %v11938_v9 = vrot.slane %v7472_v62, 7  ;;  %v1819_v43 = vmul.f32 %v7472_v62, %v1547_v25 }
 0x2be   :  { %v1817_v45 = vmul.f32 %v11937_v20, %v1517_v40  ;;  %v11939_v49 = vrot.slane %v7472_v62, 1  ;;  %v1587_v4 = vsel %vm1586_vm2, %v5362_v42, %v1583_v3  ;;  %vm7665_vm14 = vcmp.eq.f32.partialorder %v1603_v19, 8.507059e+37 }
 0x2bf   :  { %v1818_v38 = vmul.f32 %v11938_v9, %v1532_v21  ;;  %v5366_v23 = vpop.eup %5365  ;;  %v11942_v51 = vrot.slane %v7472_v62, 2  ;;  %v1592_v56 = vsel %vm7627_vm6, %v1591_v39, %v1587_v4  ;;  %v1597_v58 = vmul.f32 %v5364_v24, %v1596_v41 }
 0x2c0   :  { %v1820_v14 = vmul.f32 %v11939_v49, %v1562_v52  ;;  %v1825_v26 = vadd.f32 %v1817_v45, %v6523_v6  ;;  %vm1600_vm4 = vweird.f32 %v5364_v24  ;;  %v1610_v33 = vmul.f32 %v5366_v23, %v7545_v1 }
 0x2c1   :  { %v1821_v61 = vmul.f32 %v11942_v51, %v1577_v29  ;;  %v11943_v25 = vrot.slane %v7472_v62, 3  ;;  %v1826_v42 = vadd.f32 %v1818_v38, %v6557_v50  ;;  %v1827_v40 = vadd.f32 %v1819_v43, %v6360_v36  ;;  %vm1601_vm8 = vmor %vm1599_vm9, %vm1600_vm4  ;;  %v11944_v29 = vld [vmem:[#allocation54_spill] sm:$0xff] }
 0x2c2   :  { %v1828_v31 = vadd.f32 %v1820_v14, %v6377_v59  ;;  %v1598_v8 = vadd.f32 %v5364_v24, %v1597_v58  ;;  %v1611_v21 = vsub.f32 1.0, %v1610_v33  ;;  %5367 = vtanh.f32 %v1825_v26 }
 0x2c3   :  { %v1822_v37 = vmul.f32 %v11943_v25, %v1592_v56  ;;  %v1829_v52 = vadd.f32 %v1821_v61, %v6390_v63  ;;  %v1606_v27 = vor.u32 1.1754944e-38, %v1605_v30  ;;  %v1620_v39 = vand.u32 2147483648, %v7545_v1 }
 0x2c4   :  { %5369 = vtanh.f32 %v1826_v42  ;;  %v1602_v19 = vsel %vm1601_vm8, %v5364_v24, %v1598_v8  ;;  %v1612_v54 = vmul.f32 %v5366_v23, %v1611_v21  ;;  %vm1615_vm5 = vweird.f32 %v5366_v23 }
 0x2c5   :  { %v1830_v18 = vadd.f32 %v1822_v37, %v6411_v17  ;;  %5371 = vtanh.f32 %v1827_v40  ;;  %v1607_v34 = vsel %vm7665_vm14, %v1606_v27, %v1602_v19  ;;  %v11945_v3 = vrot.slane %v7459_v15, 5 }
 0x2c6   :  { %5373 = vtanh.f32 %v1828_v31  ;;  %v5048_v0 = vmul.f32 -1.442695, %v7503_v13  ;;  %v1613_v30 = vadd.f32 %v5366_v23, %v1612_v54  ;;  %vm1614_vm7 = vweird.f32 %v7545_v1 }
 0x2c7   :  { %v1647_v20 = vadd.f32 %v11945_v3, %v11944_v29  ;;  %v11946_v45 = vrot.slane %v7472_v62, 4  ;;  %5375 = vtanh.f32 %v1829_v52  ;;  %vm1616_vm1 = vmor %vm1614_vm7, %vm1615_vm5  ;;  %vm1619_vm0 = vcmp.eq.f32.partialorder %v1618_v48, 8.507059e+37 }
 0x2c8   :  { %v1621_v24 = vor.u32 1.1754944e-38, %v1620_v39  ;;  %5377 = vtanh.f32 %v1830_v18  ;;  %v5049_v9 = vmul.f32 -1.442695, %v7509_v11  ;;  %v7695_v38 = vpop.eup %5367  ;;  %v1617_v43 = vsel %vm1616_vm1, %v5366_v23, %v1613_v30 }
 0x2c9   :  { %v1823_v41 = vmul.f32 %v11946_v45, %v1607_v34  ;;  %5379 = vpow2.f32 %v7520_v7  ;;  %v5050_v13 = vmul.f32 -1.442695, %v7512_v22  ;;  %v1849_v14 = vrot.slane %v7695_v38, 2 }
 0x2ca   :  { %v7700_v1 = vpop.eup %5369  ;;  %v1622_v49 = vsel %vm1619_vm0, %v1621_v24, %v1617_v43  ;;  %5381 = vpow2.f32 %v5048_v0  ;;  %v5051_v48 = vmul.f32 -1.442695, %v7515_v44  ;;  %v11947_v11 = vrot.slane %v7472_v62, 5 }
 0x2cb   :  { %v1831_v15 = vadd.f32 %v1823_v41, %v11804_v35  ;;  %v7704_v4 = vpop.eup %5371  ;;  %v1850_v23 = vrot.slane %v7700_v1, 1  ;;  %v5052_v22 = vmul.f32 -1.442695, %v7518_v2  ;;  %v5053_v7 = vmul.f32 -1.442695, %v1647_v20 }
 0x2cc   :  { %v1824_v32 = vmul.f32 %v11947_v11, %v1622_v49  ;;  %v7709_v51 = vpop.eup %5373  ;;  %vm11948_vm11 = vcmask 1041409   ;;  %vm11949_vm10 = vcmask 1042434   ;;  %v7723_v2 = vadd.f32 1.0, %v7554_v16 }
 0x2cd   :  { %5383 = vtanh.f32 %v1831_v15  ;;  %v7712_v61 = vpop.eup %5375  ;;  %v1851_v44 = vsel %vm11948_vm11, %v1850_v23, %v1849_v14  ;;  %v1853_v56 = vrot.slane %v7709_v51, 7  ;;  %vm11950_vm6 = vcmask 1043459  }
 0x2ce   :  { %5385 = vpow2.f32 %v5049_v9  ;;  %v1832_v26 = vadd.f32 %v1824_v32, %v11816_v53  ;;  %v7717_v62 = vpop.eup %5377  ;;  %v1852_v58 = vsel %vm11949_vm10, %v7704_v4, %v1851_v44  ;;  %v1855_v33 = vrot.slane %v7712_v61, 6 }
 0x2cf   :  { %5387 = vpow2.f32 %v5050_v13  ;;  %v5380_v25 = vpop.eup %5379  ;;  %v1854_v37 = vsel %vm11950_vm6, %v1853_v56, %v1852_v58  ;;  %vm11951_vm13 = vcmask 1044484   ;;  %v1857_v31 = vrot.slane %v7717_v62, 5 }
 0x2d0   :  { %5389 = vpow2.f32 %v5051_v48  ;;  %v5382_v42 = vpop.eup %5381  ;;  %v1856_v40 = vsel %vm11951_vm13, %v1855_v33, %v1854_v37  ;;  %v7728_v8 = vadd.f32 1.0, %v5380_v25  ;;  %vm11952_vm3 = vcmask 1045509  }
 0x2d1   :  { %5391 = vtanh.f32 %v1832_v26  ;;  %v7732_v52 = vadd.f32 1.0, %v5382_v42  ;;  %v1858_v16 = vsel %vm11952_vm3, %v1857_v31, %v1856_v40  ;;  %v1691_v34 = vand.u32 2147483648, %v7723_v2 }
 0x2d2   :  { %5393 = vpow2.f32 %v5052_v22  ;;  %vm11953_vm12 = vcmask 1046534   ;;  %v1706_v24 = vand.u32 2147483648, %v7728_v8  ;;  %vm1685_vm15 = vweird.f32 %v7723_v2 }
 0x2d3   :  { %v7730_v21 = vpop.eup %5383  ;;  %5395 = vpow2.f32 %v5053_v7  ;;  %v1721_v49 = vand.u32 2147483648, %v7732_v52  ;;  %v1689_v11 = vand.u32 2147483647, %v7723_v2  ;;  %v7759_v32 = vor.u32 1.1754944e-38, %v1691_v34 }
 0x2d4   :  { %v5386_v27 = vpop.eup %5385  ;;  %5397 = vrcp.f32 %v7723_v2  ;;  %v1859_v19 = vrot.slane %v7730_v21, 4  ;;  %v1704_v23 = vand.u32 2147483647, %v7728_v8  ;;  %vm11954_vm9 = vcmask 1047559  }
 0x2d5   :  { %v5388_v18 = vpop.eup %5387  ;;  %v7738_v54 = vadd.f32 1.0, %v5386_v27  ;;  %5399 = vrcp.f32 %v7728_v8  ;;  %vm1700_vm2 = vweird.f32 %v7728_v8  ;;  %v7774_v33 = vor.u32 1.1754944e-38, %v1706_v24 }
 0x2d6   :  { %v5390_v3 = vpop.eup %5389  ;;  %v7742_v20 = vadd.f32 1.0, %v5388_v18  ;;  %5401 = vrcp.f32 %v7732_v52  ;;  %v1860_v41 = vsel %vm11953_vm12, %v1859_v19, %v1858_v16  ;;  %vm1715_vm14 = vweird.f32 %v7732_v52 }
 0x2d7   :  { %v7747_v45 = vpop.eup %5391  ;;  %5403 = vrcp.f32 %v7738_v54  ;;  %v7765_v26 = vadd.f32 1.0, %v5390_v3  ;;  %v1736_v44 = vand.u32 2147483648, %v7738_v54  ;;  %v1719_v25 = vand.u32 2147483647, %v7732_v52 }
 0x2d8   :  { %v5394_v15 = vpop.eup %5393  ;;  %v1861_v13 = vrot.slane %v7747_v45, 3  ;;  %5405 = vrcp.f32 %v7742_v20  ;;  %v1734_v37 = vand.u32 2147483647, %v7738_v54  ;;  %v1722_v16 = vor.u32 1.1754944e-38, %v1721_v49 }
 0x2d9   :  { %v5396_v48 = vpop.eup %5395  ;;  %v7781_v40 = vadd.f32 1.0, %v5394_v15  ;;  %vm1730_vm8 = vweird.f32 %v7738_v54  ;;  %v1737_v24 = vor.u32 1.1754944e-38, %v1736_v44  ;;  %v1749_v15 = vand.u32 2147483647, %v7742_v20 }
 0x2da   :  { %v7762_v22 = vpop.eup %5397  ;;  %v1862_v7 = vsel %vm11954_vm9, %v1861_v13, %v1860_v41  ;;  %v7783_v31 = vadd.f32 1.0, %v5396_v48  ;;  %5407 = vrcp.f32 %v7765_v26  ;;  %vm7797_vm5 = vcmp.eq.f32.partialorder %v1689_v11, 8.507059e+37 }
 0x2db   :  { %v7770_v56 = vpop.eup %5399  ;;  %v1681_v58 = vmul.f32 %v7762_v22, %v7723_v2  ;;  %v7788_v18 = vsub.f32 %v7431_v57, %v1862_v7  ;;  %vm1686_vm4 = vweird.f32 %v7762_v22  ;;  %vm7802_vm1 = vcmp.eq.f32.partialorder %v1704_v23, 8.507059e+37 }
 0x2dc   :  { %v7779_v42 = vpop.eup %5401  ;;  %v1696_v27 = vmul.f32 %v7770_v56, %v7728_v8  ;;  %vm1701_vm7 = vweird.f32 %v7770_v56  ;;  %vm7806_vm0 = vcmp.eq.f32.partialorder %v1719_v25, 8.507059e+37  ;;  %vm7813_vm10 = vcmp.eq.f32.partialorder %v1734_v37, 8.507059e+37  ;;  %vm7826_vm13 = vmor %vm1685_vm15, %vm1686_vm4 }
 0x2dd   :  { %v1682_v19 = vsub.f32 1.0, %v1681_v58  ;;  %v1711_v34 = vmul.f32 %v7779_v42, %v7732_v52  ;;  %v5404_v3 = vpop.eup %5403  ;;  %vm1716_vm11 = vweird.f32 %v7779_v42  ;;  %vm1745_vm6 = vweird.f32 %v7742_v20  ;;  %vm7841_vm12 = vmor %vm1700_vm2, %vm1701_vm7 }
 0x2de   :  { %v1697_v41 = vsub.f32 1.0, %v1696_v27  ;;  %v1726_v44 = vmul.f32 %v5404_v3, %v7738_v54  ;;  %v5406_v27 = vpop.eup %5405  ;;  %v1751_v23 = vand.u32 2147483648, %v7742_v20  ;;  %vm7831_vm3 = vcmp.eq.f32.partialorder %v1749_v15, 8.507059e+37  ;;  %vm7853_vm9 = vmor %vm1715_vm14, %vm1716_vm11 }
 0x2df   :  { %v1683_v13 = vmul.f32 %v7762_v22, %v1682_v19  ;;  %v1712_v7 = vsub.f32 1.0, %v1711_v34  ;;  %v1741_v43 = vmul.f32 %v5406_v27, %v7742_v20  ;;  %vm1731_vm15 = vweird.f32 %v5404_v3 }
 0x2e0   :  { %v1698_v19 = vmul.f32 %v7770_v56, %v1697_v41  ;;  %v1727_v14 = vsub.f32 1.0, %v1726_v44  ;;  %vm1746_vm2 = vweird.f32 %v5406_v27  ;;  %v1752_v39 = vor.u32 1.1754944e-38, %v1751_v23  ;;  %vm1732_vm14 = vmor %vm1730_vm8, %vm1731_vm15 }
 0x2e1   :  { %v1684_v25 = vadd.f32 %v7762_v22, %v1683_v13  ;;  %v1713_v34 = vmul.f32 %v7779_v42, %v1712_v7  ;;  %v1764_v13 = vand.u32 2147483647, %v7765_v26  ;;  %v1766_v7 = vand.u32 2147483648, %v7765_v26  ;;  %vm1747_vm8 = vmor %vm1745_vm6, %vm1746_vm2 }
 0x2e2   :  { %v1699_v41 = vadd.f32 %v7770_v56, %v1698_v19  ;;  %v1728_v30 = vmul.f32 %v5404_v3, %v1727_v14  ;;  %v1742_v15 = vsub.f32 1.0, %v1741_v43  ;;  %v5408_v19 = vpop.eup %5407  ;;  %vm1760_vm4 = vweird.f32 %v7765_v26 }
 0x2e3   :  { %v1714_v44 = vadd.f32 %v7779_v42, %v1713_v34  ;;  %v1688_v0 = vsel %vm7826_vm13, %v7762_v22, %v1684_v25  ;;  %5409 = vrcp.f32 %v7781_v40  ;;  %v1756_v25 = vmul.f32 %v5408_v19, %v7765_v26 }
 0x2e4   :  { %v1703_v43 = vsel %vm7841_vm12, %v7770_v56, %v1699_v41  ;;  %v1729_v22 = vadd.f32 %v5404_v3, %v1728_v30  ;;  %v1743_v52 = vmul.f32 %v5406_v27, %v1742_v15  ;;  %vm7868_vm7 = vcmp.eq.f32.partialorder %v1764_v13, 8.507059e+37 }
 0x2e5   :  { %v1718_v14 = vsel %vm7853_vm9, %v7779_v42, %v1714_v44  ;;  %v1767_v34 = vor.u32 1.1754944e-38, %v1766_v7  ;;  %v1779_v37 = vand.u32 2147483647, %v7781_v40  ;;  %v1781_v41 = vand.u32 2147483648, %v7781_v40 }
 0x2e6   :  { %v1733_v2 = vsel %vm1732_vm14, %v5404_v3, %v1729_v22  ;;  %v1744_v56 = vadd.f32 %v5406_v27, %v1743_v52  ;;  %5411 = vrcp.f32 %v7783_v31  ;;  %v1693_v54 = vsel %vm7797_vm5, %v7759_v32, %v1688_v0 }
 0x2e7   :  { %v1708_v30 = vsel %vm7802_vm1, %v7774_v33, %v1703_v43  ;;  %v1723_v42 = vsel %vm7806_vm0, %v1722_v16, %v1718_v14  ;;  %v1757_v3 = vsub.f32 1.0, %v1756_v25  ;;  %v1738_v13 = vsel %vm7813_vm10, %v1737_v24, %v1733_v2 }
 0x2e8   :  { %v1748_v7 = vsel %vm1747_vm8, %v5406_v27, %v1744_v56  ;;  %vm1761_vm11 = vweird.f32 %v5408_v19  ;;  %vm1775_vm13 = vweird.f32 %v7781_v40  ;;  %v1782_v0 = vor.u32 1.1754944e-38, %v1781_v41 }
 0x2e9   :  { %v5410_v32 = vpop.eup %5409  ;;  %v1758_v49 = vmul.f32 %v5408_v19, %v1757_v3  ;;  %v1794_v33 = vand.u32 2147483647, %v7783_v31  ;;  %v1866_v48 = vrot.slane %v7788_v18, 6  ;;  %v1867_v16 = vrot.slane %v7788_v18, 7  ;;  %vm1762_vm10 = vmor %vm1760_vm4, %vm1761_vm11 }
 0x2ea   :  { %v1753_v20 = vsel %vm7831_vm3, %v1752_v39, %v1748_v7  ;;  %v1771_v58 = vmul.f32 %v5410_v32, %v7781_v40  ;;  %vm1776_vm5 = vweird.f32 %v5410_v32  ;;  %vm7895_vm1 = vcmp.eq.f32.partialorder %v1779_v37, 8.507059e+37 }
 0x2eb   :  { %v1796_v27 = vand.u32 2147483648, %v7783_v31  ;;  %v1759_v11 = vadd.f32 %v5408_v19, %v1758_v49  ;;  %vm1790_vm0 = vweird.f32 %v7783_v31  ;;  %v1868_v44 = vrot.slane %v7788_v18, 1  ;;  %vm1777_vm12 = vmor %vm1775_vm13, %vm1776_vm5 }
 0x2ec   :  { %v1869_v15 = vrot.slane %v7788_v18, 2  ;;  %v1870_v8 = vrot.slane %v7788_v18, 3  ;;  %v5412_v9 = vpop.eup %5411  ;;  %v1772_v39 = vsub.f32 1.0, %v1771_v58  ;;  %v1871_v43 = vrot.slane %v7788_v18, 4 }
 0x2ed   :  { %v1872_v14 = vrot.slane %v7788_v18, 5  ;;  %v1881_v22 = vmul.f32 %v1866_v48, %v1693_v54  ;;  %v1763_v52 = vsel %vm1762_vm10, %v5408_v19, %v1759_v11  ;;  %v1786_v25 = vmul.f32 %v5412_v9, %v7783_v31 }
 0x2ee   :  { %vm1791_vm6 = vweird.f32 %v5412_v9  ;;  %vm7910_vm3 = vcmp.eq.f32.partialorder %v1794_v33, 8.507059e+37  ;;  %v1882_v2 = vmul.f32 %v1867_v16, %v1708_v30  ;;  %v1768_v56 = vsel %vm7868_vm7, %v1767_v34, %v1763_v52 }
 0x2ef   :  { %v1773_v26 = vmul.f32 %v5410_v32, %v1772_v39  ;;  %v1883_v41 = vmul.f32 %v7788_v18, %v1723_v42  ;;  %v1884_v3 = vmul.f32 %v1868_v44, %v1738_v13  ;;  %v1787_v7 = vsub.f32 1.0, %v1786_v25  ;;  %vm1792_vm15 = vmor %vm1790_vm0, %vm1791_vm6 }
 0x2f0   :  { %v1885_v49 = vmul.f32 %v1869_v15, %v1753_v20  ;;  %v1886_v58 = vmul.f32 %v1870_v8, %v1768_v56  ;;  %v1889_v19 = vadd.f32 %v7695_v38, %v1881_v22  ;;  %v1890_v48 = vadd.f32 %v7700_v1, %v1882_v2 }
 0x2f1   :  { %v1774_v54 = vadd.f32 %v5410_v32, %v1773_v26  ;;  %v1891_v33 = vadd.f32 %v7704_v4, %v1883_v41  ;;  %v1892_v11 = vadd.f32 %v7709_v51, %v1884_v3  ;;  %v1788_v23 = vmul.f32 %v5412_v9, %v1787_v7 }
 0x2f2   :  { %v1893_v18 = vadd.f32 %v7712_v61, %v1885_v49  ;;  %v1894_v34 = vadd.f32 %v7717_v62, %v1886_v58  ;;  %v11977_v30 = vrot.slane %v7431_v57, 6  ;;  %v11978_v13 = vrot.slane %v7431_v57, 7 }
 0x2f3   :  { %v1778_v38 = vsel %vm1777_vm12, %v5410_v32, %v1774_v54  ;;  %v1915_v4 = vsub.f32 %v1891_v33, %v7431_v57  ;;  %v11979_v51 = vrot.slane %v7431_v57, 1  ;;  %v1789_v20 = vadd.f32 %v5412_v9, %v1788_v23 }
 0x2f4   :  { %v1913_v42 = vsub.f32 %v1889_v19, %v11977_v30  ;;  %v1914_v1 = vsub.f32 %v1890_v48, %v11978_v13  ;;  %v1783_v40 = vsel %vm7895_vm1, %v1782_v0, %v1778_v38  ;;  %v11980_v61 = vrot.slane %v7431_v57, 2  ;;  %v11991_v13 = vld [vmem:[#allocation18_spill] sm:$0xff] }
 0x2f5   :  { %v1916_v16 = vsub.f32 %v1892_v11, %v11979_v51  ;;  %v11981_v62 = vrot.slane %v7431_v57, 3  ;;  %v1797_v32 = vor.u32 1.1754944e-38, %v1796_v27  ;;  %v1887_v8 = vmul.f32 %v1871_v43, %v1783_v40  ;;  %v11994_v51 = vld [vmem:[#allocation20_spill] sm:$0xff]  ;;  %v11996_v40 = vld [vmem:[#allocation19_spill] sm:$0xff] }
 0x2f6   :  { %v1917_v44 = vsub.f32 %v1893_v18, %v11980_v61  ;;  %v1921_v39 = vmul.f32 %v1913_v42, %v11864_v55  ;;  %v1922_v22 = vmul.f32 %v1914_v1, %v11868_v12  ;;  %v1793_v52 = vsel %vm1792_vm15, %v5412_v9, %v1789_v20  ;;  %v11992_v1 = vld [vmem:[#allocation15_spill] sm:$0xff]  ;;  %v11998_v61 = vld [vmem:[#allocation21_spill] sm:$0xff] }
 0x2f7   :  { %v1918_v15 = vsub.f32 %v1894_v34, %v11981_v62  ;;  %v1924_v0 = vmul.f32 %v1916_v16, %v11866_v60  ;;  %v1798_v2 = vsel %vm7910_vm3, %v1797_v32, %v1793_v52  ;;  %v1895_v56 = vadd.f32 %v7730_v21, %v1887_v8  ;;  %v11995_v16 = vld [vmem:[#allocation16_spill] sm:$0xff]  ;;  %v11997_v20 = vld [vmem:[#allocation23_spill] sm:$0xff]  ;;  %v12000_v62 = vld [vmem:[#allocation26_spill] sm:$0xff] }
 0x2f8   :  { %v1925_v24 = vmul.f32 %v1917_v44, %v11867_v5  ;;  %v1937_v31 = vrot.slane %v1921_v39, 2  ;;  %v1938_v26 = vrot.slane %v1922_v22, 1  ;;  %v1888_v27 = vmul.f32 %v1872_v14, %v1798_v2  ;;  %v11999_v44 = vld [vmem:[#allocation22_spill] sm:$0xff]  ;;  %v12002_v32 = vld [vmem:[#allocation25_spill] sm:$0xff]  ;;  %v12004_v39 = vld [vmem:[#allocation27_spill] sm:$0xff] }
 0x2f9   :  { %v1926_v25 = vmul.f32 %v1918_v15, %v11869_v28  ;;  %v1923_v43 = vmul.f32 %v1915_v4, %v11865_v46  ;;  %v11982_v41 = vrot.slane %v7431_v57, 4  ;;  %vm11983_vm9 = vcmask 1041409   ;;  %v11993_v4 = vld [vmem:[#allocation17_spill] sm:$0xff]  ;;  %v12001_v15 = vld [vmem:[#allocation24_spill] sm:$0xff] }
 0x2fa   :  { %v1939_v9 = vsel %vm11983_vm9, %v1938_v26, %v1937_v31  ;;  %v1941_v7 = vrot.slane %v1924_v0, 7  ;;  %v1896_v49 = vadd.f32 %v7747_v45, %v1888_v27  ;;  %v11547_v58 = vrot.slane %v7431_v57, 5  ;;  %v12003_v8 = vld [vmem:[#allocation29_spill] sm:$0xff]  ;;  %v12005_v22 = vld [vmem:[#allocation28_spill] sm:$0xff]  ;;  %v12007_v0 = vld [vmem:[#allocation30_spill] sm:$0xff] }
 0x2fb   :  { %v1919_v3 = vsub.f32 %v1895_v56, %v11982_v41  ;;  %vm11984_vm2 = vcmask 1042434   ;;  %v1943_v19 = vrot.slane %v1925_v24, 6  ;;  %vm11985_vm4 = vcmask 1043459   ;;  %v12006_v52 = vld [vmem:[#allocation32_spill] sm:$0xff]  ;;  %v12008_v24 = vld [vmem:[#allocation31_spill] sm:$0xff]  ;;  %v12010_v2 = vld [vmem:[#allocation33_spill] sm:$0xff] }
 0x2fc   :  { %v1940_v37 = vsel %vm11984_vm2, %v1923_v43, %v1939_v9  ;;  %v1945_v14 = vrot.slane %v1926_v25, 5  ;;  %v1920_v48 = vsub.f32 %v1896_v49, %v11547_v58  ;;  %vm11986_vm14 = vcmask 1044484   ;;  %v12009_v25 = vld [vmem:[#allocation35_spill] sm:$0xff]  ;;  %v12011_v56 = vld [vmem:[#allocation34_spill] sm:$0xff]  ;;  %v12013_v26 = vld [vmem:[#allocation36_spill] sm:$0xff] }
 0x2fd   :  { %v1927_v21 = vmul.f32 %v1919_v3, %v11870_v47  ;;  %v1942_v54 = vsel %vm11985_vm4, %v1941_v7, %v1940_v37  ;;  %vm11987_vm7 = vcmask 1045509   ;;  %vm11988_vm8 = vcmask 1046534   ;;  %v12012_v31 = vld [vmem:[#allocation38_spill] sm:$0xff]  ;;  %v12014_v27 = vld [vmem:[#allocation37_spill] sm:$0xff] }
 0x2fe   :  { %v1944_v33 = vsel %vm11986_vm14, %v1943_v19, %v1942_v54  ;;  %v1928_v45 = vmul.f32 %v1920_v48, %v11871_v10  ;;  %vm11989_vm11 = vcmask 1047559   ;;  %v12015_v37 = vld [vmem:[#allocation42_spill] sm:$0xff]  ;;  %v12017_v48 = vld [vmem:[#allocation40_spill] sm:$0xff] }
 0x2ff   :  { %v1946_v11 = vsel %vm11987_vm7, %v1945_v14, %v1944_v33  ;;  %v1947_v23 = vrot.slane %v1927_v21, 4  ;;  %v12016_v21 = vld [vmem:[#allocation39_spill] sm:$0xff] }
 0x300   :  { %v1949_v34 = vrot.slane %v1928_v45, 3 }
 0x301   :  { %v1948_v18 = vsel %vm11988_vm8, %v1947_v23, %v1946_v11  ;;  %v12018_v23 = vld [vmem:[#allocation41_spill] sm:$0xff] }
 0x302   :  { %v1950_v30 = vsel %vm11989_vm11, %v1949_v34, %v1948_v18 }
 0x303   :  { %v7967_v42 = vadd.f32 %v1950_v30, %v7431_v57 }
 0x305   :  { %11990 = vst [vmem:[#allocation72_spill] sm:$0xff] %v7967_v42  ;;  %v1953_v38 = vpack.c.bf16 %v7967_v42, %v7967_v42 }
 0x307   :  { %1962 = vmatmul.bf16.vlgmr.msra.gmra.mxu1 %v1953_v38  ;;  %1975 = vmatmul.bf16.vlgmr.msra.gmra.mxu2 %v1953_v38 }
 0x308   :  { %1988 = vmatmul.bf16.vlgmr.msra.gmra.mxu3 %v1953_v38  ;;  %3070 = vmatpush.bf16.msra.mxu1 %v11991_v13  ;;  %v12019_v38 = vld [vmem:[#allocation43_spill] sm:$0xff] }
 0x309   :  { %3589 = vmatpush.bf16.msra.mxu2 %v11992_v1  ;;  %3602 = vmatpush.bf16.msra.mxu3 %v11993_v4 }
 0x30c   :  { %3071 = vmatpush.bf16.msra.mxu1 %v11994_v51 }
 0x30d   :  { %3590 = vmatpush.bf16.msra.mxu2 %v11995_v16  ;;  %3603 = vmatpush.bf16.msra.mxu3 %v11996_v40 }
 0x310   :  { %3072 = vmatpush.bf16.msra.mxu1 %v11997_v20 }
 0x311   :  { %3591 = vmatpush.bf16.msra.mxu2 %v11998_v61  ;;  %3604 = vmatpush.bf16.msra.mxu3 %v11999_v44 }
 0x314   :  { %3073 = vmatpush.bf16.msra.mxu1 %v12000_v62 }
 0x315   :  { %3592 = vmatpush.bf16.msra.mxu2 %v12001_v15  ;;  %3605 = vmatpush.bf16.msra.mxu3 %v12002_v32 }
 0x318   :  { %3074 = vmatpush.bf16.msra.mxu1 %v12003_v8 }
 0x319   :  { %3593 = vmatpush.bf16.msra.mxu2 %v12004_v39  ;;  %3606 = vmatpush.bf16.msra.mxu3 %v12005_v22 }
 0x31c   :  { %3075 = vmatpush.bf16.msra.mxu1 %v12006_v52 }
 0x31d   :  { %3594 = vmatpush.bf16.msra.mxu2 %v12007_v0  ;;  %3607 = vmatpush.bf16.msra.mxu3 %v12008_v24 }
 0x320   :  { %3076 = vmatpush.bf16.msra.mxu1 %v12009_v25 }
 0x321   :  { %3595 = vmatpush.bf16.msra.mxu2 %v12010_v2  ;;  %3608 = vmatpush.bf16.msra.mxu3 %v12011_v56 }
 0x324   :  { %3077 = vmatpush.bf16.msra.mxu1 %v12012_v31 }
 0x325   :  { %3596 = vmatpush.bf16.msra.mxu2 %v12013_v26  ;;  %3609 = vmatpush.bf16.msra.mxu3 %v12014_v27  ;;  %v12020_v26 = vld [vmem:[#allocation44_spill] sm:$0xff] }
 0x384   :  { %v1963_v43 = vpop.f32.mrf.mxu1 }
 0x385   :  { %v1994_v41 = vrot.slane %v1963_v43, 5  ;;  %v1995_v9 = vrot.slane %v1963_v43, 6  ;;  %v1996_v49 = vrot.slane %v1963_v43, 7  ;;  %v2012_v19 = vadd.f32 %v1963_v43, %v12015_v37 }
 0x386   :  { %v1997_v14 = vrot.slane %v1963_v43, 1  ;;  %v1998_v11 = vrot.slane %v1963_v43, 2  ;;  %v1999_v27 = vrot.slane %v1963_v43, 3  ;;  %v2000_v37 = vrot.slane %v1963_v43, 4 }
 0x387   :  { %v2009_v54 = vadd.f32 %v1994_v41, %v12016_v21  ;;  %v2010_v33 = vadd.f32 %v1995_v9, %v12017_v48  ;;  %v2011_v45 = vadd.f32 %v1996_v49, %v12018_v23  ;;  %v5057_v18 = vmul.f32 -1.442695, %v2012_v19  ;;  %v12021_v9 = vld [vmem:[#allocation45_spill] sm:$0xff]  ;;  %v12022_v19 = vld [vmem:[#allocation46_spill] sm:$0xff] }
 0x388   :  { %v2013_v58 = vadd.f32 %v1997_v14, %v12019_v38  ;;  %v2015_v48 = vadd.f32 %v1999_v27, %v12021_v9 }
 0x389   :  { %v5054_v34 = vmul.f32 -1.442695, %v2009_v54  ;;  %v5055_v57 = vmul.f32 -1.442695, %v2010_v33  ;;  %v5056_v56 = vmul.f32 -1.442695, %v2011_v45  ;;  %5413 = vpow2.f32 %v5057_v18 }
 0x38a   :  { %v7995_v3 = vpop.f32.mrf.mxu2  ;;  %v5058_v41 = vmul.f32 -1.442695, %v2013_v58  ;;  %v2016_v54 = vadd.f32 %v2000_v37, %v12022_v19  ;;  %v12023_v18 = vld [vmem:[#allocation47_spill] sm:$0xff] }
 0x38b   :  { %v8003_v31 = vpop.f32.mrf.mxu3  ;;  %5415 = vpow2.f32 %v5054_v34  ;;  %v2170_v14 = vrot.slane %v7995_v3, 5  ;;  %v2171_v37 = vrot.slane %v7995_v3, 6 }
 0x38c   :  { %v1965_v7 = vpop.f32.mrf.mxu1  ;;  %5417 = vpow2.f32 %v5055_v57  ;;  %v5061_v45 = vmul.f32 -1.442695, %v2016_v54  ;;  %v12024_v54 = vld [vmem:[#allocation48_spill] sm:$0xff] }
 0x38d   :  { %v2014_v7 = vadd.f32 %v1998_v11, %v12020_v26  ;;  %5419 = vpow2.f32 %v5056_v56  ;;  %v5060_v11 = vmul.f32 -1.442695, %v2015_v48  ;;  %v2185_v34 = vadd.f32 %v2170_v14, %v12023_v18 }
 0x38e   :  { %5421 = vpow2.f32 %v5058_v41  ;;  %v2186_v14 = vadd.f32 %v2171_v37, %v12024_v54  ;;  %v2176_v37 = vrot.slane %v7995_v3, 4  ;;  %v12026_v54 = vld [vmem:[#allocation50_spill] sm:$0xff] }
 0x38f   :  { %v5059_v49 = vmul.f32 -1.442695, %v2014_v7  ;;  %v5414_v33 = vpop.eup %5413  ;;  %v2172_v7 = vrot.slane %v7995_v3, 7  ;;  %v5062_v48 = vmul.f32 -1.442695, %v2185_v34  ;;  %v2188_v19 = vadd.f32 %v7995_v3, %v12026_v54  ;;  %v12029_v54 = vld [vmem:[#allocation53_spill] sm:$0xff] }
 0x390   :  { %v8009_v57 = vadd.f32 1.0, %v5414_v33  ;;  %v5063_v9 = vmul.f32 -1.442695, %v2186_v14 }
 0x391   :  { %5423 = vpow2.f32 %v5059_v49  ;;  %v5065_v23 = vmul.f32 -1.442695, %v2188_v19 }
 0x392   :  { %v1978_v30 = vpop.f32.mrf.mxu2  ;;  %5425 = vpow2.f32 %v5060_v11  ;;  %v12025_v11 = vld [vmem:[#allocation49_spill] sm:$0xff]  ;;  %v2105_v52 = vand.u32 2147483648, %v8009_v57  ;;  %vm2099_vm1 = vweird.f32 %v8009_v57  ;;  %v12048_v42 = vand.u32 2147483647, %v8009_v57 }
 0x393   :  { %v5416_v30 = vpop.eup %5415  ;;  %v1991_v26 = vpop.f32.mrf.mxu3  ;;  %5427 = vpow2.f32 %v5061_v45  ;;  %v2174_v45 = vrot.slane %v7995_v3, 2 }
 0x394   :  { %v5418_v43 = vpop.eup %5417  ;;  %v8011_v27 = vadd.f32 1.0, %v5416_v30  ;;  %5429 = vrcp.f32 %v8009_v57  ;;  %v2173_v30 = vrot.slane %v7995_v3, 1 }
 0x395   :  { %v5420_v58 = vpop.eup %5419  ;;  %v8014_v56 = vadd.f32 1.0, %v5418_v43  ;;  %v2187_v43 = vadd.f32 %v2172_v7, %v12025_v11 }
 0x396   :  { %v5422_v41 = vpop.eup %5421  ;;  %v8017_v49 = vadd.f32 1.0, %v5420_v58  ;;  %5431 = vrcp.f32 %v8011_v27  ;;  %v2175_v58 = vrot.slane %v7995_v3, 3  ;;  %v12028_v3 = vld [vmem:[#allocation52_spill] sm:$0xff]  ;;  %vm2054_vm0 = vweird.f32 %v8011_v27 }
 0x397   :  { %v5424_v26 = vpop.eup %5423  ;;  %v8022_v33 = vadd.f32 1.0, %v5422_v41  ;;  %5433 = vrcp.f32 %v8014_v56  ;;  %v5064_v38 = vmul.f32 -1.442695, %v2187_v43  ;;  %v2190_v14 = vadd.f32 %v2174_v45, %v12028_v3 }
 0x398   :  { %v8027_v18 = vadd.f32 1.0, %v5424_v26  ;;  %5435 = vpow2.f32 %v5062_v48  ;;  %v5426_v34 = vpop.eup %5425  ;;  %v12027_v48 = vld [vmem:[#allocation51_spill] sm:$0xff]  ;;  %v8052_v24 = vadd.f32 %v2175_v58, %v12029_v54  ;;  %v2090_v19 = vand.u32 2147483648, %v8017_v49 }
 0x399   :  { %5437 = vrcp.f32 %v8017_v49  ;;  %v5428_v41 = vpop.eup %5427  ;;  %v2189_v11 = vadd.f32 %v2173_v30, %v12027_v48  ;;  %v8044_v25 = vadd.f32 1.0, %v5426_v34  ;;  %v8055_v30 = vadd.f32 %v2176_v37, %v11944_v29 }
 0x39a   :  { %v8037_v26 = vpop.eup %5429  ;;  %5439 = vrcp.f32 %v8022_v33  ;;  %v8059_v48 = vadd.f32 1.0, %v5428_v41  ;;  %v2060_v37 = vand.u32 2147483648, %v8011_v27  ;;  %v2075_v41 = vand.u32 2147483648, %v8014_v56 }
 0x39b   :  { %5441 = vrcp.f32 %v8027_v18  ;;  %v2095_v45 = vmul.f32 %v8037_v26, %v8009_v57  ;;  %v5066_v29 = vmul.f32 -1.442695, %v2189_v11  ;;  %v5067_v43 = vmul.f32 -1.442695, %v2190_v14 }
 0x39c   :  { %v8042_v2 = vpop.eup %5431  ;;  %5443 = vpow2.f32 %v5063_v9  ;;  %v2058_v9 = vand.u32 2147483647, %v8011_v27  ;;  %v8085_v8 = vor.u32 1.1754944e-38, %v2060_v37  ;;  %v2120_v15 = vand.u32 2147483648, %v8022_v33 }
 0x39d   :  { %v8049_v7 = vpop.eup %5433  ;;  %v2050_v58 = vmul.f32 %v8042_v2, %v8011_v27  ;;  %5445 = vpow2.f32 %v5064_v38  ;;  %v2096_v22 = vsub.f32 1.0, %v2095_v45  ;;  %v8089_v44 = vor.u32 1.1754944e-38, %v2075_v41 }
 0x39e   :  { %v5436_v34 = vpop.eup %5435  ;;  %v2065_v21 = vmul.f32 %v8049_v7, %v8014_v56  ;;  %5447 = vrcp.f32 %v8044_v25  ;;  %v8094_v40 = vor.u32 1.1754944e-38, %v2090_v19  ;;  %vm2100_vm13 = vweird.f32 %v8037_v26 }
 0x39f   :  { %v8063_v3 = vpop.eup %5437  ;;  %5449 = vrcp.f32 %v8059_v48  ;;  %v8083_v39 = vadd.f32 1.0, %v5436_v34  ;;  %v2051_v14 = vsub.f32 1.0, %v2050_v58  ;;  %v8097_v34 = vor.u32 1.1754944e-38, %v2105_v52  ;;  %vm8172_vm4 = vmor %vm2099_vm1, %vm2100_vm13 }
 0x3a0   :  { %v8072_v54 = vpop.eup %5439  ;;  %v2080_v11 = vmul.f32 %v8063_v3, %v8017_v49  ;;  %v2066_v62 = vsub.f32 1.0, %v2065_v21  ;;  %5451 = vpow2.f32 %v5065_v23  ;;  %vm2055_vm5 = vweird.f32 %v8042_v2 }
 0x3a1   :  { %v8078_v38 = vpop.eup %5441  ;;  %v2110_v45 = vmul.f32 %v8072_v54, %v8022_v33  ;;  %v2097_v41 = vmul.f32 %v8037_v26, %v2096_v22  ;;  %5453 = vrcp.f32 %v8083_v39  ;;  %v2052_v19 = vmul.f32 %v8042_v2, %v2051_v14  ;;  %vm8191_vm7 = vmor %vm2054_vm0, %vm2055_vm5 }
 0x3a2   :  { %v5444_v0 = vpop.eup %5443  ;;  %v2125_v58 = vmul.f32 %v8078_v38, %v8027_v18  ;;  %v2081_v21 = vsub.f32 1.0, %v2080_v11  ;;  %v8109_v52 = vor.u32 1.1754944e-38, %v2120_v15  ;;  %5455 = vpow2.f32 %v5066_v29 }
 0x3a3   :  { %v5446_v20 = vpop.eup %5445  ;;  %v8111_v32 = vadd.f32 1.0, %v5444_v0  ;;  %v2067_v11 = vmul.f32 %v8049_v7, %v2066_v62  ;;  %v2111_v22 = vsub.f32 1.0, %v2110_v45  ;;  %vm2070_vm10 = vweird.f32 %v8049_v7 }
 0x3a4   :  { %v8101_v37 = vpop.eup %5447  ;;  %v8118_v16 = vadd.f32 1.0, %v5446_v20  ;;  %v2126_v14 = vsub.f32 1.0, %v2125_v58  ;;  %v2135_v15 = vand.u32 2147483648, %v8027_v18  ;;  %v5068_v0 = vmul.f32 -1.442695, %v8052_v24 }
 0x3a5   :  { %v8113_v23 = vpop.eup %5449  ;;  %v2140_v29 = vmul.f32 %v8101_v37, %v8044_v25  ;;  %v2082_v51 = vmul.f32 %v8063_v3, %v2081_v21  ;;  %vm2085_vm6 = vweird.f32 %v8063_v3  ;;  %v2150_v62 = vand.u32 2147483648, %v8044_v25 }
 0x3a6   :  { %5457 = vpow2.f32 %v5067_v43  ;;  %v5069_v20 = vmul.f32 -1.442695, %v8055_v30  ;;  %v5452_v45 = vpop.eup %5451  ;;  %v8130_v61 = vadd.f32 %v8042_v2, %v2052_v19  ;;  %vm2069_vm3 = vweird.f32 %v8014_v56 }
 0x3a7   :  { %v8134_v58 = vadd.f32 %v8037_v26, %v2097_v41  ;;  %v2155_v24 = vmul.f32 %v8113_v23, %v8059_v48  ;;  %5459 = vrcp.f32 %v8111_v32  ;;  %v8139_v21 = vpop.eup %5453  ;;  %vm8141_vm12 = vcmp.eq.f32.partialorder %v2058_v9, 8.507059e+37  ;;  %vm8232_vm0 = vmor %vm2069_vm3, %vm2070_vm10 }
 0x3a8   :  { %v8146_v30 = vadd.f32 %v8049_v7, %v2067_v11  ;;  %vm2084_vm15 = vweird.f32 %v8017_v49  ;;  %v2112_v19 = vmul.f32 %v8072_v54, %v2111_v22  ;;  %v2165_v41 = vand.u32 2147483648, %v8059_v48  ;;  %v5456_v4 = vpop.eup %5455 }
 0x3a9   :  { %5461 = vrcp.f32 %v8118_v16  ;;  %v2127_v1 = vmul.f32 %v8078_v38, %v2126_v14  ;;  %v8153_v13 = vor.u32 1.1754944e-38, %v2135_v15  ;;  %v2141_v9 = vsub.f32 1.0, %v2140_v29  ;;  %vm8251_vm10 = vmor %vm2084_vm15, %vm2085_vm6 }
 0x3aa   :  { %5463 = vpow2.f32 %v5068_v0  ;;  %v8156_v10 = vadd.f32 %v8063_v3, %v2082_v51  ;;  %vm2115_vm9 = vweird.f32 %v8072_v54  ;;  %v2148_v11 = vand.u32 2147483647, %v8044_v25 }
 0x3ab   :  { %v8160_v60 = vor.u32 1.1754944e-38, %v2150_v62  ;;  %5465 = vpow2.f32 %v5069_v20  ;;  %vm2130_vm2 = vweird.f32 %v8078_v38  ;;  %v2156_v22 = vsub.f32 1.0, %v2155_v24 }
 0x3ac   :  { %v8163_v47 = vadd.f32 1.0, %v5452_v45  ;;  %v2226_v14 = vmul.f32 %v8139_v21, %v8083_v39  ;;  %v2236_v15 = vand.u32 2147483648, %v8083_v39  ;;  %v5458_v29 = vpop.eup %5457  ;;  %v8177_v0 = vadd.f32 %v8072_v54, %v2112_v19 }
 0x3ad   :  { %vm2114_vm14 = vweird.f32 %v8022_v33  ;;  %v2163_v62 = vand.u32 2147483647, %v8059_v48  ;;  %v8181_v20 = vor.u32 1.1754944e-38, %v2165_v41  ;;  %v8183_v45 = vadd.f32 1.0, %v5456_v4  ;;  %v8185_v24 = vpop.eup %5459 }
 0x3ae   :  { %v8196_v19 = vadd.f32 %v8078_v38, %v2127_v1  ;;  %vm2129_vm8 = vweird.f32 %v8027_v18  ;;  %v2142_v41 = vmul.f32 %v8101_v37, %v2141_v9  ;;  %vm2145_vm11 = vweird.f32 %v8101_v37  ;;  %v8217_v9 = vld [vmem:[%s11431_s3] ss:$0 sm:$0xff] }
 0x3af   :  { %v8202_v5 = vpop.eup %5461  ;;  %v2057_v1 = vsel %vm8191_vm7, %v8042_v2, %v8130_v61  ;;  %12036 = vst [vmem:[#allocation71_spill] sm:$0xff] %v8217_v9  ;;  %v8221_v4 = vadd.f32 %v8217_v9, %v8003_v31  ;;  %v2157_v12 = vmul.f32 %v8113_v23, %v2156_v22  ;;  %v2227_v28 = vsub.f32 1.0, %v2226_v14  ;;  %vm8336_vm13 = vmor %vm2129_vm8, %vm2130_vm2 }
 0x3b0   :  { %v5464_v46 = vpop.eup %5463  ;;  %v8225_v61 = vor.u32 1.1754944e-38, %v2236_v15  ;;  %5467 = vrcp.f32 %v8163_v47  ;;  %v12040_v31 = vand.u32 2147483647, %v8014_v56  ;;  %v2241_v14 = vmul.f32 %v8185_v24, %v8111_v32 }
 0x3b1   :  { %v5466_v2 = vpop.eup %5465  ;;  %v2251_v15 = vand.u32 2147483648, %v8111_v32  ;;  %v2266_v9 = vand.u32 2147483648, %v8118_v16  ;;  %5469 = vrcp.f32 %v8183_v45  ;;  %v12045_v56 = vand.u32 2147483647, %v8017_v49 }
 0x3b2   :  { %12037 = vst [vmem:[#allocation74_spill] sm:$0xff] %v8225_v61  ;;  %vm8238_vm7 = vcmp.eq.f32.partialorder %v12040_v31, 8.507059e+37  ;;  %vm8263_vm1 = vcmp.eq.f32.partialorder %v12048_v42, 8.507059e+37  ;;  %v12051_v53 = vand.u32 2147483647, %v8022_v33  ;;  %v2143_v17 = vadd.f32 %v8101_v37, %v2142_v41 }
 0x3b3   :  { %vm8257_vm3 = vcmp.eq.f32.partialorder %v12045_v56, 8.507059e+37  ;;  %v8274_v63 = vadd.f32 1.0, %v5458_v29  ;;  %v2256_v49 = vmul.f32 %v8202_v5, %v8118_v16  ;;  %v2062_v42 = vsel %vm8141_vm12, %v8085_v8, %v2057_v1 }
 0x3b4   :  { %vm8269_vm5 = vcmp.eq.f32.partialorder %v12051_v53, 8.507059e+37  ;;  %v12054_v57 = vand.u32 2147483647, %v8027_v18  ;;  %vm8287_vm15 = vcmp.eq.f32.partialorder %v2148_v11, 8.507059e+37  ;;  %v8291_v41 = vadd.f32 1.0, %v5464_v46 }
 0x3b5   :  { %v2281_v29 = vand.u32 2147483648, %v8163_v47  ;;  %v2072_v43 = vsel %vm8232_vm0, %v8049_v7, %v8146_v30  ;;  %v2087_v8 = vsel %vm8251_vm10, %v8063_v3, %v8156_v10  ;;  %v2158_v1 = vadd.f32 %v8113_v23, %v2157_v12  ;;  %vm8322_vm0 = vmor %vm2114_vm14, %vm2115_vm9 }
 0x3b6   :  { %vm8283_vm6 = vcmp.eq.f32.partialorder %v12054_v57, 8.507059e+37  ;;  %vm8303_vm12 = vcmp.eq.f32.partialorder %v2163_v62, 8.507059e+37  ;;  %v8307_v46 = vadd.f32 1.0, %v5466_v2  ;;  %v2228_v57 = vmul.f32 %v8139_v21, %v2227_v28  ;;  %v8316_v55 = vpop.eup %5467 }
 0x3b7   :  { %v2249_v59 = vand.u32 2147483647, %v8111_v32  ;;  %v2242_v36 = vsub.f32 1.0, %v2241_v14  ;;  %v8311_v27 = vor.u32 1.1754944e-38, %v2251_v15  ;;  %v2264_v7 = vand.u32 2147483647, %v8118_v16 }
 0x3b8   :  { %v8314_v30 = vor.u32 1.1754944e-38, %v2266_v9  ;;  %vm2231_vm10 = vweird.f32 %v8139_v21  ;;  %v2257_v10 = vsub.f32 1.0, %v2256_v49  ;;  %v2279_v3 = vand.u32 2147483647, %v8163_v47  ;;  %v8330_v9 = vpop.eup %5469 }
 0x3b9   :  { %v2294_v62 = vand.u32 2147483647, %v8183_v45  ;;  %5471 = vrcp.f32 %v8274_v63  ;;  %v8340_v28 = vor.u32 1.1754944e-38, %v2281_v29  ;;  %v2296_v2 = vand.u32 2147483648, %v8183_v45 }
 0x3ba   :  { %5473 = vrcp.f32 %v8291_v41  ;;  %vm12065_vm9 = vweird.f32 %v8044_v25  ;;  %v8354_v18 = vadd.f32 %v8139_v21, %v2228_v57  ;;  %vm2230_vm2 = vweird.f32 %v8083_v39  ;;  %v12076_v25 = vld [vmem:[#allocation55_spill] sm:$0xff] }
 0x3bb   :  { %vm8349_vm14 = vmor %vm12065_vm9, %vm2145_vm11  ;;  %v2311_v49 = vand.u32 2147483648, %v8274_v63  ;;  %5475 = vrcp.f32 %v8307_v46  ;;  %v2117_v29 = vsel %vm8322_vm0, %v8072_v54, %v8177_v0  ;;  %vm12068_vm8 = vweird.f32 %v8113_v23 }
 0x3bc   :  { %vm12069_vm11 = vweird.f32 %v8059_v48  ;;  %v2243_v57 = vmul.f32 %v8185_v24, %v2242_v36  ;;  %v8374_v14 = vmul.f32 %v8316_v55, %v8163_v47  ;;  %v2132_v12 = vsel %vm8336_vm13, %v8078_v38, %v8196_v19 }
 0x3bd   :  { %vm8367_vm9 = vmor %vm12069_vm11, %vm12068_vm8  ;;  %v2147_v54 = vsel %vm8349_vm14, %v8101_v37, %v2143_v17  ;;  %v8384_v48 = vmul.f32 %v8202_v5, %v2257_v10  ;;  %v8388_v0 = vmul.f32 %v8330_v9, %v8183_v45  ;;  %v2077_v36 = vsel %vm8238_vm7, %v8089_v44, %v2072_v43 }
 0x3be   :  { %v2162_v33 = vsel %vm8367_vm9, %v8113_v23, %v2158_v1  ;;  %vm2246_vm13 = vweird.f32 %v8185_v24  ;;  %v2092_v17 = vsel %vm8257_vm3, %v8094_v40, %v2087_v8  ;;  %v12072_v38 = vsel %vm8172_vm4, %v8037_v26, %v8134_v58  ;;  %vm8452_vm3 = vmor %vm2230_vm2, %vm2231_vm10 }
 0x3bf   :  { %v2107_v37 = vsel %vm8263_vm1, %v8097_v34, %v12072_v38  ;;  %v2122_v44 = vsel %vm8269_vm5, %v8109_v52, %v2117_v29  ;;  %v2347_v23 = vrot.slane %v8221_v4, 5  ;;  %v8412_v19 = vpop.eup %5471  ;;  %v2137_v40 = vsel %vm8283_vm6, %v8153_v13, %v2132_v12 }
 0x3c0   :  { %v2152_v26 = vsel %vm8287_vm15, %v8160_v60, %v2147_v54  ;;  %v2348_v58 = vrot.slane %v8221_v4, 6  ;;  %v2349_v34 = vrot.slane %v8221_v4, 7  ;;  %v8422_v51 = vpop.eup %5473  ;;  %v12073_v35 = vand.u32 2147483647, %v8083_v39  ;;  %v12081_v39 = vld [vmem:[#allocation56_spill] sm:$0xff] }
 0x3c1   :  { %vm2245_vm5 = vweird.f32 %v8111_v32  ;;  %v2167_v13 = vsel %vm8303_vm12, %v8181_v20, %v2162_v33  ;;  %v2350_v60 = vrot.slane %v8221_v4, 1  ;;  %v2351_v61 = vrot.slane %v8221_v4, 2  ;;  %v8436_v31 = vpop.eup %5475 }
 0x3c2   :  { %vm8426_vm4 = vcmp.eq.f32.partialorder %v12073_v35, 8.507059e+37  ;;  %v2362_v22 = vmul.f32 %v2347_v23, %v2062_v42  ;;  %vm2261_vm1 = vweird.f32 %v8202_v5  ;;  %v2352_v56 = vrot.slane %v8221_v4, 3  ;;  %vm8495_vm14 = vmor %vm2245_vm5, %vm2246_vm13 }
 0x3c3   :  { %v2363_v53 = vmul.f32 %v2348_v58, %v2077_v36  ;;  %v2364_v43 = vmul.f32 %v2349_v34, %v2092_v17  ;;  %v2365_v8 = vmul.f32 %v8221_v4, %v2107_v37  ;;  %v2301_v1 = vmul.f32 %v8412_v19, %v8274_v63  ;;  %v12083_v58 = vld [vmem:[#allocation58_spill] sm:$0xff] }
 0x3c4   :  { %v2353_v20 = vrot.slane %v8221_v4, 4  ;;  %v2366_v11 = vmul.f32 %v2350_v60, %v2122_v44  ;;  %v2367_v10 = vmul.f32 %v2351_v61, %v2137_v40  ;;  %vm2260_vm7 = vweird.f32 %v8118_v16  ;;  %v12082_v44 = vld [vmem:[#allocation57_spill] sm:$0xff]  ;;  %v12085_v60 = vld [vmem:[#allocation60_spill] sm:$0xff] }
 0x3c5   :  { %v2368_v42 = vmul.f32 %v2352_v56, %v2152_v26  ;;  %v2370_v15 = vadd.f32 %v2362_v22, %v6523_v6  ;;  %v2371_v29 = vadd.f32 %v2363_v53, %v6557_v50  ;;  %v2372_v12 = vadd.f32 %v2364_v43, %v12076_v25  ;;  %vm8523_vm11 = vmor %vm2260_vm7, %vm2261_vm1 }
 0x3c6   :  { %vm8458_vm6 = vcmp.eq.f32.partialorder %v2249_v59, 8.507059e+37  ;;  %vm2276_vm15 = vweird.f32 %v8316_v55  ;;  %v2316_v36 = vmul.f32 %v8422_v51, %v8291_v41  ;;  %v2331_v33 = vmul.f32 %v8436_v31, %v8307_v46 }
 0x3c7   :  { %v2369_v17 = vmul.f32 %v2353_v20, %v2167_v13  ;;  %v2373_v38 = vadd.f32 %v2365_v8, %v12081_v39  ;;  %v2233_v37 = vsel %vm8452_vm3, %v8139_v21, %v8354_v18  ;;  %v2244_v59 = vadd.f32 %v8185_v24, %v2243_v57  ;;  %v12084_v18 = vld [vmem:[#allocation59_spill] sm:$0xff] }
 0x3c8   :  { %v2374_v23 = vadd.f32 %v2366_v11, %v12082_v44  ;;  %5477 = vtanh.f32 %v2370_v15  ;;  %v2272_v40 = vsub.f32 1.0, %v8374_v14  ;;  %vm2275_vm12 = vweird.f32 %v8163_v47 }
 0x3c9   :  { %v2287_v26 = vsub.f32 1.0, %v8388_v0  ;;  %v2375_v34 = vadd.f32 %v2367_v10, %v12083_v58  ;;  %5479 = vtanh.f32 %v2371_v29  ;;  %vm2290_vm0 = vweird.f32 %v8183_v45  ;;  %v12086_v0 = vld [vmem:[#allocation74_spill] sm:$0xff]  ;;  %vm8579_vm7 = vmor %vm2275_vm12, %vm2276_vm15 }
 0x3ca   :  { %v8481_v35 = vor.u32 1.1754944e-38, %v2296_v2  ;;  %v2302_v21 = vsub.f32 1.0, %v2301_v1  ;;  %v2376_v57 = vadd.f32 %v2368_v42, %v12084_v18  ;;  %5481 = vtanh.f32 %v2372_v12 }
 0x3cb   :  { %vm2305_vm10 = vweird.f32 %v8274_v63  ;;  %v2317_v14 = vsub.f32 1.0, %v2316_v36  ;;  %v2332_v13 = vsub.f32 1.0, %v2331_v33  ;;  %v2377_v61 = vadd.f32 %v2369_v17, %v12085_v60 }
 0x3cc   :  { %5483 = vtanh.f32 %v2373_v38  ;;  %v8489_v22 = vsel %vm8426_vm4, %v12086_v0, %v2233_v37  ;;  %v8501_v56 = vadd.f32 %v8202_v5, %v8384_v48  ;;  %v8505_v53 = vor.u32 1.1754944e-38, %v2311_v49 }
 0x3cd   :  { %5485 = vtanh.f32 %v2374_v23  ;;  %v2248_v52 = vsel %vm8495_vm14, %v8185_v24, %v2244_v59  ;;  %v2273_v43 = vmul.f32 %v8316_v55, %v2272_v40  ;;  %v2288_v32 = vmul.f32 %v8330_v9, %v2287_v26 }
 0x3ce   :  { %5487 = vtanh.f32 %v2375_v34  ;;  %v8512_v8 = vpop.eup %5477  ;;  %vm2291_vm2 = vweird.f32 %v8330_v9  ;;  %v2303_v48 = vmul.f32 %v8412_v19, %v2302_v21  ;;  %vm2320_vm8 = vweird.f32 %v8291_v41 }
 0x3cf   :  { %5489 = vtanh.f32 %v2376_v57  ;;  %v8517_v49 = vpop.eup %5479  ;;  %vm8529_vm9 = vcmp.eq.f32.partialorder %v2264_v7, 8.507059e+37  ;;  %v2318_v20 = vmul.f32 %v8422_v51, %v2317_v14  ;;  %v2333_v11 = vmul.f32 %v8436_v31, %v2332_v13 }
 0x3d0   :  { %5491 = vtanh.f32 %v2377_v61  ;;  %v2394_v10 = vrot.slane %v8512_v8, 3  ;;  %v8536_v42 = vpop.eup %5481  ;;  %v8541_v15 = vsel %vm8458_vm6, %v8311_v27, %v2248_v52  ;;  %v2263_v16 = vsel %vm8523_vm11, %v8202_v5, %v8501_v56  ;;  %vm8591_vm11 = vmor %vm2290_vm0, %vm2291_vm2 }
 0x3d1   :  { %vm8549_vm13 = vcmp.eq.f32.partialorder %v2279_v3, 8.507059e+37  ;;  %vm2306_vm4 = vweird.f32 %v8412_v19  ;;  %v2395_v29 = vrot.slane %v8517_v49, 2  ;;  %v2274_v27 = vadd.f32 %v8316_v55, %v2273_v43 }
 0x3d2   :  { %v8555_v12 = vpop.eup %5483  ;;  %v2289_v54 = vadd.f32 %v8330_v9, %v2288_v32  ;;  %vm8561_vm5 = vcmp.eq.f32.partialorder %v2294_v62, 8.507059e+37  ;;  %v12097_v3 = vand.u32 2147483647, %v8274_v63  ;;  %v2324_v36 = vand.u32 2147483647, %v8291_v41  ;;  %vm8603_vm12 = vmor %vm2305_vm10, %vm2306_vm4 }
 0x3d3   :  { %v2397_v33 = vrot.slane %v8536_v42, 1  ;;  %v8573_v17 = vpop.eup %5485  ;;  %v2304_v38 = vadd.f32 %v8412_v19, %v2303_v48  ;;  %vm2321_vm3 = vweird.f32 %v8422_v51  ;;  %vm2336_vm6 = vweird.f32 %v8436_v31 }
 0x3d4   :  { %vm8567_vm1 = vcmp.eq.f32.partialorder %v12097_v3, 8.507059e+37  ;;  %vm12102_vm14 = vcmask 1041409   ;;  %v5488_v59 = vpop.eup %5487  ;;  %v2319_v47 = vadd.f32 %v8422_v51, %v2318_v20  ;;  %v2334_v40 = vadd.f32 %v8436_v31, %v2333_v11  ;;  %vm8615_vm2 = vmor %vm2320_vm8, %vm2321_vm3 }
 0x3d5   :  { %v2396_v37 = vsel %vm12102_vm14, %v2395_v29, %v2394_v10  ;;  %vm12105_vm15 = vcmask 1042434   ;;  %v2400_v34 = vrot.slane %v8573_v17, 7  ;;  %v5490_v21 = vpop.eup %5489  ;;  %v2326_v45 = vand.u32 2147483648, %v8291_v41  ;;  %v12124_v41 = vld [vmem:[#allocation63_spill] sm:$0xff] }
 0x3d6   :  { %v2398_v26 = vsel %vm12105_vm15, %v2397_v33, %v2396_v37  ;;  %v2341_v14 = vand.u32 2147483648, %v8307_v46  ;;  %vm12108_vm0 = vcmask 1043459   ;;  %v2402_v61 = vrot.slane %v5488_v59, 6  ;;  %v5492_v0 = vpop.eup %5491 }
 0x3d7   :  { %v2399_v13 = vsel %vm12108_vm0, %v8555_v12, %v2398_v26  ;;  %vm2335_vm10 = vweird.f32 %v8307_v46  ;;  %v2339_v63 = vand.u32 2147483647, %v8307_v46  ;;  %vm12111_vm4 = vcmask 1044484  }
 0x3d8   :  { %v2401_v56 = vsel %vm12111_vm4, %v2400_v34, %v2399_v13  ;;  %v2404_v52 = vrot.slane %v5490_v21, 5  ;;  %v2278_v43 = vsel %vm8579_vm7, %v8316_v55, %v2274_v27  ;;  %v2293_v32 = vsel %vm8591_vm11, %v8330_v9, %v2289_v54  ;;  %vm8630_vm8 = vmor %vm2335_vm10, %vm2336_vm6 }
 0x3d9   :  { %vm12114_vm3 = vcmask 1045509   ;;  %v2406_v46 = vrot.slane %v5492_v0, 4  ;;  %v2308_v24 = vsel %vm8603_vm12, %v8412_v19, %v2304_v38  ;;  %v2323_v55 = vsel %vm8615_vm2, %v8422_v51, %v2319_v47  ;;  %v12117_v51 = vld [vmem:[#allocation72_spill] sm:$0xff] }
 0x3da   :  { %v2403_v48 = vsel %vm12114_vm3, %v2402_v61, %v2401_v56  ;;  %v2338_v9 = vsel %vm8630_vm8, %v8436_v31, %v2334_v40  ;;  %vm12115_vm7 = vcmask 1046534   ;;  %v2268_v11 = vsel %vm8529_vm9, %v8314_v30, %v2263_v16 }
 0x3db   :  { %v2405_v20 = vsel %vm12115_vm7, %v2404_v52, %v2403_v48  ;;  %v2327_v10 = vor.u32 1.1754944e-38, %v2326_v45  ;;  %v2342_v29 = vor.u32 1.1754944e-38, %v2341_v14  ;;  %vm12116_vm6 = vcmask 1047559   ;;  %vm12137_vm12 = vmmov %vm12115_vm7 }
 0x3dc   :  { %v2407_v27 = vsel %vm12116_vm6, %v2406_v46, %v2405_v20  ;;  %v2283_v19 = vsel %vm8549_vm13, %v8340_v28, %v2278_v43  ;;  %vm2325_vm14 = vcmp.eq.f32.partialorder %v2324_v36, 8.507059e+37  ;;  %vm2340_vm11 = vcmp.eq.f32.partialorder %v2339_v63, 8.507059e+37  ;;  %v12125_v46 = vld [vmem:[#allocation62_spill] sm:$0xff]  ;;  %vm12133_vm13 = vmmov %vm12105_vm15 }
 0x3dd   :  { %v2409_v54 = vsub.f32 %v12117_v51, %v2407_v27  ;;  %v2298_v31 = vsel %vm8561_vm5, %v8481_v35, %v2293_v32  ;;  %v2313_v30 = vsel %vm8567_vm1, %v8505_v53, %v2308_v24  ;;  %v2328_v1 = vsel %vm2325_vm14, %v2327_v10, %v2323_v55  ;;  %v12126_v55 = vld [vmem:[#allocation64_spill] sm:$0xff]  ;;  %v12127_v20 = vld [vmem:[#allocation66_spill] sm:$0xff]  ;;  %v12128_v10 = vld [vmem:[#allocation69_spill] sm:$0xff] }
 0x3de   :  { %v2343_v16 = vsel %vm2340_vm11, %v2342_v29, %v2338_v9  ;;  %v12118_v2 = vrot.slane %v12117_v51, 5  ;;  %v12119_v56 = vrot.slane %v12117_v51, 6  ;;  %vm12132_vm9 = vcmask 1041409   ;;  %vm12134_vm5 = vmmov %vm12108_vm0 }
 0x3df   :  { %v2411_v3 = vrot.slane %v2409_v54, 5  ;;  %v2412_v33 = vrot.slane %v2409_v54, 6  ;;  %v2413_v62 = vrot.slane %v2409_v54, 7  ;;  %v2414_v38 = vrot.slane %v2409_v54, 1  ;;  %vm12135_vm1 = vmmov %vm12111_vm4 }
 0x3e0   :  { %v2415_v7 = vrot.slane %v2409_v54, 2  ;;  %v2416_v28 = vrot.slane %v2409_v54, 3  ;;  %v2417_v36 = vrot.slane %v2409_v54, 4  ;;  %v2429_v37 = vmul.f32 %v2409_v54, %v2283_v19  ;;  %vm12136_vm15 = vmmov %vm12114_vm3 }
 0x3e1   :  { %v2426_v23 = vmul.f32 %v2411_v3, %v8489_v22  ;;  %v2427_v47 = vmul.f32 %v2412_v33, %v8541_v15  ;;  %v2428_v5 = vmul.f32 %v2413_v62, %v2268_v11  ;;  %v2430_v35 = vmul.f32 %v2414_v38, %v2298_v31  ;;  %v12129_v31 = vld [vmem:[#allocation67_spill] sm:$0xff]  ;;  %v12131_v3 = vld [vmem:[#allocation68_spill] sm:$0xff]  ;;  %vm12138_vm0 = vmmov %vm12116_vm6 }
 0x3e2   :  { %v2431_v40 = vmul.f32 %v2415_v7, %v2313_v30  ;;  %v2432_v26 = vmul.f32 %v2416_v28, %v2328_v1  ;;  %v2433_v4 = vmul.f32 %v2417_v36, %v2343_v16  ;;  %v2437_v53 = vadd.f32 %v8555_v12, %v2429_v37  ;;  %v12130_v1 = vld [vmem:[#allocation65_spill] sm:$0xff] }
 0x3e3   :  { %v2434_v34 = vadd.f32 %v8512_v8, %v2426_v23  ;;  %v2435_v57 = vadd.f32 %v8517_v49, %v2427_v47  ;;  %v2436_v45 = vadd.f32 %v8536_v42, %v2428_v5  ;;  %v2438_v14 = vadd.f32 %v8573_v17, %v2430_v35 }
 0x3e4   :  { %v2439_v13 = vadd.f32 %v5488_v59, %v2431_v40  ;;  %v2440_v61 = vadd.f32 %v5490_v21, %v2432_v26  ;;  %v2441_v22 = vadd.f32 %v5492_v0, %v2433_v4  ;;  %v11572_v15 = vrot.slane %v12117_v51, 4 }
 0x3e5   :  { %v2458_v63 = vsub.f32 %v2434_v34, %v12118_v2  ;;  %v2459_v52 = vsub.f32 %v2435_v57, %v12119_v56  ;;  %v12120_v12 = vrot.slane %v12117_v51, 7  ;;  %v12121_v49 = vrot.slane %v12117_v51, 1  ;;  %v12141_v34 = vld [vmem:[#allocation15_spill] sm:$0xff]  ;;  %v12142_v57 = vld [vmem:[#allocation17_spill] sm:$0xff]  ;;  %v12148_v2 = vld [vmem:[#allocation22_spill] sm:$0xff] }
 0x3e6   :  { %v2461_v42 = vsub.f32 %v2437_v53, %v12117_v51  ;;  %v12122_v17 = vrot.slane %v12117_v51, 2  ;;  %v12123_v21 = vrot.slane %v12117_v51, 3  ;;  %v2465_v32 = vsub.f32 %v2441_v22, %v11572_v15  ;;  %v12140_v53 = vld [vmem:[#allocation18_spill] sm:$0xff]  ;;  %v12147_v22 = vld [vmem:[#allocation21_spill] sm:$0xff]  ;;  %v12150_v56 = vld [vmem:[#allocation24_spill] sm:$0xff] }
 0x3e7   :  { %v2460_v8 = vsub.f32 %v2436_v45, %v12120_v12  ;;  %v2462_v43 = vsub.f32 %v2438_v14, %v12121_v49  ;;  %v2466_v48 = vmul.f32 %v2458_v63, %v12124_v41  ;;  %v2467_v24 = vmul.f32 %v2459_v52, %v12125_v46  ;;  %v12143_v45 = vld [vmem:[#allocation20_spill] sm:$0xff]  ;;  %v12149_v63 = vld [vmem:[#allocation26_spill] sm:$0xff]  ;;  %v12151_v52 = vld [vmem:[#allocation25_spill] sm:$0xff] }
 0x3e8   :  { %v2463_v59 = vsub.f32 %v2439_v13, %v12122_v17  ;;  %v2464_v0 = vsub.f32 %v2440_v61, %v12123_v21  ;;  %v2469_v16 = vmul.f32 %v2461_v42, %v12130_v1  ;;  %v2473_v33 = vmul.f32 %v2465_v32, %v12131_v3  ;;  %v12144_v14 = vld [vmem:[#allocation16_spill] sm:$0xff]  ;;  %v12145_v13 = vld [vmem:[#allocation19_spill] sm:$0xff]  ;;  %v12152_v12 = vld [vmem:[#allocation29_spill] sm:$0xff] }
 0x3e9   :  { %v2468_v9 = vmul.f32 %v2460_v8, %v12126_v55  ;;  %v2470_v11 = vmul.f32 %v2462_v43, %v12127_v20  ;;  %v2482_v27 = vrot.slane %v2466_v48, 3  ;;  %v2483_v19 = vrot.slane %v2467_v24, 2  ;;  %v12146_v61 = vld [vmem:[#allocation23_spill] sm:$0xff]  ;;  %v12154_v49 = vld [vmem:[#allocation28_spill] sm:$0xff]  ;;  %v12156_v42 = vld [vmem:[#allocation30_spill] sm:$0xff] }
 0x3ea   :  { %v2471_v29 = vmul.f32 %v2463_v59, %v12128_v10  ;;  %v2472_v30 = vmul.f32 %v2464_v0, %v12129_v31  ;;  %v2494_v5 = vrot.slane %v2473_v33, 4  ;;  %v12153_v8 = vld [vmem:[#allocation27_spill] sm:$0xff]  ;;  %v12155_v43 = vld [vmem:[#allocation32_spill] sm:$0xff]  ;;  %v12159_v21 = vld [vmem:[#allocation33_spill] sm:$0xff] }
 0x3eb   :  { %v2485_v54 = vrot.slane %v2468_v9, 1  ;;  %v2484_v62 = vsel %vm12132_vm9, %v2483_v19, %v2482_v27  ;;  %v2488_v7 = vrot.slane %v2470_v11, 7  ;;  %v12157_v17 = vld [vmem:[#allocation31_spill] sm:$0xff]  ;;  %v12160_v0 = vld [vmem:[#allocation34_spill] sm:$0xff]  ;;  %v12162_v48 = vld [vmem:[#allocation36_spill] sm:$0xff] }
 0x3ec   :  { %v2490_v36 = vrot.slane %v2471_v29, 6  ;;  %v2492_v23 = vrot.slane %v2472_v30, 5  ;;  %v12158_v59 = vld [vmem:[#allocation35_spill] sm:$0xff]  ;;  %v12161_v32 = vld [vmem:[#allocation38_spill] sm:$0xff]  ;;  %v12163_v24 = vld [vmem:[#allocation37_spill] sm:$0xff] }
 0x3ed   :  { %v2486_v38 = vsel %vm12133_vm13, %v2485_v54, %v2484_v62  ;;  %v12164_v19 = vld [vmem:[#allocation39_spill] sm:$0xff] }
 0x3ee   :  { %v2487_v28 = vsel %vm12134_vm5, %v2469_v16, %v2486_v38  ;;  %v12165_v33 = vld [vmem:[#allocation43_spill] sm:$0xff] }
 0x3ef   :  { %v2489_v37 = vsel %vm12135_vm1, %v2488_v7, %v2487_v28  ;;  %v12166_v7 = vld [vmem:[#allocation40_spill] sm:$0xff] }
 0x3f0   :  { %v2491_v47 = vsel %vm12136_vm15, %v2490_v36, %v2489_v37 }
 0x3f1   :  { %v2493_v35 = vsel %vm12137_vm12, %v2492_v23, %v2491_v47 }
 0x3f2   :  { %v2495_v40 = vsel %vm12138_vm0, %v2494_v5, %v2493_v35  ;;  %v12167_v5 = vld [vmem:[#allocation41_spill] sm:$0xff] }
 0x3f3   :  { %v8698_v26 = vadd.f32 %v2495_v40, %v12117_v51 }
 0x3f5   :  { %12139 = vst [vmem:[#allocation75_spill] sm:$0xff] %v8698_v26  ;;  %v2498_v4 = vpack.c.bf16 %v8698_v26, %v8698_v26 }
 0x3f7   :  { %2507 = vmatmul.bf16.vlgmr.msrb.gmra.mxu0 %v2498_v4  ;;  %2520 = vmatmul.bf16.vlgmr.msrb.gmra.mxu1 %v2498_v4 }
 0x3f8   :  { %2533 = vmatmul.bf16.vlgmr.msrb.gmra.mxu2 %v2498_v4  ;;  %3615 = vmatpush.bf16.msrb.mxu0 %v12140_v53 }
 0x3f9   :  { %4134 = vmatpush.bf16.msrb.mxu1 %v12141_v34  ;;  %4147 = vmatpush.bf16.msrb.mxu2 %v12142_v57  ;;  %v12168_v34 = vld [vmem:[#allocation42_spill] sm:$0xff] }
 0x3fc   :  { %3616 = vmatpush.bf16.msrb.mxu0 %v12143_v45 }
 0x3fd   :  { %4135 = vmatpush.bf16.msrb.mxu1 %v12144_v14  ;;  %4148 = vmatpush.bf16.msrb.mxu2 %v12145_v13  ;;  %v12169_v14 = vld [vmem:[#allocation44_spill] sm:$0xff] }
 0x400   :  { %3617 = vmatpush.bf16.msrb.mxu0 %v12146_v61 }
 0x401   :  { %4136 = vmatpush.bf16.msrb.mxu1 %v12147_v22  ;;  %4149 = vmatpush.bf16.msrb.mxu2 %v12148_v2 }
 0x404   :  { %3618 = vmatpush.bf16.msrb.mxu0 %v12149_v63 }
 0x405   :  { %4137 = vmatpush.bf16.msrb.mxu1 %v12150_v56  ;;  %4150 = vmatpush.bf16.msrb.mxu2 %v12151_v52  ;;  %v12170_v56 = vld [vmem:[#allocation45_spill] sm:$0xff] }
 0x408   :  { %3619 = vmatpush.bf16.msrb.mxu0 %v12152_v12 }
 0x409   :  { %4138 = vmatpush.bf16.msrb.mxu1 %v12153_v8  ;;  %4151 = vmatpush.bf16.msrb.mxu2 %v12154_v49 }
 0x40c   :  { %3620 = vmatpush.bf16.msrb.mxu0 %v12155_v43 }
 0x40d   :  { %4139 = vmatpush.bf16.msrb.mxu1 %v12156_v42  ;;  %4152 = vmatpush.bf16.msrb.mxu2 %v12157_v17  ;;  %v12171_v17 = vld [vmem:[#allocation46_spill] sm:$0xff] }
 0x410   :  { %3621 = vmatpush.bf16.msrb.mxu0 %v12158_v59 }
 0x411   :  { %4140 = vmatpush.bf16.msrb.mxu1 %v12159_v21  ;;  %4153 = vmatpush.bf16.msrb.mxu2 %v12160_v0 }
 0x414   :  { %3622 = vmatpush.bf16.msrb.mxu0 %v12161_v32 }
 0x415   :  { %4141 = vmatpush.bf16.msrb.mxu1 %v12162_v48  ;;  %4154 = vmatpush.bf16.msrb.mxu2 %v12163_v24 }
 0x474   :  { %v2508_v9 = vpop.f32.mrf.mxu0  ;;  %v8726_v11 = vpop.f32.mrf.mxu1 }
 0x475   :  { %v2539_v29 = vrot.slane %v2508_v9, 4  ;;  %v2540_v27 = vrot.slane %v2508_v9, 5  ;;  %v2558_v62 = vadd.f32 %v2508_v9, %v12165_v33  ;;  %v2541_v38 = vrot.slane %v2508_v9, 6 }
 0x476   :  { %v2542_v36 = vrot.slane %v2508_v9, 7  ;;  %v2543_v23 = vrot.slane %v2508_v9, 1  ;;  %v2544_v4 = vrot.slane %v2508_v9, 2  ;;  %v2545_v22 = vrot.slane %v2508_v9, 3 }
 0x477   :  { %v2554_v54 = vadd.f32 %v2539_v29, %v12164_v19  ;;  %v2555_v28 = vadd.f32 %v2540_v27, %v12166_v7  ;;  %v5074_v47 = vmul.f32 -1.442695, %v2558_v62  ;;  %v2556_v35 = vadd.f32 %v2541_v38, %v12167_v5 }
 0x478   :  { %v2557_v57 = vadd.f32 %v2542_v36, %v12168_v34  ;;  %v2559_v13 = vadd.f32 %v2543_v23, %v12169_v14  ;;  %v2560_v52 = vadd.f32 %v2544_v4, %v12170_v56  ;;  %v2561_v21 = vadd.f32 %v2545_v22, %v12171_v17  ;;  %v12179_v34 = vld [vmem:[#allocation54_spill] sm:$0xff] }
 0x479   :  { %v5070_v37 = vmul.f32 -1.442695, %v2554_v54  ;;  %v5071_v40 = vmul.f32 -1.442695, %v2555_v28  ;;  %v5072_v2 = vmul.f32 -1.442695, %v2556_v35 }
 0x47a   :  { %v5073_v8 = vmul.f32 -1.442695, %v2557_v57  ;;  %v5075_v49 = vmul.f32 -1.442695, %v2559_v13  ;;  %v2715_v0 = vrot.slane %v8726_v11, 4  ;;  %v2717_v4 = vrot.slane %v8726_v11, 6 }
 0x47b   :  { %5493 = vpow2.f32 %v5070_v37  ;;  %v8737_v48 = vpop.f32.mrf.mxu2  ;;  %v5076_v29 = vmul.f32 -1.442695, %v2560_v52  ;;  %v5077_v54 = vmul.f32 -1.442695, %v2561_v21  ;;  %v2716_v37 = vrot.slane %v8726_v11, 5 }
 0x47c   :  { %v2510_v30 = vpop.f32.mrf.mxu0  ;;  %v2523_v16 = vpop.f32.mrf.mxu1  ;;  %5495 = vpow2.f32 %v5074_v47  ;;  %v2718_v13 = vrot.slane %v8726_v11, 7  ;;  %v2719_v52 = vrot.slane %v8726_v11, 1  ;;  %v2720_v21 = vrot.slane %v8726_v11, 2 }
 0x47d   :  { %5497 = vpow2.f32 %v5071_v40  ;;  %v12172_v16 = vld [vmem:[#allocation47_spill] sm:$0xff] }
 0x47e   :  { %5499 = vpow2.f32 %v5072_v2  ;;  %v2730_v62 = vadd.f32 %v2715_v0, %v12172_v16 }
 0x47f   :  { %5501 = vpow2.f32 %v5073_v8  ;;  %v12173_v8 = vld [vmem:[#allocation48_spill] sm:$0xff] }
 0x480   :  { %5503 = vpow2.f32 %v5075_v49  ;;  %v5078_v47 = vmul.f32 -1.442695, %v2730_v62  ;;  %v2731_v49 = vadd.f32 %v2716_v37, %v12173_v8 }
 0x481   :  { %v5494_v42 = vpop.eup %5493  ;;  %5505 = vpow2.f32 %v5076_v29 }
 0x482   :  { %v5496_v24 = vpop.eup %5495  ;;  %v8739_v9 = vadd.f32 1.0, %v5494_v42  ;;  %v5079_v17 = vmul.f32 -1.442695, %v2731_v49 }
 0x483   :  { %v5498_v27 = vpop.eup %5497  ;;  %v8741_v30 = vadd.f32 1.0, %v5496_v24  ;;  %v2536_v35 = vpop.f32.mrf.mxu2 }
 0x484   :  { %v8744_v38 = vadd.f32 1.0, %v5498_v27  ;;  %v5500_v28 = vpop.eup %5499  ;;  %5507 = vrcp.f32 %v8739_v9  ;;  %v2721_v27 = vrot.slane %v8726_v11, 3  ;;  %v12176_v35 = vld [vmem:[#allocation51_spill] sm:$0xff]  ;;  %vm2599_vm3 = vweird.f32 %v8739_v9 }
 0x485   :  { %v5502_v36 = vpop.eup %5501  ;;  %5509 = vpow2.f32 %v5077_v54  ;;  %v8749_v40 = vadd.f32 1.0, %v5500_v28  ;;  %v12174_v54 = vld [vmem:[#allocation49_spill] sm:$0xff]  ;;  %v2734_v15 = vadd.f32 %v8726_v11, %v12176_v35  ;;  %vm2659_vm8 = vweird.f32 %v8741_v30 }
 0x486   :  { %v5504_v23 = vpop.eup %5503  ;;  %5511 = vrcp.f32 %v8741_v30  ;;  %v8753_v57 = vadd.f32 1.0, %v5502_v36  ;;  %v2732_v62 = vadd.f32 %v2717_v4, %v12174_v54  ;;  %v12177_v4 = vld [vmem:[#allocation52_spill] sm:$0xff]  ;;  %v2737_v5 = vadd.f32 %v2721_v27, %v12179_v34 }
 0x487   :  { %5513 = vrcp.f32 %v8744_v38  ;;  %v5506_v22 = vpop.eup %5505  ;;  %v8756_v2 = vadd.f32 1.0, %v5504_v23  ;;  %v12175_v23 = vld [vmem:[#allocation50_spill] sm:$0xff]  ;;  %v2735_v28 = vadd.f32 %v2719_v52, %v12177_v4  ;;  %v2620_v27 = vand.u32 2147483648, %v8744_v38 }
 0x488   :  { %5515 = vpow2.f32 %v5078_v47  ;;  %v8771_v37 = vadd.f32 1.0, %v5506_v22  ;;  %v2733_v47 = vadd.f32 %v2718_v13, %v12175_v23  ;;  %v12178_v22 = vld [vmem:[#allocation53_spill] sm:$0xff]  ;;  %v5080_v7 = vmul.f32 -1.442695, %v2732_v62 }
 0x489   :  { %5517 = vrcp.f32 %v8749_v40  ;;  %v2736_v14 = vadd.f32 %v2720_v21, %v12178_v22  ;;  %v5082_v21 = vmul.f32 -1.442695, %v2734_v15  ;;  %v2605_v13 = vand.u32 2147483648, %v8739_v9 }
 0x48a   :  { %v8760_v42 = vpop.eup %5507  ;;  %5519 = vrcp.f32 %v8753_v57  ;;  %v5081_v49 = vmul.f32 -1.442695, %v2733_v47  ;;  %v5083_v22 = vmul.f32 -1.442695, %v2735_v28  ;;  %v2635_v15 = vand.u32 2147483648, %v8749_v40 }
 0x48b   :  { %v5510_v29 = vpop.eup %5509  ;;  %v2595_v0 = vmul.f32 %v8760_v42, %v8739_v9  ;;  %5521 = vrcp.f32 %v8756_v2  ;;  %v5084_v19 = vmul.f32 -1.442695, %v2736_v14  ;;  %v2650_v47 = vand.u32 2147483648, %v8753_v57 }
 0x48c   :  { %v8769_v36 = vpop.eup %5511  ;;  %v8783_v56 = vadd.f32 1.0, %v5510_v29  ;;  %5523 = vrcp.f32 %v8771_v37  ;;  %v2665_v54 = vand.u32 2147483648, %v8741_v30  ;;  %v8812_v4 = vor.u32 1.1754944e-38, %v2605_v13 }
 0x48d   :  { %v8777_v24 = vpop.eup %5513  ;;  %v2655_v11 = vmul.f32 %v8769_v36, %v8741_v30  ;;  %v2596_v33 = vsub.f32 1.0, %v2595_v0  ;;  %5525 = vpow2.f32 %v5079_v17  ;;  %v8829_v14 = vor.u32 1.1754944e-38, %v2650_v47 }
 0x48e   :  { %v5516_v51 = vpop.eup %5515  ;;  %v2610_v52 = vmul.f32 %v8777_v24, %v8744_v38  ;;  %5527 = vrcp.f32 %v8783_v56  ;;  %vm2660_vm2 = vweird.f32 %v8769_v36  ;;  %vm2600_vm10 = vweird.f32 %v8760_v42 }
 0x48f   :  { %v8795_v29 = vpop.eup %5517  ;;  %v2656_v0 = vsub.f32 1.0, %v2655_v11  ;;  %5529 = vpow2.f32 %v5080_v7  ;;  %v2597_v62 = vmul.f32 %v8760_v42, %v2596_v33  ;;  %v8819_v7 = vor.u32 1.1754944e-38, %v2620_v27  ;;  %vm8968_vm13 = vmor %vm2659_vm8, %vm2660_vm2 }
 0x490   :  { %v8798_v35 = vpop.eup %5519  ;;  %v2611_v28 = vsub.f32 1.0, %v2610_v52  ;;  %v2625_v23 = vmul.f32 %v8795_v29, %v8749_v40  ;;  %v8824_v17 = vadd.f32 1.0, %v5516_v51  ;;  %v8826_v33 = vor.u32 1.1754944e-38, %v2635_v15  ;;  %vm8989_vm2 = vmor %vm2599_vm3, %vm2600_vm10 }
 0x491   :  { %v8803_v34 = vpop.eup %5521  ;;  %v2640_v8 = vmul.f32 %v8798_v35, %v8753_v57  ;;  %v2657_v59 = vmul.f32 %v8769_v36, %v2656_v0  ;;  %v8835_v11 = vor.u32 1.1754944e-38, %v2665_v54  ;;  %v8839_v61 = vadd.f32 %v8760_v42, %v2597_v62 }
 0x492   :  { %v8817_v16 = vpop.eup %5523  ;;  %v2670_v52 = vmul.f32 %v8803_v34, %v8756_v2  ;;  %v2612_v27 = vmul.f32 %v8777_v24, %v2611_v28  ;;  %v2626_v12 = vsub.f32 1.0, %v2625_v23  ;;  %5531 = vpow2.f32 %v5081_v49 }
 0x493   :  { %v5526_v32 = vpop.eup %5525  ;;  %v2641_v15 = vsub.f32 1.0, %v2640_v8  ;;  %v2685_v47 = vmul.f32 %v8817_v16, %v8771_v37  ;;  %v2680_v0 = vand.u32 2147483648, %v8756_v2  ;;  %5533 = vrcp.f32 %v8824_v17 }
 0x494   :  { %v8832_v43 = vpop.eup %5527  ;;  %v2671_v13 = vsub.f32 1.0, %v2670_v52  ;;  %v8844_v45 = vadd.f32 1.0, %v5526_v32  ;;  %v8848_v54 = vadd.f32 %v8769_v36, %v2657_v59  ;;  %5535 = vpow2.f32 %v5082_v21 }
 0x495   :  { %v5530_v51 = vpop.eup %5529  ;;  %v2700_v23 = vmul.f32 %v8832_v43, %v8783_v56  ;;  %v5085_v62 = vmul.f32 -1.442695, %v2737_v5  ;;  %v2627_v8 = vmul.f32 %v8795_v29, %v2626_v12  ;;  %v2695_v49 = vand.u32 2147483648, %v8771_v37 }
 0x496   :  { %5537 = vpow2.f32 %v5083_v22  ;;  %v8855_v28 = vadd.f32 1.0, %v5530_v51  ;;  %v2642_v32 = vmul.f32 %v8798_v35, %v2641_v15  ;;  %v2686_v59 = vsub.f32 1.0, %v2685_v47 }
 0x497   :  { %v2710_v52 = vand.u32 2147483648, %v8783_v56  ;;  %5539 = vpow2.f32 %v5084_v19  ;;  %v8861_v21 = vadd.f32 %v8777_v24, %v2612_v27  ;;  %vm2615_vm4 = vweird.f32 %v8777_v24  ;;  %v12180_v27 = vld [vmem:[#allocation71_spill] sm:$0xff] }
 0x498   :  { %v2672_v12 = vmul.f32 %v8803_v34, %v2671_v13  ;;  %v8866_v5 = vor.u32 1.1754944e-38, %v2680_v0  ;;  %5541 = vrcp.f32 %v8844_v45  ;;  %v5532_v22 = vpop.eup %5531  ;;  %vm2630_vm7 = vweird.f32 %v8795_v29 }
 0x499   :  { %v2693_v19 = vand.u32 2147483647, %v8771_v37  ;;  %v2701_v51 = vsub.f32 1.0, %v2700_v23  ;;  %5543 = vpow2.f32 %v5085_v62  ;;  %v8874_v15 = vadd.f32 %v12180_v27, %v8737_v48  ;;  %v8876_v47 = vpop.eup %5533 }
 0x49a   :  { %vm2614_vm6 = vweird.f32 %v8744_v38  ;;  %v8880_v13 = vadd.f32 %v8795_v29, %v2627_v8  ;;  %v8883_v0 = vor.u32 1.1754944e-38, %v2695_v49  ;;  %v2781_v63 = vand.u32 2147483648, %v8824_v17  ;;  %v5536_v23 = vpop.eup %5535 }
 0x49b   :  { %5545 = vrcp.f32 %v8855_v28  ;;  %vm2629_vm11 = vweird.f32 %v8749_v40  ;;  %v8889_v48 = vadd.f32 %v8798_v35, %v2642_v32  ;;  %v2687_v62 = vmul.f32 %v8817_v16, %v2686_v59  ;;  %vm9007_vm10 = vmor %vm2614_vm6, %vm2615_vm4 }
 0x49c   :  { %v2708_v8 = vand.u32 2147483647, %v8783_v56  ;;  %v8894_v27 = vor.u32 1.1754944e-38, %v2710_v52  ;;  %v5538_v49 = vpop.eup %5537  ;;  %v8898_v53 = vadd.f32 %v8803_v34, %v2672_v12  ;;  %v8901_v20 = vadd.f32 1.0, %v5532_v22  ;;  %vm9025_vm4 = vmor %vm2629_vm11, %vm2630_vm7 }
 0x49d   :  { %v5540_v3 = vpop.eup %5539  ;;  %v2702_v59 = vmul.f32 %v8832_v43, %v2701_v51  ;;  %v2771_v52 = vmul.f32 %v8876_v47, %v8824_v17  ;;  %v12181_v1 = vand.u32 2147483647, %v8739_v9  ;;  %v8920_v51 = vor.u32 1.1754944e-38, %v2781_v63 }
 0x49e   :  { %v8910_v12 = vpop.eup %5541  ;;  %v2796_v32 = vand.u32 2147483648, %v8844_v45  ;;  %v12185_v46 = vand.u32 2147483647, %v8744_v38  ;;  %v8932_v41 = vadd.f32 %v8817_v16, %v2687_v62  ;;  %v8934_v26 = vadd.f32 1.0, %v5536_v23 }
 0x49f   :  { %vm8914_vm15 = vcmp.eq.f32.partialorder %v12181_v1, 8.507059e+37  ;;  %12184 = vst [vmem:[#allocation76_spill] sm:$0xff] %v8920_v51  ;;  %v5544_v55 = vpop.eup %5543  ;;  %v2811_v63 = vand.u32 2147483648, %v8855_v28  ;;  %v12188_v10 = vand.u32 2147483647, %v8749_v40  ;;  %v8959_v51 = vadd.f32 1.0, %v5538_v49 }
 0x4a0   :  { %vm8927_vm5 = vcmp.eq.f32.partialorder %v12185_v46, 8.507059e+37  ;;  %v12191_v46 = vand.u32 2147483647, %v8753_v57  ;;  %v12194_v23 = vand.u32 2147483647, %v8741_v30  ;;  %v2826_v58 = vand.u32 2147483648, %v8901_v20 }
 0x4a1   :  { %v8938_v60 = vpop.eup %5545  ;;  %vm8942_vm0 = vcmp.eq.f32.partialorder %v12188_v10, 8.507059e+37  ;;  %v8979_v49 = vadd.f32 %v8832_v43, %v2702_v59  ;;  %v8981_v10 = vadd.f32 1.0, %v5540_v3  ;;  %v2772_v44 = vsub.f32 1.0, %v2771_v52 }
 0x4a2   :  { %vm8948_vm12 = vcmp.eq.f32.partialorder %v12191_v46, 8.507059e+37  ;;  %vm8954_vm1 = vcmp.eq.f32.partialorder %v12194_v23, 8.507059e+37  ;;  %v12199_v23 = vand.u32 2147483647, %v8756_v2  ;;  %v2786_v25 = vmul.f32 %v8910_v12, %v8844_v45 }
 0x4a3   :  { %vm8993_vm8 = vcmp.eq.f32.partialorder %v2693_v19, 8.507059e+37  ;;  %v8997_v59 = vadd.f32 1.0, %v5544_v55  ;;  %v8999_v3 = vor.u32 1.1754944e-38, %v2796_v32  ;;  %5547 = vrcp.f32 %v8901_v20 }
 0x4a4   :  { %vm8974_vm14 = vcmp.eq.f32.partialorder %v12199_v23, 8.507059e+37  ;;  %vm9011_vm3 = vcmp.eq.f32.partialorder %v2708_v8, 8.507059e+37  ;;  %v12209_v19 = vmov 0  ;;  %v2801_v55 = vmul.f32 %v8938_v60, %v8855_v28 }
 0x4a5   :  { %12206 = vst [vmem:[#allocation74_spill] sm:$0xff] %v8999_v3  ;;  %v12210_v19 = vsel %vm9011_vm3, 4294967295, %v12209_v19  ;;  %v9017_v32 = vor.u32 1.1754944e-38, %v2811_v63  ;;  %5549 = vrcp.f32 %v8934_v26  ;;  %v9030_v8 = vor.u32 1.1754944e-38, %v2826_v58 }
 0x4a6   :  { %5551 = vrcp.f32 %v8959_v51  ;;  %v2602_v63 = vsel %vm8989_vm2, %v8760_v42, %v8839_v61  ;;  %vm12213_vm9 = vweird.f32 %v8798_v35  ;;  %vm12214_vm7 = vweird.f32 %v8753_v57 }
 0x4a7   :  { %vm9042_vm11 = vmor %vm12214_vm7, %vm12213_vm9  ;;  %v2773_v58 = vmul.f32 %v8876_v47, %v2772_v44  ;;  %v2787_v52 = vsub.f32 1.0, %v2786_v25  ;;  %5553 = vrcp.f32 %v8981_v10  ;;  %v2617_v3 = vsel %vm9007_vm10, %v8777_v24, %v8861_v21 }
 0x4a8   :  { %vm12217_vm2 = vweird.f32 %v8803_v34  ;;  %vm12218_vm6 = vweird.f32 %v8756_v2  ;;  %vm2775_vm9 = vweird.f32 %v8824_v17  ;;  %v2841_v44 = vand.u32 2147483648, %v8934_v26 }
 0x4a9   :  { %vm9056_vm3 = vmor %vm12218_vm6, %vm12217_vm2  ;;  %5555 = vrcp.f32 %v8997_v59  ;;  %v2632_v25 = vsel %vm9025_vm4, %v8795_v29, %v8880_v13  ;;  %v2647_v57 = vsel %vm9042_vm11, %v8798_v35, %v8889_v48  ;;  %vm12221_vm10 = vweird.f32 %v8817_v16  ;;  %v9084_v13 = vpop.eup %5547 }
 0x4aa   :  { %vm12222_vm6 = vweird.f32 %v8771_v37  ;;  %v2802_v42 = vsub.f32 1.0, %v2801_v55  ;;  %v2854_v24 = vand.u32 2147483647, %v8959_v51  ;;  %v2856_v21 = vand.u32 2147483648, %v8959_v51 }
 0x4ab   :  { %vm9075_vm7 = vmor %vm12222_vm6, %vm12221_vm10  ;;  %v2607_v29 = vsel %vm8914_vm15, %v8812_v4, %v2602_v63  ;;  %v2622_v35 = vsel %vm8927_vm5, %v8819_v7, %v2617_v3  ;;  %v2662_v37 = vsel %vm8968_vm13, %v8769_v36, %v8848_v54  ;;  %v2677_v48 = vsel %vm9056_vm3, %v8803_v34, %v8898_v53  ;;  %v9101_v22 = vpop.eup %5549 }
 0x4ac   :  { %v2692_v4 = vsel %vm9075_vm7, %v8817_v16, %v8932_v41  ;;  %vm12225_vm15 = vweird.f32 %v8832_v43  ;;  %vm12226_vm5 = vweird.f32 %v8783_v56  ;;  %v2774_v36 = vadd.f32 %v8876_v47, %v2773_v58  ;;  %v9122_v56 = vpop.eup %5551 }
 0x4ad   :  { %vm9107_vm4 = vmor %vm12226_vm5, %vm12225_vm15  ;;  %vm2791_vm13 = vweird.f32 %v8910_v12  ;;  %v2637_v53 = vsel %vm8942_vm0, %v8826_v33, %v2632_v25  ;;  %v2652_v41 = vsel %vm8948_vm12, %v8829_v14, %v2647_v57  ;;  %v2667_v34 = vsel %vm8954_vm1, %v8835_v11, %v2662_v37  ;;  %v9134_v33 = vpop.eup %5553  ;;  %v12239_v57 = vld [vmem:[#allocation55_spill] sm:$0xff] }
 0x4ae   :  { %v2788_v16 = vmul.f32 %v8910_v12, %v2787_v52  ;;  %v2682_v54 = vsel %vm8974_vm14, %v8866_v5, %v2677_v48  ;;  %v2707_v31 = vsel %vm9107_vm4, %v8832_v43, %v8979_v49  ;;  %v12229_v18 = vrot.slane %v8874_v15, 4 }
 0x4af   :  { %v12230_v11 = vand.u32 2147483647, %v8824_v17  ;;  %vm2790_vm12 = vweird.f32 %v8844_v45  ;;  %v2803_v39 = vmul.f32 %v8938_v60, %v2802_v42  ;;  %v2816_v5 = vmul.f32 %v9084_v13, %v8901_v20  ;;  %v9151_v49 = vpop.eup %5555  ;;  %v12246_v17 = vld [vmem:[#allocation56_spill] sm:$0xff] }
 0x4b0   :  { %v2907_v14 = vmul.f32 %v12229_v18, %v2607_v29  ;;  %v2697_v43 = vsel %vm8993_vm8, %v8883_v0, %v2692_v4  ;;  %v12233_v62 = vrot.slane %v8874_v15, 5  ;;  %vm2806_vm14 = vweird.f32 %v8938_v60  ;;  %v12248_v18 = vld [vmem:[#allocation58_spill] sm:$0xff]  ;;  %vm9219_vm15 = vmor %vm2790_vm12, %vm2791_vm13 }
 0x4b1   :  { %vm9138_vm1 = vcmp.eq.f32.partialorder %v12230_v11, 8.507059e+37  ;;  %vm12234_vm0 = vnez %v12210_v19  ;;  %v12235_v3 = vrot.slane %v8874_v15, 6  ;;  %v12236_v9 = vrot.slane %v8874_v15, 7 }
 0x4b2   :  { %v2908_v46 = vmul.f32 %v12233_v62, %v2622_v35  ;;  %v2712_v30 = vsel %vm12234_vm0, %v8894_v27, %v2707_v31  ;;  %v2911_v23 = vmul.f32 %v8874_v15, %v2667_v34  ;;  %v2831_v0 = vmul.f32 %v9101_v22, %v8934_v26  ;;  %v12250_v62 = vld [vmem:[#allocation60_spill] sm:$0xff] }
 0x4b3   :  { %v2909_v52 = vmul.f32 %v12235_v3, %v2637_v53  ;;  %v2910_v55 = vmul.f32 %v12236_v9, %v2652_v41  ;;  %v2846_v38 = vmul.f32 %v9122_v56, %v8959_v51  ;;  %v2898_v63 = vrot.slane %v8874_v15, 3  ;;  %v12247_v41 = vld [vmem:[#allocation57_spill] sm:$0xff] }
 0x4b4   :  { %v12237_v40 = vrot.slane %v8874_v15, 1  ;;  %vm2805_vm8 = vweird.f32 %v8855_v28  ;;  %v12238_v27 = vrot.slane %v8874_v15, 2  ;;  %v2915_v61 = vadd.f32 %v2907_v14, %v6523_v6 }
 0x4b5   :  { %v2916_v25 = vadd.f32 %v2908_v46, %v6557_v50  ;;  %v2917_v2 = vadd.f32 %v2909_v52, %v12239_v57  ;;  %vm12240_vm3 = vweird.f32 %v8876_v47  ;;  %v12243_v29 = vand.u32 2147483647, %v8844_v45  ;;  %vm9246_vm13 = vmor %vm2805_vm8, %vm2806_vm14 }
 0x4b6   :  { %v2912_v19 = vmul.f32 %v12237_v40, %v2682_v54  ;;  %v2913_v58 = vmul.f32 %v12238_v27, %v2697_v43  ;;  %vm9179_vm11 = vmor %vm2775_vm9, %vm12240_vm3  ;;  %vm2821_vm10 = vweird.f32 %v9084_v13  ;;  %v2861_v15 = vmul.f32 %v9134_v33, %v8981_v10 }
 0x4b7   :  { %vm9185_vm2 = vcmp.eq.f32.partialorder %v12243_v29, 8.507059e+37  ;;  %v2876_v37 = vmul.f32 %v9151_v49, %v8997_v59  ;;  %v2914_v48 = vmul.f32 %v2898_v63, %v2712_v30  ;;  %v2918_v4 = vadd.f32 %v2910_v55, %v12246_v17  ;;  %v12251_v30 = vld [vmem:[#allocation76_spill] sm:$0xff] }
 0x4b8   :  { %v2778_v7 = vsel %vm9179_vm11, %v8876_v47, %v2774_v36  ;;  %v2789_v53 = vadd.f32 %v8910_v12, %v2788_v16  ;;  %v2919_v34 = vadd.f32 %v2911_v23, %v12247_v41  ;;  %5557 = vtanh.f32 %v2915_v61  ;;  %v12249_v47 = vld [vmem:[#allocation59_spill] sm:$0xff] }
 0x4b9   :  { %v2817_v54 = vsub.f32 1.0, %v2816_v5  ;;  %vm2820_vm9 = vweird.f32 %v8901_v20  ;;  %v2832_v31 = vsub.f32 1.0, %v2831_v0  ;;  %v2920_v14 = vadd.f32 %v2912_v19, %v12248_v18 }
 0x4ba   :  { %5559 = vtanh.f32 %v2916_v25  ;;  %vm2835_vm6 = vweird.f32 %v8934_v26  ;;  %v9205_v11 = vor.u32 1.1754944e-38, %v2841_v44  ;;  %v2847_v43 = vsub.f32 1.0, %v2846_v38  ;;  %vm9302_vm3 = vmor %vm2820_vm9, %vm2821_vm10 }
 0x4bb   :  { %v2921_v36 = vadd.f32 %v2913_v58, %v12249_v47  ;;  %5561 = vtanh.f32 %v2917_v2  ;;  %vm2850_vm7 = vweird.f32 %v8959_v51  ;;  %v2862_v16 = vsub.f32 1.0, %v2861_v15  ;;  %v12259_v58 = vld [vmem:[#allocation74_spill] sm:$0xff] }
 0x4bc   :  { %v2877_v5 = vsub.f32 1.0, %v2876_v37  ;;  %v2922_v46 = vadd.f32 %v2914_v48, %v12250_v62  ;;  %5563 = vtanh.f32 %v2918_v4  ;;  %v9213_v3 = vsel %vm9138_vm1, %v12251_v30, %v2778_v7 }
 0x4bd   :  { %v9224_v52 = vadd.f32 %v8938_v60, %v2803_v39  ;;  %v9228_v9 = vor.u32 1.1754944e-38, %v2856_v21  ;;  %5565 = vtanh.f32 %v2919_v34  ;;  %v2793_v1 = vsel %vm9219_vm15, %v8910_v12, %v2789_v53 }
 0x4be   :  { %v2818_v55 = vmul.f32 %v9084_v13, %v2817_v54  ;;  %v2833_v45 = vmul.f32 %v9101_v22, %v2832_v31  ;;  %5567 = vtanh.f32 %v2920_v14  ;;  %v9235_v23 = vpop.eup %5557  ;;  %vm2836_vm5 = vweird.f32 %v9101_v22 }
 0x4bf   :  { %v2848_v39 = vmul.f32 %v9122_v56, %v2847_v43  ;;  %vm2865_vm4 = vweird.f32 %v8981_v10  ;;  %5569 = vtanh.f32 %v2921_v36  ;;  %v12256_v0 = vand.u32 2147483647, %v8855_v28  ;;  %vm9314_vm15 = vmor %vm2835_vm6, %vm2836_vm5 }
 0x4c0   :  { %v9240_v21 = vpop.eup %5559  ;;  %v2863_v63 = vmul.f32 %v9134_v33, %v2862_v16  ;;  %v2878_v40 = vmul.f32 %v9151_v49, %v2877_v5  ;;  %5571 = vtanh.f32 %v2922_v46  ;;  %v2939_v19 = vrot.slane %v9235_v23, 4 }
 0x4c1   :  { %vm9252_vm1 = vcmp.eq.f32.partialorder %v12256_v0, 8.507059e+37  ;;  %v9259_v27 = vpop.eup %5561  ;;  %v9264_v61 = vsel %vm9185_vm2, %v12259_v58, %v2793_v1  ;;  %v2808_v28 = vsel %vm9246_vm13, %v8938_v60, %v9224_v52  ;;  %v12260_v25 = vand.u32 2147483647, %v8901_v20 }
 0x4c2   :  { %vm2851_vm14 = vweird.f32 %v9122_v56  ;;  %v2940_v42 = vrot.slane %v9240_v21, 3  ;;  %v9278_v29 = vpop.eup %5563  ;;  %v2819_v35 = vadd.f32 %v9084_v13, %v2818_v55  ;;  %v2834_v15 = vadd.f32 %v9101_v22, %v2833_v45 }
 0x4c3   :  { %vm9272_vm12 = vcmp.eq.f32.partialorder %v12260_v25, 8.507059e+37  ;;  %v12263_v37 = vand.u32 2147483647, %v8934_v26  ;;  %vm9290_vm8 = vcmp.eq.f32.partialorder %v2854_v24, 8.507059e+37  ;;  %v2869_v4 = vand.u32 2147483647, %v8981_v10  ;;  %v9296_v53 = vpop.eup %5565  ;;  %vm9326_vm13 = vmor %vm2850_vm7, %vm2851_vm14 }
 0x4c4   :  { %v2942_v7 = vrot.slane %v9259_v27, 2  ;;  %v2849_v54 = vadd.f32 %v9122_v56, %v2848_v39  ;;  %vm2866_vm11 = vweird.f32 %v9134_v33  ;;  %vm12270_vm2 = vcmask 1041409   ;;  %v5568_v14 = vpop.eup %5567 }
 0x4c5   :  { %vm9284_vm0 = vcmp.eq.f32.partialorder %v12263_v37, 8.507059e+37  ;;  %v2941_v24 = vsel %vm12270_vm2, %v2940_v42, %v2939_v19  ;;  %v2944_v31 = vrot.slane %v9278_v29, 1  ;;  %v2864_v20 = vadd.f32 %v9134_v33, %v2863_v63  ;;  %v5570_v5 = vpop.eup %5569  ;;  %vm9337_vm5 = vmor %vm2865_vm4, %vm2866_vm11 }
 0x4c6   :  { %v2879_v36 = vadd.f32 %v9151_v49, %v2878_v40  ;;  %vm2881_vm10 = vweird.f32 %v9151_v49  ;;  %vm12273_vm9 = vcmask 1042434   ;;  %v2871_v26 = vand.u32 2147483648, %v8981_v10  ;;  %v5572_v1 = vpop.eup %5571 }
 0x4c7   :  { %v2943_v16 = vsel %vm12273_vm9, %v2942_v7, %v2941_v24  ;;  %v2886_v30 = vand.u32 2147483648, %v8997_v59  ;;  %vm12276_vm6 = vcmask 1043459   ;;  %v2947_v52 = vrot.slane %v5568_v14, 7 }
 0x4c8   :  { %v2945_v44 = vsel %vm12276_vm6, %v2944_v31, %v2943_v16  ;;  %vm2880_vm7 = vweird.f32 %v8997_v59  ;;  %v2884_v51 = vand.u32 2147483647, %v8997_v59  ;;  %vm12279_vm14 = vcmask 1044484  }
 0x4c9   :  { %v2946_v45 = vsel %vm12279_vm14, %v9296_v53, %v2945_v44  ;;  %v2949_v39 = vrot.slane %v5570_v5, 6  ;;  %v2823_v12 = vsel %vm9302_vm3, %v9084_v13, %v2819_v35  ;;  %v2838_v10 = vsel %vm9314_vm15, %v9101_v22, %v2834_v15  ;;  %vm9353_vm4 = vmor %vm2880_vm7, %vm2881_vm10 }
 0x4ca   :  { %vm12282_vm11 = vcmask 1045509   ;;  %v2951_v63 = vrot.slane %v5572_v1, 5  ;;  %v2853_v40 = vsel %vm9326_vm13, %v9122_v56, %v2849_v54  ;;  %v2868_v13 = vsel %vm9337_vm5, %v9134_v33, %v2864_v20  ;;  %v12285_v33 = vld [vmem:[#allocation75_spill] sm:$0xff] }
 0x4cb   :  { %v2948_v59 = vsel %vm12282_vm11, %v2947_v52, %v2946_v45  ;;  %v2883_v22 = vsel %vm9353_vm4, %v9151_v49, %v2879_v36  ;;  %vm12283_vm3 = vcmask 1046534   ;;  %v2813_v58 = vsel %vm9252_vm1, %v9017_v32, %v2808_v28 }
 0x4cc   :  { %v2950_v19 = vsel %vm12283_vm3, %v2949_v39, %v2948_v59  ;;  %v2872_v25 = vor.u32 1.1754944e-38, %v2871_v26  ;;  %v2887_v42 = vor.u32 1.1754944e-38, %v2886_v30  ;;  %vm12284_vm2 = vcmask 1047559   ;;  %v12293_v59 = vld [vmem:[#allocation62_spill] sm:$0xff]  ;;  %vm12305_vm13 = vmmov %vm12283_vm3 }
 0x4cd   :  { %v2952_v35 = vsel %vm12284_vm2, %v2951_v63, %v2950_v19  ;;  %v2828_v56 = vsel %vm9272_vm12, %v9030_v8, %v2823_v12  ;;  %vm2870_vm15 = vcmp.eq.f32.partialorder %v2869_v4, 8.507059e+37  ;;  %vm2885_vm10 = vcmp.eq.f32.partialorder %v2884_v51, 8.507059e+37  ;;  %vm12301_vm12 = vmmov %vm12273_vm9 }
 0x4ce   :  { %v2954_v15 = vsub.f32 %v12285_v33, %v2952_v35  ;;  %v2843_v49 = vsel %vm9284_vm0, %v9205_v11, %v2838_v10  ;;  %v2858_v32 = vsel %vm9290_vm8, %v9228_v9, %v2853_v40  ;;  %v2873_v38 = vsel %vm2870_vm15, %v2872_v25, %v2868_v13  ;;  %v12294_v40 = vld [vmem:[#allocation64_spill] sm:$0xff]  ;;  %v12296_v25 = vld [vmem:[#allocation69_spill] sm:$0xff]  ;;  %vm12302_vm0 = vmmov %vm12276_vm6 }
 0x4cf   :  { %v2888_v28 = vsel %vm2885_vm10, %v2887_v42, %v2883_v22  ;;  %v2994_v9 = vrot.slane %v12285_v33, 3  ;;  %v12286_v55 = vrot.slane %v12285_v33, 4  ;;  %v12287_v45 = vrot.slane %v12285_v33, 5  ;;  %v12295_v22 = vld [vmem:[#allocation65_spill] sm:$0xff]  ;;  %vm12303_vm8 = vmmov %vm12279_vm14 }
 0x4d0   :  { %v2956_v37 = vrot.slane %v2954_v15, 4  ;;  %v2957_v7 = vrot.slane %v2954_v15, 5  ;;  %v2958_v34 = vrot.slane %v2954_v15, 6  ;;  %v2959_v54 = vrot.slane %v2954_v15, 7  ;;  %vm12304_vm9 = vmmov %vm12282_vm11 }
 0x4d1   :  { %v2960_v2 = vrot.slane %v2954_v15, 1  ;;  %v2961_v8 = vrot.slane %v2954_v15, 2  ;;  %v2962_v4 = vrot.slane %v2954_v15, 3  ;;  %v2975_v24 = vmul.f32 %v2954_v15, %v2843_v49  ;;  %v12297_v49 = vld [vmem:[#allocation67_spill] sm:$0xff]  ;;  %vm12306_vm6 = vmmov %vm12284_vm2 }
 0x4d2   :  { %v2971_v31 = vmul.f32 %v2956_v37, %v9213_v3  ;;  %v2972_v43 = vmul.f32 %v2957_v7, %v9264_v61  ;;  %v2973_v60 = vmul.f32 %v2958_v34, %v2813_v58  ;;  %v2974_v11 = vmul.f32 %v2959_v54, %v2828_v56  ;;  %v12300_v34 = vld [vmem:[#allocation66_spill] sm:$0xff] }
 0x4d3   :  { %v2976_v20 = vmul.f32 %v2960_v2, %v2858_v32  ;;  %v2977_v36 = vmul.f32 %v2961_v8, %v2873_v38  ;;  %v2978_v48 = vmul.f32 %v2962_v4, %v2888_v28  ;;  %v2983_v44 = vadd.f32 %v9296_v53, %v2975_v24  ;;  %v12298_v38 = vld [vmem:[#allocation68_spill] sm:$0xff] }
 0x4d4   :  { %v2979_v16 = vadd.f32 %v9235_v23, %v2971_v31  ;;  %v2980_v46 = vadd.f32 %v9240_v21, %v2972_v43  ;;  %v2981_v26 = vadd.f32 %v9259_v27, %v2973_v60  ;;  %v2982_v30 = vadd.f32 %v9278_v29, %v2974_v11 }
 0x4d5   :  { %v2984_v3 = vadd.f32 %v5568_v14, %v2976_v20  ;;  %v2985_v52 = vadd.f32 %v5570_v5, %v2977_v36  ;;  %v2986_v61 = vadd.f32 %v5572_v1, %v2978_v48  ;;  %v12288_v12 = vrot.slane %v12285_v33, 6  ;;  %v12292_v1 = vld [vmem:[#allocation63_spill] sm:$0xff] }
 0x4d6   :  { %v3003_v51 = vsub.f32 %v2979_v16, %v12286_v55  ;;  %v3004_v39 = vsub.f32 %v2980_v46, %v12287_v45  ;;  %v12289_v21 = vrot.slane %v12285_v33, 7  ;;  %v12290_v27 = vrot.slane %v12285_v33, 1  ;;  %v12308_v16 = vld [vmem:[#allocation18_spill] sm:$0xff]  ;;  %v12309_v46 = vld [vmem:[#allocation20_spill] sm:$0xff] }
 0x4d7   :  { %v3005_v23 = vsub.f32 %v2981_v26, %v12288_v12  ;;  %v12291_v53 = vrot.slane %v12285_v33, 2  ;;  %v3010_v5 = vsub.f32 %v2986_v61, %v2994_v9  ;;  %v3007_v58 = vsub.f32 %v2983_v44, %v12285_v33  ;;  %v12310_v26 = vld [vmem:[#allocation23_spill] sm:$0xff]  ;;  %v12312_v44 = vld [vmem:[#allocation29_spill] sm:$0xff]  ;;  %v12315_v61 = vld [vmem:[#allocation38_spill] sm:$0xff] }
 0x4d8   :  { %v3006_v10 = vsub.f32 %v2982_v30, %v12289_v21  ;;  %v3008_v29 = vsub.f32 %v2984_v3, %v12290_v27  ;;  %v3011_v0 = vmul.f32 %v3003_v51, %v12292_v1  ;;  %v3012_v63 = vmul.f32 %v3004_v39, %v12293_v59  ;;  %v12311_v30 = vld [vmem:[#allocation26_spill] sm:$0xff]  ;;  %v12313_v3 = vld [vmem:[#allocation32_spill] sm:$0xff] }
 0x4d9   :  { %v3009_v14 = vsub.f32 %v2985_v52, %v12291_v53  ;;  %v3013_v13 = vmul.f32 %v3005_v23, %v12294_v40  ;;  %v3018_v28 = vmul.f32 %v3010_v5, %v12298_v38  ;;  %vm12299_vm1 = vcmask 1041409   ;;  %v12314_v52 = vld [vmem:[#allocation35_spill] sm:$0xff]  ;;  %v12317_v5 = vld [vmem:[#allocation48_spill] sm:$0xff] }
 0x4da   :  { %v3014_v19 = vmul.f32 %v3006_v10, %v12295_v22  ;;  %v3016_v42 = vmul.f32 %v3008_v29, %v12296_v25  ;;  %v3027_v35 = vrot.slane %v3011_v0, 4  ;;  %v3028_v56 = vrot.slane %v3012_v63, 3  ;;  %v12316_v29 = vld [vmem:[#allocation47_spill] sm:$0xff]  ;;  %v12318_v63 = vld [vmem:[#allocation73_spill] sm:$0xff] }
 0x4db   :  { %v3030_v15 = vrot.slane %v3013_v13, 2  ;;  %v3017_v32 = vmul.f32 %v3009_v14, %v12297_v49  ;;  %v3015_v54 = vmul.f32 %v3007_v58, %v12300_v34  ;;  %v3039_v60 = vrot.slane %v3018_v28, 5 }
 0x4dc   :  { %v3029_v37 = vsel %vm12299_vm1, %v3028_v56, %v3027_v35  ;;  %v3032_v7 = vrot.slane %v3014_v19, 1  ;;  %v3035_v4 = vrot.slane %v3016_v42, 7  ;;  %v12319_v13 = vrot.slane %v12318_v63, 6  ;;  %v12321_v56 = vld [vmem:[#allocation52_spill] sm:$0xff] }
 0x4dd   :  { %v3031_v2 = vsel %vm12301_vm12, %v3030_v15, %v3029_v37  ;;  %v3037_v31 = vrot.slane %v3017_v32, 6  ;;  %v12320_v58 = vrot.slane %v12318_v63, 7  ;;  %v12322_v28 = vrot.slane %v12318_v63, 3 }
 0x4de   :  { %v3033_v8 = vsel %vm12302_vm0, %v3032_v7, %v3031_v2  ;;  %v4692_v19 = vperm.slane %v12319_v13, 0  ;;  %v12323_v7 = vrot.slane %v12318_v63, 4  ;;  %vm11599_vm5 = vcmask 1040384  }
 0x4df   :  { %v3034_v24 = vsel %vm12303_vm8, %v3015_v54, %v3033_v8  ;;  %v4693_v42 = vperm.slane %v12320_v58, 0  ;;  %v4689_v37 = vperm.slane %v12322_v28, 0  ;;  %v12324_v8 = vld [vmem:[#allocation49_spill] sm:$0xff]  ;;  %vm11596_vm7 = vcmask 1041408  }
 0x4e0   :  { %v3036_v43 = vsel %vm12304_vm9, %v3035_v4, %v3034_v24  ;;  %v4690_v54 = vperm.slane %v12323_v7, 0  ;;  %v12325_v24 = vld [vmem:[#allocation50_spill] sm:$0xff]  ;;  %vm11595_vm14 = vcmask 1042432   ;;  %vm11600_vm4 = vcmask 1043456  }
 0x4e1   :  { %v3038_v11 = vsel %vm12305_vm13, %v3037_v31, %v3036_v43 }
 0x4e2   :  { %v3040_v20 = vsel %vm12306_vm6, %v3039_v60, %v3038_v11  ;;  %v12326_v60 = vrot.slane %v12318_v63, 5 }
 0x4e3   :  { %v9421_v36 = vadd.f32 %v3040_v20, %v12285_v33  ;;  %v12327_v20 = vld [vmem:[#allocation51_spill] sm:$0xff] }
 0x4e4   :  { %v4691_v11 = vperm.slane %v12326_v60, 0 }
 0x4e5   :  { %12307 = vst [vmem:[#allocation15_spill] sm:$0xff] %v9421_v36  ;;  %v3043_v48 = vpack.c.bf16 %v9421_v36, %v9421_v36  ;;  %v12377_v38 = vrot.slane %v9421_v36, 7 }
 0x4e7   :  { %3052 = vmatmul.bf16.vlgmr.msrb.gmra.mxu3 %v3043_v48  ;;  %3065 = vmatmul.bf16.vlgmr.msra.gmra.mxu0 %v3043_v48  ;;  %v9682_v49 = vperm.slane %v12377_v38, 0 }
 0x4e8   :  { %3078 = vmatmul.bf16.vlgmr.msra.gmra.mxu1 %v3043_v48  ;;  %4160 = vmatpush.bf16.msrb.mxu3 %v12308_v16 }
 0x4ec   :  { %4161 = vmatpush.bf16.msrb.mxu3 %v12309_v46  ;;  %v12328_v46 = vld [vmem:[#allocation70_spill] sm:$0xff] }
 0x4f0   :  { %4162 = vmatpush.bf16.msrb.mxu3 %v12310_v26  ;;  %v12329_v26 = vrot.slane %v12328_v46, 6 }
 0x4f4   :  { %4163 = vmatpush.bf16.msrb.mxu3 %v12311_v30  ;;  %v4805_v30 = vsel %vm11599_vm5, %v12329_v26, %v4692_v19  ;;  %v12342_v26 = vrot.slane %v12285_v33, 5 }
 0x4f8   :  { %4164 = vmatpush.bf16.msrb.mxu3 %v12312_v44  ;;  %v12330_v44 = vrot.slane %v12328_v46, 7 }
 0x4fc   :  { %4165 = vmatpush.bf16.msrb.mxu3 %v12313_v3  ;;  %v4806_v3 = vsel %vm11599_vm5, %v12330_v44, %v4693_v42  ;;  %v4723_v44 = vperm.slane %v12342_v26, 0 }
 0x500   :  { %4166 = vmatpush.bf16.msrb.mxu3 %v12314_v52  ;;  %v12331_v52 = vld [vmem:[#allocation53_spill] sm:$0xff] }
 0x504   :  { %4167 = vmatpush.bf16.msrb.mxu3 %v12315_v61 }
 0x564   :  { %v3066_v55 = vpop.f32.mrf.mxu0 }
 0x565   :  { %v9433_v51 = vpop.f32.mrf.mxu1  ;;  %v3260_v39 = vrot.slane %v3066_v55, 3  ;;  %v3261_v23 = vrot.slane %v3066_v55, 4  ;;  %v3262_v10 = vrot.slane %v3066_v55, 5  ;;  %v3263_v27 = vrot.slane %v3066_v55, 6 }
 0x566   :  { %v3264_v14 = vrot.slane %v3066_v55, 7  ;;  %v3265_v35 = vrot.slane %v3066_v55, 1  ;;  %v3280_v15 = vadd.f32 %v3066_v55, %v12321_v56  ;;  %v3266_v2 = vrot.slane %v3066_v55, 2 }
 0x567   :  { %v3275_v53 = vadd.f32 %v3260_v39, %v12316_v29  ;;  %v3276_v0 = vadd.f32 %v3261_v23, %v12317_v5  ;;  %v3277_v4 = vadd.f32 %v3262_v10, %v12324_v8  ;;  %v3278_v31 = vadd.f32 %v3263_v27, %v12325_v24  ;;  %v12334_v10 = vld [vmem:[#allocation54_spill] sm:$0xff] }
 0x568   :  { %v3279_v48 = vadd.f32 %v3264_v14, %v12327_v20  ;;  %v3281_v61 = vadd.f32 %v3265_v35, %v12331_v52  ;;  %v5099_v55 = vmul.f32 -1.442695, %v3280_v15  ;;  %v12332_v39 = vrot.slane %v12328_v46, 3  ;;  %v12335_v14 = vld [vmem:[#allocation72_spill] sm:$0xff] }
 0x569   :  { %v5094_v43 = vmul.f32 -1.442695, %v3275_v53  ;;  %v5095_v16 = vmul.f32 -1.442695, %v3276_v0  ;;  %v12333_v23 = vrot.slane %v12328_v46, 4  ;;  %v3282_v27 = vadd.f32 %v3266_v2, %v12334_v10 }
 0x56a   :  { %v9435_v45 = vpop.f32.mrf.mxu3  ;;  %v5096_v53 = vmul.f32 -1.442695, %v3277_v4  ;;  %v12336_v0 = vrot.slane %v12335_v14, 5  ;;  %v12337_v19 = vrot.slane %v12335_v14, 6  ;;  %v5097_v42 = vmul.f32 -1.442695, %v3278_v31 }
 0x56b   :  { %5573 = vpow2.f32 %v5094_v43  ;;  %v12338_v35 = vrot.slane %v12335_v14, 3  ;;  %v12340_v7 = vrot.slane %v12335_v14, 7  ;;  %v5100_v2 = vmul.f32 -1.442695, %v3281_v61 }
 0x56c   :  { %v3068_v12 = vpop.f32.mrf.mxu0  ;;  %v4707_v13 = vperm.slane %v12336_v0, 0  ;;  %v4708_v58 = vperm.slane %v12337_v19, 0  ;;  %5575 = vpow2.f32 %v5095_v16  ;;  %v4721_v4 = vperm.slane %v2994_v9, 0 }
 0x56d   :  { %v3081_v21 = vpop.f32.mrf.mxu1  ;;  %v4802_v12 = vsel %vm11599_vm5, %v12332_v39, %v4689_v37  ;;  %v4705_v15 = vperm.slane %v12338_v35, 0  ;;  %v5098_v37 = vmul.f32 -1.442695, %v3279_v48  ;;  %5577 = vpow2.f32 %v5099_v55 }
 0x56e   :  { %v4803_v21 = vsel %vm11599_vm5, %v12333_v23, %v4690_v54  ;;  %v4709_v54 = vperm.slane %v12340_v7, 0  ;;  %v12341_v43 = vrot.slane %v12285_v33, 4  ;;  %5579 = vpow2.f32 %v5096_v53 }
 0x56f   :  { %v5101_v60 = vmul.f32 -1.442695, %v3282_v27  ;;  %v12343_v16 = vrot.slane %v12285_v33, 6  ;;  %v12344_v39 = vrot.slane %v12285_v33, 7  ;;  %5581 = vpow2.f32 %v5097_v42  ;;  %v9497_v42 = vld [vmem:[%s11431_s3] ss:$0 sm:$0xff] }
 0x570   :  { %v4722_v31 = vperm.slane %v12341_v43, 0  ;;  %v12345_v61 = vrot.slane %v12328_v46, 5  ;;  %5583 = vpow2.f32 %v5098_v37  ;;  %v4811_v9 = vsel %vm11596_vm7, %v4802_v12, %v4705_v15  ;;  %12346 = vst [vmem:[#allocation17_spill] sm:$0xff] %v9497_v42  ;;  %v12354_v37 = vld [vmem:[#allocation43_spill] sm:$0xff]  ;;  %v12356_v33 = vld [vmem:[#allocation45_spill] sm:$0xff] }
 0x571   :  { %v4724_v48 = vperm.slane %v12343_v16, 0  ;;  %v4725_v23 = vperm.slane %v12344_v39, 0  ;;  %v5574_v27 = vpop.eup %5573  ;;  %5585 = vpow2.f32 %v5100_v2  ;;  %v4814_v19 = vsel %vm11596_vm7, %v4805_v30, %v4708_v58 }
 0x572   :  { %v3055_v32 = vpop.f32.mrf.mxu3  ;;  %v4804_v55 = vsel %vm11599_vm5, %v12345_v61, %v4691_v11  ;;  %v5576_v35 = vpop.eup %5575  ;;  %5587 = vpow2.f32 %v5101_v60  ;;  %v9501_v11 = vadd.f32 %v9497_v42, %v9433_v51  ;;  %v4815_v12 = vsel %vm11596_vm7, %v4806_v3, %v4709_v54  ;;  %v12350_v61 = vld [vmem:[#allocation40_spill] sm:$0xff] }
 0x573   :  { %v12339_v32 = vrot.slane %v12335_v14, 4  ;;  %v4813_v0 = vsel %vm11596_vm7, %v4804_v55, %v4707_v13  ;;  %v5578_v13 = vpop.eup %5577  ;;  %v9514_v15 = vsel %vm11595_vm14, %v4814_v19, %v4724_v48  ;;  %v9524_v2 = vadd.f32 1.0, %v5576_v35 }
 0x574   :  { %v9511_v58 = vsel %vm11595_vm14, %v4813_v0, %v4723_v44  ;;  %v5580_v51 = vpop.eup %5579  ;;  %v9529_v26 = vadd.f32 1.0, %v5578_v13  ;;  %v3084_v16 = vrot.slane %v9435_v45, 3  ;;  %v3085_v48 = vrot.slane %v9435_v45, 4 }
 0x575   :  { %v4706_v28 = vperm.slane %v12339_v32, 0  ;;  %v9517_v32 = vsel %vm11595_vm14, %v4815_v12, %v4725_v23  ;;  %v5582_v54 = vpop.eup %5581  ;;  %v9534_v23 = vadd.f32 1.0, %v5580_v51  ;;  %v3086_v55 = vrot.slane %v9435_v45, 5 }
 0x576   :  { %v5584_v60 = vpop.eup %5583  ;;  %v3088_v19 = vrot.slane %v9435_v45, 7  ;;  %v3089_v13 = vrot.slane %v9435_v45, 1  ;;  %v3100_v44 = vadd.f32 %v3085_v48, %v12350_v61  ;;  %v12355_v48 = vld [vmem:[#allocation44_spill] sm:$0xff]  ;;  %v12362_v8 = vrot.slane %v9421_v36, 3 }
 0x577   :  { %v4812_v53 = vsel %vm11596_vm7, %v4803_v21, %v4706_v28  ;;  %v9505_v21 = vsel %vm11595_vm14, %v4811_v9, %v4721_v4  ;;  %v9519_v28 = vadd.f32 1.0, %v5574_v27  ;;  %v5586_v39 = vpop.eup %5585  ;;  %v3087_v9 = vrot.slane %v9435_v45, 6  ;;  %v12353_v4 = vld [vmem:[#allocation42_spill] sm:$0xff] }
 0x578   :  { %v9508_v30 = vsel %vm11595_vm14, %v4812_v53, %v4722_v31  ;;  %v5588_v53 = vpop.eup %5587  ;;  %v9539_v27 = vadd.f32 1.0, %v5582_v54  ;;  %v9544_v35 = vadd.f32 1.0, %v5584_v60  ;;  %v9549_v51 = vadd.f32 1.0, %v5586_v39  ;;  %v12349_v54 = vld [vmem:[#allocation39_spill] sm:$0xff]  ;;  %v12352_v60 = vld [vmem:[#allocation41_spill] sm:$0xff] }
 0x579   :  { %5589 = vrcp.f32 %v9519_v28  ;;  %v3099_v31 = vadd.f32 %v3084_v16, %v12349_v54  ;;  %v9554_v43 = vadd.f32 1.0, %v5588_v53  ;;  %v3101_v0 = vadd.f32 %v3086_v55, %v12352_v60 }
 0x57a   :  { %12347 = vst [vmem:[#allocation16_spill] sm:$0xff] %v9544_v35  ;;  %5591 = vrcp.f32 %v9524_v2  ;;  %v3102_v7 = vadd.f32 %v3087_v9, %v12353_v4  ;;  %v3090_v39 = vrot.slane %v9435_v45, 2  ;;  %v3103_v3 = vadd.f32 %v3088_v19, %v12354_v37 }
 0x57b   :  { %12348 = vst [vmem:[#allocation19_spill] sm:$0xff] %v9549_v51  ;;  %5593 = vrcp.f32 %v9529_v26  ;;  %v3104_v53 = vadd.f32 %v9435_v45, %v12355_v48  ;;  %v3105_v14 = vadd.f32 %v3089_v13, %v12356_v33  ;;  %v3326_v9 = vand.u32 2147483648, %v9519_v28  ;;  %v12357_v13 = vld [vmem:[#allocation46_spill] sm:$0xff] }
 0x57c   :  { %12351 = vst [vmem:[#allocation21_spill] sm:$0xff] %v9554_v43  ;;  %5595 = vrcp.f32 %v9534_v23  ;;  %v5086_v12 = vmul.f32 -1.442695, %v3099_v31  ;;  %v5087_v46 = vmul.f32 -1.442695, %v3100_v44  ;;  %v3341_v19 = vand.u32 2147483648, %v9524_v2 }
 0x57d   :  { %5597 = vrcp.f32 %v9539_v27  ;;  %v5088_v16 = vmul.f32 -1.442695, %v3101_v0  ;;  %v5089_v10 = vmul.f32 -1.442695, %v3102_v7  ;;  %v3106_v56 = vadd.f32 %v3090_v39, %v12357_v13 }
 0x57e   :  { %5599 = vrcp.f32 %v9544_v35  ;;  %v5090_v20 = vmul.f32 -1.442695, %v3103_v3  ;;  %v9593_v39 = vor.u32 1.1754944e-38, %v3326_v9  ;;  %v9595_v5 = vor.u32 1.1754944e-38, %v3341_v19 }
 0x57f   :  { %v9568_v55 = vpop.eup %5589  ;;  %5601 = vrcp.f32 %v9549_v51  ;;  %v5092_v44 = vmul.f32 -1.442695, %v3105_v14  ;;  %v4737_v42 = vperm.slane %v12362_v8, 0  ;;  %v12363_v13 = vrot.slane %v9421_v36, 4 }
 0x580   :  { %v9572_v63 = vpop.eup %5591  ;;  %5603 = vrcp.f32 %v9554_v43  ;;  %v3316_v31 = vmul.f32 %v9568_v55, %v9519_v28  ;;  %12359 = vst [vmem:[#allocation24_spill] sm:$0xff] %v9593_v39  ;;  %v3356_v19 = vand.u32 2147483648, %v9534_v23  ;;  %v12376_v33 = vrot.slane %v9421_v36, 6 }
 0x581   :  { %v9576_v52 = vpop.eup %5593  ;;  %5605 = vpow2.f32 %v5086_v12  ;;  %v3331_v7 = vmul.f32 %v9572_v63, %v9524_v2  ;;  %v5091_v12 = vmul.f32 -1.442695, %v3104_v53  ;;  %12360 = vst [vmem:[#allocation25_spill] sm:$0xff] %v9595_v5  ;;  %v4738_v45 = vperm.slane %v12363_v13, 0 }
 0x582   :  { %v9580_v24 = vpop.eup %5595  ;;  %5607 = vpow2.f32 %v5087_v46  ;;  %v5093_v46 = vmul.f32 -1.442695, %v3106_v56  ;;  %v3317_v53 = vsub.f32 1.0, %v3316_v31  ;;  %v9611_v56 = vmul.f32 %v9576_v52, %v9529_v26 }
 0x583   :  { %v9586_v0 = vpop.eup %5597  ;;  %5609 = vpow2.f32 %v5088_v16  ;;  %v3332_v48 = vsub.f32 1.0, %v3331_v7  ;;  %v9615_v13 = vmul.f32 %v9580_v24, %v9534_v23  ;;  %v9623_v7 = vsel %vm11600_vm4, %v9505_v21, %v4737_v42 }
 0x584   :  { %v9591_v3 = vpop.eup %5599  ;;  %5611 = vpow2.f32 %v5089_v10  ;;  %v3371_v10 = vand.u32 2147483648, %v9539_v27  ;;  %12365 = vst [vmem:[#allocation30_spill] sm:$0xff] %v9611_v56  ;;  %v9629_v60 = vor.u32 1.1754944e-38, %v3356_v19  ;;  %v9678_v25 = vperm.slane %v12376_v33, 0 }
 0x585   :  { %12358 = vst [vmem:[#allocation22_spill] sm:$0xff] %v9591_v3  ;;  %v9597_v29 = vpop.eup %5601  ;;  %5613 = vpow2.f32 %v5090_v20  ;;  %v3386_v20 = vand.u32 2147483648, %v9544_v35  ;;  %v9643_v21 = vmul.f32 %v9572_v63, %v3332_v48 }
 0x586   :  { %12361 = vst [vmem:[#allocation27_spill] sm:$0xff] %v9597_v29  ;;  %v9603_v16 = vpop.eup %5603  ;;  %5615 = vpow2.f32 %v5091_v12  ;;  %v9627_v12 = vsel %vm11600_vm4, %v9508_v30, %v4738_v45  ;;  %v9638_v61 = vor.u32 1.1754944e-38, %v3371_v10  ;;  %v9657_v10 = vmul.f32 %v9591_v3, %v9544_v35 }
 0x587   :  { %12364 = vst [vmem:[#allocation28_spill] sm:$0xff] %v9603_v16  ;;  %v5606_v14 = vpop.eup %5605  ;;  %5617 = vpow2.f32 %v5092_v44  ;;  %v9645_v30 = vor.u32 1.1754944e-38, %v3386_v20  ;;  %v9662_v20 = vmul.f32 %v9597_v29, %v9549_v51 }
 0x588   :  { %v5608_v8 = vpop.eup %5607  ;;  %12366 = vst [vmem:[#allocation31_spill] sm:$0xff] %v9615_v13  ;;  %v9617_v31 = vadd.f32 1.0, %v5606_v14  ;;  %5619 = vpow2.f32 %v5093_v46  ;;  %v12399_v13 = vrot.slane %v9501_v11, 4 }
 0x589   :  { %v5610_v9 = vpop.eup %5609  ;;  %v9619_v37 = vadd.f32 1.0, %v5608_v8  ;;  %12367 = vst [vmem:[#allocation33_spill] sm:$0xff] %v9623_v7  ;;  %v9636_v8 = vmul.f32 %v9568_v55, %v3317_v53  ;;  %v9653_v53 = vmul.f32 %v9586_v0, %v9539_v27  ;;  %v12375_v7 = vrot.slane %v9421_v36, 5 }
 0x58a   :  { %12368 = vst [vmem:[#allocation34_spill] sm:$0xff] %v9627_v12  ;;  %v5612_v4 = vpop.eup %5611  ;;  %v9632_v14 = vadd.f32 1.0, %v5610_v9  ;;  %5621 = vrcp.f32 %v9617_v31  ;;  %v3150_v48 = vand.u32 2147483648, %v9617_v31  ;;  %vm3144_vm11 = vweird.f32 %v9617_v31 }
 0x58b   :  { %12369 = vst [vmem:[#allocation36_spill] sm:$0xff] %v9629_v60  ;;  %v5614_v46 = vpop.eup %5613  ;;  %5623 = vrcp.f32 %v9619_v37  ;;  %v9648_v9 = vadd.f32 1.0, %v5612_v4  ;;  %v9666_v4 = vmul.f32 %v9603_v16, %v9554_v43  ;;  %v3165_v12 = vand.u32 2147483648, %v9619_v37 }
 0x58c   :  { %12370 = vst [vmem:[#allocation37_spill] sm:$0xff] %v9638_v61  ;;  %v5616_v19 = vpop.eup %5615  ;;  %v9668_v45 = vadd.f32 1.0, %v5614_v46  ;;  %5625 = vrcp.f32 %v9632_v14  ;;  %v9674_v54 = vperm.slane %v12375_v7, 0  ;;  %v3148_v22 = vand.u32 2147483647, %v9617_v31 }
 0x58d   :  { %12371 = vst [vmem:[#allocation71_spill] sm:$0xff] %v9643_v21  ;;  %v5618_v42 = vpop.eup %5617  ;;  %v9686_v46 = vadd.f32 1.0, %v5616_v19  ;;  %v3180_v40 = vand.u32 2147483648, %v9632_v14  ;;  %5627 = vrcp.f32 %v9648_v9  ;;  %v9698_v59 = vor.u32 1.1754944e-38, %v3150_v48 }
 0x58e   :  { %12372 = vst [vmem:[#allocation76_spill] sm:$0xff] %v9645_v30  ;;  %v5620_v44 = vpop.eup %5619  ;;  %v9694_v33 = vadd.f32 1.0, %v5618_v42  ;;  %vm3159_vm3 = vweird.f32 %v9619_v37  ;;  %v3163_v19 = vand.u32 2147483647, %v9619_v37  ;;  %v3178_v30 = vand.u32 2147483647, %v9632_v14 }
 0x58f   :  { %12373 = vst [vmem:[#allocation74_spill] sm:$0xff] %v9662_v20  ;;  %v3195_v61 = vand.u32 2147483648, %v9648_v9  ;;  %5629 = vrcp.f32 %v9668_v45  ;;  %v9707_v42 = vadd.f32 1.0, %v5620_v44  ;;  %v3166_v60 = vor.u32 1.1754944e-38, %v3165_v12 }
 0x590   :  { %12374 = vst [vmem:[#allocation18_spill] sm:$0xff] %v9666_v4  ;;  %v9684_v34 = vpop.eup %5621  ;;  %vm3174_vm2 = vweird.f32 %v9632_v14  ;;  %v3193_v48 = vand.u32 2147483647, %v9648_v9  ;;  %v3181_v51 = vor.u32 1.1754944e-38, %v3180_v40  ;;  %5631 = vrcp.f32 %v9686_v46 }
 0x591   :  { %v9692_v7 = vpop.eup %5623  ;;  %v3140_v38 = vmul.f32 %v9684_v34, %v9617_v31  ;;  %vm3145_vm15 = vweird.f32 %v9684_v34  ;;  %vm9716_vm10 = vcmp.eq.f32.partialorder %v3148_v22, 8.507059e+37  ;;  %vm9721_vm12 = vcmp.eq.f32.partialorder %v3163_v19, 8.507059e+37 }
 0x592   :  { %v3155_v1 = vmul.f32 %v9692_v7, %v9619_v37  ;;  %v9711_v5 = vpop.eup %5625  ;;  %vm3160_vm1 = vweird.f32 %v9692_v7  ;;  %vm3189_vm0 = vweird.f32 %v9648_v9  ;;  %v3196_v22 = vor.u32 1.1754944e-38, %v3195_v61  ;;  %vm9751_vm14 = vmor %vm3144_vm11, %vm3145_vm15 }
 0x593   :  { %v3141_v36 = vsub.f32 1.0, %v3140_v38  ;;  %v3170_v44 = vmul.f32 %v9711_v5, %v9632_v14  ;;  %v5628_v40 = vpop.eup %5627  ;;  %v3210_v38 = vand.u32 2147483648, %v9668_v45  ;;  %v3225_v29 = vand.u32 2147483648, %v9686_v46  ;;  %vm9768_vm11 = vmor %vm3159_vm3, %vm3160_vm1 }
 0x594   :  { %v3156_v43 = vsub.f32 1.0, %v3155_v1  ;;  %v3208_v1 = vand.u32 2147483647, %v9668_v45  ;;  %vm9733_vm8 = vcmp.eq.f32.partialorder %v3178_v30, 8.507059e+37  ;;  %v3185_v56 = vmul.f32 %v5628_v40, %v9648_v9 }
 0x595   :  { %v3142_v39 = vmul.f32 %v9684_v34, %v3141_v36  ;;  %v3171_v3 = vsub.f32 1.0, %v3170_v44  ;;  %vm9738_vm9 = vcmp.eq.f32.partialorder %v3193_v48, 8.507059e+37  ;;  %vm3204_vm13 = vweird.f32 %v9668_v45 }
 0x596   :  { %v3157_v36 = vmul.f32 %v9692_v7, %v3156_v43  ;;  %v5630_v43 = vpop.eup %5629  ;;  %vm3175_vm6 = vweird.f32 %v9711_v5  ;;  %5633 = vrcp.f32 %v9694_v33  ;;  %v3186_v44 = vsub.f32 1.0, %v3185_v56 }
 0x597   :  { %v3143_v19 = vadd.f32 %v9684_v34, %v3142_v39  ;;  %v3223_v39 = vand.u32 2147483647, %v9686_v46  ;;  %v3172_v48 = vmul.f32 %v9711_v5, %v3171_v3  ;;  %v3200_v21 = vmul.f32 %v5630_v43, %v9668_v45  ;;  %v5632_v4 = vpop.eup %5631 }
 0x598   :  { %v3158_v61 = vadd.f32 %v9692_v7, %v3157_v36  ;;  %vm9757_vm7 = vcmp.eq.f32.partialorder %v3208_v1, 8.507059e+37  ;;  %vm3190_vm15 = vweird.f32 %v5628_v40  ;;  %v3211_v3 = vor.u32 1.1754944e-38, %v3210_v38 }
 0x599   :  { %v3147_v35 = vsel %vm9751_vm14, %v9684_v34, %v3143_v19  ;;  %vm3219_vm5 = vweird.f32 %v9686_v46  ;;  %v3226_v56 = vor.u32 1.1754944e-38, %v3225_v29  ;;  %v3173_v30 = vadd.f32 %v9711_v5, %v3172_v48  ;;  %vm9781_vm14 = vmor %vm3174_vm2, %vm3175_vm6 }
 0x59a   :  { %v3162_v1 = vsel %vm9768_vm11, %v9692_v7, %v3158_v61  ;;  %v3187_v34 = vmul.f32 %v5628_v40, %v3186_v44  ;;  %v3201_v19 = vsub.f32 1.0, %v3200_v21  ;;  %vm3205_vm3 = vweird.f32 %v5630_v43  ;;  %vm3191_vm2 = vmor %vm3189_vm0, %vm3190_vm15 }
 0x59b   :  { %v3215_v38 = vmul.f32 %v5632_v4, %v9686_v46  ;;  %vm9786_vm1 = vcmp.eq.f32.partialorder %v3223_v39, 8.507059e+37  ;;  %v3238_v7 = vand.u32 2147483647, %v9694_v33  ;;  %v3240_v61 = vand.u32 2147483648, %v9694_v33 }
 0x59c   :  { %v3177_v21 = vsel %vm9781_vm14, %v9711_v5, %v3173_v30  ;;  %v3188_v14 = vadd.f32 %v5628_v40, %v3187_v34  ;;  %v3202_v48 = vmul.f32 %v5630_v43, %v3201_v19  ;;  %5635 = vrcp.f32 %v9707_v42  ;;  %v5634_v44 = vpop.eup %5633 }
 0x59d   :  { %v3152_v39 = vsel %vm9716_vm10, %v9698_v59, %v3147_v35  ;;  %v3167_v31 = vsel %vm9721_vm12, %v3166_v60, %v3162_v1  ;;  %v3216_v20 = vsub.f32 1.0, %v3215_v38  ;;  %vm3234_vm6 = vweird.f32 %v9694_v33  ;;  %vm3206_vm10 = vmor %vm3204_vm13, %vm3205_vm3 }
 0x59e   :  { %v3192_v5 = vsel %vm3191_vm2, %v5628_v40, %v3188_v14  ;;  %v3203_v30 = vadd.f32 %v5630_v43, %v3202_v48  ;;  %vm3220_vm11 = vweird.f32 %v5632_v4  ;;  %v3230_v34 = vmul.f32 %v5634_v44, %v9694_v33 }
 0x59f   :  { %v3182_v19 = vsel %vm9733_vm8, %v3181_v51, %v3177_v21  ;;  %v3197_v59 = vsel %vm9738_vm9, %v3196_v22, %v3192_v5  ;;  %v3217_v35 = vmul.f32 %v5632_v4, %v3216_v20  ;;  %vm9813_vm12 = vcmp.eq.f32.partialorder %v3238_v7, 8.507059e+37  ;;  %vm3221_vm8 = vmor %vm3219_vm5, %vm3220_vm11 }
 0x5a0   :  { %v3207_v16 = vsel %vm3206_vm10, %v5630_v43, %v3203_v30  ;;  %v3231_v9 = vsub.f32 1.0, %v3230_v34  ;;  %v3241_v12 = vor.u32 1.1754944e-38, %v3240_v61  ;;  %v12398_v40 = vrot.slane %v9501_v11, 3 }
 0x5a1   :  { %v3212_v62 = vsel %vm9757_vm7, %v3211_v3, %v3207_v16  ;;  %v3218_v51 = vadd.f32 %v5632_v4, %v3217_v35  ;;  %vm3235_vm0 = vweird.f32 %v5634_v44  ;;  %v3453_v45 = vmul.f32 %v12399_v13, %v3167_v31 }
 0x5a2   :  { %v3452_v1 = vmul.f32 %v12398_v40, %v3152_v39  ;;  %v5636_v22 = vpop.eup %5635  ;;  %v3232_v20 = vmul.f32 %v5634_v44, %v3231_v9  ;;  %v3253_v43 = vand.u32 2147483647, %v9707_v42  ;;  %v12400_v37 = vrot.slane %v9501_v11, 5  ;;  %vm3236_vm9 = vmor %vm3234_vm6, %vm3235_vm0 }
 0x5a3   :  { %v12401_v7 = vrot.slane %v9501_v11, 6  ;;  %vm3321_vm7 = vweird.f32 %v9568_v55  ;;  %v3222_v3 = vsel %vm3221_vm8, %v5632_v4, %v3218_v51  ;;  %v3245_v61 = vmul.f32 %v5636_v22, %v9707_v42  ;;  %v12410_v51 = vld [vmem:[#allocation74_spill] sm:$0xff] }
 0x5a4   :  { %v3454_v38 = vmul.f32 %v12400_v37, %v3182_v19  ;;  %v3255_v21 = vand.u32 2147483648, %v9707_v42  ;;  %v12402_v14 = vrot.slane %v9501_v11, 7  ;;  %v3227_v48 = vsel %vm9786_vm1, %v3226_v56, %v3222_v3  ;;  %v12411_v37 = vld [vmem:[#allocation16_spill] sm:$0xff] }
 0x5a5   :  { %v3455_v36 = vmul.f32 %v12401_v7, %v3197_v59  ;;  %v3233_v39 = vadd.f32 %v5634_v44, %v3232_v20  ;;  %v3460_v31 = vadd.f32 %v3452_v1, %v6523_v6  ;;  %v3461_v5 = vadd.f32 %v3453_v45, %v6557_v50 }
 0x5a6   :  { %v3456_v46 = vmul.f32 %v12402_v14, %v3212_v62  ;;  %vm3320_vm5 = vweird.f32 %v9519_v28  ;;  %v3246_v4 = vsub.f32 1.0, %v3245_v61  ;;  %v3457_v30 = vmul.f32 %v9501_v11, %v3227_v48  ;;  %v12417_v61 = vld [vmem:[#allocation31_spill] sm:$0xff]  ;;  %v12419_v14 = vld [vmem:[#allocation30_spill] sm:$0xff] }
 0x5a7   :  { %v3462_v34 = vadd.f32 %v3454_v38, %v12239_v57  ;;  %v3463_v19 = vadd.f32 %v3455_v36, %v12246_v17  ;;  %v3237_v29 = vsel %vm3236_vm9, %v5634_v44, %v3233_v39  ;;  %5637 = vtanh.f32 %v3460_v31  ;;  %v12416_v36 = vld [vmem:[#allocation71_spill] sm:$0xff] }
 0x5a8   :  { %v3464_v56 = vadd.f32 %v3456_v46, %v12247_v41  ;;  %v9851_v59 = vsel %vm11600_vm4, %v9511_v58, %v9674_v54  ;;  %vm3336_vm13 = vweird.f32 %v9572_v63  ;;  %v3242_v33 = vsel %vm9813_vm12, %v3241_v12, %v3237_v29 }
 0x5a9   :  { %12403 = vst [vmem:[#allocation20_spill] sm:$0xff] %v9851_v59  ;;  %v3247_v35 = vmul.f32 %v5636_v22, %v3246_v4  ;;  %vm3250_vm15 = vweird.f32 %v5636_v22  ;;  %5639 = vtanh.f32 %v3461_v5  ;;  %vm3396_vm14 = vweird.f32 %v9576_v52  ;;  %v12531_v59 = vld [vmem:[#allocation52_spill] sm:$0xff] }
 0x5aa   :  { %v12404_v44 = vrot.slane %v9501_v11, 1  ;;  %5641 = vtanh.f32 %v3462_v34  ;;  %v9862_v9 = vsel %vm11600_vm4, %v9514_v15, %v9678_v25  ;;  %v9867_v58 = vsel %vm11600_vm4, %v9517_v32, %v9682_v49  ;;  %v12424_v34 = vld [vmem:[#allocation60_spill] sm:$0xff] }
 0x5ab   :  { %12405 = vst [vmem:[#allocation23_spill] sm:$0xff] %v9862_v9  ;;  %vm3335_vm3 = vweird.f32 %v9524_v2  ;;  %vm3351_vm1 = vweird.f32 %v9580_v24  ;;  %v3248_v54 = vadd.f32 %v5636_v22, %v3247_v35  ;;  %vm3249_vm2 = vweird.f32 %v9707_v42 }
 0x5ac   :  { %v3458_v16 = vmul.f32 %v12404_v44, %v3242_v33  ;;  %12406 = vst [vmem:[#allocation26_spill] sm:$0xff] %v9867_v58  ;;  %v3465_v60 = vadd.f32 %v3457_v30, %v12248_v18  ;;  %5643 = vtanh.f32 %v3463_v19  ;;  %v12407_v12 = vand.u32 2147483647, %v9519_v28  ;;  %vm3251_vm12 = vmor %vm3249_vm2, %vm3250_vm15  ;;  %v12425_v33 = vld [vmem:[#allocation22_spill] sm:$0xff]  ;;  %v12426_v44 = vld [vmem:[#allocation27_spill] sm:$0xff] }
 0x5ad   :  { %vm3366_vm11 = vweird.f32 %v9586_v0  ;;  %vm3395_vm10 = vweird.f32 %v9529_v26  ;;  %v3256_v49 = vor.u32 1.1754944e-38, %v3255_v21  ;;  %5645 = vtanh.f32 %v3464_v56  ;;  %v9887_v1 = vpop.eup %5637  ;;  %vm9905_vm2 = vmor %vm3320_vm5, %vm3321_vm7 }
 0x5ae   :  { %vm9875_vm6 = vcmp.eq.f32.partialorder %v12407_v12, 8.507059e+37  ;;  %v3466_v15 = vadd.f32 %v3458_v16, %v12249_v47  ;;  %v3319_v32 = vadd.f32 %v9568_v55, %v9636_v8  ;;  %vm3350_vm0 = vweird.f32 %v9534_v23  ;;  %v12412_v8 = vld [vmem:[#allocation18_spill] sm:$0xff] }
 0x5af   :  { %v3362_v42 = vsub.f32 1.0, %v9653_v53  ;;  %v3252_v40 = vsel %vm3251_vm12, %v5636_v22, %v3248_v54  ;;  %vm3254_vm8 = vcmp.eq.f32.partialorder %v3253_v43, 8.507059e+37  ;;  %vm3365_vm9 = vweird.f32 %v9539_v27  ;;  %v9892_v20 = vpop.eup %5639 }
 0x5b0   :  { %v3377_v62 = vsub.f32 1.0, %v9657_v10  ;;  %v3407_v13 = vsub.f32 1.0, %v12410_v51  ;;  %v3257_v45 = vsel %vm3254_vm8, %v3256_v49, %v3252_v40  ;;  %5647 = vtanh.f32 %v3466_v15  ;;  %v9899_v7 = vpop.eup %5641  ;;  %v12431_v49 = vld [vmem:[#allocation28_spill] sm:$0xff] }
 0x5b1   :  { %v3422_v38 = vsub.f32 1.0, %v12412_v8  ;;  %v12413_v53 = vrot.slane %v9501_v11, 2  ;;  %5649 = vtanh.f32 %v3465_v60  ;;  %v3484_v43 = vrot.slane %v9887_v1, 5 }
 0x5b2   :  { %v3334_v3 = vadd.f32 %v9572_v63, %v12416_v36  ;;  %v12418_v21 = vsub.f32 1.0, %v12417_v61  ;;  %v12420_v46 = vsub.f32 1.0, %v12419_v14  ;;  %v3485_v39 = vrot.slane %v9892_v20, 4  ;;  %v9918_v31 = vpop.eup %5643 }
 0x5b3   :  { %v3459_v22 = vmul.f32 %v12413_v53, %v3257_v45  ;;  %v3323_v28 = vsel %vm9905_vm2, %v9568_v55, %v3319_v32  ;;  %v12421_v5 = vand.u32 2147483647, %v9524_v2  ;;  %v3363_v30 = vmul.f32 %v9586_v0, %v3362_v42  ;;  %v9932_v56 = vpop.eup %5645  ;;  %vm9953_vm2 = vmor %vm3335_vm3, %vm3336_vm13  ;;  %v12439_v2 = vld [vmem:[#allocation24_spill] sm:$0xff] }
 0x5b4   :  { %v3348_v11 = vmul.f32 %v9580_v24, %v12418_v21  ;;  %v3393_v48 = vmul.f32 %v9576_v52, %v12420_v46  ;;  %v3487_v29 = vrot.slane %v9899_v7, 3  ;;  %v3378_v35 = vmul.f32 %v12425_v33, %v3377_v62 }
 0x5b5   :  { %vm9925_vm7 = vcmp.eq.f32.partialorder %v12421_v5, 8.507059e+37  ;;  %v3467_v19 = vadd.f32 %v3459_v22, %v12424_v34  ;;  %v3408_v16 = vmul.f32 %v12426_v44, %v3407_v13  ;;  %vm12427_vm5 = vcmask 1041409  }
 0x5b6   :  { %v3486_v55 = vsel %vm12427_vm5, %v3485_v39, %v3484_v43  ;;  %v3489_v54 = vrot.slane %v9918_v31, 2  ;;  %v12428_v60 = vand.u32 2147483647, %v9534_v23  ;;  %v3423_v15 = vmul.f32 %v12431_v49, %v3422_v38  ;;  %v9947_v40 = vpop.eup %5647 }
 0x5b7   :  { %5651 = vtanh.f32 %v3467_v19  ;;  %vm12432_vm8 = vcmask 1042434   ;;  %v3491_v42 = vrot.slane %v9932_v56, 1  ;;  %v3349_v51 = vadd.f32 %v9580_v24, %v3348_v11  ;;  %v9967_v53 = vpop.eup %5649 }
 0x5b8   :  { %vm9940_vm12 = vcmp.eq.f32.partialorder %v12428_v60, 8.507059e+37  ;;  %v3488_v32 = vsel %vm12432_vm8, %v3487_v29, %v3486_v55  ;;  %vm3381_vm5 = vweird.f32 %v12425_v33  ;;  %v12435_v13 = vand.u32 2147483647, %v9529_v26  ;;  %v12458_v29 = vld [vmem:[#allocation21_spill] sm:$0xff] }
 0x5b9   :  { %v3401_v8 = vand.u32 2147483648, %v9529_v26  ;;  %vm12438_vm8 = vcmask 1043459   ;;  %v3328_v22 = vsel %vm9875_vm6, %v12439_v2, %v3323_v28  ;;  %v3338_v43 = vsel %vm9953_vm2, %v9572_v63, %v3334_v3  ;;  %vm9992_vm6 = vmor %vm3395_vm10, %vm3396_vm14  ;;  %v12462_v60 = vld [vmem:[#allocation25_spill] sm:$0xff] }
 0x5ba   :  { %vm9961_vm4 = vcmp.eq.f32.partialorder %v12435_v13, 8.507059e+37  ;;  %v3490_v38 = vsel %vm12438_vm8, %v3489_v54, %v3488_v32  ;;  %v12440_v10 = vand.u32 2147483647, %v9539_v27  ;;  %v12443_v61 = vand.u32 2147483647, %v12411_v37  ;;  %vm10001_vm8 = vmor %vm3350_vm0, %vm3351_vm1 }
 0x5bb   :  { %v3394_v11 = vadd.f32 %v9576_v52, %v3393_v48  ;;  %vm12448_vm2 = vcmask 1044484   ;;  %v3364_v14 = vadd.f32 %v9586_v0, %v3363_v30  ;;  %v3379_v46 = vadd.f32 %v12425_v33, %v3378_v35  ;;  %vm10014_vm10 = vmor %vm3365_vm9, %vm3366_vm11  ;;  %v12457_v30 = vld [vmem:[#allocation19_spill] sm:$0xff] }
 0x5bc   :  { %vm9977_vm13 = vcmp.eq.f32.partialorder %v12440_v10, 8.507059e+37  ;;  %vm9983_vm3 = vcmp.eq.f32.partialorder %v12443_v61, 8.507059e+37  ;;  %v3492_v25 = vsel %vm12448_vm2, %v3491_v42, %v3490_v38  ;;  %vm3411_vm15 = vweird.f32 %v12426_v44  ;;  %v12465_v38 = vld [vmem:[#allocation36_spill] sm:$0xff] }
 0x5bd   :  { %vm12451_vm14 = vcmask 1045509   ;;  %v3409_v23 = vadd.f32 %v12426_v44, %v3408_v16  ;;  %v3424_v39 = vadd.f32 %v12431_v49, %v3423_v15  ;;  %vm3426_vm1 = vweird.f32 %v12431_v49  ;;  %v5652_v16 = vpop.eup %5651 }
 0x5be   :  { %v3493_v26 = vsel %vm12451_vm14, %v9967_v53, %v3492_v25  ;;  %v3494_v28 = vrot.slane %v9947_v40, 7  ;;  %v3353_v5 = vsel %vm10001_vm8, %v9580_v24, %v3349_v51  ;;  %vm12454_vm0 = vweird.f32 %v12411_v37 }
 0x5bf   :  { %vm10029_vm11 = vmor %vm12454_vm0, %vm3381_vm5  ;;  %vm3410_vm9 = vweird.f32 %v12457_v30  ;;  %v3416_v19 = vand.u32 2147483648, %v12457_v30  ;;  %v3431_v35 = vand.u32 2147483648, %v12458_v29  ;;  %v3414_v24 = vand.u32 2147483647, %v12457_v30 }
 0x5c0   :  { %vm10036_vm2 = vmor %vm3410_vm9, %vm3411_vm15  ;;  %vm3425_vm8 = vweird.f32 %v12458_v29  ;;  %v3429_v37 = vand.u32 2147483647, %v12458_v29  ;;  %vm12461_vm5 = vcmask 1046534   ;;  %v3343_v15 = vsel %vm9925_vm7, %v12462_v60, %v3338_v43 }
 0x5c1   :  { %v3495_v54 = vsel %vm12461_vm5, %v3494_v28, %v3493_v26  ;;  %v3398_v32 = vsel %vm9992_vm6, %v9576_v52, %v3394_v11  ;;  %v3402_v42 = vor.u32 1.1754944e-38, %v3401_v8  ;;  %vm10052_vm15 = vmor %vm3425_vm8, %vm3426_vm1  ;;  %v3496_v51 = vrot.slane %v5652_v16, 6 }
 0x5c2   :  { %v3368_v13 = vsel %vm10014_vm10, %v9586_v0, %v3364_v14  ;;  %v3383_v4 = vsel %vm10029_vm11, %v12425_v33, %v3379_v46  ;;  %v3413_v52 = vsel %vm10036_vm2, %v12426_v44, %v3409_v23  ;;  %v3428_v8 = vsel %vm10052_vm15, %v12431_v49, %v3424_v39  ;;  %v12467_v33 = vld [vmem:[#allocation15_spill] sm:$0xff]  ;;  %v12468_v44 = vld [vmem:[#allocation37_spill] sm:$0xff]  ;;  %v12469_v49 = vld [vmem:[#allocation76_spill] sm:$0xff] }
 0x5c3   :  { %v3358_v2 = vsel %vm9940_vm12, %v12465_v38, %v3353_v5  ;;  %v3417_v43 = vor.u32 1.1754944e-38, %v3416_v19  ;;  %v3432_v10 = vor.u32 1.1754944e-38, %v3431_v35  ;;  %vm12466_vm7 = vcmask 1047559   ;;  %v12477_v38 = vld [vmem:[#allocation62_spill] sm:$0xff]  ;;  %vm12489_vm1 = vmmov %vm12461_vm5 }
 0x5c4   :  { %v3497_v0 = vsel %vm12466_vm7, %v3496_v51, %v3495_v54  ;;  %v3403_v61 = vsel %vm9961_vm4, %v3402_v42, %v3398_v32  ;;  %vm3415_vm6 = vcmp.eq.f32.partialorder %v3414_v24, 8.507059e+37  ;;  %vm3430_vm14 = vcmp.eq.f32.partialorder %v3429_v37, 8.507059e+37  ;;  %vm12490_vm0 = vmmov %vm12466_vm7 }
 0x5c5   :  { %v3499_v11 = vsub.f32 %v12467_v33, %v3497_v0  ;;  %v3373_v63 = vsel %vm9977_vm13, %v12468_v44, %v3368_v13  ;;  %v3388_v12 = vsel %vm9983_vm3, %v12469_v49, %v3383_v4  ;;  %v3418_v25 = vsel %vm3415_vm6, %v3417_v43, %v3413_v52  ;;  %v12476_v52 = vld [vmem:[#allocation63_spill] sm:$0xff]  ;;  %v12478_v43 = vld [vmem:[#allocation64_spill] sm:$0xff]  ;;  %v12479_v0 = vld [vmem:[#allocation65_spill] sm:$0xff] }
 0x5c6   :  { %v3433_v3 = vsel %vm3430_vm14, %v3432_v10, %v3428_v8  ;;  %v11601_v32 = vrot.slane %v12467_v33, 2  ;;  %v12470_v42 = vrot.slane %v12467_v33, 3  ;;  %vm12483_vm4 = vcmask 1041409  }
 0x5c7   :  { %v3501_v14 = vrot.slane %v3499_v11, 3  ;;  %v3502_v46 = vrot.slane %v3499_v11, 4  ;;  %v3503_v26 = vrot.slane %v3499_v11, 5  ;;  %v3504_v48 = vrot.slane %v3499_v11, 6 }
 0x5c8   :  { %v3505_v45 = vrot.slane %v3499_v11, 7  ;;  %v3506_v23 = vrot.slane %v3499_v11, 1  ;;  %v3507_v39 = vrot.slane %v3499_v11, 2  ;;  %v3521_v28 = vmul.f32 %v3499_v11, %v3403_v61  ;;  %v12480_v11 = vld [vmem:[#allocation66_spill] sm:$0xff] }
 0x5c9   :  { %v3516_v5 = vmul.f32 %v3501_v14, %v3328_v22  ;;  %v3517_v27 = vmul.f32 %v3502_v46, %v3343_v15  ;;  %v3518_v30 = vmul.f32 %v3503_v26, %v3358_v2  ;;  %v3519_v19 = vmul.f32 %v3504_v48, %v3373_v63  ;;  %v12482_v46 = vld [vmem:[#allocation68_spill] sm:$0xff] }
 0x5ca   :  { %v3520_v36 = vmul.f32 %v3505_v45, %v3388_v12  ;;  %v3522_v29 = vmul.f32 %v3506_v23, %v3418_v25  ;;  %v3523_v35 = vmul.f32 %v3507_v39, %v3433_v3  ;;  %v3529_v21 = vadd.f32 %v9967_v53, %v3521_v28  ;;  %v12481_v3 = vld [vmem:[#allocation67_spill] sm:$0xff]  ;;  %v12485_v28 = vld [vmem:[#allocation69_spill] sm:$0xff] }
 0x5cb   :  { %v3524_v55 = vadd.f32 %v9887_v1, %v3516_v5  ;;  %v3525_v24 = vadd.f32 %v9892_v20, %v3517_v27  ;;  %v3526_v37 = vadd.f32 %v9899_v7, %v3518_v30  ;;  %v3527_v54 = vadd.f32 %v9918_v31, %v3519_v19 }
 0x5cc   :  { %v3528_v60 = vadd.f32 %v9932_v56, %v3520_v36  ;;  %v3530_v22 = vadd.f32 %v9947_v40, %v3522_v29  ;;  %v3531_v15 = vadd.f32 %v5652_v16, %v3523_v35  ;;  %v12471_v53 = vrot.slane %v12467_v33, 4 }
 0x5cd   :  { %v3548_v62 = vsub.f32 %v3524_v55, %v12470_v42  ;;  %v12472_v1 = vrot.slane %v12467_v33, 5  ;;  %v12473_v7 = vrot.slane %v12467_v33, 6  ;;  %v12474_v31 = vrot.slane %v12467_v33, 7 }
 0x5ce   :  { %v3549_v51 = vsub.f32 %v3525_v24, %v12471_v53  ;;  %v12475_v40 = vrot.slane %v12467_v33, 1  ;;  %v3555_v4 = vsub.f32 %v3531_v15, %v11601_v32  ;;  %v3553_v63 = vsub.f32 %v3529_v21, %v12467_v33 }
 0x5cf   :  { %v3550_v20 = vsub.f32 %v3526_v37, %v12472_v1  ;;  %v3551_v13 = vsub.f32 %v3527_v54, %v12473_v7  ;;  %v3552_v56 = vsub.f32 %v3528_v60, %v12474_v31  ;;  %v3556_v8 = vmul.f32 %v3548_v62, %v12476_v52 }
 0x5d0   :  { %v3554_v16 = vsub.f32 %v3530_v22, %v12475_v40  ;;  %v3557_v2 = vmul.f32 %v3549_v51, %v12477_v38  ;;  %v3563_v26 = vmul.f32 %v3555_v4, %v12482_v46  ;;  %vm12484_vm12 = vcmask 1042434  }
 0x5d1   :  { %v3558_v10 = vmul.f32 %v3550_v20, %v12478_v43  ;;  %v3559_v61 = vmul.f32 %v3551_v13, %v12479_v0  ;;  %v3560_v44 = vmul.f32 %v3552_v56, %v12480_v11  ;;  %v3572_v49 = vrot.slane %v3556_v8, 5  ;;  %v12492_v20 = vld [vmem:[#allocation45_spill] sm:$0xff]  ;;  %v12493_v13 = vld [vmem:[#allocation39_spill] sm:$0xff]  ;;  %v12494_v56 = vld [vmem:[#allocation40_spill] sm:$0xff] }
 0x5d2   :  { %v3573_v12 = vrot.slane %v3557_v2, 4  ;;  %v3562_v14 = vmul.f32 %v3554_v16, %v12481_v3  ;;  %v3561_v5 = vmul.f32 %v3553_v63, %v12485_v28  ;;  %vm12486_vm13 = vcmask 1043459   ;;  %v12495_v16 = vld [vmem:[#allocation41_spill] sm:$0xff]  ;;  %v12496_v8 = vld [vmem:[#allocation42_spill] sm:$0xff]  ;;  %v12498_v63 = vld [vmem:[#allocation44_spill] sm:$0xff] }
 0x5d3   :  { %v3575_v25 = vrot.slane %v3558_v10, 3  ;;  %v3577_v45 = vrot.slane %v3559_v61, 2  ;;  %v3579_v39 = vrot.slane %v3560_v44, 1  ;;  %vm12487_vm3 = vcmask 1044484   ;;  %v12497_v61 = vld [vmem:[#allocation43_spill] sm:$0xff] }
 0x5d4   :  { %v3574_v48 = vsel %vm12483_vm4, %v3573_v12, %v3572_v49  ;;  %v3582_v19 = vrot.slane %v3562_v14, 7  ;;  %vm12488_vm10 = vcmask 1045509   ;;  %v3584_v29 = vrot.slane %v3563_v26, 6 }
 0x5d5   :  { %v3576_v23 = vsel %vm12484_vm12, %v3575_v25, %v3574_v48 }
 0x5d6   :  { %v3578_v27 = vsel %vm12486_vm13, %v3577_v45, %v3576_v23  ;;  %v12499_v45 = vld [vmem:[#allocation46_spill] sm:$0xff] }
 0x5d7   :  { %v3580_v30 = vsel %vm12487_vm3, %v3579_v39, %v3578_v27 }
 0x5d8   :  { %v3581_v36 = vsel %vm12488_vm10, %v3561_v5, %v3580_v30 }
 0x5d9   :  { %v3583_v35 = vsel %vm12489_vm1, %v3582_v19, %v3581_v36  ;;  %v12500_v19 = vld [vmem:[#allocation17_spill] sm:$0xff] }
 0x5da   :  { %v3585_v21 = vsel %vm12490_vm0, %v3584_v29, %v3583_v35 }
 0x5db   :  { %v10120_v55 = vadd.f32 %v3585_v21, %v12467_v33 }
 0x5dd   :  { %12491 = vst [vmem:[#allocation29_spill] sm:$0xff] %v10120_v55  ;;  %v3588_v24 = vpack.c.bf16 %v10120_v55, %v10120_v55 }
 0x5df   :  { %3597 = vmatmul.bf16.vlgmr.msra.gmra.mxu2 %v3588_v24  ;;  %3610 = vmatmul.bf16.vlgmr.msra.gmra.mxu3 %v3588_v24 }
 0x5e0   :  { %3623 = vmatmul.bf16.vlgmr.msrb.gmra.mxu0 %v3588_v24 }
 0x65d   :  { %v3624_v37 = vpop.f32.mrf.mxu0 }
 0x65e   :  { %v10135_v36 = vadd.f32 %v12500_v19, %v3624_v37  ;;  %v12502_v19 = vld [vmem:[#allocation48_spill] sm:$0xff] }
 0x662   :  { %v3598_v54 = vpop.f32.mrf.mxu2  ;;  %v10124_v60 = vpop.f32.mrf.mxu3 }
 0x663   :  { %v3629_v22 = vrot.slane %v3598_v54, 2  ;;  %v3630_v15 = vrot.slane %v3598_v54, 3  ;;  %v3631_v42 = vrot.slane %v3598_v54, 4  ;;  %v3632_v62 = vrot.slane %v3598_v54, 5 }
 0x664   :  { %v3633_v53 = vrot.slane %v3598_v54, 6  ;;  %v3634_v51 = vrot.slane %v3598_v54, 7  ;;  %v3635_v1 = vrot.slane %v3598_v54, 1  ;;  %v3650_v7 = vadd.f32 %v3598_v54, %v12492_v20 }
 0x665   :  { %v3644_v31 = vadd.f32 %v3629_v22, %v12493_v13  ;;  %v3645_v40 = vadd.f32 %v3630_v15, %v12494_v56  ;;  %v3646_v4 = vadd.f32 %v3631_v42, %v12495_v16  ;;  %v3647_v2 = vadd.f32 %v3632_v62, %v12496_v8  ;;  %v3626_v10 = vpop.f32.mrf.mxu0 }
 0x666   :  { %v3648_v44 = vadd.f32 %v3633_v53, %v12497_v61  ;;  %v3649_v49 = vadd.f32 %v3634_v51, %v12498_v63  ;;  %v5108_v12 = vmul.f32 -1.442695, %v3650_v7  ;;  %v3651_v23 = vadd.f32 %v3635_v1, %v12499_v45 }
 0x667   :  { %v5102_v25 = vmul.f32 -1.442695, %v3644_v31  ;;  %v5103_v14 = vmul.f32 -1.442695, %v3645_v40  ;;  %v5104_v26 = vmul.f32 -1.442695, %v3646_v4 }
 0x668   :  { %v5105_v48 = vmul.f32 -1.442695, %v3647_v2  ;;  %5653 = vpow2.f32 %v5108_v12  ;;  %v5106_v39 = vmul.f32 -1.442695, %v3648_v44  ;;  %v5107_v5 = vmul.f32 -1.442695, %v3649_v49 }
 0x669   :  { %5655 = vpow2.f32 %v5102_v25  ;;  %v5109_v29 = vmul.f32 -1.442695, %v3651_v23  ;;  %v3805_v21 = vrot.slane %v10124_v60, 2  ;;  %v3806_v31 = vrot.slane %v10124_v60, 3  ;;  %v12501_v44 = vld [vmem:[#allocation47_spill] sm:$0xff] }
 0x66a   :  { %5657 = vpow2.f32 %v5103_v14  ;;  %v3600_v27 = vpop.f32.mrf.mxu2  ;;  %v3613_v30 = vpop.f32.mrf.mxu3  ;;  %v3807_v40 = vrot.slane %v10124_v60, 4  ;;  %v12520_v20 = vrot.slane %v10135_v36, 2 }
 0x66b   :  { %5659 = vpow2.f32 %v5104_v26  ;;  %v3820_v49 = vadd.f32 %v3805_v21, %v12501_v44 }
 0x66c   :  { %5661 = vpow2.f32 %v5105_v48 }
 0x66d   :  { %5663 = vpow2.f32 %v5106_v39 }
 0x66e   :  { %v5654_v35 = vpop.eup %5653  ;;  %5665 = vpow2.f32 %v5107_v5 }
 0x66f   :  { %v5656_v24 = vpop.eup %5655  ;;  %5667 = vpow2.f32 %v5109_v29  ;;  %v10152_v10 = vadd.f32 1.0, %v5654_v35  ;;  %v10169_v29 = vadd.f32 %v3806_v31, %v12502_v19  ;;  %v12503_v35 = vld [vmem:[#allocation49_spill] sm:$0xff] }
 0x670   :  { %v5658_v42 = vpop.eup %5657  ;;  %v10144_v51 = vadd.f32 1.0, %v5656_v24  ;;  %v10172_v21 = vadd.f32 %v3807_v40, %v12503_v35 }
 0x671   :  { %v5660_v1 = vpop.eup %5659  ;;  %v10146_v7 = vadd.f32 1.0, %v5658_v42  ;;  %vm3779_vm1 = vweird.f32 %v10152_v10 }
 0x672   :  { %v5662_v4 = vpop.eup %5661  ;;  %v10150_v2 = vadd.f32 1.0, %v5660_v1  ;;  %5669 = vrcp.f32 %v10144_v51  ;;  %v3695_v39 = vand.u32 2147483648, %v10144_v51  ;;  %v10177_v1 = vmul.f32 -1.442695, %v3820_v49 }
 0x673   :  { %v5664_v12 = vpop.eup %5663  ;;  %v10157_v14 = vadd.f32 1.0, %v5662_v4  ;;  %5671 = vrcp.f32 %v10146_v7  ;;  %v3710_v24 = vand.u32 2147483648, %v10146_v7  ;;  %vm3689_vm11 = vweird.f32 %v10144_v51 }
 0x674   :  { %v5666_v48 = vpop.eup %5665  ;;  %v10161_v23 = vadd.f32 1.0, %v5664_v12  ;;  %5673 = vrcp.f32 %v10150_v2  ;;  %v3693_v32 = vand.u32 2147483647, %v10144_v51  ;;  %v10186_v40 = vor.u32 1.1754944e-38, %v3695_v39 }
 0x675   :  { %5675 = vrcp.f32 %v10152_v10  ;;  %v5668_v4 = vpop.eup %5667  ;;  %v10179_v12 = vadd.f32 1.0, %v5666_v48  ;;  %vm3704_vm9 = vweird.f32 %v10146_v7  ;;  %v3708_v25 = vand.u32 2147483647, %v10146_v7 }
 0x676   :  { %5677 = vrcp.f32 %v10157_v14  ;;  %v3723_v30 = vand.u32 2147483647, %v10150_v2  ;;  %v3725_v27 = vand.u32 2147483648, %v10150_v2  ;;  %v3740_v5 = vand.u32 2147483648, %v10157_v14 }
 0x677   :  { %5679 = vrcp.f32 %v10161_v23  ;;  %v10198_v26 = vadd.f32 1.0, %v5668_v4  ;;  %v3711_v53 = vor.u32 1.1754944e-38, %v3710_v24  ;;  %vm3719_vm2 = vweird.f32 %v10150_v2 }
 0x678   :  { %v10184_v31 = vpop.eup %5669  ;;  %v3738_v37 = vand.u32 2147483647, %v10157_v14  ;;  %vm10204_vm8 = vcmp.eq.f32.partialorder %v3693_v32, 8.507059e+37  ;;  %v3753_v22 = vand.u32 2147483647, %v10161_v23  ;;  %v3755_v54 = vand.u32 2147483648, %v10161_v23 }
 0x679   :  { %v10191_v49 = vpop.eup %5671  ;;  %v3685_v48 = vmul.f32 %v10184_v31, %v10144_v51  ;;  %5681 = vrcp.f32 %v10179_v12  ;;  %vm3690_vm5 = vweird.f32 %v10184_v31  ;;  %vm10214_vm15 = vcmp.eq.f32.partialorder %v3708_v25, 8.507059e+37 }
 0x67a   :  { %v3700_v39 = vmul.f32 %v10191_v49, %v10146_v7  ;;  %v5674_v62 = vpop.eup %5673  ;;  %vm3734_vm7 = vweird.f32 %v10157_v14  ;;  %vm3705_vm6 = vweird.f32 %v10191_v49  ;;  %vm10222_vm14 = vcmp.eq.f32.partialorder %v3723_v30, 8.507059e+37  ;;  %vm10243_vm10 = vmor %vm3689_vm11, %vm3690_vm5 }
 0x67b   :  { %v3686_v42 = vsub.f32 1.0, %v3685_v48  ;;  %v10211_v4 = vpop.eup %5675  ;;  %v3715_v32 = vmul.f32 %v5674_v62, %v10150_v2  ;;  %v3726_v35 = vor.u32 1.1754944e-38, %v3725_v27  ;;  %v3741_v19 = vor.u32 1.1754944e-38, %v3740_v5  ;;  %vm10257_vm0 = vmor %vm3704_vm9, %vm3705_vm6 }
 0x67c   :  { %v3701_v24 = vsub.f32 1.0, %v3700_v39  ;;  %v5678_v48 = vpop.eup %5677  ;;  %vm3749_vm4 = vweird.f32 %v10161_v23  ;;  %vm3720_vm12 = vweird.f32 %v5674_v62  ;;  %vm10229_vm13 = vcmp.eq.f32.partialorder %v3738_v37, 8.507059e+37 }
 0x67d   :  { %v3687_v9 = vmul.f32 %v10184_v31, %v3686_v42  ;;  %v5680_v25 = vpop.eup %5679  ;;  %v3716_v33 = vsub.f32 1.0, %v3715_v32  ;;  %v3730_v44 = vmul.f32 %v5678_v48, %v10157_v14  ;;  %vm10235_vm3 = vcmp.eq.f32.partialorder %v3753_v22, 8.507059e+37  ;;  %vm3721_vm9 = vmor %vm3719_vm2, %vm3720_vm12 }
 0x67e   :  { %v3702_v39 = vmul.f32 %v10191_v49, %v3701_v24  ;;  %v3745_v42 = vmul.f32 %v5680_v25, %v10161_v23  ;;  %v3756_v5 = vor.u32 1.1754944e-38, %v3755_v54  ;;  %vm3764_vm11 = vweird.f32 %v10179_v12 }
 0x67f   :  { %v3688_v30 = vadd.f32 %v10184_v31, %v3687_v9  ;;  %v3717_v32 = vmul.f32 %v5674_v62, %v3716_v33  ;;  %v3731_v63 = vsub.f32 1.0, %v3730_v44  ;;  %v3768_v9 = vand.u32 2147483647, %v10179_v12  ;;  %v5682_v22 = vpop.eup %5681 }
 0x680   :  { %v3703_v37 = vadd.f32 %v10191_v49, %v3702_v39  ;;  %v3746_v39 = vsub.f32 1.0, %v3745_v42  ;;  %v3770_v33 = vand.u32 2147483648, %v10179_v12  ;;  %v3775_v44 = vmul.f32 %v10211_v4, %v10152_v10 }
 0x681   :  { %v3692_v54 = vsel %vm10243_vm10, %v10184_v31, %v3688_v30  ;;  %v3718_v30 = vadd.f32 %v5674_v62, %v3717_v32  ;;  %v3732_v24 = vmul.f32 %v5678_v48, %v3731_v63  ;;  %vm3735_vm5 = vweird.f32 %v5678_v48 }
 0x682   :  { %v3707_v31 = vsel %vm10257_vm0, %v10191_v49, %v3703_v37  ;;  %v3747_v7 = vmul.f32 %v5680_v25, %v3746_v39  ;;  %vm3750_vm6 = vweird.f32 %v5680_v25  ;;  %v3760_v42 = vmul.f32 %v5682_v22, %v10179_v12  ;;  %vm3736_vm0 = vmor %vm3734_vm7, %vm3735_vm5 }
 0x683   :  { %vm3780_vm10 = vweird.f32 %v10211_v4  ;;  %v3697_v61 = vsel %vm10204_vm8, %v10186_v40, %v3692_v54  ;;  %v3722_v8 = vsel %vm3721_vm9, %v5674_v62, %v3718_v30  ;;  %v3733_v51 = vadd.f32 %v5678_v48, %v3732_v24  ;;  %vm3751_vm2 = vmor %vm3749_vm4, %vm3750_vm6 }
 0x684   :  { %v3776_v49 = vsub.f32 1.0, %v3775_v44  ;;  %v3712_v63 = vsel %vm10214_vm15, %v3711_v53, %v3707_v31  ;;  %v3748_v2 = vadd.f32 %v5680_v25, %v3747_v7  ;;  %v3761_v37 = vsub.f32 1.0, %v3760_v42  ;;  %vm3781_vm7 = vmor %vm3779_vm1, %vm3780_vm10 }
 0x685   :  { %v3785_v32 = vand.u32 2147483648, %v10152_v10  ;;  %v3727_v39 = vsel %vm10222_vm14, %v3726_v35, %v3722_v8  ;;  %v3737_v16 = vsel %vm3736_vm0, %v5678_v48, %v3733_v51  ;;  %5683 = vrcp.f32 %v10198_v26 }
 0x686   :  { %v3777_v15 = vmul.f32 %v10211_v4, %v3776_v49  ;;  %v3742_v58 = vsel %vm10229_vm13, %v3741_v19, %v3737_v16  ;;  %v3752_v62 = vsel %vm3751_vm2, %v5680_v25, %v3748_v2  ;;  %v3762_v53 = vmul.f32 %v5682_v22, %v3761_v37  ;;  %v12527_v37 = vld [vmem:[#allocation50_spill] sm:$0xff] }
 0x687   :  { %vm3765_vm8 = vweird.f32 %v5682_v22  ;;  %v3757_v14 = vsel %vm10235_vm3, %v3756_v5, %v3752_v62  ;;  %vm10291_vm15 = vcmp.eq.f32.partialorder %v3768_v9, 8.507059e+37  ;;  %v3786_v23 = vor.u32 1.1754944e-38, %v3785_v32 }
 0x688   :  { %v3778_v8 = vadd.f32 %v10211_v4, %v3777_v15  ;;  %v3763_v35 = vadd.f32 %v5682_v22, %v3762_v53  ;;  %v3997_v16 = vmul.f32 %v12520_v20, %v3697_v61  ;;  %v12521_v19 = vrot.slane %v10135_v36, 3  ;;  %vm3766_vm14 = vmor %vm3764_vm11, %vm3765_vm8  ;;  %v12529_v15 = vld [vmem:[#allocation51_spill] sm:$0xff] }
 0x689   :  { %v12522_v48 = vrot.slane %v10135_v36, 4  ;;  %v3771_v27 = vor.u32 1.1754944e-38, %v3770_v33  ;;  %v12523_v9 = vand.u32 2147483647, %v10152_v10  ;;  %v12524_v54 = vrot.slane %v10135_v36, 5 }
 0x68a   :  { %v3998_v40 = vmul.f32 %v12521_v19, %v3712_v63  ;;  %v3782_v5 = vsel %vm3781_vm7, %v10211_v4, %v3778_v8  ;;  %v3767_v31 = vsel %vm3766_vm14, %v5682_v22, %v3763_v35  ;;  %v12525_v30 = vrot.slane %v10135_v36, 6 }
 0x68b   :  { %v3999_v25 = vmul.f32 %v12522_v48, %v3727_v39  ;;  %vm3784_vm4 = vcmp.eq.f32.partialorder %v12523_v9, 8.507059e+37  ;;  %v4000_v44 = vmul.f32 %v12524_v54, %v3742_v58  ;;  %v4005_v7 = vadd.f32 %v3997_v16, %v6523_v6  ;;  %v5684_v42 = vpop.eup %5683 }
 0x68c   :  { %v3787_v61 = vsel %vm3784_vm4, %v3786_v23, %v3782_v5  ;;  %v4001_v24 = vmul.f32 %v12525_v30, %v3757_v14  ;;  %v3772_v12 = vsel %vm10291_vm15, %v3771_v27, %v3767_v31  ;;  %v4006_v4 = vadd.f32 %v3998_v40, %v6557_v50  ;;  %v12533_v40 = vld [vmem:[#allocation53_spill] sm:$0xff] }
 0x68d   :  { %v4003_v33 = vmul.f32 %v10135_v36, %v3787_v61  ;;  %v4007_v10 = vadd.f32 %v3999_v25, %v12239_v57  ;;  %v3790_v51 = vmul.f32 %v5684_v42, %v10198_v26  ;;  %v12526_v22 = vrot.slane %v10135_v36, 7  ;;  %v12534_v25 = vld [vmem:[#allocation54_spill] sm:$0xff] }
 0x68e   :  { %v4008_v63 = vadd.f32 %v4000_v44, %v12246_v17  ;;  %5685 = vpow2.f32 %v10177_v1  ;;  %v4009_v2 = vadd.f32 %v4001_v24, %v12247_v41  ;;  %v12528_v32 = vrot.slane %v10124_v60, 5 }
 0x68f   :  { %v4002_v49 = vmul.f32 %v12526_v22, %v3772_v12  ;;  %5687 = vtanh.f32 %v4005_v7  ;;  %v12530_v58 = vrot.slane %v10124_v60, 6  ;;  %v3791_v53 = vsub.f32 1.0, %v3790_v51 }
 0x690   :  { %v3823_v39 = vadd.f32 %v12528_v32, %v12527_v37  ;;  %5689 = vtanh.f32 %v4006_v4  ;;  %v12532_v8 = vrot.slane %v10124_v60, 7  ;;  %v3798_v1 = vand.u32 2147483647, %v10198_v26 }
 0x691   :  { %v3824_v62 = vadd.f32 %v12530_v58, %v12529_v15  ;;  %v4010_v14 = vadd.f32 %v4002_v49, %v12248_v18  ;;  %v3800_v35 = vand.u32 2147483648, %v10198_v26  ;;  %v4011_v20 = vadd.f32 %v4003_v33, %v12249_v47 }
 0x692   :  { %v3825_v23 = vadd.f32 %v12532_v8, %v12531_v59  ;;  %5691 = vtanh.f32 %v4007_v10  ;;  %v3792_v16 = vmul.f32 %v5684_v42, %v3791_v53  ;;  %vm3795_vm12 = vweird.f32 %v5684_v42 }
 0x693   :  { %5693 = vtanh.f32 %v4008_v63  ;;  %v5111_v19 = vmul.f32 -1.442695, %v10169_v29  ;;  %v3826_v48 = vadd.f32 %v10124_v60, %v12533_v40  ;;  %v12535_v27 = vrot.slane %v10124_v60, 1 }
 0x694   :  { %5695 = vtanh.f32 %v4009_v2  ;;  %v5112_v9 = vmul.f32 -1.442695, %v10172_v21  ;;  %v5686_v54 = vpop.eup %5685  ;;  %v3793_v44 = vadd.f32 %v5684_v42, %v3792_v16  ;;  %vm3794_vm13 = vweird.f32 %v10198_v26 }
 0x695   :  { %v3827_v5 = vadd.f32 %v12535_v27, %v12534_v25  ;;  %5697 = vtanh.f32 %v4010_v14  ;;  %v5113_v31 = vmul.f32 -1.442695, %v3823_v39  ;;  %v10348_v61 = vpop.eup %5687  ;;  %vm3796_vm3 = vmor %vm3794_vm13, %vm3795_vm12  ;;  %vm3799_vm1 = vcmp.eq.f32.partialorder %v3798_v1, 8.507059e+37 }
 0x696   :  { %v3801_v29 = vor.u32 1.1754944e-38, %v3800_v35  ;;  %5699 = vtanh.f32 %v4011_v20  ;;  %v5114_v30 = vmul.f32 -1.442695, %v3824_v62  ;;  %v10350_v24 = vpop.eup %5689  ;;  %v3797_v7 = vsel %vm3796_vm3, %v5684_v42, %v3793_v44 }
 0x697   :  { %v4029_v60 = vrot.slane %v10348_v61, 6  ;;  %5701 = vpow2.f32 %v5111_v19  ;;  %v5115_v21 = vmul.f32 -1.442695, %v3825_v23  ;;  %v4030_v26 = vrot.slane %v10350_v24, 5 }
 0x698   :  { %v10353_v12 = vpop.eup %5691  ;;  %v3802_v33 = vsel %vm3799_vm1, %v3801_v29, %v3797_v7  ;;  %5703 = vpow2.f32 %v5112_v9  ;;  %v5116_v4 = vmul.f32 -1.442695, %v3826_v48  ;;  %v12536_v51 = vrot.slane %v10135_v36, 1 }
 0x699   :  { %v10356_v10 = vpop.eup %5693  ;;  %v4032_v49 = vrot.slane %v10353_v12, 4  ;;  %5705 = vpow2.f32 %v5113_v31  ;;  %v5117_v42 = vmul.f32 -1.442695, %v3827_v5  ;;  %vm12537_vm11 = vcmask 1041409  }
 0x69a   :  { %v4004_v22 = vmul.f32 %v12536_v51, %v3802_v33  ;;  %v10361_v63 = vpop.eup %5695  ;;  %v4031_v2 = vsel %vm12537_vm11, %v4030_v26, %v4029_v60  ;;  %v4034_v32 = vrot.slane %v10356_v10, 3  ;;  %5707 = vpow2.f32 %v5114_v30 }
 0x69b   :  { %v10365_v39 = vadd.f32 1.0, %v5686_v54  ;;  %v10367_v58 = vpop.eup %5697  ;;  %vm12538_vm5 = vcmask 1042434   ;;  %v4036_v53 = vrot.slane %v10361_v63, 2  ;;  %5709 = vpow2.f32 %v5115_v21 }
 0x69c   :  { %v4012_v62 = vadd.f32 %v4004_v22, %v12424_v34  ;;  %v4033_v36 = vsel %vm12538_vm5, %v4032_v49, %v4031_v2  ;;  %v10372_v14 = vpop.eup %5699  ;;  %vm12539_vm9 = vcmask 1043459   ;;  %5711 = vpow2.f32 %v5116_v4 }
 0x69d   :  { %v4035_v8 = vsel %vm12539_vm9, %v4034_v32, %v4033_v36  ;;  %v5702_v23 = vpop.eup %5701  ;;  %vm12540_vm6 = vcmask 1044484   ;;  %v4038_v20 = vrot.slane %v10367_v58, 1  ;;  %vm12541_vm10 = vcmask 1045509  }
 0x69e   :  { %5713 = vtanh.f32 %v4012_v62  ;;  %v4037_v1 = vsel %vm12540_vm6, %v4036_v53, %v4035_v8  ;;  %v5704_v35 = vpop.eup %5703  ;;  %v10377_v16 = vadd.f32 1.0, %v5702_v23  ;;  %v3871_v54 = vand.u32 2147483648, %v10365_v39 }
 0x69f   :  { %5715 = vpow2.f32 %v5117_v42  ;;  %v5706_v19 = vpop.eup %5705  ;;  %v10379_v48 = vadd.f32 1.0, %v5704_v35  ;;  %v4039_v5 = vsel %vm12541_vm10, %v4038_v20, %v4037_v1  ;;  %vm12542_vm0 = vcmask 1046534  }
 0x6a0   :  { %5717 = vrcp.f32 %v10365_v39  ;;  %v5708_v27 = vpop.eup %5707  ;;  %v10383_v9 = vadd.f32 1.0, %v5706_v19  ;;  %v4040_v51 = vsel %vm12542_vm0, %v10372_v14, %v4039_v5  ;;  %v3886_v22 = vand.u32 2147483648, %v10377_v16 }
 0x6a1   :  { %5719 = vrcp.f32 %v10377_v16  ;;  %v5710_v44 = vpop.eup %5709  ;;  %v10387_v31 = vadd.f32 1.0, %v5708_v27  ;;  %v3901_v49 = vand.u32 2147483648, %v10379_v48  ;;  %vm3865_vm2 = vweird.f32 %v10365_v39 }
 0x6a2   :  { %5721 = vrcp.f32 %v10379_v48  ;;  %v5712_v7 = vpop.eup %5711  ;;  %v3869_v32 = vand.u32 2147483647, %v10365_v39  ;;  %v10406_v62 = vor.u32 1.1754944e-38, %v3871_v54  ;;  %v3884_v36 = vand.u32 2147483647, %v10377_v16 }
 0x6a3   :  { %5723 = vrcp.f32 %v10383_v9  ;;  %v10411_v8 = vadd.f32 1.0, %v5710_v44  ;;  %vm3880_vm8 = vweird.f32 %v10377_v16  ;;  %v3899_v23 = vand.u32 2147483647, %v10379_v48 }
 0x6a4   :  { %v10396_v4 = vpop.eup %5713  ;;  %5725 = vrcp.f32 %v10387_v31  ;;  %vm12543_vm15 = vcmask 1047559   ;;  %v10419_v20 = vadd.f32 1.0, %v5712_v7  ;;  %vm3895_vm7 = vweird.f32 %v10379_v48 }
 0x6a5   :  { %v5716_v42 = vpop.eup %5715  ;;  %v4041_v2 = vrot.slane %v10396_v4, 7  ;;  %v3916_v27 = vand.u32 2147483648, %v10383_v9  ;;  %v3887_v44 = vor.u32 1.1754944e-38, %v3886_v22  ;;  %v3902_v26 = vor.u32 1.1754944e-38, %v3901_v49 }
 0x6a6   :  { %v10409_v53 = vpop.eup %5717  ;;  %v3914_v33 = vand.u32 2147483647, %v10383_v9  ;;  %v10430_v21 = vadd.f32 1.0, %v5716_v42  ;;  %vm10433_vm4 = vcmp.eq.f32.partialorder %v3869_v32, 8.507059e+37  ;;  %vm10437_vm12 = vcmp.eq.f32.partialorder %v3884_v36, 8.507059e+37 }
 0x6a7   :  { %v10416_v1 = vpop.eup %5719  ;;  %v4042_v35 = vsel %vm12543_vm15, %v4041_v2, %v4040_v51  ;;  %v3861_v19 = vmul.f32 %v10409_v53, %v10365_v39  ;;  %vm3866_vm14 = vweird.f32 %v10409_v53  ;;  %vm3910_vm13 = vweird.f32 %v10383_v9 }
 0x6a8   :  { %v10425_v5 = vpop.eup %5721  ;;  %v3876_v54 = vmul.f32 %v10416_v1, %v10377_v16  ;;  %v10445_v49 = vsub.f32 %v10120_v55, %v4042_v35  ;;  %vm3881_vm3 = vweird.f32 %v10416_v1  ;;  %5727 = vrcp.f32 %v10411_v8  ;;  %vm10471_vm6 = vmor %vm3865_vm2, %vm3866_vm14 }
 0x6a9   :  { %v3862_v7 = vsub.f32 1.0, %v3861_v19  ;;  %v3891_v60 = vmul.f32 %v10425_v5, %v10379_v48  ;;  %v5724_v22 = vpop.eup %5723  ;;  %vm10450_vm1 = vcmp.eq.f32.partialorder %v3899_v23, 8.507059e+37  ;;  %v3917_v29 = vor.u32 1.1754944e-38, %v3916_v27  ;;  %vm10485_vm0 = vmor %vm3880_vm8, %vm3881_vm3 }
 0x6aa   :  { %v3877_v42 = vsub.f32 1.0, %v3876_v54  ;;  %v3906_v30 = vmul.f32 %v5724_v22, %v10383_v9  ;;  %vm3925_vm11 = vweird.f32 %v10387_v31  ;;  %v5726_v34 = vpop.eup %5725  ;;  %vm3896_vm5 = vweird.f32 %v10425_v5 }
 0x6ab   :  { %v3863_v32 = vmul.f32 %v10409_v53, %v3862_v7  ;;  %v3892_v36 = vsub.f32 1.0, %v3891_v60  ;;  %vm10458_vm9 = vcmp.eq.f32.partialorder %v3914_v33, 8.507059e+37  ;;  %v3929_v60 = vand.u32 2147483647, %v10387_v31  ;;  %vm10497_vm2 = vmor %vm3895_vm7, %vm3896_vm5 }
 0x6ac   :  { %v3878_v35 = vmul.f32 %v10416_v1, %v3877_v42  ;;  %v3931_v23 = vand.u32 2147483648, %v10387_v31  ;;  %v3907_v27 = vsub.f32 1.0, %v3906_v30  ;;  %v3921_v18 = vmul.f32 %v5726_v34, %v10387_v31 }
 0x6ad   :  { %v3864_v7 = vadd.f32 %v10409_v53, %v3863_v32  ;;  %v3893_v47 = vmul.f32 %v10425_v5, %v3892_v36  ;;  %vm3911_vm10 = vweird.f32 %v5724_v22  ;;  %v3944_v41 = vand.u32 2147483647, %v10411_v8 }
 0x6ae   :  { %v3879_v42 = vadd.f32 %v10416_v1, %v3878_v35  ;;  %v3946_v32 = vand.u32 2147483648, %v10411_v8  ;;  %v3908_v35 = vmul.f32 %v5724_v22, %v3907_v27  ;;  %v3922_v17 = vsub.f32 1.0, %v3921_v18  ;;  %v5728_v57 = vpop.eup %5727  ;;  %vm3912_vm7 = vmor %vm3910_vm13, %vm3911_vm10 }
 0x6af   :  { %v3868_v30 = vsel %vm10471_vm6, %v10409_v53, %v3864_v7  ;;  %v3894_v36 = vadd.f32 %v10425_v5, %v3893_v47  ;;  %vm10501_vm8 = vcmp.eq.f32.partialorder %v3929_v60, 8.507059e+37  ;;  %v3932_v47 = vor.u32 1.1754944e-38, %v3931_v23 }
 0x6b0   :  { %v3883_v50 = vsel %vm10485_vm0, %v10416_v1, %v3879_v42  ;;  %vm3940_vm15 = vweird.f32 %v10411_v8  ;;  %5729 = vrcp.f32 %v10419_v20  ;;  %v3909_v1 = vadd.f32 %v5724_v22, %v3908_v35 }
 0x6b1   :  { %v3898_v18 = vsel %vm10497_vm2, %v10425_v5, %v3894_v36  ;;  %v3923_v7 = vmul.f32 %v5726_v34, %v3922_v17  ;;  %vm3926_vm14 = vweird.f32 %v5726_v34  ;;  %v3873_v48 = vsel %vm10433_vm4, %v10406_v62, %v3868_v30 }
 0x6b2   :  { %v3888_v60 = vsel %vm10437_vm12, %v3887_v44, %v3883_v50  ;;  %v3936_v23 = vmul.f32 %v5728_v57, %v10411_v8  ;;  %vm10519_vm3 = vcmp.eq.f32.partialorder %v3944_v41, 8.507059e+37  ;;  %v3947_v5 = vor.u32 1.1754944e-38, %v3946_v32  ;;  %vm3927_vm4 = vmor %vm3925_vm11, %vm3926_vm14 }
 0x6b3   :  { %v3913_v17 = vsel %vm3912_vm7, %v5724_v22, %v3909_v1  ;;  %v3924_v33 = vadd.f32 %v5726_v34, %v3923_v7  ;;  %v3959_v42 = vand.u32 2147483647, %v10419_v20  ;;  %v3961_v62 = vand.u32 2147483648, %v10419_v20 }
 0x6b4   :  { %v3903_v50 = vsel %vm10450_vm1, %v3902_v26, %v3898_v18  ;;  %v3937_v9 = vsub.f32 1.0, %v3936_v23  ;;  %vm3941_vm12 = vweird.f32 %v5728_v57  ;;  %5731 = vrcp.f32 %v10430_v21 }
 0x6b5   :  { %v3918_v41 = vsel %vm10458_vm9, %v3917_v29, %v3913_v17  ;;  %v3928_v44 = vsel %vm3927_vm4, %v5726_v34, %v3924_v33  ;;  %vm3955_vm13 = vweird.f32 %v10419_v20  ;;  %v3962_v51 = vor.u32 1.1754944e-38, %v3961_v62  ;;  %vm3942_vm5 = vmor %vm3940_vm15, %vm3941_vm12 }
 0x6b6   :  { %v5730_v2 = vpop.eup %5729  ;;  %v3938_v22 = vmul.f32 %v5728_v57, %v3937_v9  ;;  %v3974_v32 = vand.u32 2147483647, %v10430_v21  ;;  %v3976_v26 = vand.u32 2147483648, %v10430_v21  ;;  %v4046_v31 = vrot.slane %v10445_v49, 2 }
 0x6b7   :  { %v3933_v19 = vsel %vm10501_vm8, %v3932_v47, %v3928_v44  ;;  %v3951_v30 = vmul.f32 %v5730_v2, %v10419_v20  ;;  %vm3956_vm1 = vweird.f32 %v5730_v2  ;;  %vm10539_vm11 = vcmp.eq.f32.partialorder %v3959_v42, 8.507059e+37 }
 0x6b8   :  { %v4047_v34 = vrot.slane %v10445_v49, 3  ;;  %v3939_v54 = vadd.f32 %v5728_v57, %v3938_v22  ;;  %v3977_v39 = vor.u32 1.1754944e-38, %v3976_v26  ;;  %v4048_v36 = vrot.slane %v10445_v49, 4  ;;  %vm3957_vm0 = vmor %vm3955_vm13, %vm3956_vm1 }
 0x6b9   :  { %v4049_v35 = vrot.slane %v10445_v49, 5  ;;  %v3952_v53 = vsub.f32 1.0, %v3951_v30  ;;  %vm3970_vm9 = vweird.f32 %v10430_v21  ;;  %v4050_v16 = vrot.slane %v10445_v49, 6 }
 0x6ba   :  { %v4051_v47 = vrot.slane %v10445_v49, 7  ;;  %v4052_v18 = vrot.slane %v10445_v49, 1  ;;  %v5732_v1 = vpop.eup %5731  ;;  %v3943_v7 = vsel %vm3942_vm5, %v5728_v57, %v3939_v54  ;;  %v4061_v23 = vmul.f32 %v4046_v31, %v3873_v48 }
 0x6bb   :  { %v4062_v17 = vmul.f32 %v4047_v34, %v3888_v60  ;;  %v4063_v33 = vmul.f32 %v4048_v36, %v3903_v50  ;;  %v3948_v42 = vsel %vm10519_vm3, %v3947_v5, %v3943_v7  ;;  %v3953_v62 = vmul.f32 %v5730_v2, %v3952_v53 }
 0x6bc   :  { %v3966_v8 = vmul.f32 %v5732_v1, %v10430_v21  ;;  %vm3971_vm6 = vweird.f32 %v5732_v1  ;;  %vm10556_vm10 = vcmp.eq.f32.partialorder %v3974_v32, 8.507059e+37  ;;  %v4064_v44 = vmul.f32 %v4049_v35, %v3918_v41 }
 0x6bd   :  { %v4065_v22 = vmul.f32 %v4050_v16, %v3933_v19  ;;  %v4066_v26 = vmul.f32 %v4051_v47, %v3948_v42  ;;  %v4069_v30 = vadd.f32 %v10348_v61, %v4061_v23  ;;  %v3954_v57 = vadd.f32 %v5730_v2, %v3953_v62  ;;  %vm3972_vm2 = vmor %vm3970_vm9, %vm3971_vm6 }
 0x6be   :  { %v3967_v48 = vsub.f32 1.0, %v3966_v8  ;;  %v4070_v60 = vadd.f32 %v10350_v24, %v4062_v17  ;;  %v4071_v27 = vadd.f32 %v10353_v12, %v4063_v33  ;;  %v4072_v5 = vadd.f32 %v10356_v10, %v4064_v44 }
 0x6bf   :  { %v4073_v50 = vadd.f32 %v10361_v63, %v4065_v22  ;;  %v4074_v41 = vadd.f32 %v10367_v58, %v4066_v26  ;;  %v12566_v32 = vrot.slane %v10120_v55, 2  ;;  %v3958_v61 = vsel %vm3957_vm0, %v5730_v2, %v3954_v57 }
 0x6c0   :  { %v3968_v19 = vmul.f32 %v5732_v1, %v3967_v48  ;;  %v12567_v34 = vrot.slane %v10120_v55, 3  ;;  %v12568_v12 = vrot.slane %v10120_v55, 4  ;;  %v3963_v20 = vsel %vm10539_vm11, %v3962_v51, %v3958_v61 }
 0x6c1   :  { %v4093_v31 = vsub.f32 %v4069_v30, %v12566_v32  ;;  %v12569_v10 = vrot.slane %v10120_v55, 5  ;;  %v12570_v63 = vrot.slane %v10120_v55, 6  ;;  %v12571_v35 = vrot.slane %v10120_v55, 7 }
 0x6c2   :  { %v4094_v24 = vsub.f32 %v4070_v60, %v12567_v34  ;;  %v4095_v54 = vsub.f32 %v4071_v27, %v12568_v12  ;;  %v3969_v2 = vadd.f32 %v5732_v1, %v3968_v19  ;;  %v4067_v16 = vmul.f32 %v10445_v49, %v3963_v20 }
 0x6c3   :  { %v4096_v36 = vsub.f32 %v4072_v5, %v12569_v10  ;;  %v4097_v58 = vsub.f32 %v4073_v50, %v12570_v63  ;;  %v4098_v53 = vsub.f32 %v4074_v41, %v12571_v35  ;;  %v4101_v47 = vmul.f32 %v4093_v31, %v12476_v52 }
 0x6c4   :  { %v4102_v7 = vmul.f32 %v4094_v24, %v12477_v38  ;;  %v4103_v51 = vmul.f32 %v4095_v54, %v12478_v43  ;;  %v3973_v33 = vsel %vm3972_vm2, %v5732_v1, %v3969_v2  ;;  %v4075_v42 = vadd.f32 %v10372_v14, %v4067_v16  ;;  %v12580_v2 = vld [vmem:[#allocation41_spill] sm:$0xff] }
 0x6c5   :  { %v4104_v29 = vmul.f32 %v4096_v36, %v12479_v0  ;;  %v4105_v23 = vmul.f32 %v4097_v58, %v12480_v11  ;;  %v4106_v17 = vmul.f32 %v4098_v53, %v12485_v28  ;;  %v4117_v49 = vrot.slane %v4101_v47, 6 }
 0x6c6   :  { %v4118_v62 = vrot.slane %v4102_v7, 5  ;;  %v3978_v8 = vsel %vm10556_vm10, %v3977_v39, %v3973_v33  ;;  %v4120_v44 = vrot.slane %v4103_v51, 4  ;;  %v4099_v21 = vsub.f32 %v4075_v42, %v10120_v55  ;;  %v12581_v51 = vld [vmem:[#allocation42_spill] sm:$0xff]  ;;  %v12582_v33 = vld [vmem:[#allocation43_spill] sm:$0xff] }
 0x6c7   :  { %v4068_v22 = vmul.f32 %v4052_v18, %v3978_v8  ;;  %vm12572_vm8 = vcmask 1041409   ;;  %v4122_v30 = vrot.slane %v4104_v29, 3  ;;  %vm12573_vm15 = vcmask 1042434  }
 0x6c8   :  { %v4119_v26 = vsel %vm12572_vm8, %v4118_v62, %v4117_v49  ;;  %v4124_v48 = vrot.slane %v4105_v23, 2  ;;  %v4084_v1 = vrot.slane %v10120_v55, 1  ;;  %vm12574_vm14 = vcmask 1043459   ;;  %v12583_v62 = vld [vmem:[#allocation73_spill] sm:$0xff] }
 0x6c9   :  { %v4121_v57 = vsel %vm12573_vm15, %v4120_v44, %v4119_v26  ;;  %v4076_v60 = vadd.f32 %v10396_v4, %v4068_v22  ;;  %v4126_v27 = vrot.slane %v4106_v17, 1  ;;  %v4107_v9 = vmul.f32 %v4099_v21, %v12481_v3  ;;  %v12585_v44 = vld [vmem:[#allocation44_spill] sm:$0xff] }
 0x6ca   :  { %v4123_v14 = vsel %vm12574_vm14, %v4122_v30, %v4121_v57  ;;  %vm12575_vm7 = vcmask 1044484   ;;  %vm12576_vm3 = vcmask 1045509   ;;  %vm12577_vm4 = vcmask 1046534  }
 0x6cb   :  { %v4125_v39 = vsel %vm12575_vm7, %v4124_v48, %v4123_v14  ;;  %v4100_v18 = vsub.f32 %v4076_v60, %v4084_v1  ;;  %vm12578_vm12 = vcmask 1047559   ;;  %v12587_v57 = vrot.slane %v12583_v62, 2 }
 0x6cc   :  { %v4127_v5 = vsel %vm12576_vm3, %v4126_v27, %v4125_v39  ;;  %v12588_v27 = vld [vmem:[#allocation70_spill] sm:$0xff]  ;;  %vm12590_vm13 = vcmask 1040384   ;;  %vm12604_vm5 = vcmask 1041408   ;;  %vm12607_vm10 = vcmask 1042432  }
 0x6cd   :  { %v4128_v50 = vsel %vm12577_vm4, %v4107_v9, %v4127_v5  ;;  %v4108_v41 = vmul.f32 %v4100_v18, %v12482_v46  ;;  %v4688_v48 = vperm.slane %v12587_v57, 0  ;;  %v12589_v9 = vrot.slane %v12588_v27, 1  ;;  %vm12597_vm1 = vmmov %vm12590_vm13 }
 0x6ce   :  { %v4686_v5 = vperm.slane %v12583_v62, 0  ;;  %vm12603_vm11 = vmmov %vm12597_vm1  ;;  %vm12610_vm8 = vcmask 1043456  }
 0x6cf   :  { %v4129_v32 = vrot.slane %v4108_v41, 7  ;;  %vm12605_vm9 = vmmov %vm12604_vm5 }
 0x6d0   :  { %vm12606_vm6 = vmmov %vm12604_vm5 }
 0x6d1   :  { %v4130_v4 = vsel %vm12578_vm12, %v4129_v32, %v4128_v50  ;;  %v12591_v50 = vld [vmem:[#allocation72_spill] sm:$0xff]  ;;  %vm12608_vm0 = vmmov %vm12607_vm10 }
 0x6d2   :  { %v10611_v31 = vadd.f32 %v4130_v4, %v10120_v55  ;;  %v12592_v41 = vrot.slane %v12591_v50, 1  ;;  %vm12609_vm2 = vmmov %vm12608_vm0 }
 0x6d3   :  { %vm12612_vm15 = vmmov %vm12610_vm8 }
 0x6d4   :  { %12579 = vst [vmem:[#allocation32_spill] sm:$0xff] %v10611_v31  ;;  %v4133_v61 = vpack.c.bf16 %v10611_v31, %v10611_v31  ;;  %v4703_v32 = vperm.slane %v12592_v41, 0  ;;  %vm12614_vm14 = vmmov %vm12610_vm8  ;;  %v12616_v41 = vrot.slane %v10120_v55, 2 }
 0x6d6   :  { %4142 = vmatmul.bf16.vlgmr.msrb.gmra.mxu1 %v4133_v61  ;;  %4155 = vmatmul.bf16.vlgmr.msrb.gmra.mxu2 %v4133_v61 }
 0x6d7   :  { %4168 = vmatmul.bf16.vlgmr.msrb.gmra.mxu3 %v4133_v61  ;;  %v4702_v61 = vperm.slane %v12591_v50, 0 }
 0x753   :  { %v4143_v19 = vpop.f32.mrf.mxu1 }
 0x754   :  { %v4174_v34 = vrot.slane %v4143_v19, 1  ;;  %v4175_v24 = vrot.slane %v4143_v19, 2  ;;  %v4176_v20 = vrot.slane %v4143_v19, 3  ;;  %v4177_v36 = vrot.slane %v4143_v19, 4 }
 0x755   :  { %v4178_v58 = vrot.slane %v4143_v19, 5  ;;  %v4196_v35 = vadd.f32 %v4143_v19, %v12499_v45  ;;  %v4179_v53 = vrot.slane %v4143_v19, 6  ;;  %v4180_v7 = vrot.slane %v4143_v19, 7  ;;  %v12586_v45 = vld [vmem:[#allocation45_spill] sm:$0xff] }
 0x756   :  { %v4189_v10 = vadd.f32 %v4174_v34, %v12493_v13  ;;  %v4190_v63 = vadd.f32 %v4175_v24, %v12494_v56  ;;  %v4191_v16 = vadd.f32 %v4176_v20, %v12580_v2  ;;  %v4192_v29 = vadd.f32 %v4177_v36, %v12581_v51 }
 0x757   :  { %v4193_v42 = vadd.f32 %v4178_v58, %v12582_v33  ;;  %v5125_v49 = vmul.f32 -1.442695, %v4196_v35  ;;  %v12584_v13 = vrot.slane %v12583_v62, 1  ;;  %v4194_v56 = vadd.f32 %v4179_v53, %v12585_v44 }
 0x758   :  { %v5118_v47 = vmul.f32 -1.442695, %v4189_v10  ;;  %v5119_v23 = vmul.f32 -1.442695, %v4190_v63  ;;  %v5120_v22 = vmul.f32 -1.442695, %v4191_v16  ;;  %v4195_v21 = vadd.f32 %v4180_v7, %v12586_v45 }
 0x759   :  { %v10615_v12 = vpop.f32.mrf.mxu2  ;;  %v4687_v8 = vperm.slane %v12584_v13, 0  ;;  %v5121_v26 = vmul.f32 -1.442695, %v4192_v29  ;;  %v5122_v30 = vmul.f32 -1.442695, %v4193_v42  ;;  %v12593_v34 = vrot.slane %v12591_v50, 2 }
 0x75a   :  { %5733 = vpow2.f32 %v5118_v47  ;;  %v4350_v60 = vrot.slane %v10615_v12, 1  ;;  %v10630_v14 = vpop.f32.mrf.mxu3  ;;  %v5123_v18 = vmul.f32 -1.442695, %v4194_v56  ;;  %v5124_v4 = vmul.f32 -1.442695, %v4195_v21  ;;  %v12599_v16 = vld [vmem:[#allocation47_spill] sm:$0xff] }
 0x75b   :  { %v4145_v54 = vpop.f32.mrf.mxu1  ;;  %5735 = vpow2.f32 %v5119_v23  ;;  %v4800_v39 = vsel %vm12590_vm13, %v12589_v9, %v4687_v8  ;;  %v4704_v24 = vperm.slane %v12593_v34, 0  ;;  %v12596_v58 = vrot.slane %v12588_v27, 2  ;;  %v12600_v7 = vld [vmem:[#allocation15_spill] sm:$0xff] }
 0x75c   :  { %5737 = vpow2.f32 %v5125_v49  ;;  %v12594_v54 = vld [vmem:[#allocation75_spill] sm:$0xff]  ;;  %v4365_v47 = vadd.f32 %v4350_v60, %v12599_v16  ;;  %v4734_v51 = vperm.slane %v12600_v7, 0  ;;  %v12601_v29 = vrot.slane %v12600_v7, 1 }
 0x75d   :  { %5739 = vpow2.f32 %v5120_v22  ;;  %v12595_v20 = vrot.slane %v12594_v54, 1  ;;  %v4718_v36 = vperm.slane %v12594_v54, 0  ;;  %v4801_v35 = vsel %vm12597_vm1, %v12596_v58, %v4688_v48 }
 0x75e   :  { %5741 = vpow2.f32 %v5121_v26  ;;  %v12598_v53 = vrot.slane %v12594_v54, 2  ;;  %v4735_v23 = vperm.slane %v12601_v29, 0  ;;  %v4799_v42 = vsel %vm12603_vm11, %v12588_v27, %v4686_v5 }
 0x75f   :  { %v4719_v10 = vperm.slane %v12595_v20, 0  ;;  %5743 = vpow2.f32 %v5122_v30  ;;  %v4808_v13 = vsel %vm12604_vm5, %v4799_v42, %v4702_v61  ;;  %v4809_v8 = vsel %vm12605_vm9, %v4800_v39, %v4703_v32 }
 0x760   :  { %v5734_v19 = vpop.eup %5733  ;;  %v4720_v2 = vperm.slane %v12598_v53, 0  ;;  %5745 = vpow2.f32 %v5123_v18  ;;  %v4810_v22 = vsel %vm12606_vm6, %v4801_v35, %v4704_v24  ;;  %v4817_v45 = vsel %vm12607_vm10, %v4808_v13, %v4718_v36  ;;  %v12624_v53 = vld [vmem:[#allocation48_spill] sm:$0xff] }
 0x761   :  { %v4158_v17 = vpop.f32.mrf.mxu2  ;;  %v5736_v63 = vpop.eup %5735  ;;  %5747 = vpow2.f32 %v5124_v4  ;;  %v10657_v62 = vadd.f32 1.0, %v5734_v19  ;;  %v4818_v21 = vsel %vm12608_vm0, %v4809_v8, %v4719_v10  ;;  %v4351_v30 = vrot.slane %v10615_v12, 2 }
 0x762   :  { %v12602_v17 = vrot.slane %v12600_v7, 2  ;;  %v5738_v49 = vpop.eup %5737  ;;  %v10661_v56 = vadd.f32 1.0, %v5736_v63  ;;  %v5126_v57 = vmul.f32 -1.442695, %v4365_v47  ;;  %v4171_v48 = vpop.f32.mrf.mxu3  ;;  %v4819_v60 = vsel %vm12609_vm2, %v4810_v22, %v4720_v2  ;;  %v12625_v7 = vld [vmem:[#allocation49_spill] sm:$0xff] }
 0x763   :  { %v5740_v44 = vpop.eup %5739  ;;  %v10669_v27 = vsel %vm12610_vm8, %v4817_v45, %v4734_v51  ;;  %v10671_v39 = vadd.f32 1.0, %v5738_v49  ;;  %v4352_v18 = vrot.slane %v10615_v12, 3  ;;  %v10675_v5 = vsel %vm12612_vm15, %v4818_v21, %v4735_v23 }
 0x764   :  { %v4736_v33 = vperm.slane %v12602_v17, 0  ;;  %v5742_v26 = vpop.eup %5741  ;;  %12611 = vst [vmem:[#allocation35_spill] sm:$0xff] %v10669_v27  ;;  %v10682_v32 = vperm.slane %v12616_v41, 0  ;;  %v12618_v4 = vrot.slane %v10120_v55, 3  ;;  %v10688_v19 = vadd.f32 1.0, %v5740_v44 }
 0x765   :  { %v5744_v9 = vpop.eup %5743  ;;  %12613 = vst [vmem:[#allocation38_spill] sm:$0xff] %v10675_v5  ;;  %5749 = vrcp.f32 %v10657_v62  ;;  %v12620_v24 = vrot.slane %v10120_v55, 4  ;;  %v12622_v20 = vrot.slane %v10120_v55, 5  ;;  %v10699_v36 = vadd.f32 1.0, %v5742_v26 }
 0x766   :  { %v10678_v50 = vsel %vm12614_vm14, %v4819_v60, %v4736_v33  ;;  %12617 = vst [vmem:[#allocation16_spill] sm:$0xff] %v10682_v32  ;;  %v10686_v61 = vperm.slane %v12618_v4, 0  ;;  %v5746_v34 = vpop.eup %5745  ;;  %5751 = vrcp.f32 %v10661_v56  ;;  %v10702_v58 = vadd.f32 1.0, %v5744_v9 }
 0x767   :  { %12615 = vst [vmem:[#allocation74_spill] sm:$0xff] %v10678_v50  ;;  %v10693_v54 = vperm.slane %v12620_v24, 0  ;;  %v10697_v10 = vperm.slane %v12622_v20, 0  ;;  %v5748_v63 = vpop.eup %5747  ;;  %v4353_v35 = vrot.slane %v10615_v12, 4  ;;  %v4366_v2 = vadd.f32 %v4351_v30, %v12624_v53 }
 0x768   :  { %12619 = vst [vmem:[#allocation18_spill] sm:$0xff] %v10686_v61  ;;  %5753 = vpow2.f32 %v5126_v57  ;;  %v4354_v16 = vrot.slane %v10615_v12, 5  ;;  %v4355_v47 = vrot.slane %v10615_v12, 6  ;;  %v4367_v51 = vadd.f32 %v4352_v18, %v12625_v7 }
 0x769   :  { %12621 = vst [vmem:[#allocation71_spill] sm:$0xff] %v10693_v54  ;;  %5755 = vrcp.f32 %v10671_v39  ;;  %v10712_v29 = vperm.slane %v4084_v1, 0  ;;  %v10714_v23 = vadd.f32 1.0, %v5746_v34  ;;  %v10718_v33 = vadd.f32 1.0, %v5748_v63 }
 0x76a   :  { %12623 = vst [vmem:[#allocation31_spill] sm:$0xff] %v10697_v10  ;;  %5757 = vrcp.f32 %v10688_v19  ;;  %v4356_v42 = vrot.slane %v10615_v12, 7  ;;  %v5127_v1 = vmul.f32 -1.442695, %v4366_v2  ;;  %v4368_v45 = vadd.f32 %v4353_v35, %v12527_v37 }
 0x76b   :  { %12626 = vst [vmem:[#allocation30_spill] sm:$0xff] %v10712_v29  ;;  %5759 = vrcp.f32 %v10699_v36  ;;  %v10723_v13 = vpop.eup %5749  ;;  %v4369_v21 = vadd.f32 %v4354_v16, %v12529_v15  ;;  %v4370_v26 = vadd.f32 %v4355_v47, %v12531_v59  ;;  %v5128_v30 = vmul.f32 -1.442695, %v4367_v51 }
 0x76c   :  { %5761 = vrcp.f32 %v10702_v58  ;;  %v10728_v22 = vpop.eup %5751  ;;  %v4230_v41 = vmul.f32 %v10723_v13, %v10657_v62  ;;  %v4240_v37 = vand.u32 2147483648, %v10657_v62  ;;  %v4371_v15 = vadd.f32 %v4356_v42, %v12533_v40 }
 0x76d   :  { %5763 = vrcp.f32 %v10714_v23  ;;  %v4245_v4 = vmul.f32 %v10728_v22, %v10661_v56  ;;  %v4255_v34 = vand.u32 2147483648, %v10661_v56  ;;  %v4372_v24 = vadd.f32 %v10615_v12, %v12534_v25 }
 0x76e   :  { %v5754_v57 = vpop.eup %5753  ;;  %5765 = vrcp.f32 %v10718_v33  ;;  %v5129_v63 = vmul.f32 -1.442695, %v4368_v45  ;;  %v5130_v35 = vmul.f32 -1.442695, %v4369_v21  ;;  %v5131_v53 = vmul.f32 -1.442695, %v4370_v26 }
 0x76f   :  { %v10737_v18 = vpop.eup %5755  ;;  %5767 = vpow2.f32 %v5127_v1  ;;  %v4270_v16 = vand.u32 2147483648, %v10688_v19  ;;  %v4285_v47 = vand.u32 2147483648, %v10699_v36  ;;  %v4231_v51 = vsub.f32 1.0, %v4230_v41 }
 0x770   :  { %v10744_v59 = vpop.eup %5757  ;;  %5769 = vpow2.f32 %v5128_v30  ;;  %v10759_v42 = vor.u32 1.1754944e-38, %v4240_v37  ;;  %v4335_v12 = vmul.f32 %v10737_v18, %v10671_v39  ;;  %v4246_v45 = vsub.f32 1.0, %v4245_v4 }
 0x771   :  { %v10751_v20 = vpop.eup %5759  ;;  %v10766_v21 = vor.u32 1.1754944e-38, %v4255_v34  ;;  %v4260_v26 = vmul.f32 %v10744_v59, %v10688_v19  ;;  %v4300_v30 = vand.u32 2147483648, %v10702_v58  ;;  %v10778_v60 = vadd.f32 1.0, %v5754_v57 }
 0x772   :  { %v10753_v2 = vpop.eup %5761  ;;  %v4275_v37 = vmul.f32 %v10751_v20, %v10699_v36  ;;  %v10780_v34 = vor.u32 1.1754944e-38, %v4270_v16  ;;  %v10783_v44 = vor.u32 1.1754944e-38, %v4285_v47  ;;  %v4232_v41 = vmul.f32 %v10723_v13, %v4231_v51 }
 0x773   :  { %v10764_v1 = vpop.eup %5763  ;;  %v4290_v9 = vmul.f32 %v10753_v2, %v10702_v58  ;;  %v4336_v40 = vsub.f32 1.0, %v4335_v12  ;;  %5771 = vpow2.f32 %v5129_v63  ;;  %v4247_v57 = vmul.f32 %v10728_v22, %v4246_v45 }
 0x774   :  { %v10771_v17 = vpop.eup %5765  ;;  %v4305_v25 = vmul.f32 %v10764_v1, %v10714_v23  ;;  %v4261_v7 = vsub.f32 1.0, %v4260_v26  ;;  %v10790_v10 = vor.u32 1.1754944e-38, %v4300_v30  ;;  %v4315_v16 = vand.u32 2147483648, %v10714_v23 }
 0x775   :  { %v5768_v4 = vpop.eup %5767  ;;  %v4276_v48 = vsub.f32 1.0, %v4275_v37  ;;  %v4291_v47 = vsub.f32 1.0, %v4290_v9  ;;  %vm4339_vm7 = vweird.f32 %v10671_v39  ;;  %5773 = vrcp.f32 %v10778_v60 }
 0x776   :  { %v5770_v49 = vpop.eup %5769  ;;  %v10794_v8 = vadd.f32 1.0, %v5768_v4  ;;  %v4320_v63 = vmul.f32 %v10771_v17, %v10718_v33  ;;  %5775 = vpow2.f32 %v5130_v35  ;;  %v10803_v45 = vadd.f32 %v10723_v13, %v4232_v41 }
 0x777   :  { %v10800_v12 = vadd.f32 1.0, %v5770_v49  ;;  %v4306_v26 = vsub.f32 1.0, %v4305_v25  ;;  %v4337_v9 = vmul.f32 %v10737_v18, %v4336_v40  ;;  %v5132_v30 = vmul.f32 -1.442695, %v4371_v15 }
 0x778   :  { %v10807_v37 = vadd.f32 %v10728_v22, %v4247_v57  ;;  %v4262_v4 = vmul.f32 %v10744_v59, %v4261_v7  ;;  %5777 = vpow2.f32 %v5131_v53  ;;  %v5133_v51 = vmul.f32 -1.442695, %v4372_v24 }
 0x779   :  { %v5772_v54 = vpop.eup %5771  ;;  %vm4235_vm3 = vweird.f32 %v10723_v13  ;;  %v4277_v49 = vmul.f32 %v10751_v20, %v4276_v48  ;;  %v4292_v35 = vmul.f32 %v10753_v2, %v4291_v47  ;;  %v10813_v41 = vor.u32 1.1754944e-38, %v4315_v16 }
 0x77a   :  { %5779 = vrcp.f32 %v10794_v8  ;;  %vm4250_vm4 = vweird.f32 %v10728_v22  ;;  %v4321_v15 = vsub.f32 1.0, %v4320_v63  ;;  %v4330_v40 = vand.u32 2147483648, %v10718_v33 }
 0x77b   :  { %vm4340_vm12 = vweird.f32 %v10737_v18  ;;  %5781 = vrcp.f32 %v10800_v12  ;;  %v10820_v24 = vpop.eup %5773  ;;  %vm4234_vm13 = vweird.f32 %v10657_v62  ;;  %vm4265_vm1 = vweird.f32 %v10744_v59 }
 0x77c   :  { %v4307_v48 = vmul.f32 %v10764_v1, %v4306_v26  ;;  %v4338_v53 = vadd.f32 %v10737_v18, %v4337_v9  ;;  %v4345_v7 = vand.u32 2147483648, %v10671_v39  ;;  %5783 = vpow2.f32 %v5132_v30  ;;  %v5776_v25 = vpop.eup %5775  ;;  %vm10865_vm8 = vmor %vm4339_vm7, %vm4340_vm12 }
 0x77d   :  { %vm4249_vm11 = vweird.f32 %v10661_v56  ;;  %vm4280_vm5 = vweird.f32 %v10751_v20  ;;  %v4328_v57 = vand.u32 2147483647, %v10718_v33  ;;  %5785 = vpow2.f32 %v5133_v51 }
 0x77e   :  { %v10830_v16 = vadd.f32 1.0, %v5772_v54  ;;  %v4416_v47 = vand.u32 2147483648, %v10778_v60  ;;  %v10834_v63 = vadd.f32 %v10744_v59, %v4262_v4  ;;  %vm4264_vm9 = vweird.f32 %v10688_v19  ;;  %v5816_v54 = vld [vmem:[%s11431_s3] ss:$0 sm:$0xff]  ;;  %v5778_v4 = vpop.eup %5777  ;;  %s5928_s3 = smov [#allocation9]  }
 0x77f   :  { %v10838_v26 = vadd.f32 %v10751_v20, %v4277_v49  ;;  %v12627_v9 = vand.u32 2147483647, %v10671_v39  ;;  %v10851_v51 = vadd.f32 %v5816_v54, %v10630_v14  ;;  %vm4279_vm0 = vweird.f32 %v10699_v36  ;;  %s11390_s28 = sshll.u32 %s5928_s3, 4  ;;  %s4893_s28 = int_to_ptr.vmem [resolvable:$true] %s11390_s28 }
 0x780   :  { %v10855_v49 = vadd.f32 %v10753_v2, %v4292_v35  ;;  %v10859_v46 = vor.u32 1.1754944e-38, %v4330_v40  ;;  %v4406_v14 = vmul.f32 %v10820_v24, %v10778_v60  ;;  %v10871_v54 = vpop.eup %5779  ;;  %v10875_v35 = vadd.f32 %v10764_v1, %v4307_v48 }
 0x781   :  { %vm10843_vm10 = vcmp.eq.f32.partialorder %v12627_v9, 8.507059e+37  ;;  %v4322_v9 = vmul.f32 %v10771_v17, %v4321_v15  ;;  %v4346_v15 = vor.u32 1.1754944e-38, %v4345_v7  ;;  %v10877_v40 = vadd.f32 1.0, %v5776_v25  ;;  %v10882_v50 = vpop.eup %5781 }
 0x782   :  { %v4342_v39 = vsel %vm10865_vm8, %v10737_v18, %v4338_v53  ;;  %v10887_v5 = vor.u32 1.1754944e-38, %v4416_v47  ;;  %5787 = vrcp.f32 %v10830_v16  ;;  %v5784_v48 = vpop.eup %5783  ;;  %v4431_v7 = vand.u32 2147483648, %v10794_v8 }
 0x783   :  { %v4446_v25 = vand.u32 2147483648, %v10800_v12  ;;  %v5786_v53 = vpop.eup %5785  ;;  %v12633_v29 = vand.u32 2147483647, %v10657_v62  ;;  %v12636_v47 = vand.u32 2147483647, %v10661_v56  ;;  %v10913_v18 = vadd.f32 %v10771_v17, %v4322_v9 }
 0x784   :  { %12632 = vst [vmem:[#allocation22_spill] sm:$0xff] %v10887_v5  ;;  %v12639_v28 = vand.u32 2147483647, %v10688_v19  ;;  %v4421_v61 = vmul.f32 %v10871_v54, %v10794_v8  ;;  %v12642_v11 = vand.u32 2147483647, %v10699_v36  ;;  %v10940_v30 = vadd.f32 1.0, %v5778_v4 }
 0x785   :  { %vm10896_vm12 = vcmp.eq.f32.partialorder %v12633_v29, 8.507059e+37  ;;  %vm10902_vm8 = vcmp.eq.f32.partialorder %v12636_v47, 8.507059e+37  ;;  %v4407_v29 = vsub.f32 1.0, %v4406_v14  ;;  %v10920_v47 = vsel %vm10843_vm10, %v4346_v15, %v4342_v39  ;;  %vm10952_vm10 = vmor %vm4234_vm13, %vm4235_vm3 }
 0x786   :  { %vm10908_vm7 = vcmp.eq.f32.partialorder %v12639_v28, 8.507059e+37  ;;  %vm10924_vm2 = vcmp.eq.f32.partialorder %v12642_v11, 8.507059e+37  ;;  %v12645_v55 = vand.u32 2147483647, %v10702_v58  ;;  %v12648_v14 = vand.u32 2147483647, %v10714_v23  ;;  %vm10969_vm3 = vmor %vm4249_vm11, %vm4250_vm4 }
 0x787   :  { %v10944_v11 = vmul.f32 %v10882_v50, %v10800_v12  ;;  %v4461_v15 = vand.u32 2147483648, %v10830_v16  ;;  %v4476_v39 = vand.u32 2147483648, %v10877_v40  ;;  %vm10956_vm6 = vcmp.eq.f32.partialorder %v4328_v57, 8.507059e+37  ;;  %vm10986_vm13 = vmor %vm4264_vm9, %vm4265_vm1 }
 0x788   :  { %vm10930_vm15 = vcmp.eq.f32.partialorder %v12645_v55, 8.507059e+37  ;;  %vm10936_vm14 = vcmp.eq.f32.partialorder %v12648_v14, 8.507059e+37  ;;  %v10960_v4 = vadd.f32 1.0, %v5784_v48  ;;  %v4529_v52 = vrot.slane %v10851_v51, 3  ;;  %v10980_v5 = vpop.eup %5787  ;;  %vm10998_vm11 = vmor %vm4279_vm0, %vm4280_vm5 }
 0x789   :  { %v10973_v57 = vadd.f32 1.0, %v5786_v53  ;;  %v10975_v31 = vor.u32 1.1754944e-38, %v4431_v7  ;;  %v10977_v48 = vor.u32 1.1754944e-38, %v4446_v25  ;;  %v4408_v38 = vmul.f32 %v10820_v24, %v4407_v29 }
 0x78a   :  { %v4422_v7 = vsub.f32 1.0, %v4421_v61  ;;  %5789 = vrcp.f32 %v10877_v40  ;;  %v4474_v25 = vand.u32 2147483647, %v10877_v40  ;;  %v4437_v19 = vsub.f32 1.0, %v10944_v11 }
 0x78b   :  { %v11003_v43 = vor.u32 1.1754944e-38, %v4461_v15  ;;  %v11005_v29 = vor.u32 1.1754944e-38, %v4476_v39  ;;  %5791 = vrcp.f32 %v10940_v30  ;;  %vm12661_vm1 = vweird.f32 %v10753_v2 }
 0x78c   :  { %vm12662_vm9 = vweird.f32 %v10702_v58  ;;  %vm4410_vm5 = vweird.f32 %v10778_v60  ;;  %5793 = vrcp.f32 %v10960_v4  ;;  %v4237_v36 = vsel %vm10952_vm10, %v10723_v13, %v10803_v45 }
 0x78d   :  { %vm11012_vm4 = vmor %vm12662_vm9, %vm12661_vm1  ;;  %v4252_v15 = vsel %vm10969_vm3, %v10728_v22, %v10807_v37  ;;  %v4267_v58 = vsel %vm10986_vm13, %v10744_v59, %v10834_v63  ;;  %vm12665_vm0 = vweird.f32 %v10764_v1  ;;  %vm12666_vm1 = vweird.f32 %v10714_v23 }
 0x78e   :  { %vm11034_vm9 = vmor %vm12666_vm1, %vm12665_vm0  ;;  %v11040_v13 = vmul.f32 %v10980_v5, %v10830_v16  ;;  %v4489_v45 = vand.u32 2147483647, %v10940_v30  ;;  %v4282_v22 = vsel %vm10998_vm11, %v10751_v20, %v10838_v26  ;;  %v4297_v23 = vsel %vm11012_vm4, %v10753_v2, %v10855_v49 }
 0x78f   :  { %v11052_v59 = vadd.f32 %v10820_v24, %v4408_v38  ;;  %v4423_v37 = vmul.f32 %v10871_v54, %v4422_v7  ;;  %5795 = vrcp.f32 %v10973_v57  ;;  %v4312_v63 = vsel %vm11034_vm9, %v10764_v1, %v10875_v35 }
 0x790   :  { %vm12669_vm10 = vweird.f32 %v10771_v17  ;;  %vm12670_vm3 = vweird.f32 %v10718_v33  ;;  %vm4426_vm11 = vweird.f32 %v10871_v54  ;;  %v4491_v20 = vand.u32 2147483648, %v10940_v30  ;;  %v11075_v26 = vpop.eup %5789 }
 0x791   :  { %vm4326_vm13 = vmor %vm12670_vm3, %vm12669_vm10  ;;  %v4242_v38 = vsel %vm10896_vm12, %v10759_v42, %v4237_v36  ;;  %v4257_v2 = vsel %vm10902_vm8, %v10766_v21, %v4252_v15  ;;  %v4272_v1 = vsel %vm10908_vm7, %v10780_v34, %v4267_v58  ;;  %v4287_v33 = vsel %vm10924_vm2, %v10783_v44, %v4282_v22  ;;  %v11088_v42 = vpop.eup %5791  ;;  %v12676_v15 = vld [vmem:[#allocation61_spill] sm:$0xff] }
 0x792   :  { %v4302_v49 = vsel %vm10930_vm15, %v10790_v10, %v4297_v23  ;;  %v4317_v3 = vsel %vm10936_vm14, %v10813_v41, %v4312_v63  ;;  %v4327_v32 = vsel %vm4326_vm13, %v10771_v17, %v10913_v18  ;;  %v12671_v27 = vand.u32 2147483647, %v10778_v60  ;;  %v11103_v34 = vpop.eup %5793  ;;  %v12683_v23 = vld [vmem:[#allocation55_spill] sm:$0xff]  ;;  %v12684_v63 = vld [vmem:[#allocation56_spill] sm:$0xff] }
 0x793   :  { %vm4425_vm2 = vweird.f32 %v10794_v8  ;;  %v4332_v10 = vsel %vm10956_vm6, %v10859_v46, %v4327_v32  ;;  %v4530_v0 = vrot.slane %v10851_v51, 4  ;;  %v4531_v44 = vrot.slane %v10851_v51, 5 }
 0x794   :  { %vm11092_vm7 = vcmp.eq.f32.partialorder %v12671_v27, 8.507059e+37  ;;  %v4532_v17 = vrot.slane %v10851_v51, 6  ;;  %v4533_v41 = vrot.slane %v10851_v51, 7  ;;  %v12674_v35 = vrot.slane %v10851_v51, 1  ;;  %v12686_v27 = vld [vmem:[#allocation58_spill] sm:$0xff]  ;;  %vm11167_vm9 = vmor %vm4425_vm2, %vm4426_vm11 }
 0x795   :  { %v12675_v28 = vrot.slane %v10851_v51, 2  ;;  %v4544_v55 = vmul.f32 %v4529_v52, %v4272_v1  ;;  %v4452_v14 = vsub.f32 1.0, %v11040_v13  ;;  %v4545_v46 = vmul.f32 %v4530_v0, %v4287_v33  ;;  %v11111_v7 = vpop.eup %5795  ;;  %v12685_v33 = vld [vmem:[#allocation57_spill] sm:$0xff] }
 0x796   :  { %v4542_v18 = vmul.f32 %v12674_v35, %v4242_v38  ;;  %v4546_v62 = vmul.f32 %v4531_v44, %v4302_v49  ;;  %v4547_v56 = vmul.f32 %v4532_v17, %v4317_v3  ;;  %v4466_v53 = vmul.f32 %v11075_v26, %v10877_v40 }
 0x797   :  { %v4543_v9 = vmul.f32 %v12675_v28, %v4257_v2  ;;  %v4548_v61 = vmul.f32 %v4533_v41, %v4332_v10  ;;  %vm12677_vm6 = vweird.f32 %v10820_v24  ;;  %v12680_v39 = vand.u32 2147483647, %v10794_v8 }
 0x798   :  { %v4550_v36 = vadd.f32 %v4542_v18, %v6523_v6  ;;  %vm11121_vm15 = vmor %vm4410_vm5, %vm12677_vm6  ;;  %vm4441_vm12 = vweird.f32 %v10882_v50  ;;  %v4481_v6 = vmul.f32 %v11088_v42, %v10940_v30  ;;  %v4496_v22 = vmul.f32 %v11103_v34, %v10960_v4  ;;  %v12691_v18 = vld [vmem:[#allocation60_spill] sm:$0xff] }
 0x799   :  { %v4551_v58 = vadd.f32 %v4543_v9, %v12676_v15  ;;  %vm11127_vm14 = vcmp.eq.f32.partialorder %v12680_v39, 8.507059e+37  ;;  %v4552_v60 = vadd.f32 %v4544_v55, %v12683_v23  ;;  %v4553_v38 = vadd.f32 %v4545_v46, %v12684_v63 }
 0x79a   :  { %v4413_v2 = vsel %vm11121_vm15, %v10820_v24, %v11052_v59  ;;  %v4424_v1 = vadd.f32 %v10871_v54, %v4423_v37  ;;  %vm4456_vm8 = vweird.f32 %v10980_v5  ;;  %v4554_v49 = vadd.f32 %v4546_v62, %v12685_v33  ;;  %v12687_v37 = vld [vmem:[#allocation59_spill] sm:$0xff] }
 0x79b   :  { %5797 = vtanh.f32 %v4550_v36  ;;  %vm4440_vm4 = vweird.f32 %v10800_v12  ;;  %v4511_v3 = vmul.f32 %v11111_v7, %v10973_v57  ;;  %v4549_v32 = vmul.f32 %v10851_v51, %v10920_v47  ;;  %v12688_v51 = vld [vmem:[#allocation22_spill] sm:$0xff] }
 0x79c   :  { %v4555_v10 = vadd.f32 %v4547_v56, %v12686_v27  ;;  %5799 = vtanh.f32 %v4551_v58  ;;  %v4438_v24 = vmul.f32 %v10882_v50, %v4437_v19  ;;  %vm4455_vm5 = vweird.f32 %v10830_v16  ;;  %vm11235_vm15 = vmor %vm4440_vm4, %vm4441_vm12 }
 0x79d   :  { %v4467_v59 = vsub.f32 1.0, %v4466_v53  ;;  %v4556_v0 = vadd.f32 %v4548_v61, %v12687_v37  ;;  %5801 = vtanh.f32 %v4552_v60  ;;  %vm4470_vm0 = vweird.f32 %v10877_v40  ;;  %vm11247_vm3 = vmor %vm4455_vm5, %vm4456_vm8 }
 0x79e   :  { %vm4471_vm1 = vweird.f32 %v11075_v26  ;;  %v4482_v44 = vsub.f32 1.0, %v4481_v6  ;;  %v4497_v17 = vsub.f32 1.0, %v4496_v22  ;;  %5803 = vtanh.f32 %v4553_v38 }
 0x79f   :  { %v11161_v47 = vsel %vm11092_vm7, %v12688_v51, %v4413_v2  ;;  %v4453_v19 = vmul.f32 %v10980_v5, %v4452_v14  ;;  %vm4485_vm10 = vweird.f32 %v10940_v30  ;;  %v11173_v41 = vor.u32 1.1754944e-38, %v4491_v20  ;;  %vm11265_vm8 = vmor %vm4470_vm0, %vm4471_vm1  ;;  %v12732_v30 = vld [vmem:[#allocation65_spill] sm:$0xff] }
 0x7a0   :  { %5805 = vtanh.f32 %v4554_v49  ;;  %v4428_v21 = vsel %vm11167_vm9, %v10871_v54, %v4424_v1  ;;  %v4512_v35 = vsub.f32 1.0, %v4511_v3  ;;  %v4557_v28 = vadd.f32 %v4549_v32, %v12691_v18 }
 0x7a1   :  { %5807 = vtanh.f32 %v4555_v10  ;;  %v11179_v8 = vpop.eup %5797  ;;  %v4439_v9 = vadd.f32 %v10882_v50, %v4438_v24  ;;  %v4468_v55 = vmul.f32 %v11075_v26, %v4467_v59  ;;  %v12692_v14 = vand.u32 2147483647, %v10800_v12 }
 0x7a2   :  { %5809 = vtanh.f32 %v4556_v0  ;;  %v11184_v20 = vpop.eup %5799  ;;  %v4483_v54 = vmul.f32 %v11088_v42, %v4482_v44  ;;  %v4498_v62 = vmul.f32 %v11103_v34, %v4497_v17  ;;  %v4504_v56 = vand.u32 2147483647, %v10960_v4 }
 0x7a3   :  { %vm11188_vm13 = vcmp.eq.f32.partialorder %v12692_v14, 8.507059e+37  ;;  %v4574_v53 = vrot.slane %v11179_v8, 7  ;;  %v11196_v61 = vpop.eup %5801  ;;  %v11201_v36 = vsel %vm11127_vm14, %v10975_v31, %v4428_v21  ;;  %v4454_v15 = vadd.f32 %v10980_v5, %v4453_v19 }
 0x7a4   :  { %v12695_v58 = vand.u32 2147483647, %v10830_v16  ;;  %vm11212_vm7 = vcmp.eq.f32.partialorder %v4474_v25, 8.507059e+37  ;;  %v4506_v6 = vand.u32 2147483648, %v10960_v4  ;;  %v4575_v13 = vrot.slane %v11184_v20, 6  ;;  %v11218_v31 = vpop.eup %5803 }
 0x7a5   :  { %vm4486_vm2 = vweird.f32 %v11088_v42  ;;  %vm11223_vm6 = vcmp.eq.f32.partialorder %v4489_v45, 8.507059e+37  ;;  %v4513_v23 = vmul.f32 %v11111_v7, %v4512_v35  ;;  %5811 = vtanh.f32 %v4557_v28  ;;  %v12738_v28 = vld [vmem:[#allocation35_spill] sm:$0xff] }
 0x7a6   :  { %vm11206_vm11 = vcmp.eq.f32.partialorder %v12695_v58, 8.507059e+37  ;;  %v4577_v25 = vrot.slane %v11196_v61, 5  ;;  %v11229_v60 = vpop.eup %5805  ;;  %v4469_v45 = vadd.f32 %v11075_v26, %v4468_v55  ;;  %vm4501_vm14 = vweird.f32 %v11103_v34  ;;  %vm11274_vm5 = vmor %vm4485_vm10, %vm4486_vm2 }
 0x7a7   :  { %vm12704_vm9 = vcmask 1041409   ;;  %v4579_v2 = vrot.slane %v11218_v31, 4  ;;  %v5808_v1 = vpop.eup %5807  ;;  %v4484_v12 = vadd.f32 %v11088_v42, %v4483_v54  ;;  %v4499_v49 = vadd.f32 %v11103_v34, %v4498_v62 }
 0x7a8   :  { %v4576_v38 = vsel %vm12704_vm9, %v4575_v13, %v4574_v53  ;;  %vm12707_vm12 = vcmask 1042434   ;;  %v4581_v32 = vrot.slane %v11229_v60, 3  ;;  %v5810_v27 = vpop.eup %5809  ;;  %v4443_v10 = vsel %vm11235_vm15, %v10882_v50, %v4439_v9  ;;  %v12722_v9 = vld [vmem:[#allocation32_spill] sm:$0xff] }
 0x7a9   :  { %v4578_v3 = vsel %vm12707_vm12, %v4577_v25, %v4576_v38  ;;  %v4458_v16 = vsel %vm11247_vm3, %v10980_v5, %v4454_v15  ;;  %vm12710_vm4 = vcmask 1043459   ;;  %v4583_v37 = vrot.slane %v5808_v1, 2 }
 0x7aa   :  { %v4580_v59 = vsel %vm12710_vm4, %v4579_v2, %v4578_v3  ;;  %v4514_v5 = vadd.f32 %v11111_v7, %v4513_v23  ;;  %vm4516_vm3 = vweird.f32 %v11111_v7  ;;  %vm12713_vm15 = vcmask 1044484  }
 0x7ab   :  { %v4582_v40 = vsel %vm12713_vm15, %v4581_v32, %v4580_v59  ;;  %v4585_v0 = vrot.slane %v5810_v27, 1  ;;  %v4473_v44 = vsel %vm11265_vm8, %v11075_v26, %v4469_v45  ;;  %vm12714_vm0 = vweird.f32 %v10960_v4  ;;  %v5812_v19 = vpop.eup %5811 }
 0x7ac   :  { %vm11288_vm1 = vmor %vm12714_vm0, %vm4501_vm14  ;;  %v4519_v17 = vand.u32 2147483647, %v10973_v57  ;;  %v4521_v51 = vand.u32 2147483648, %v10973_v57  ;;  %vm12717_vm10 = vcmask 1045509   ;;  %v4488_v21 = vsel %vm11274_vm5, %v11088_v42, %v4484_v12 }
 0x7ad   :  { %v4584_v11 = vsel %vm12717_vm10, %v4583_v37, %v4582_v40  ;;  %v4503_v26 = vsel %vm11288_vm1, %v11103_v34, %v4499_v49  ;;  %vm4515_vm2 = vweird.f32 %v10973_v57  ;;  %vm12718_vm14 = vcmask 1046534   ;;  %v12729_v37 = vld [vmem:[#allocation63_spill] sm:$0xff]  ;;  %vm12754_vm5 = vmmov %vm12713_vm15 }
 0x7ae   :  { %v4586_v4 = vsel %vm12718_vm14, %v4585_v0, %v4584_v11  ;;  %v4448_v35 = vsel %vm11188_vm13, %v10977_v48, %v4443_v10  ;;  %vm4505_vm9 = vcmp.eq.f32.partialorder %v4504_v56, 8.507059e+37  ;;  %v4507_v18 = vor.u32 1.1754944e-38, %v4506_v6  ;;  %vm11308_vm12 = vmor %vm4515_vm2, %vm4516_vm3  ;;  %v12731_v0 = vld [vmem:[#allocation64_spill] sm:$0xff] }
 0x7af   :  { %vm12721_vm8 = vcmask 1047559   ;;  %v4463_v57 = vsel %vm11206_vm11, %v11003_v43, %v4458_v16  ;;  %v4478_v34 = vsel %vm11212_vm7, %v11005_v29, %v4473_v44  ;;  %v4518_v48 = vsel %vm11308_vm12, %v11111_v7, %v4514_v5  ;;  %v12730_v5 = vld [vmem:[#allocation62_spill] sm:$0xff]  ;;  %vm12757_vm15 = vmmov %vm12717_vm10 }
 0x7b0   :  { %v4587_v42 = vsel %vm12721_vm8, %v5812_v19, %v4586_v4  ;;  %vm4834_vm13 = vcmask 1044480   ;;  %v4493_v14 = vsel %vm11223_vm6, %v11173_v41, %v4488_v21  ;;  %v4508_v46 = vsel %vm4505_vm9, %v4507_v18, %v4503_v26  ;;  %v12736_v4 = vld [vmem:[#allocation66_spill] sm:$0xff]  ;;  %vm12759_vm0 = vmmov %vm12718_vm14 }
 0x7b1   :  { %v4589_v55 = vsub.f32 %v12722_v9, %v4587_v42  ;;  %vm4520_vm4 = vcmp.eq.f32.partialorder %v4519_v17, 8.507059e+37  ;;  %v4522_v54 = vor.u32 1.1754944e-38, %v4521_v51  ;;  %v12723_v49 = vrot.slane %v12722_v9, 1  ;;  %v12733_v51 = vld [vmem:[#allocation29_spill] sm:$0xff]  ;;  %vm12765_vm1 = vmmov %vm12721_vm8 }
 0x7b2   :  { %v12724_v32 = vrot.slane %v12722_v9, 2  ;;  %v12734_v11 = vrot.slane %v12733_v51, 6  ;;  %v12737_v18 = vperm.slane %v12733_v51, 0  ;;  %vm12747_vm11 = vcmask 1041409  }
 0x7b3   :  { %v4591_v62 = vrot.slane %v4589_v55, 1  ;;  %v4592_v43 = vrot.slane %v4589_v55, 2  ;;  %v4593_v56 = vrot.slane %v4589_v55, 3  ;;  %v4594_v53 = vrot.slane %v4589_v55, 4 }
 0x7b4   :  { %v4523_v15 = vsel %vm4520_vm4, %v4522_v54, %v4518_v48  ;;  %v4595_v29 = vrot.slane %v4589_v55, 5  ;;  %v4596_v58 = vrot.slane %v4589_v55, 6  ;;  %v4597_v52 = vrot.slane %v4589_v55, 7 }
 0x7b5   :  { %v4606_v7 = vmul.f32 %v4591_v62, %v11161_v47  ;;  %v4607_v39 = vmul.f32 %v4592_v43, %v11201_v36  ;;  %v4608_v6 = vmul.f32 %v4593_v56, %v4448_v35  ;;  %v4609_v13 = vmul.f32 %v4594_v53, %v4463_v57  ;;  %v12739_v57 = vld [vmem:[#allocation69_spill] sm:$0xff]  ;;  %v12741_v62 = vld [vmem:[#allocation30_spill] sm:$0xff]  ;;  %v12743_v53 = vld [vmem:[#allocation16_spill] sm:$0xff] }
 0x7b6   :  { %v4610_v23 = vmul.f32 %v4595_v29, %v4478_v34  ;;  %v4611_v22 = vmul.f32 %v4596_v58, %v4493_v14  ;;  %v4612_v41 = vmul.f32 %v4597_v52, %v4508_v46  ;;  %v4613_v25 = vmul.f32 %v4589_v55, %v4523_v15  ;;  %v12740_v46 = vld [vmem:[#allocation67_spill] sm:$0xff]  ;;  %v12742_v43 = vld [vmem:[#allocation38_spill] sm:$0xff]  ;;  %v12746_v52 = vld [vmem:[#allocation33_spill] sm:$0xff] }
 0x7b7   :  { %v4614_v63 = vadd.f32 %v11179_v8, %v4606_v7  ;;  %v4615_v45 = vadd.f32 %v11184_v20, %v4607_v39  ;;  %v4616_v38 = vadd.f32 %v11196_v61, %v4608_v6  ;;  %v4617_v2 = vadd.f32 %v11218_v31, %v4609_v13  ;;  %v12744_v15 = vld [vmem:[#allocation74_spill] sm:$0xff] }
 0x7b8   :  { %v4618_v33 = vadd.f32 %v11229_v60, %v4610_v23  ;;  %v4619_v12 = vadd.f32 %v5808_v1, %v4611_v22  ;;  %v4620_v47 = vadd.f32 %v5810_v27, %v4612_v41  ;;  %v4629_v36 = vrot.slane %v12722_v9, 7  ;;  %v12745_v58 = vld [vmem:[#allocation18_spill] sm:$0xff] }
 0x7b9   :  { %v4638_v3 = vsub.f32 %v4614_v63, %v12723_v49  ;;  %v4639_v10 = vsub.f32 %v4615_v45, %v12724_v32  ;;  %v12725_v8 = vrot.slane %v12722_v9, 3  ;;  %v12726_v20 = vrot.slane %v12722_v9, 4 }
 0x7ba   :  { %v4621_v24 = vadd.f32 %v5812_v19, %v4613_v25  ;;  %v12727_v31 = vrot.slane %v12722_v9, 5  ;;  %v12728_v1 = vrot.slane %v12722_v9, 6  ;;  %v4644_v59 = vsub.f32 %v4620_v47, %v4629_v36 }
 0x7bb   :  { %v4640_v16 = vsub.f32 %v4616_v38, %v12725_v8  ;;  %v4641_v61 = vsub.f32 %v4617_v2, %v12726_v20  ;;  %v4646_v50 = vmul.f32 %v4638_v3, %v12729_v37  ;;  %v4647_v40 = vmul.f32 %v4639_v10, %v12730_v5  ;;  %v12761_v37 = vld [vmem:[#allocation34_spill] sm:$0xff]  ;;  %v12762_v5 = vld [vmem:[#allocation31_spill] sm:$0xff] }
 0x7bc   :  { %v4642_v60 = vsub.f32 %v4618_v33, %v12727_v31  ;;  %v4643_v27 = vsub.f32 %v4619_v12, %v12728_v1  ;;  %v4756_v21 = vperm.slane %v12734_v11, 0  ;;  %v12735_v19 = vrot.slane %v12733_v51, 7 }
 0x7bd   :  { %v4648_v44 = vmul.f32 %v4640_v16, %v12731_v0  ;;  %v4649_v17 = vmul.f32 %v4641_v61, %v12732_v30  ;;  %v4835_v42 = vsel %vm4834_vm13, %v12738_v28, %v12737_v18  ;;  %v4662_v48 = vrot.slane %v4646_v50, 7 }
 0x7be   :  { %v4757_v26 = vperm.slane %v12735_v19, 0  ;;  %v4650_v35 = vmul.f32 %v4642_v60, %v12736_v4  ;;  %v4651_v34 = vmul.f32 %v4643_v27, %v12739_v57  ;;  %v4663_v55 = vrot.slane %v4647_v40, 6  ;;  %v12763_v40 = vld [vmem:[#allocation20_spill] sm:$0xff] }
 0x7bf   :  { %v4665_v14 = vrot.slane %v4648_v44, 5  ;;  %v4652_v54 = vmul.f32 %v4644_v59, %v12740_v46  ;;  %v4836_v56 = vsel %vm4834_vm13, %v12742_v43, %v12741_v62  ;;  %v4837_v29 = vsel %vm4834_vm13, %v12744_v15, %v12743_v53  ;;  %v12760_v59 = vld [vmem:[#allocation71_spill] sm:$0xff] }
 0x7c0   :  { %v4838_v7 = vsel %vm4834_vm13, %v12746_v52, %v12745_v58  ;;  %v4645_v39 = vsub.f32 %v4621_v24, %v12722_v9  ;;  %v4664_v6 = vsel %vm12747_vm11, %v4663_v55, %v4662_v48  ;;  %v4667_v13 = vrot.slane %v4649_v17, 4  ;;  %v12764_v44 = vld [vmem:[#allocation23_spill] sm:$0xff]  ;;  %v12766_v17 = vld [vmem:[#allocation26_spill] sm:$0xff] }
 0x7c1   :  { %v4766_v23 = vperm.slane %v12722_v9, 0  ;;  %vm12748_vm7 = vcmask 1042434   ;;  %v4669_v41 = vrot.slane %v4650_v35, 3  ;;  %v12749_v25 = vmov %v12723_v49 }
 0x7c2   :  { %v4666_v22 = vsel %vm12748_vm7, %v4665_v14, %v4664_v6  ;;  %v4767_v63 = vperm.slane %v12749_v25, 0  ;;  %v12750_v45 = vmov %v12724_v32  ;;  %vm12751_vm6 = vcmask 1043459  }
 0x7c3   :  { %v4768_v38 = vperm.slane %v12750_v45, 0  ;;  %v4668_v2 = vsel %vm12751_vm6, %v4667_v13, %v4666_v22  ;;  %v4671_v33 = vrot.slane %v4651_v34, 2  ;;  %v12752_v12 = vmov %v12725_v8 }
 0x7c4   :  { %v4769_v47 = vperm.slane %v12752_v12, 0  ;;  %v12753_v49 = vmov %v12726_v20  ;;  %v4670_v32 = vsel %vm12754_vm5, %v4669_v41, %v4668_v2  ;;  %v4673_v10 = vrot.slane %v4652_v54, 1  ;;  %v12756_v20 = vld [vmem:[#allocation68_spill] sm:$0xff] }
 0x7c5   :  { %v4770_v3 = vperm.slane %v12753_v49, 0  ;;  %v12755_v8 = vmov %v12727_v31  ;;  %vm4843_vm3 = vcmask 1045504   ;;  %v4653_v61 = vmul.f32 %v4645_v39, %v12756_v20 }
 0x7c6   :  { %v4771_v16 = vperm.slane %v12755_v8, 0  ;;  %v4672_v24 = vsel %vm12757_vm15, %v4671_v33, %v4670_v32  ;;  %v12758_v31 = vmov %v12728_v1  ;;  %v4773_v1 = vperm.slane %v4629_v36, 0 }
 0x7c7   :  { %v4772_v60 = vperm.slane %v12758_v31, 0  ;;  %v4674_v27 = vsel %vm12759_vm0, %v4673_v10, %v4672_v24  ;;  %v4839_v50 = vsel %vm4834_vm13, %v12761_v37, %v12760_v59  ;;  %v4840_v0 = vsel %vm4834_vm13, %v12763_v40, %v12762_v5 }
 0x7c8   :  { %v4841_v36 = vsel %vm4834_vm13, %v12764_v44, %v4756_v21  ;;  %v4675_v30 = vsel %vm12765_vm1, %v4653_v61, %v4674_v27  ;;  %v4842_v51 = vsel %vm4834_vm13, %v12766_v17, %v4757_v26  ;;  %v4844_v11 = vsel %vm4843_vm3, %v4835_v42, %v4766_v23 }
 0x7c9   :  { %v4845_v19 = vsel %vm4843_vm3, %v4836_v56, %v4767_v63  ;;  %v4677_v4 = vadd.f32 %v4675_v30, %v12722_v9  ;;  %v4846_v35 = vsel %vm4843_vm3, %v4837_v29, %v4768_v38  ;;  %v4847_v18 = vsel %vm4843_vm3, %v4838_v7, %v4769_v47 }
 0x7ca   :  { %v4848_v28 = vsel %vm4843_vm3, %v4839_v50, %v4770_v3  ;;  %v4849_v21 = vsel %vm4843_vm3, %v4840_v0, %v4771_v16  ;;  %v4850_v57 = vsel %vm4843_vm3, %v4841_v36, %v4772_v60  ;;  %v4851_v26 = vsel %vm4843_vm3, %v4842_v51, %v4773_v1 }
 0x7cb   :  { %vm4852_vm10 = vcmask 1046528   ;;  %4873 = vst [vmem:[#allocation9] sm:$0xff] %v4677_v4  ;;  %v4679_v42 = vrot.slane %v4677_v4, 1  ;;  %v4680_v34 = vrot.slane %v4677_v4, 2  ;;  %v4681_v48 = vrot.slane %v4677_v4, 3 }
 0x7cc   :  { %v4682_v9 = vrot.slane %v4677_v4, 4  ;;  %v4683_v55 = vrot.slane %v4677_v4, 5  ;;  %v4684_v14 = vrot.slane %v4677_v4, 6  ;;  %v4685_v46 = vrot.slane %v4677_v4, 7  ;;  %4897 = dma.vmem_to_hbm [thread:$0]  %s4893_s28, 128, %s4895_s2, [#allocation10]  }
 0x7cd   :  { %v4782_v54 = vperm.slane %v4677_v4, 0  ;;  %v4783_v62 = vperm.slane %v4679_v42, 0  ;;  %v4784_v43 = vperm.slane %v4680_v34, 0  ;;  %v4785_v56 = vperm.slane %v4681_v48, 0 }
 0x7ce   :  { %v4786_v53 = vperm.slane %v4682_v9, 0  ;;  %v4787_v15 = vperm.slane %v4683_v55, 0  ;;  %v4788_v29 = vperm.slane %v4684_v14, 0  ;;  %v4789_v58 = vperm.slane %v4685_v46, 0 }
 0x7cf   :  { %v4853_v52 = vsel %vm4852_vm10, %v4844_v11, %v4782_v54  ;;  %v4854_v7 = vsel %vm4852_vm10, %v4845_v19, %v4783_v62  ;;  %v4855_v39 = vsel %vm4852_vm10, %v4846_v35, %v4784_v43  ;;  %v4856_v6 = vsel %vm4852_vm10, %v4847_v18, %v4785_v56 }
 0x7d0   :  { %v4857_v13 = vsel %vm4852_vm10, %v4848_v28, %v4786_v53  ;;  %4861 = vst [vmem:[#allocation8] sm:$0xff] %v4853_v52  ;;  %v4858_v23 = vsel %vm4852_vm10, %v4849_v21, %v4787_v15  ;;  %v4859_v22 = vsel %vm4852_vm10, %v4850_v57, %v4788_v29  ;;  %v4860_v41 = vsel %vm4852_vm10, %v4851_v26, %v4789_v58 }
 0x7d1   :  { %4862 = vst [vmem:[#allocation8 + $0x8] sm:$0xff] %v4854_v7 }
 0x7d2   :  { %4863 = vst [vmem:[#allocation8 + $0x10] sm:$0xff] %v4855_v39 }
 0x7d3   :  { %4864 = vst [vmem:[#allocation8 + $0x18] sm:$0xff] %v4856_v6 }
 0x7d4   :  { %4865 = vst [vmem:[#allocation8 + $0x20] sm:$0xff] %v4857_v13 }
 0x7d5   :  { %4866 = vst [vmem:[#allocation8 + $0x28] sm:$0xff] %v4858_v23 }
 0x7d6   :  { %4867 = vst [vmem:[#allocation8 + $0x30] sm:$0xff] %v4859_v22 }
 0x7d7   :  { %4868 = vst [vmem:[#allocation8 + $0x38] sm:$0xff] %v4860_v41 }
 0x7d8   :  { %4886 = dma.vmem_to_hbm [thread:$0]  %s4879_s30, 1024, %s4881_s8, [#allocation5], %s5930_s9, %s5930_s9, %s5931_s10  }
 0x7d9   :  { %5917 = dma.done.wait [#allocation5], 1024  }
 0x7da   :  { %5918 = vsyncadd [#allocation5], 4294966272 }
 0x7db   :  { %5919 = dma.done.wait [#allocation10], 128  }
 0x7dc   :  { %5920 = vsyncadd [#allocation10], 4294967168 }
 0x7dd   :  { %4906 = vsyncpa [#allocation4], 1 }
 0x7de   :  { %4907 = vsyncpa [#allocation7], 1 }
 0x7df   :  { %4908 = vsyncpa [#allocation5], 1 }
 0x7e0   :  { %4909 = vsyncpa [#allocation10], 1 }

</bundles_post_ra>
